<compile_context>
chip_gen: v7x
topology: tpu7x:2x2x1
jax: 0.10.0
libtpu: 0.0.40
codegen_flags: <defaults>
</compile_context>

<pallas_src>
import jax
import jax.numpy as jnp
from jax.experimental import pallas as pl
from jax.experimental.pallas import tpu as pltpu


INPUT_DIM = 17
INPUT_DIM_PAD = 128     # lane-aligned in-dim for the first matmul
HIDDEN_DIM = 50
OUTPUT_DIM = 1
LAYERS_NUM = 4          # -> 3 hidden Linear+Sin stages, 1 final Linear


def _round_up(x, m):
    return ((x + m - 1) // m) * m


def mlp_kernel(x_ref,
               w1_ref, b1_ref,
               w2_ref, b2_ref,
               w3_ref, b3_ref,
               w4_ref, b4_ref,
               o_ref):
    # Feature-major layout: lanes = batch rows, sublanes = features.
    xt = x_ref[...]                                            # (128, TB) f32

    # layer 0: Linear(17 -> 50) + Sin   (in-dim zero-padded to 128)
    h = jnp.dot(w1_ref[...], xt, preferred_element_type=jnp.float32) + b1_ref[...]
    h = jnp.sin(h)                                             # (50, TB)

    # layer 1: Linear(50 -> 50) + Sin (+ Dropout == identity in eval)
    h = jnp.dot(w2_ref[...], h, preferred_element_type=jnp.float32) + b2_ref[...]
    h = jnp.sin(h)

    # layer 2: Linear(50 -> 50) + Sin (+ Dropout == identity in eval)
    h = jnp.dot(w3_ref[...], h, preferred_element_type=jnp.float32) + b3_ref[...]
    h = jnp.sin(h)

    # layer 3: Linear(50 -> 1)  -> already lane-dense (1, TB) row
    y = jnp.dot(w4_ref[...], h, preferred_element_type=jnp.float32) + b4_ref[...]

    o_ref[...] = y                                             # (1, TB)


def _choose_tile(B, batch_tile):
    """Pick a lane-aligned batch tile; prefer >= 2 grid steps (v7x megacore)."""
    TB = min(batch_tile, _round_up(B, 128))
    if _round_up(B, TB) // TB < 2 and TB > 128:
        TB = _round_up(max(128, TB // 2), 128)
    B_pad = _round_up(B, TB)
    return TB, B_pad


def mlp_forward(x, params, *, batch_tile=1024):
    """x: (B, 17) float32.  params: torch-layout weights w_i (out, in) and
    biases b_i (out, 1).  Returns (B, 1) float32."""
    B, D = x.shape
    assert D == INPUT_DIM

    TB, B_pad = _choose_tile(B, batch_tile)
    grid = (B_pad // TB,)

    # Layout plumbing in the wrapper: transpose to feature-major and zero-pad
    # features -> 128 lanes worth of sublanes, batch -> multiple of TB lanes.
    x_t = jnp.pad(x.T.astype(jnp.float32),
                  ((0, INPUT_DIM_PAD - D), (0, B_pad - B)))       # (128, B_pad)
    w1p = jnp.pad(params["w1"], ((0, 0), (0, INPUT_DIM_PAD - D)))  # (50, 128)

    def full_spec(a):
        # Whole-array block, invariant across the batch grid (no re-DMA).
        return pl.BlockSpec(a.shape, lambda i: (0, 0))

    in_specs = [
        pl.BlockSpec((INPUT_DIM_PAD, TB), lambda i: (0, i)),       # x (lane-dense)
        full_spec(w1p), full_spec(params["b1"]),
        full_spec(params["w2"]), full_spec(params["b2"]),
        full_spec(params["w3"]), full_spec(params["b3"]),
        full_spec(params["w4"]), full_spec(params["b4"]),
    ]
    # Lane-dense output: one (1, TB) row per grid step -> unmasked full stores.
    out_spec = pl.BlockSpec((1, TB), lambda i: (0, i))

    out = pl.pallas_call(
        mlp_kernel,
        out_shape=jax.ShapeDtypeStruct((1, B_pad), jnp.float32),
        grid_spec=pltpu.PrefetchScalarGridSpec(
            num_scalar_prefetch=0,
            grid=grid,
            in_specs=in_specs,
            out_specs=out_spec,
        ),
        compiler_params=pltpu.CompilerParams(
            dimension_semantics=("parallel",)),
    )(x_t,
      w1p, params["b1"],
      params["w2"], params["b2"],
      params["w3"], params["b3"],
      params["w4"], params["b4"])

    return out.reshape(-1)[:B].reshape(B, OUTPUT_DIM)


def init_params(key):
    """Deterministic init mirroring the module: xavier_normal_ weights (torch
    (out, in) layout), torch.nn.Linear default uniform biases stored as
    (out, 1) columns for the feature-major kernel."""
    dims = [(HIDDEN_DIM, INPUT_DIM),
            (HIDDEN_DIM, HIDDEN_DIM),
            (HIDDEN_DIM, HIDDEN_DIM),
            (OUTPUT_DIM, HIDDEN_DIM)]
    params = {}
    keys = jax.random.split(key, 2 * len(dims))
    for idx, (fan_out, fan_in) in enumerate(dims):
        wkey, bkey = keys[2 * idx], keys[2 * idx + 1]
        std = (2.0 / (fan_in + fan_out)) ** 0.5            # xavier normal gain=1
        w = std * jax.random.normal(wkey, (fan_out, fan_in), dtype=jnp.float32)
        bound = 1.0 / (fan_in ** 0.5)                      # torch Linear bias init
        b = jax.random.uniform(bkey, (fan_out, 1), dtype=jnp.float32,
                               minval=-bound, maxval=bound)
        params[f"w{idx + 1}"] = w
        params[f"b{idx + 1}"] = b
    return params


def mlp_reference(x, params):
    h = jnp.sin(x @ params["w1"].T + params["b1"].T)
    h = jnp.sin(h @ params["w2"].T + params["b2"].T)
    h = jnp.sin(h @ params["w3"].T + params["b3"].T)
    return h @ params["w4"].T + params["b4"].T


if __name__ == "__main__":
    key = jax.random.PRNGKey(0)
    pkey, xkey = jax.random.split(key)
    params = init_params(pkey)

    B = 300   # small batch; default tiling gives a 2-step grid (TB=256, pad 512)
    x = jax.random.normal(xkey, (B, INPUT_DIM), dtype=jnp.float32)

    out = mlp_forward(x, params)
    out = jax.block_until_ready(out)

    ref = mlp_reference(x, params)
    assert out.shape == (B, OUTPUT_DIM), out.shape
    assert jnp.allclose(out, ref, atol=1e-4, rtol=1e-4), (
        float(jnp.max(jnp.abs(out - ref))))

    print("KERNEL_OK")
</pallas_src>

<mosaic_0001>
module attributes {stable_mosaic.version = 11 : i64} {
  func.func @mlp_kernel(%arg0: i32, %arg1: memref<128x256xf32, #tpu.memory_space<vmem>>, %arg2: memref<50x128xf32, #tpu.memory_space<vmem>>, %arg3: memref<50x1xf32, #tpu.memory_space<vmem>>, %arg4: memref<50x50xf32, #tpu.memory_space<vmem>>, %arg5: memref<50x1xf32, #tpu.memory_space<vmem>>, %arg6: memref<50x50xf32, #tpu.memory_space<vmem>>, %arg7: memref<50x1xf32, #tpu.memory_space<vmem>>, %arg8: memref<1x50xf32, #tpu.memory_space<vmem>>, %arg9: memref<1x1xf32, #tpu.memory_space<vmem>>, %arg10: memref<1x256xf32, #tpu.memory_space<vmem>>) attributes {dimension_semantics = [#tpu.dimension_semantics<parallel>], iteration_bounds = array<i64: 2>, scalar_prefetch = 0 : i64, scratch_operands = 0 : i64, tpu.core_type = #tpu.core_type<tc>, window_params = [{transform_indices = @transform_0, window_bounds = array<i64: 128, 256>}, {pipeline_mode = #tpu.pipeline_mode<synchronous>, transform_indices = @transform_1, window_bounds = array<i64: 50, 128>}, {pipeline_mode = #tpu.pipeline_mode<synchronous>, transform_indices = @transform_2, window_bounds = array<i64: 50, 1>}, {pipeline_mode = #tpu.pipeline_mode<synchronous>, transform_indices = @transform_3, window_bounds = array<i64: 50, 50>}, {pipeline_mode = #tpu.pipeline_mode<synchronous>, transform_indices = @transform_4, window_bounds = array<i64: 50, 1>}, {pipeline_mode = #tpu.pipeline_mode<synchronous>, transform_indices = @transform_5, window_bounds = array<i64: 50, 50>}, {pipeline_mode = #tpu.pipeline_mode<synchronous>, transform_indices = @transform_6, window_bounds = array<i64: 50, 1>}, {pipeline_mode = #tpu.pipeline_mode<synchronous>, transform_indices = @transform_7, window_bounds = array<i64: 1, 50>}, {pipeline_mode = #tpu.pipeline_mode<synchronous>, transform_indices = @transform_8, window_bounds = array<i64: 1, 1>}, {transform_indices = @transform_9, window_bounds = array<i64: 1, 256>}]} {
    %c0 = arith.constant 0 : index
    %c0_0 = arith.constant 0 : index
    %0 = vector.load %arg1[%c0, %c0_0] : memref<128x256xf32, #tpu.memory_space<vmem>>, vector<128x256xf32>
    %c0_1 = arith.constant 0 : index
    %c0_2 = arith.constant 0 : index
    %1 = vector.load %arg2[%c0_1, %c0_2] : memref<50x128xf32, #tpu.memory_space<vmem>>, vector<50x128xf32>
    %cst = arith.constant dense<0.000000e+00> : vector<50x256xf32>
    %2 = tpu.matmul %1, %0, %cst {dimension_numbers = #tpu.dot_dimension_numbers<[1], [0], [0], [1], [0, 0, 1, 1], [], []>} : vector<50x128xf32>, vector<128x256xf32>, vector<50x256xf32> -> vector<50x256xf32>
    %c0_3 = arith.constant 0 : index
    %c0_4 = arith.constant 0 : index
    %3 = vector.load %arg3[%c0_3, %c0_4] : memref<50x1xf32, #tpu.memory_space<vmem>>, vector<50x1xf32>
    %4 = vector.broadcast %3 : vector<50x1xf32> to vector<50x256xf32>
    %5 = arith.addf %2, %4 : vector<50x256xf32>
    %6 = math.sin %5 : vector<50x256xf32>
    %c0_5 = arith.constant 0 : index
    %c0_6 = arith.constant 0 : index
    %7 = vector.load %arg4[%c0_5, %c0_6] : memref<50x50xf32, #tpu.memory_space<vmem>>, vector<50x50xf32>
    %cst_7 = arith.constant dense<0.000000e+00> : vector<50x256xf32>
    %8 = tpu.matmul %7, %6, %cst_7 {dimension_numbers = #tpu.dot_dimension_numbers<[1], [0], [0], [1], [0, 0, 1, 1], [], []>} : vector<50x50xf32>, vector<50x256xf32>, vector<50x256xf32> -> vector<50x256xf32>
    %c0_8 = arith.constant 0 : index
    %c0_9 = arith.constant 0 : index
    %9 = vector.load %arg5[%c0_8, %c0_9] : memref<50x1xf32, #tpu.memory_space<vmem>>, vector<50x1xf32>
    %10 = vector.broadcast %9 : vector<50x1xf32> to vector<50x256xf32>
    %11 = arith.addf %8, %10 : vector<50x256xf32>
    %12 = math.sin %11 : vector<50x256xf32>
    %c0_10 = arith.constant 0 : index
    %c0_11 = arith.constant 0 : index
    %13 = vector.load %arg6[%c0_10, %c0_11] : memref<50x50xf32, #tpu.memory_space<vmem>>, vector<50x50xf32>
    %cst_12 = arith.constant dense<0.000000e+00> : vector<50x256xf32>
    %14 = tpu.matmul %13, %12, %cst_12 {dimension_numbers = #tpu.dot_dimension_numbers<[1], [0], [0], [1], [0, 0, 1, 1], [], []>} : vector<50x50xf32>, vector<50x256xf32>, vector<50x256xf32> -> vector<50x256xf32>
    %c0_13 = arith.constant 0 : index
    %c0_14 = arith.constant 0 : index
    %15 = vector.load %arg7[%c0_13, %c0_14] : memref<50x1xf32, #tpu.memory_space<vmem>>, vector<50x1xf32>
    %16 = vector.broadcast %15 : vector<50x1xf32> to vector<50x256xf32>
    %17 = arith.addf %14, %16 : vector<50x256xf32>
    %18 = math.sin %17 : vector<50x256xf32>
    %c0_15 = arith.constant 0 : index
    %c0_16 = arith.constant 0 : index
    %19 = vector.load %arg8[%c0_15, %c0_16] : memref<1x50xf32, #tpu.memory_space<vmem>>, vector<1x50xf32>
    %cst_17 = arith.constant dense<0.000000e+00> : vector<1x256xf32>
    %20 = tpu.matmul %19, %18, %cst_17 {dimension_numbers = #tpu.dot_dimension_numbers<[1], [0], [0], [1], [0, 0, 1, 1], [], []>} : vector<1x50xf32>, vector<50x256xf32>, vector<1x256xf32> -> vector<1x256xf32>
    %c0_18 = arith.constant 0 : index
    %c0_19 = arith.constant 0 : index
    %21 = vector.load %arg9[%c0_18, %c0_19] : memref<1x1xf32, #tpu.memory_space<vmem>>, vector<1x1xf32>
    %22 = vector.broadcast %21 : vector<1x1xf32> to vector<1x256xf32>
    %23 = arith.addf %20, %22 : vector<1x256xf32>
    %c0_20 = arith.constant 0 : index
    %c0_21 = arith.constant 0 : index
    %24 = vector.load %arg10[%c0_20, %c0_21] : memref<1x256xf32, #tpu.memory_space<vmem>>, vector<1x256xf32>
    tpu.vector_store %arg10[%c0_20, %c0_21], %23 {strides = array<i32>} : memref<1x256xf32, #tpu.memory_space<vmem>>, vector<1x256xf32>,
    return
  }
  func.func @transform_0(%arg0: i32) -> (i32, i32) {
    %c0_i32 = arith.constant 0 : i32
    %c0_i32_0 = arith.constant 0 : i32
    return %c0_i32, %arg0 : i32, i32
  }
  func.func @transform_1(%arg0: i32) -> (i32, i32) {
    %c0_i32 = arith.constant 0 : i32
    %c0_i32_0 = arith.constant 0 : i32
    %c0_i32_1 = arith.constant 0 : i32
    return %c0_i32, %c0_i32_0 : i32, i32
  }
  func.func @transform_2(%arg0: i32) -> (i32, i32) {
    %c0_i32 = arith.constant 0 : i32
    %c0_i32_0 = arith.constant 0 : i32
    %c0_i32_1 = arith.constant 0 : i32
    return %c0_i32, %c0_i32_0 : i32, i32
  }
  func.func @transform_3(%arg0: i32) -> (i32, i32) {
    %c0_i32 = arith.constant 0 : i32
    %c0_i32_0 = arith.constant 0 : i32
    %c0_i32_1 = arith.constant 0 : i32
    return %c0_i32, %c0_i32_0 : i32, i32
  }
  func.func @transform_4(%arg0: i32) -> (i32, i32) {
    %c0_i32 = arith.constant 0 : i32
    %c0_i32_0 = arith.constant 0 : i32
    %c0_i32_1 = arith.constant 0 : i32
    return %c0_i32, %c0_i32_0 : i32, i32
  }
  func.func @transform_5(%arg0: i32) -> (i32, i32) {
    %c0_i32 = arith.constant 0 : i32
    %c0_i32_0 = arith.constant 0 : i32
    %c0_i32_1 = arith.constant 0 : i32
    return %c0_i32, %c0_i32_0 : i32, i32
  }
  func.func @transform_6(%arg0: i32) -> (i32, i32) {
    %c0_i32 = arith.constant 0 : i32
    %c0_i32_0 = arith.constant 0 : i32
    %c0_i32_1 = arith.constant 0 : i32
    return %c0_i32, %c0_i32_0 : i32, i32
  }
  func.func @transform_7(%arg0: i32) -> (i32, i32) {
    %c0_i32 = arith.constant 0 : i32
    %c0_i32_0 = arith.constant 0 : i32
    %c0_i32_1 = arith.constant 0 : i32
    return %c0_i32, %c0_i32_0 : i32, i32
  }
  func.func @transform_8(%arg0: i32) -> (i32, i32) {
    %c0_i32 = arith.constant 0 : i32
    %c0_i32_0 = arith.constant 0 : i32
    %c0_i32_1 = arith.constant 0 : i32
    return %c0_i32, %c0_i32_0 : i32, i32
  }
  func.func @transform_9(%arg0: i32) -> (i32, i32) {
    %c0_i32 = arith.constant 0 : i32
    %c0_i32_0 = arith.constant 0 : i32
    return %c0_i32, %arg0 : i32, i32
  }
}

</mosaic_0001>

<bundles_post_ra>
// kernel: tpu_custom_call.1
= control target key start
LH: loop header
LB: loop body
LE: loop exit
PB: predicated region body
PF: predicated region fallthrough
CT: control target
= control target key end

     0   :  { %s10624_s0 = inlined_call_operand.hbm [shape: f32[128,512], index: 0, kind: input, shape index: {}]   ;;  %s10625_s1 = inlined_call_operand.vmem [shape: f32[50,128], index: 1, kind: input, shape index: {}]   ;;  %s10626_s2 = inlined_call_operand.vmem [shape: f32[50,1], index: 2, kind: input, shape index: {}]   ;;  %s10627_s3 = inlined_call_operand.vmem [shape: f32[50,50], index: 3, kind: input, shape index: {}]   ;;  %s10628_s4 = inlined_call_operand.vmem [shape: f32[50,1], index: 4, kind: input, shape index: {}]   ;;  %s10629_s5 = inlined_call_operand.vmem [shape: f32[50,50], index: 5, kind: input, shape index: {}]   ;;  %s10630_s6 = inlined_call_operand.vmem [shape: f32[50,1], index: 6, kind: input, shape index: {}]   ;;  %s10631_s7 = inlined_call_operand.vmem [shape: f32[1,50], index: 7, kind: input, shape index: {}]   ;;  %s10632_s8 = inlined_call_operand.<no memory space> [shape: f32[1,1], index: 8, kind: input, shape index: {}]   ;;  %s10633_s9 = inlined_call_operand.hbm [shape: f32[1,512], index: 9, kind: output, shape index: {}]  }
   0x1   :  { %v14_v0 = vstv %s10632_s8 }
   0x2   :  { %15 = vst [vmem:[#allocation2] sm:$0x1] %v14_v0 }
   0x3   :  { %16 = vsyncpa [#allocation4], 0 }
   0x4   :  { %18 = vsyncpa [#allocation4 + $0x1], 0 }
   0x5   :  { %19 = vsyncpa [#allocation5], 0 }
   0x6   :  { %21 = vsyncpa [#allocation5 + $0x1], 0  ;;  %s6312_s11 = smov 0   ;;  %s6314_s12 = smov 0  }
   0x7   :  { %s6316_s13 = smov 0   ;;  %s6318_s14 = smov 0  }
   0x8 LB: > { %s6333_s8 = sadd.s32 4294967295, %s6243_s14   ;;  %s5478_s15 = sadd.s32 4294967294, %s6243_s14   ;;  %s6243_s14 = sphi %s6318_s14, %s11189_s14   ;;  %s6239_s13 = sphi %s6316_s13, %s11188_s13   ;;  %s6235_s12 = sphi %s6314_s12, %s11187_s12   ;;  %s6231_s11 = sphi %s6312_s11, %s11186_s11  }
   0x9   : > { %s6337_s16 = sadd.s32 1, %s6243_s14   ;;  %s34_s17 = sadd.s32 1, %s6239_s13 }
   0xa   : > { %s31_s18 = ssub.s32 %s6243_s14, %s6337_s16  ;;  %p41_p0 = scmp.ne.s32.totalorder %s6239_s13, %s6235_s12 }
   0xb   : > { %p32_p1 = scmp.eq.s32.totalorder %s31_s18, 0  ;;  %p42_p2 = scmp.eq.s32.totalorder %s6243_s14, 0 }
   0xc   : > { %p47_p3 = scmp.ne.s32.totalorder %s6235_s12, %s6231_s11  ;;  %p48_p4 = scmp.eq.s32.totalorder %s6333_s8, 0 }
   0xd   : > { %s6349_s19 = scalar_select %p32_p1, %s6239_s13, %s34_s17  }
   0xe   : > { %p6351_p5 = por %p42_p2, %p41_p0  ;;  %p6355_p6 = por %p48_p4, %p47_p3 }
   0xf   : > { %p239_p7 = scmp.eq.s32.totalorder %s6333_s8, 1  ;;  %p245_p8 = scmp.eq.s32.totalorder %s5478_s15, 1 }
  0x10   : > { %p5931_p10 = scmp.lt.s32.totalorder %s6243_s14, 2  ;;  %s289_s24 = sand.u32 1, %s6239_s13  }
  0x11   : > { %p6362_p11 = por %p239_p7, %p41_p0  ;;  %p6366_p12 = por %p245_p8, %p47_p3 }
  0x12   : > { %s5681_s25 = sshll.u32 %s6243_s14, 8  ;;  %s5481_s26 = sshll.u32 %s289_s24, 8 }
  0x13   : > { %s10802_s22 = scalar_select %p6362_p11, 1, 0 }
  0x14   : > { %s10803_s23 = scalar_select %p6366_p12, 1, 0 }
  0x15   : > { %s6375_s29 = scalar_lea.hbm %s10624_s0, %s5681_s25  ;;  %s293_s30 = scalar_lea.vmem [#allocation3], %s5481_s26 }
  0x16   : > { %s300_s10 = sshll.u32 %s293_s30, 4  ;;  %p6379_p13 = pnand %p5931_p10, %p6351_p5  ;;  %s6383_s10 = int_to_ptr.vmem [resolvable:$true] %s300_s10 }
  0x17   : > { %s6386_s17 = scalar_lea.sflag [#allocation4], %s289_s24  ;;  %s6147_s18 = scalar_lea.hbm %s6375_s29, 4096 }
  0x18   : > { %p6148_p1 = scmp.ne.s32.totalorder %s6375_s29, %s6147_s18  ;;  %p6149_p2 = pneg %p6379_p13 }
  0x19   : > { %s6152_s26 = scalar_lea.hbm %s10624_s0, 8192  ;;  %p6153_p5 = scmp.lt.u32.totalorder %s6375_s29, %s10624_s0 }
  0x1a   : > { %p6150_p3 = pnand %p6149_p2, %p6148_p1  ;;  %p6154_p7 = scmp.lt.u32.totalorder %s6152_s26, %s6147_s18 }
  0x1b   : > { %p6156_p10 = scmp.lt.u32.totalorder %s6147_s18, %s6375_s29 }
  0x1c   : > { %p6151_p4 = pneg %p6150_p3  ;;  %p6155_p8 = por %p6154_p7, %p6153_p5 }
  0x1e   : > { %p6157_p9 = por %p6156_p10, %p6155_p8 }
  0x20   : > { %p6158_p0 = pnand %p6157_p9, %p6151_p4 }
  0x22   : > { %6161 = shalt.err (!%p6158_p0)
}
  0x23   : > { %s6162_s24 = scalar_lea.vmem %s6383_s10, 4096  ;;  %s6245_s30 = smov [#allocation3]  }
  0x24   : > { %p6163_p1 = scmp.ne.s32.totalorder %s6383_s10, %s6162_s24  ;;  %s6167_s20 = sshll.u32 %s6245_s30, 4  ;;  %s6168_s20 = int_to_ptr.vmem [resolvable:$false] %s6167_s20 }
  0x25   : > { %s6169_s25 = scalar_lea.vmem %s6168_s20, 8192  ;;  %p6170_p11 = scmp.lt.s32.totalorder %s6383_s10, %s6168_s20 }
  0x26   : > { %p6165_p3 = pnand %p6163_p1, %p6149_p2  ;;  %p6171_p5 = scmp.lt.s32.totalorder %s6169_s25, %s6162_s24 }
  0x28   : > { %p6166_p12 = pneg %p6165_p3  ;;  %p6172_p7 = por %p6171_p5, %p6170_p11 }
  0x2a   : > { %p6173_p8 = pnand %p6172_p7, %p6166_p12 }
  0x2c   : > { %6176 = shalt.err (!%p6173_p8)
}
  0x2d   : > { %s6246_s18 = smov 512   ;;  %s6247_s26 = smov 256  }
  0x2e   : > { %s6248_s27 = smov 16   ;;  %p308_p9 = scmp.lt.s32.totalorder %s6243_s14, 3 }
  0x2f   : > { %5926 = dma.hbm_to_vmem [thread:$0]  (!%p6379_p13), %s6375_s29, 4096, %s6383_s10, %s6386_s17, %s6246_s18, %s6247_s26, %s6248_s27  }
  0x30   : > { %p10805_p0 = scmp.ge.s32.totalorder %s6243_s14, 1 }
  0x32   : > { %p309_p2 = pnand %p10805_p0, %p308_p9 }
  0x34   : > { %312 = sbr.rel (%p309_p2) target bundleno = 2059 (0x80b), region = 56 }
  0x3b   : > { %s6418_s28 = sand.u32 1, %s6235_s12  }
  0x3c   : > { %s5485_s24 = sshll.u32 %s6418_s28, 8  ;;  %s315_s30 = scalar_lea.sflag [#allocation4], %s6418_s28 }
  0x3d   : > { %s6422_s20 = scalar_lea.vmem [#allocation3], %s5485_s24 }
  0x3e   : > { %6222 = dma.done.wait (%p6355_p6), %s315_s30, 4096  }
  0x3f   : > { %6224 = vsyncadd (%p6355_p6), %s315_s30, 4294963200  ;;  %v10635_v1 = vmov 0.0   ;;  %v6250_v2 = vmov 0   ;;  %v356_v3 = vld [vmem:[%s6422_s20 + $0x8] sm:$0xff]  ;;  %v358_v4 = vld [vmem:[%s6422_s20 + $0x18] sm:$0xff]  ;;  %s5486_s15 = sshll.u32 %s6418_s28, 1 }
  0x40   : > { %500 = vmatprep.mubr.f32.mxu0 %v10635_v1  ;;  %5977 = vset.pattern.permute.xlu0 %v6250_v2  ;;  %v355_v5 = vld [vmem:[%s6422_s20] sm:$0xff]  ;;  %v5683_v6 = vpack.c.bf16 %v358_v4, %v356_v3  ;;  %v357_v7 = vld [vmem:[%s6422_s20 + $0x10] sm:$0xff]  ;;  %v360_v8 = vld [vmem:[%s6422_s20 + $0x28] sm:$0xff]  ;;  %s5682_s17 = sshll.u32 %s6333_s8, 5  ;;  %s352_s25 = scalar_lea.vmem [#allocation6], %s5486_s15 }
  0x41   : > { %5978 = vset.pattern.permute.xlu1 %v6250_v2  ;;  %2141 = vmatprep.mubr.f32.mxu1 %v10635_v1  ;;  %v362_v9 = vld [vmem:[%s6422_s20 + $0x38] sm:$0xff]  ;;  %v5685_v10 = vpack.c.bf16 %v357_v7, %v355_v5  ;;  %v359_v12 = vld [vmem:[%s6422_s20 + $0x20] sm:$0xff]  ;;  %v361_v13 = vld [vmem:[%s6422_s20 + $0x30] sm:$0xff]  ;;  %s5408_s18 = sshll.u32 %s352_s25, 4  ;;  %s10580_s24 = scalar_lea.hbm %s10633_s9, %s5682_s17  ;;  %s10582_s18 = int_to_ptr.vmem [resolvable:$true] %s5408_s18 }
  0x42   : > { %v5687_v11 = vpack.c.bf16 %v362_v9, %v360_v8  ;;  %v364_v14 = vld [vmem:[%s6422_s20 + $0x48] sm:$0xff]  ;;  %5684 = vmatprep.subr.bf16.mxu0 %v5683_v6  ;;  %v366_v15 = vld [vmem:[%s6422_s20 + $0x58] sm:$0xff]  ;;  %v5689_v16 = vpack.c.bf16 %v361_v13, %v359_v12  ;;  %v363_v18 = vld [vmem:[%s6422_s20 + $0x40] sm:$0xff]  ;;  %s5394_s30 = scalar_lea.sflag [#allocation5], %s6418_s28  ;;  %p11183_p11 = scmp.ne.s32.totalorder %s10802_s22, 0 }
  0x43   : > { %5686 = vmatpush1.bf16.msra.mxu0 %v5685_v10  ;;  %v5691_v17 = vpack.c.bf16 %v366_v15, %v364_v14  ;;  %v365_v19 = vld [vmem:[%s6422_s20 + $0x50] sm:$0xff]  ;;  %v368_v20 = vld [vmem:[%s6422_s20 + $0x68] sm:$0xff]  ;;  %v370_v21 = vld [vmem:[%s6422_s20 + $0x78] sm:$0xff]  ;;  %s6258_s8 = smov [#allocation6]  }
  0x44   : > { %5688 = vmatprep.subr.bf16.mxu0 %v5687_v11  ;;  %v5693_v22 = vpack.c.bf16 %v365_v19, %v363_v18  ;;  %v5695_v23 = vpack.c.bf16 %v370_v21, %v368_v20  ;;  %v367_v24 = vld [vmem:[%s6422_s20 + $0x60] sm:$0xff]  ;;  %v369_v25 = vld [vmem:[%s6422_s20 + $0x70] sm:$0xff]  ;;  %v372_v26 = vld [vmem:[%s6422_s20 + $0x88] sm:$0xff]  ;;  %s6181_s21 = sshll.u32 %s6258_s8, 4  ;;  %s6182_s21 = int_to_ptr.vmem [resolvable:$false] %s6181_s21 }
  0x45   : > { %v374_v27 = vld [vmem:[%s6422_s20 + $0x98] sm:$0xff]  ;;  %v5697_v28 = vpack.c.bf16 %v369_v25, %v367_v24  ;;  %v371_v29 = vld [vmem:[%s6422_s20 + $0x80] sm:$0xff]  ;;  %v373_v31 = vld [vmem:[%s6422_s20 + $0x90] sm:$0xff]  ;;  %s6183_s29 = scalar_lea.vmem %s6182_s21, 64  ;;  %p6184_p4 = scmp.lt.s32.totalorder %s10582_s18, %s6182_s21 }
  0x46   : > { %v5699_v30 = vpack.c.bf16 %v374_v27, %v372_v26  ;;  %v394_v32 = vld [vmem:[%s10626_s2] sm:$0xff]  ;;  %v396_v33 = vld [vmem:[%s10626_s2 + $0x10] sm:$0xff]  ;;  %v395_v36 = vld [vmem:[%s10626_s2 + $0x8] sm:$0xff]  ;;  %v5701_v38 = vpack.c.bf16 %v373_v31, %v371_v29 }
  0x47   : > { %5690 = vmatpush1.bf16.msra.mxu0 %v5689_v16  ;;  %v376_v34 = vld [vmem:[%s6422_s20 + $0xa8] sm:$0xff]  ;;  %v378_v35 = vld [vmem:[%s6422_s20 + $0xb8] sm:$0xff]  ;;  %403 = vperm.xlu0 %5977, %v394_v32   ;;  %v375_v40 = vld [vmem:[%s6422_s20 + $0xa0] sm:$0xff] }
  0x48   : > { %5692 = vmatprep.subr.bf16.mxu0 %v5691_v17  ;;  %413 = vperm.xlu1 %5978, %v396_v33   ;;  %v397_v37 = vld [vmem:[%s10626_s2 + $0x18] sm:$0xff]  ;;  %v5703_v39 = vpack.c.bf16 %v378_v35, %v376_v34  ;;  %v380_v42 = vld [vmem:[%s6422_s20 + $0xc8] sm:$0xff]  ;;  %v398_v44 = vld [vmem:[%s10626_s2 + $0x20] sm:$0xff] }
  0x49   : > { %v377_v41 = vld [vmem:[%s6422_s20 + $0xb0] sm:$0xff]  ;;  %v382_v43 = vld [vmem:[%s6422_s20 + $0xd8] sm:$0xff]  ;;  %v399_v45 = vld [vmem:[%s10626_s2 + $0x28] sm:$0xff] }
  0x4a   : > { %v5705_v46 = vpack.c.bf16 %v377_v41, %v375_v40  ;;  %v5707_v47 = vpack.c.bf16 %v382_v43, %v380_v42  ;;  %v379_v48 = vld [vmem:[%s6422_s20 + $0xc0] sm:$0xff]  ;;  %v381_v49 = vld [vmem:[%s6422_s20 + $0xd0] sm:$0xff]  ;;  %v384_v50 = vld [vmem:[%s6422_s20 + $0xe8] sm:$0xff] }
  0x4b   : > { %5694 = vmatpush1.bf16.msra.mxu0 %v5693_v22  ;;  %408 = vperm.xlu0 %5977, %v395_v36   ;;  %v386_v51 = vld [vmem:[%s6422_s20 + $0xf8] sm:$0xff]  ;;  %v400_v52 = vld [vmem:[%s10626_s2 + $0x30] sm:$0x3]  ;;  %v5709_v54 = vpack.c.bf16 %v381_v49, %v379_v48  ;;  %v383_v56 = vld [vmem:[%s6422_s20 + $0xe0] sm:$0xff] }
  0x4c   : > { %5696 = vmatprep.subr.bf16.mxu0 %v5695_v23  ;;  %418 = vperm.xlu1 %5978, %v397_v37   ;;  %v2006_v53 = vld [vmem:[%s10628_s4] sm:$0xff]  ;;  %v5711_v55 = vpack.c.bf16 %v386_v51, %v384_v50  ;;  %v385_v57 = vld [vmem:[%s6422_s20 + $0xf0] sm:$0xff]  ;;  %v2007_v58 = vld [vmem:[%s10628_s4 + $0x8] sm:$0xff]  ;;  %v10645_v51 = vmov 683565275   ;;  %s6177_s20 = scalar_lea.vmem %s10582_s18, 32 }
  0x4d   : > { %v2008_v59 = vld [vmem:[%s10628_s4 + $0x10] sm:$0xff]  ;;  %v5713_v60 = vpack.c.bf16 %v385_v57, %v383_v56  ;;  %v2009_v61 = vld [vmem:[%s10628_s4 + $0x18] sm:$0xff]  ;;  %v2010_v62 = vld [vmem:[%s10628_s4 + $0x20] sm:$0xff]  ;;  %p6178_p6 = scmp.ne.s32.totalorder %s10582_s18, %s6177_s20  ;;  %p6185_p10 = scmp.lt.s32.totalorder %s6183_s29, %s6177_s20 }
  0x4e   : > { %v387_v63 = vld [vmem:[%s10625_s1] sm:$0xff]  ;;  %v2011_v0 = vld [vmem:[%s10628_s4 + $0x28] sm:$0xff]  ;;  %v2012_v2 = vld [vmem:[%s10628_s4 + $0x30] sm:$0x3] }
  0x4f   : > { %5698 = vmatpush1.bf16.msra.mxu0 %v5697_v28  ;;  %423 = vperm.xlu0 %5977, %v398_v44   ;;  %v388_v3 = vld [vmem:[%s10625_s1 + $0x8] sm:$0xff]  ;;  %v3647_v4 = vld [vmem:[%s10630_s6] sm:$0xff]  ;;  %v389_v6 = vld [vmem:[%s10625_s1 + $0x10] sm:$0xff]  ;;  %p6179_p12 = pnand %p6178_p6, %p11183_p11  ;;  %p6186_p1 = por %p6185_p10, %p6184_p4 }
  0x50   : > { %5700 = vmatprep.subr.bf16.mxu0 %v5699_v30  ;;  %428 = vperm.xlu1 %5978, %v399_v45   ;;  %v3648_v5 = vld [vmem:[%s10630_s6 + $0x8] sm:$0xff]  ;;  %v3649_v7 = vld [vmem:[%s10630_s6 + $0x10] sm:$0xff]  ;;  %v3650_v8 = vld [vmem:[%s10630_s6 + $0x18] sm:$0xff] }
  0x51   : > { %v390_v9 = vld [vmem:[%s10625_s1 + $0x18] sm:$0xff]  ;;  %v3651_v10 = vld [vmem:[%s10630_s6 + $0x20] sm:$0xff]  ;;  %v3652_v11 = vld [vmem:[%s10630_s6 + $0x28] sm:$0xff]  ;;  %p6180_p13 = pneg %p6179_p12 }
  0x52   : > { %v391_v12 = vld [vmem:[%s10625_s1 + $0x20] sm:$0xff]  ;;  %v3653_v13 = vld [vmem:[%s10630_s6 + $0x30] sm:$0x3]  ;;  %v392_v15 = vld [vmem:[%s10625_s1 + $0x28] sm:$0xff] }
  0x53   : > { %5702 = vmatpush1.bf16.msra.mxu0 %v5701_v38  ;;  %433 = vperm.xlu0 %5977, %v400_v52   ;;  %v5280_v14 = vld [vmem:[#allocation2] sm:$0x1]  ;;  %v393_v16 = vld [vmem:[%s10625_s1 + $0x30] sm:$0x3]  ;;  %p6187_p3 = pnand %p6186_p1, %p6180_p13 }
  0x54   : > { %5704 = vmatprep.subr.bf16.mxu0 %v5703_v39  ;;  %2015 = vperm.xlu1 %5978, %v2006_v53   ;;  %v10649_v53 = vmov 2475754826  }
  0x57   : > { %5706 = vmatpush1.bf16.msra.mxu0 %v5705_v46  ;;  %2020 = vperm.xlu0 %5977, %v2007_v58   ;;  %v10651_v58 = vmov 2131351028  }
  0x58   : > { %5708 = vmatprep.subr.bf16.mxu0 %v5707_v47  ;;  %2025 = vperm.xlu1 %5978, %v2008_v59  }
  0x5b   : > { %5710 = vmatpush1.bf16.msra.mxu0 %v5709_v54  ;;  %2030 = vperm.xlu0 %5977, %v2009_v61   ;;  %v10653_v61 = vmov 2102212464  }
  0x5c   : > { %5712 = vmatprep.subr.bf16.mxu0 %v5711_v55  ;;  %2035 = vperm.xlu1 %5978, %v2010_v62  }
  0x5f   : > { %5714 = vmatpush1.bf16.msra.mxu0 %v5713_v60  ;;  %2040 = vperm.xlu0 %5977, %v2011_v0  }
  0x60   : > { %2045 = vperm.xlu1 %5978, %v2012_v2   ;;  %v10643_v2 = vmov 920167782  }
  0x62   : > { %501 = vmatmul.mubr.f32.vlgmr.msra.gmra.mrb[0].mxu0 %v387_v63 }
  0x63   : > { %506 = vmatprep.mubr.f32.mxu0 %v10635_v1  ;;  %3656 = vperm.xlu0 %5977, %v3647_v4  }
  0x64   : > { %3661 = vperm.xlu1 %5978, %v3648_v5   ;;  %v10641_v5 = vmov 1326507024  }
  0x66   : > { %507 = vmatmul.mubr.f32.gmra.mrb[2].mxu0 %v388_v3 }
  0x67   : > { %512 = vmatprep.mubr.f32.mxu0 %v10635_v1  ;;  %3666 = vperm.xlu0 %5977, %v3649_v7  }
  0x68   : > { %3671 = vperm.xlu1 %5978, %v3650_v8  }
  0x6a   : > { %513 = vmatmul.mubr.f32.gmra.mrb[4].mxu0 %v389_v6 }
  0x6b   : > { %518 = vmatprep.mubr.f32.mxu0 %v10635_v1  ;;  %3676 = vperm.xlu0 %5977, %v3651_v10  }
  0x6c   : > { %3681 = vperm.xlu1 %5978, %v3652_v11  }
  0x6e   : > { %519 = vmatmul.mubr.f32.gmra.mrb[6].mxu0 %v390_v9 }
  0x6f   : > { %524 = vmatprep.mubr.f32.mxu0 %v10635_v1  ;;  %3686 = vperm.xlu0 %5977, %v3653_v13  }
  0x70   : > { %5283 = vperm.xlu1 %5978, %v5280_v14  }
  0x72   : > { %525 = vmatmul.mubr.f32.gmra.mrb[8].mxu0 %v391_v12 }
  0x73   : > { %530 = vmatprep.mubr.f32.mxu0 %v10635_v1 }
  0x76   : > { %531 = vmatmul.mubr.f32.gmra.mrb[10].mxu0 %v392_v15 }
  0x77   : > { %536 = vmatprep.mubr.f32.mxu0 %v10635_v1 }
  0x7a   : > { %537 = vmatmul.mubr.f32.gmra.mrb[12].mxu0 %v393_v16 }
  0x7b   : > { %5363 = vmatprep.mubr.f32.mxu0 %v10635_v1 }
  0xc6   : > { %v404_v17 = vpop.permute.xlu0 %403 }
  0xca   : > { %v409_v24 = vpop.permute.xlu0 %408 }
 0x135   : > { %v502_v18 = vpop.f32.mrb[0].mxu0 }
 0x136   : > { %v6553_v19 = vadd.f32 %v502_v18, %v404_v17  ;;  %v504_v20 = vpop.f32.mrb[1].mxu0 }
 0x137   : > { %v6555_v21 = vadd.f32 %v504_v20, %v404_v17 }
 0x138   : > { %v10638_v22 = vand.u32 2147483647, %v6553_v19  ;;  %v546_v23 = vand.u32 2139095040, %v6553_v19 }
 0x139   : > { %10806 = vst [vmem:[#allocation9_spill] sm:$0xff] %v6555_v21  ;;  %v508_v25 = vpop.f32.mrb[2].mxu0  ;;  %v650_v29 = vand.u32 2139095040, %v6555_v21 }
 0x13a   : > { %v547_v26 = vshrl.u32 %v546_v23, 23  ;;  %v6559_v27 = vadd.f32 %v508_v25, %v409_v24  ;;  %v510_v28 = vpop.f32.mrb[3].mxu0  ;;  %v550_v31 = vand.u32 8388607, %v10638_v22 }
 0x13b   : > { %v651_v36 = vshrl.u32 %v650_v29, 23  ;;  %v6570_v39 = vadd.f32 %v510_v28, %v409_v24 }
 0x13c   : > { %v5487_v30 = vadd.s32 4294967169, %v547_v26  ;;  %v754_v32 = vand.u32 2139095040, %v6559_v27  ;;  %v551_v37 = vor.u32 8388608, %v550_v31  ;;  %v10637_v38 = vand.u32 2147483647, %v6559_v27 }
 0x13d   : > { %v6565_v33 = vpop.f32.mrb[4].mxu0  ;;  %10807 = vst [vmem:[#allocation10_spill] sm:$0xff] %v6570_v39  ;;  %v5491_v45 = vadd.s32 4294967169, %v651_v36  ;;  %v858_v49 = vand.u32 2139095040, %v6570_v39 }
 0x13e   : > { %v553_v34 = vadd.s32 1, %v5487_v30  ;;  %v6567_v35 = vpop.f32.mrb[5].mxu0  ;;  %v755_v41 = vshrl.u32 %v754_v32, 23  ;;  %v6576_v47 = vshll.u32 %v551_v37, 8  ;;  %v6580_v48 = vand.u32 8388607, %v10637_v38 }
 0x13f   : > { %v657_v10 = vadd.s32 1, %v5491_v45  ;;  %v859_v25 = vshrl.u32 %v858_v49, 23 }
 0x140   : > { %vm554_vm0 = vcmp.gt.s32.totalorder %v553_v34, 0  ;;  %v5495_v55 = vadd.s32 4294967169, %v755_v41 }
 0x141   : > { %v555_v40 = vsel %vm554_vm0, %v553_v34, 0  ;;  %v6572_v42 = vpop.f32.mrb[6].mxu0  ;;  %vm658_vm6 = vcmp.gt.s32.totalorder %v657_v10, 0 }
 0x142   : > { %v557_v43 = vand.u32 31, %v555_v40  ;;  %v6574_v44 = vpop.f32.mrb[7].mxu0  ;;  %v556_v50 = vshrl.u32 %v555_v40, 5  ;;  %v761_v16 = vadd.s32 1, %v5495_v55  ;;  %v6609_v40 = vpop.permute.xlu1 %413  ;;  %v6620_v55 = vsel %vm658_vm6, %v657_v10, 0 }
 0x144   : > { %v558_v46 = vsub.s32 32, %v557_v43  ;;  %v560_v52 = vshll.u32 %v10645_v51, %v557_v43  ;;  %v563_v54 = vshll.u32 %v10649_v53, %v557_v43  ;;  %v566_v60 = vshll.u32 %v10651_v58, %v557_v43 }
 0x145   : > { %v6585_v56 = vpop.f32.mrb[8].mxu0  ;;  %v569_v0 = vshll.u32 %v10653_v61, %v557_v43  ;;  %v572_v4 = vshll.u32 %v10643_v2, %v557_v43  ;;  %vm575_vm1 = vcmp.lt.s32.totalorder %v556_v50, 1  ;;  %vm578_vm2 = vcmp.lt.s32.totalorder %v556_v50, 4 }
 0x146   : > { %v561_v57 = vshrl.u32 %v10649_v53, %v558_v46  ;;  %v564_v59 = vshrl.u32 %v10651_v58, %v558_v46  ;;  %v567_v62 = vshrl.u32 %v10653_v61, %v558_v46  ;;  %v6591_v63 = vpop.f32.mrb[9].mxu0  ;;  %v570_v3 = vshrl.u32 %v10643_v2, %v558_v46 }
 0x147   : > { %v573_v6 = vshrl.u32 %v10641_v5, %v558_v46  ;;  %v559_v17 = vshrl.u32 %v10645_v51, %v558_v46  ;;  %vm577_vm3 = vcmp.lt.s32.totalorder %v556_v50, 3  ;;  %vm576_vm4 = vcmp.lt.s32.totalorder %v556_v50, 2 }
 0x148   : > { %v562_v7 = vor.u32 %v561_v57, %v560_v52  ;;  %v565_v8 = vor.u32 %v564_v59, %v563_v54  ;;  %v568_v9 = vor.u32 %v567_v62, %v566_v60  ;;  %v571_v11 = vor.u32 %v570_v3, %v569_v0 }
 0x149   : > { %v574_v12 = vor.u32 %v573_v6, %v572_v4  ;;  %v6607_v37 = vpop.f32.mrb[10].mxu0  ;;  %vm762_vm5 = vcmp.gt.s32.totalorder %v761_v16, 0  ;;  %v6613_v46 = vadd.f32 %v6565_v33, %v6609_v40  ;;  %v759_v50 = vor.u32 8388608, %v6580_v48 }
 0x14a   : > { %v580_v13 = vsel %vm578_vm2, %v568_v9, 2102212464  ;;  %v583_v14 = vsel %vm575_vm1, %v562_v7, %v565_v8  ;;  %v587_v15 = vsel %vm575_vm1, %v565_v8, %v568_v9  ;;  %v584_v18 = vsel %vm578_vm2, %v571_v11, 920167782 }
 0x14b   : > { %v588_v20 = vsel %vm578_vm2, %v574_v12, 1326507024  ;;  %v585_v23 = vsel %vm577_vm3, %v568_v9, %v584_v18  ;;  %v579_v26 = vsel %vm575_vm1, %v559_v17, %v562_v7  ;;  %v581_v28 = vsel %vm577_vm3, %v565_v8, %v580_v13  ;;  %10808 = vst [vmem:[#allocation11_spill] sm:$0xff] %v6613_v46 }
 0x14c   : > { %v589_v24 = vsel %vm577_vm3, %v571_v11, %v588_v20  ;;  %v586_v29 = vsel %vm576_vm4, %v583_v14, %v585_v23  ;;  %v582_v41 = vsel %vm576_vm4, %v579_v26, %v581_v28  ;;  %v763_v43 = vsel %vm762_vm5, %v761_v16, 0 }
 0x14d   : > { %v590_v30 = vsel %vm576_vm4, %v587_v15, %v589_v24  ;;  %v6603_v34 = vmul.u32.u64.low %v6576_v47, %v586_v29  ;;  %v6604_v36 = vmul.u32.u64.high %v6576_v47, %v586_v29, %v6603_v34  ;;  %v765_v45 = vand.u32 31, %v763_v43 }
 0x14e   : > { %v6599_v31 = vmul.u32.u64.low %v6576_v47, %v590_v30  ;;  %v6600_v32 = vmul.u32.u64.high %v6576_v47, %v590_v30, %v6599_v31  ;;  %v5499_v52 = vadd.s32 4294967169, %v859_v25  ;;  %v598_v54 = vmul.u32 %v6576_v47, %v582_v41 }
 0x14f   : > { %v601_v49 = vadd.s32 1, %v6604_v36  ;;  %v764_v57 = vshrl.u32 %v763_v43, 5  ;;  %v766_v59 = vsub.s32 32, %v765_v45  ;;  %v768_v62 = vshll.u32 %v10645_v51, %v765_v45 }
 0x150   : > { %vm600_vm7 = vc.u32 %v6600_v32, %v6603_v34  ;;  %v771_v33 = vshll.u32 %v10649_v53, %v765_v45  ;;  %v774_v0 = vshll.u32 %v10651_v58, %v765_v45  ;;  %v777_v6 = vshll.u32 %v10653_v61, %v765_v45 }
 0x151   : > { %v602_v60 = vsel %vm600_vm7, %v601_v49, %v6604_v36  ;;  %v769_v4 = vshrl.u32 %v10649_v53, %v766_v59  ;;  %v772_v48 = vshrl.u32 %v10651_v58, %v766_v59  ;;  %v775_v47 = vshrl.u32 %v10653_v61, %v766_v59 }
 0x152   : > { %v603_v3 = vadd.s32 %v602_v60, %v598_v54  ;;  %v778_v7 = vshrl.u32 %v10643_v2, %v766_v59  ;;  %v780_v8 = vshll.u32 %v10643_v2, %v765_v45  ;;  %v781_v9 = vshrl.u32 %v10641_v5, %v766_v59  ;;  %v6652_v60 = vpop.f32.mrb[11].mxu0 }
 0x153   : > { %v770_v11 = vor.u32 %v769_v4, %v768_v62  ;;  %v773_v12 = vor.u32 %v772_v48, %v771_v33  ;;  %v799_v13 = vshll.u32 %v759_v50, 8  ;;  %v776_v14 = vor.u32 %v775_v47, %v774_v0 }
 0x154   : > { %v604_v10 = vadd.s32 536870912, %v603_v3  ;;  %v779_v15 = vor.u32 %v778_v7, %v777_v6  ;;  %v782_v16 = vor.u32 %v781_v9, %v780_v8  ;;  %vm783_vm8 = vcmp.lt.s32.totalorder %v764_v57, 1 }
 0x155   : > { %vm785_vm9 = vcmp.lt.s32.totalorder %v764_v57, 3  ;;  %vm786_vm10 = vcmp.lt.s32.totalorder %v764_v57, 4  ;;  %v791_v18 = vsel %vm783_vm8, %v770_v11, %v773_v12  ;;  %v795_v24 = vsel %vm783_vm8, %v773_v12, %v776_v14 }
 0x156   : > { %v6633_v17 = vshrl.u32 %v604_v10, 30  ;;  %v788_v20 = vsel %vm786_vm10, %v776_v14, 2102212464  ;;  %v792_v23 = vsel %vm786_vm10, %v779_v15, 920167782  ;;  %v767_v26 = vshrl.u32 %v10645_v51, %v766_v59 }
 0x157   : > { %v796_v25 = vsel %vm786_vm10, %v782_v16, 1326507024  ;;  %vm784_vm11 = vcmp.lt.s32.totalorder %v764_v57, 2  ;;  %v793_v28 = vsel %vm785_vm9, %v776_v14, %v792_v23  ;;  %v6639_v30 = vand.u32 31, %v6620_v55 }
 0x158   : > { %10809 = vst [vmem:[#allocation12_spill] sm:$0xff] %v6633_v17  ;;  %v797_v29 = vsel %vm785_vm9, %v779_v15, %v796_v25  ;;  %v794_v31 = vsel %vm784_vm11, %v791_v18, %v793_v28  ;;  %v787_v41 = vsel %vm783_vm8, %v767_v26, %v770_v11  ;;  %v789_v43 = vsel %vm785_vm9, %v773_v12, %v788_v20 }
 0x159   : > { %10810 = vst [vmem:[#allocation13_spill] sm:$0xff] %v6639_v30  ;;  %v798_v36 = vsel %vm784_vm11, %v795_v24, %v797_v29  ;;  %v606_v50 = vshll.u32 %v6633_v17, 30  ;;  %v6648_v54 = vmul.u32.u64.low %v799_v13, %v794_v31  ;;  %v6649_v59 = vmul.u32.u64.high %v799_v13, %v794_v31, %v6648_v54 }
 0x15a   : > { %v6644_v45 = vmul.u32.u64.low %v799_v13, %v798_v36  ;;  %v6645_v49 = vmul.u32.u64.high %v799_v13, %v798_v36, %v6644_v45  ;;  %v865_v62 = vadd.s32 1, %v5499_v52  ;;  %v962_v33 = vand.u32 2139095040, %v6613_v46 }
 0x15b   : > { %v6656_v0 = vsub.s32 32, %v6639_v30  ;;  %v790_v4 = vsel %vm784_vm11, %v787_v41, %v789_v43  ;;  %v6661_v48 = vsub.s32 %v603_v3, %v606_v50  ;;  %v809_v6 = vadd.s32 1, %v6649_v59 }
 0x15c   : > { %vm808_vm12 = vc.u32 %v6645_v49, %v6648_v54  ;;  %v963_v47 = vshrl.u32 %v962_v33, 23  ;;  %v6666_v7 = vadd.f32 %v6567_v35, %v6609_v40  ;;  %v806_v52 = vmul.u32 %v799_v13, %v790_v4 }
 0x15d   : > { %10811 = vst [vmem:[#allocation14_spill] sm:$0xff] %v6656_v0  ;;  %vm866_vm13 = vcmp.gt.s32.totalorder %v865_v62, 0  ;;  %v674_v8 = vshrl.u32 %v10643_v2, %v6656_v0  ;;  %v810_v57 = vsel %vm808_vm12, %v809_v6, %v6649_v59  ;;  %v673_v10 = vshll.u32 %v10653_v61, %v6639_v30 }
 0x15e   : > { %v5503_v9 = vadd.s32 4294967169, %v963_v47  ;;  %v677_v3 = vshrl.u32 %v10641_v5, %v6656_v0  ;;  %v811_v11 = vadd.s32 %v810_v57, %v806_v52  ;;  %v609_v12 = vsub.s32 0, %v6661_v48  ;;  %v6716_v52 = vpop.permute.xlu1 %418 }
 0x15f   : > { %v867_v14 = vsel %vm866_vm13, %v865_v62, 0  ;;  %v1066_v40 = vand.u32 2139095040, %v6666_v7  ;;  %v6678_v13 = vshrl.u32 %v6620_v55, 5  ;;  %v676_v15 = vshll.u32 %v10643_v2, %v6639_v30 }
 0x160   : > { %v969_v35 = vadd.s32 1, %v5503_v9  ;;  %v812_v16 = vadd.s32 536870912, %v811_v11  ;;  %v6682_v18 = vor.u32 %v674_v8, %v673_v10  ;;  %v6686_v24 = vand.u32 31, %v867_v14 }
 0x161   : > { %10812 = vst [vmem:[#allocation15_spill] sm:$0xff] %v6678_v13  ;;  %v678_v20 = vor.u32 %v677_v3, %v676_v15  ;;  %v5488_v25 = vmin.u32 %v609_v12, %v6661_v48  ;;  %v10639_v26 = vand.u32 2147483647, %v6613_v46  ;;  %v1067_v29 = vshrl.u32 %v1066_v40, 23 }
 0x162   : > { %10813 = vst [vmem:[#allocation16_spill] sm:$0xff] %v6682_v18  ;;  %vm970_vm14 = vcmp.gt.s32.totalorder %v969_v35, 0  ;;  %v6684_v23 = vshrl.u32 %v812_v16, 30  ;;  %10815 = vst [vmem:[#allocation18_spill] sm:$0xff] %v6686_v24  ;;  %vm682_vm15 = vcmp.lt.s32.totalorder %v6678_v13, 4  ;;  %v6699_v41 = vadd.s32 %v6603_v34, %v6600_v32 }
 0x163   : > { %v971_v28 = vsel %vm970_vm14, %v969_v35, 0  ;;  %v6695_v31 = vsel %vm682_vm15, %v6682_v18, 920167782  ;;  %v6703_v43 = vsel %vm682_vm15, %v678_v20, 1326507024  ;;  %v6705_v45 = vshrl.u32 %v867_v14, 5 }
 0x164   : > { %10814 = vst [vmem:[#allocation17_spill] sm:$0xff] %v6684_v23  ;;  %v814_v55 = vshll.u32 %v6684_v23, 30  ;;  %10816 = vst [vmem:[#allocation19_spill] sm:$0xff] %v6695_v31  ;;  %v973_v36 = vand.u32 31, %v971_v28  ;;  %v6708_v50 = vsub.s32 32, %v6686_v24  ;;  %v611_v59 = vclz %v5488_v25 }
 0x165   : > { %10817 = vst [vmem:[#allocation20_spill] sm:$0xff] %v6703_v43  ;;  %v966_v62 = vand.u32 8388607, %v10639_v26  ;;  %v5507_v4 = vadd.s32 4294967169, %v1067_v29  ;;  %v972_v47 = vshrl.u32 %v971_v28, 5  ;;  %v6727_v14 = vadd.f32 %v6572_v42, %v6716_v52 }
 0x166   : > { %10818 = vst [vmem:[#allocation21_spill] sm:$0xff] %v6708_v50  ;;  %v974_v33 = vsub.s32 32, %v973_v36  ;;  %v6712_v6 = vsub.s32 %v811_v11, %v814_v55  ;;  %v976_v32 = vshll.u32 %v10645_v51, %v973_v36  ;;  %v979_v34 = vshll.u32 %v10649_v53, %v973_v36 }
 0x167   : > { %v982_v9 = vshll.u32 %v10651_v58, %v973_v36  ;;  %v985_v3 = vshll.u32 %v10653_v61, %v973_v36  ;;  %v988_v12 = vshll.u32 %v10643_v2, %v973_v36  ;;  %10819 = vst [vmem:[#allocation22_spill] sm:$0xff] %v6727_v14  ;;  %v967_v25 = vor.u32 8388608, %v966_v62  ;;  %v6732_v36 = vpop.f32.mrb[12].mxu0 }
 0x168   : > { %v977_v8 = vshrl.u32 %v10649_v53, %v974_v33  ;;  %v980_v57 = vshrl.u32 %v10651_v58, %v974_v33  ;;  %v983_v10 = vshrl.u32 %v10653_v61, %v974_v33  ;;  %v986_v11 = vshrl.u32 %v10643_v2, %v974_v33  ;;  %10820 = vst [vmem:[#allocation23_spill] sm:$0xff] %v6732_v36 }
 0x169   : > { %v989_v16 = vshrl.u32 %v10641_v5, %v974_v33  ;;  %v817_v20 = vsub.s32 0, %v6712_v6  ;;  %v10640_v29 = vand.u32 2147483647, %v6666_v7  ;;  %v5489_v55 = vadd.s32 4294967294, %v611_v59 }
 0x16a   : > { %v978_v35 = vor.u32 %v977_v8, %v976_v32  ;;  %v981_v40 = vor.u32 %v980_v57, %v979_v34  ;;  %v984_v15 = vor.u32 %v983_v10, %v982_v9  ;;  %v987_v28 = vor.u32 %v986_v11, %v985_v3 }
 0x16b   : > { %v990_v1 = vor.u32 %v989_v16, %v988_v12  ;;  %vm991_vm0 = vcmp.lt.s32.totalorder %v972_v47, 1  ;;  %v1073_v38 = vadd.s32 1, %v5507_v4  ;;  %vm993_vm1 = vcmp.lt.s32.totalorder %v972_v47, 3 }
 0x16c   : > { %vm994_vm2 = vcmp.lt.s32.totalorder %v972_v47, 4  ;;  %v999_v42 = vsel %vm991_vm0, %v978_v35, %v981_v40  ;;  %v1170_v32 = vand.u32 2139095040, %v6727_v14  ;;  %v1003_v57 = vsel %vm991_vm0, %v981_v40, %v984_v15 }
 0x16d   : > { %v996_v34 = vsel %vm994_vm2, %v984_v15, 2102212464  ;;  %v1000_v8 = vsel %vm994_vm2, %v987_v28, 920167782  ;;  %v1004_v62 = vsel %vm994_vm2, %v990_v1, 1326507024  ;;  %v5496_v9 = vmin.u32 %v817_v20, %v6712_v6 }
 0x16e   : > { %v975_v59 = vshrl.u32 %v10645_v51, %v974_v33  ;;  %vm992_vm3 = vcmp.lt.s32.totalorder %v972_v47, 2  ;;  %v1001_v4 = vsel %vm993_vm1, %v984_v15, %v1000_v8  ;;  %v1005_v3 = vsel %vm993_vm1, %v987_v28, %v1004_v62 }
 0x16f   : > { %v1002_v10 = vsel %vm992_vm3, %v999_v42, %v1001_v4  ;;  %v1007_v11 = vshll.u32 %v967_v25, 8  ;;  %vm1074_vm4 = vcmp.gt.s32.totalorder %v1073_v38, 0  ;;  %v997_v16 = vsel %vm993_vm1, %v981_v40, %v996_v34 }
 0x170   : > { %v995_v12 = vsel %vm991_vm0, %v975_v59, %v978_v35  ;;  %v1006_v22 = vsel %vm992_vm3, %v1003_v57, %v1005_v3  ;;  %v1070_v1 = vand.u32 8388607, %v10640_v29  ;;  %vm5490_vm5 = vcmp.lt.s32.totalorder %v5489_v55, 0 }
 0x171   : > { %v6747_v20 = vmul.u32.u64.low %v1007_v11, %v1006_v22  ;;  %v6748_v33 = vmul.u32.u64.high %v1007_v11, %v1006_v22, %v6747_v20  ;;  %v6750_v26 = vmul.u32.u64.low %v1007_v11, %v1002_v10  ;;  %v6751_v15 = vmul.u32.u64.high %v1007_v11, %v1002_v10, %v6750_v26 }
 0x172   : > { %v819_v28 = vclz %v5496_v9  ;;  %v1075_v25 = vsel %vm1074_vm4, %v1073_v38, 0  ;;  %v1171_v42 = vshrl.u32 %v1170_v32, 23  ;;  %v6756_v35 = vshll.u32 %v10653_v61, %v6686_v24 }
 0x173   : > { %v6760_v40 = vshrl.u32 %v10643_v2, %v6708_v50  ;;  %v998_v34 = vsel %vm992_vm3, %v995_v12, %v997_v16  ;;  %v1077_v22 = vand.u32 31, %v1075_v25  ;;  %v6765_v8 = vshll.u32 %v10643_v2, %v6686_v24 }
 0x174   : > { %v6769_v57 = vshrl.u32 %v10641_v5, %v6708_v50  ;;  %v1071_v38 = vor.u32 8388608, %v1070_v1  ;;  %v6772_v62 = vsel %vm5490_vm5, 0, %v5489_v55  ;;  %vm1016_vm6 = vc.u32 %v6748_v33, %v6750_v26 }
 0x175   : > { %v1017_v47 = vadd.s32 1, %v6751_v15  ;;  %v1078_v9 = vsub.s32 32, %v1077_v22  ;;  %v5497_v59 = vadd.s32 4294967294, %v819_v28  ;;  %v1014_v4 = vmul.u32 %v1007_v11, %v998_v34 }
 0x176   : > { %v1080_v10 = vshll.u32 %v10645_v51, %v1077_v22  ;;  %v5511_v3 = vadd.s32 4294967169, %v1171_v42  ;;  %v1083_v1 = vshll.u32 %v10649_v53, %v1077_v22  ;;  %v1076_v29 = vshrl.u32 %v1075_v25, 5 }
 0x177   : > { %v1018_v12 = vsel %vm1016_vm6, %v1017_v47, %v6751_v15  ;;  %v1081_v16 = vshrl.u32 %v10649_v53, %v1078_v9  ;;  %v1084_v55 = vshrl.u32 %v10651_v58, %v1078_v9  ;;  %v1086_v32 = vshll.u32 %v10651_v58, %v1077_v22 }
 0x178   : > { %v1019_v20 = vadd.s32 %v1018_v12, %v1014_v4  ;;  %v1087_v5 = vshrl.u32 %v10653_v61, %v1078_v9  ;;  %v1089_v11 = vshll.u32 %v10653_v61, %v1077_v22  ;;  %v10821_v34 = vmov 920167782  }
 0x179   : > { %v1082_v2 = vor.u32 %v1081_v16, %v1080_v10  ;;  %v1085_v28 = vor.u32 %v1084_v55, %v1083_v1  ;;  %v1090_v42 = vshrl.u32 %v10821_v34, %v1078_v9  ;;  %v619_v15 = vsub.s32 4294967266, %v6772_v62 }
 0x17a   : > { %v1020_v47 = vadd.s32 536870912, %v1019_v20  ;;  %v1088_v51 = vor.u32 %v1087_v5, %v1086_v32  ;;  %v1111_v23 = vshll.u32 %v1071_v38, 8  ;;  %vm5498_vm7 = vcmp.lt.s32.totalorder %v5497_v59, 0 }
 0x17b   : > { %v1091_v53 = vor.u32 %v1090_v42, %v1089_v11  ;;  %v1092_v4 = vshll.u32 %v10821_v34, %v1077_v22  ;;  %v10822_v25 = vmov 1326507024   ;;  %vm1095_vm8 = vcmp.lt.s32.totalorder %v1076_v29, 1  ;;  %v6793_v42 = vpop.f32.mrb[13].mxu0 }
 0x17c   : > { %v1093_v12 = vshrl.u32 %v10822_v25, %v1078_v9  ;;  %v6789_v58 = vshrl.u32 %v1020_v47, 30  ;;  %vm1098_vm9 = vcmp.lt.s32.totalorder %v1076_v29, 4  ;;  %v1177_v10 = vadd.s32 1, %v5511_v3  ;;  %10825 = vst [vmem:[#allocation25_spill] sm:$0xff] %v6793_v42 }
 0x17d   : > { %v10824_v16 = vmov 683565275   ;;  %v1100_v61 = vsel %vm1098_vm9, %v1088_v51, 2102212464  ;;  %v1103_v17 = vsel %vm1095_vm8, %v1082_v2, %v1085_v28  ;;  %vm1096_vm10 = vcmp.lt.s32.totalorder %v1076_v29, 2 }
 0x17e   : > { %10823 = vst [vmem:[#allocation24_spill] sm:$0xff] %v6789_v58  ;;  %v1079_v1 = vshrl.u32 %v10824_v16, %v1078_v9  ;;  %v1094_v55 = vor.u32 %v1093_v12, %v1092_v4  ;;  %v1022_v24 = vshll.u32 %v6789_v58, 30  ;;  %vm1097_vm11 = vcmp.lt.s32.totalorder %v1076_v29, 3 }
 0x17f   : > { %v1104_v5 = vsel %vm1098_vm9, %v1091_v53, 920167782  ;;  %v1107_v22 = vsel %vm1095_vm8, %v1085_v28, %v1088_v51  ;;  %v1101_v50 = vsel %vm1097_vm11, %v1085_v28, %v1100_v61  ;;  %vm1178_vm12 = vcmp.gt.s32.totalorder %v1177_v10, 0 }
 0x180   : > { %v1099_v38 = vsel %vm1095_vm8, %v1079_v1, %v1082_v2  ;;  %v1105_v32 = vsel %vm1097_vm11, %v1088_v51, %v1104_v5  ;;  %v1108_v11 = vsel %vm1098_vm9, %v1094_v55, 1326507024  ;;  %v6795_v47 = vsub.s32 %v1019_v20, %v1022_v24 }
 0x181   : > { %v1106_v3 = vsel %vm1096_vm10, %v1103_v17, %v1105_v32  ;;  %v1109_v9 = vsel %vm1097_vm11, %v1091_v53, %v1108_v11  ;;  %v1179_v55 = vsel %vm1178_vm12, %v1177_v10, 0  ;;  %v6808_v24 = vsel %vm5498_vm7, 0, %v5497_v59 }
 0x182   : > { %v1110_v4 = vsel %vm1096_vm10, %v1107_v22, %v1109_v9  ;;  %v6799_v12 = vmul.u32.u64.low %v1111_v23, %v1106_v3  ;;  %v6800_v39 = vmul.u32.u64.high %v1111_v23, %v1106_v3, %v6799_v12  ;;  %v1025_v2 = vsub.s32 0, %v6795_v47 }
 0x183   : > { %v6804_v1 = vmul.u32.u64.low %v1111_v23, %v1110_v4  ;;  %v6805_v51 = vmul.u32.u64.high %v1111_v23, %v1110_v4, %v6804_v1  ;;  %v1102_v61 = vsel %vm1096_vm10, %v1099_v38, %v1101_v50  ;;  %v10826_v53 = vand.u32 2147483647, %v6727_v14 }
 0x184   : > { %v1181_v20 = vand.u32 31, %v1179_v55  ;;  %v6815_v28 = vadd.s32 %v6648_v54, %v6645_v49  ;;  %v6819_v5 = vor.u32 %v6760_v40, %v6756_v35  ;;  %v5504_v32 = vmin.u32 %v1025_v2, %v6795_v47 }
 0x185   : > { %v1174_v17 = vand.u32 8388607, %v10826_v53  ;;  %v6824_v59 = vadd.f32 %v6574_v44, %v6716_v52  ;;  %v615_v50 = vsub.s32 32, %v6772_v62  ;;  %v6827_v29 = vadd.s32 127, %v619_v15 }
 0x186   : > { %v1121_v10 = vadd.s32 1, %v6800_v39  ;;  %v1182_v38 = vsub.s32 32, %v1181_v20  ;;  %v827_v49 = vsub.s32 4294967266, %v6808_v24  ;;  %v1027_v54 = vclz %v5504_v32 }
 0x187   : > { %10827 = vst [vmem:[#allocation26_spill] sm:$0xff] %v6824_v59  ;;  %v1118_v22 = vmul.u32 %v1111_v23, %v1102_v61  ;;  %vm1120_vm13 = vc.u32 %v6805_v51, %v6799_v12  ;;  %v1175_v40 = vor.u32 8388608, %v1174_v17  ;;  %v10828_v11 = vmov 2475754826  }
 0x188   : > { %v1122_v35 = vsel %vm1120_vm13, %v1121_v10, %v6800_v39  ;;  %v1185_v44 = vshrl.u32 %v10828_v11, %v1182_v38  ;;  %v10829_v52 = vmov 2131351028   ;;  %v1184_v15 = vshll.u32 %v10824_v16, %v1181_v20 }
 0x189   : > { %v1188_v3 = vshrl.u32 %v10829_v52, %v1182_v38  ;;  %v1123_v9 = vadd.s32 %v1122_v35, %v1118_v22  ;;  %v1187_v4 = vshll.u32 %v10828_v11, %v1181_v20  ;;  %v10830_v2 = vmov 2102212464  }
 0x18a   : > { %v1191_v1 = vshrl.u32 %v10830_v2, %v1182_v38  ;;  %v5505_v53 = vadd.s32 4294967294, %v1027_v54  ;;  %v1190_v23 = vshll.u32 %v10829_v52, %v1181_v20  ;;  %v1193_v61 = vshll.u32 %v10830_v2, %v1181_v20 }
 0x18b   : > { %v1194_v32 = vshrl.u32 %v10821_v34, %v1182_v38  ;;  %v1124_v39 = vadd.s32 536870912, %v1123_v9  ;;  %v1180_v17 = vshrl.u32 %v1179_v55, 5  ;;  %v1186_v10 = vor.u32 %v1185_v44, %v1184_v15 }
 0x18c   : > { %v1197_v58 = vshrl.u32 %v10822_v25, %v1182_v38  ;;  %v1189_v31 = vor.u32 %v1188_v3, %v1187_v4  ;;  %v1192_v22 = vor.u32 %v1191_v1, %v1190_v23  ;;  %v1196_v18 = vshll.u32 %v10821_v34, %v1181_v20 }
 0x18d   : > { %v1195_v35 = vor.u32 %v1194_v32, %v1193_v61  ;;  %v617_v43 = vshrl.u32 %v6699_v41, %v615_v50  ;;  %v621_v54 = vshll.u32 %v6827_v29, 23  ;;  %v6848_v30 = vshrl.u32 %v1124_v39, 30 }
 0x18e   : > { %v828_v0 = vadd.s32 127, %v827_v49  ;;  %vm5506_vm14 = vcmp.lt.s32.totalorder %v5505_v53, 0  ;;  %v1198_v55 = vor.u32 %v1197_v58, %v1196_v18  ;;  %v1274_v44 = vand.u32 2139095040, %v6824_v59 }
 0x18f   : > { %10831 = vst [vmem:[#allocation27_spill] sm:$0xff] %v6848_v30  ;;  %v1126_v3 = vshll.u32 %v6848_v30, 30  ;;  %vm1199_vm0 = vcmp.lt.s32.totalorder %v1180_v17, 1  ;;  %vm1202_vm1 = vcmp.lt.s32.totalorder %v1180_v17, 4  ;;  %v1215_v15 = vshll.u32 %v1175_v40, 8 }
 0x190   : > { %v1183_v20 = vshrl.u32 %v10824_v16, %v1182_v38  ;;  %v1204_v41 = vsel %vm1202_vm1, %v1192_v22, 2102212464  ;;  %v1207_v50 = vsel %vm1199_vm0, %v1186_v10, %v1189_v31  ;;  %v1208_v29 = vsel %vm1202_vm1, %v1195_v35, 920167782 }
 0x191   : > { %v6854_v4 = vsel %vm5506_vm14, 0, %v5505_v53  ;;  %v6856_v1 = vsub.s32 %v1123_v9, %v1126_v3  ;;  %vm1200_vm2 = vcmp.lt.s32.totalorder %v1180_v17, 2  ;;  %vm1201_vm3 = vcmp.lt.s32.totalorder %v1180_v17, 3 }
 0x192   : > { %v1209_v58 = vsel %vm1201_vm3, %v1192_v22, %v1208_v29  ;;  %v1211_v18 = vsel %vm1199_vm0, %v1189_v31, %v1192_v22  ;;  %v1212_v49 = vsel %vm1202_vm1, %v1198_v55, 1326507024  ;;  %v1275_v23 = vshrl.u32 %v1274_v44, 23 }
 0x193   : > { %v1129_v61 = vsub.s32 0, %v6856_v1  ;;  %v1203_v40 = vsel %vm1199_vm0, %v1183_v20, %v1186_v10  ;;  %v1205_v38 = vsel %vm1201_vm3, %v1189_v31, %v1204_v41  ;;  %v1210_v32 = vsel %vm1200_vm2, %v1207_v50, %v1209_v58 }
 0x194   : > { %v1213_v39 = vsel %vm1201_vm3, %v1195_v35, %v1212_v49  ;;  %v6862_v13 = vmul.u32.u64.low %v1215_v15, %v1210_v32  ;;  %v6863_v53 = vmul.u32.u64.high %v1215_v15, %v1210_v32, %v6862_v13  ;;  %v5515_v9 = vadd.s32 4294967169, %v1275_v23 }
 0x195   : > { %v616_v3 = vshll.u32 %v6661_v48, %v6772_v62  ;;  %v5508_v22 = vmin.u32 %v1129_v61, %v6856_v1  ;;  %v1214_v55 = vsel %vm1200_vm2, %v1211_v18, %v1213_v39  ;;  %v10672_v44 = vand.u32 2147483647, %v6824_v59 }
 0x196   : > { %v1035_v10 = vsub.s32 4294967266, %v6854_v4  ;;  %v6872_v31 = vmul.u32.u64.low %v1215_v15, %v1214_v55  ;;  %v6873_v20 = vmul.u32.u64.high %v1215_v15, %v1214_v55, %v6872_v31  ;;  %v1281_v35 = vadd.s32 1, %v5515_v9  ;;  %v6892_v9 = vpop.permute.xlu0 %423 }
 0x197   : > { %v6875_v41 = vor.u32 %v617_v43, %v616_v3  ;;  %v6877_v50 = vor.u32 4788187, %v621_v54  ;;  %v1131_v29 = vclz %v5508_v22  ;;  %v1206_v58 = vsel %vm1200_vm2, %v1203_v40, %v1205_v38 }
 0x198   : > { %v823_v48 = vsub.s32 32, %v6808_v24  ;;  %v829_v62 = vshll.u32 %v828_v0, 23  ;;  %v1225_v18 = vadd.s32 1, %v6863_v53  ;;  %vm1282_vm4 = vcmp.gt.s32.totalorder %v1281_v35, 0 }
 0x199   : > { %v1031_v49 = vsub.s32 32, %v6854_v4  ;;  %v5509_v23 = vadd.s32 4294967294, %v1131_v29  ;;  %v1278_v61 = vand.u32 8388607, %v10672_v44  ;;  %v1283_v32 = vsel %vm1282_vm4, %v1281_v35, 0 }
 0x19a   : > { %v1036_v43 = vadd.s32 127, %v1035_v10  ;;  %v1222_v39 = vmul.u32 %v1215_v15, %v1206_v58  ;;  %vm1224_vm5 = vc.u32 %v6873_v20, %v6862_v13  ;;  %v1285_v17 = vand.u32 31, %v1283_v32 }
 0x19b   : > { %v1226_v38 = vsel %vm1224_vm5, %v1225_v18, %v6863_v53  ;;  %v1015_v3 = vadd.s32 %v6750_v26, %v6748_v33  ;;  %vm5510_vm6 = vcmp.lt.s32.totalorder %v5509_v23, 0  ;;  %v6897_v55 = vshrl.u32 %v6815_v28, %v823_v48 }
 0x19c   : > { %v1227_v15 = vadd.s32 %v1226_v38, %v1222_v39  ;;  %v1286_v22 = vsub.s32 32, %v1285_v17  ;;  %v6899_v10 = vor.u32 4788187, %v829_v62  ;;  %v1032_v31 = vshll.u32 %v6795_v47, %v6854_v4 }
 0x19d   : > { %v6905_v35 = vadd.f32 %v6585_v56, %v6892_v9  ;;  %v1033_v53 = vshrl.u32 %v1015_v3, %v1031_v49  ;;  %v1037_v29 = vshll.u32 %v1036_v43, 23  ;;  %v1279_v18 = vor.u32 8388608, %v1278_v61 }
 0x19e   : > { %v1228_v58 = vadd.s32 536870912, %v1227_v15  ;;  %v6907_v26 = vsel %vm5510_vm6, 0, %v5509_v23  ;;  %v1288_v33 = vshll.u32 %v10824_v16, %v1285_v17  ;;  %v1289_v28 = vshrl.u32 %v10828_v11, %v1286_v22 }
 0x19f   : > { %10832 = vst [vmem:[#allocation28_spill] sm:$0xff] %v6905_v35  ;;  %v1291_v48 = vshll.u32 %v10828_v11, %v1285_v17  ;;  %v1292_v47 = vshrl.u32 %v10829_v52, %v1286_v22  ;;  %v1294_v4 = vshll.u32 %v10829_v52, %v1285_v17  ;;  %v1295_v56 = vshrl.u32 %v10830_v2, %v1286_v22 }
 0x1a0   : > { %v6912_v62 = vshrl.u32 %v1228_v58, 30  ;;  %v1284_v49 = vshrl.u32 %v1283_v32, 5  ;;  %v1290_v43 = vor.u32 %v1289_v28, %v1288_v33  ;;  %v1297_v61 = vshll.u32 %v10830_v2, %v1285_v17 }
 0x1a1   : > { %v1378_v23 = vand.u32 2139095040, %v6905_v35  ;;  %v1293_v38 = vor.u32 %v1292_v47, %v1291_v48  ;;  %v1296_v3 = vor.u32 %v1295_v56, %v1294_v4  ;;  %v1298_v44 = vshrl.u32 %v10821_v34, %v1286_v22 }
 0x1a2   : > { %10833 = vst [vmem:[#allocation29_spill] sm:$0xff] %v6912_v62  ;;  %v1230_v39 = vshll.u32 %v6912_v62, 30  ;;  %v1034_v58 = vor.u32 %v1033_v53, %v1032_v31  ;;  %v1139_v40 = vsub.s32 4294967266, %v6907_v26  ;;  %v1300_v0 = vshll.u32 %v10821_v34, %v1285_v17 }
 0x1a3   : > { %v1301_v54 = vshrl.u32 %v10822_v25, %v1286_v22  ;;  %v1038_v30 = vor.u32 4788187, %v1037_v29  ;;  %v1299_v33 = vor.u32 %v1298_v44, %v1297_v61  ;;  %v1319_v28 = vshll.u32 %v1279_v18, 8 }
 0x1a4   : > { %v6924_v32 = vsub.s32 %v1227_v15, %v1230_v39  ;;  %vm1303_vm7 = vcmp.lt.s32.totalorder %v1284_v49, 1  ;;  %vm1306_vm8 = vcmp.lt.s32.totalorder %v1284_v49, 4  ;;  %v1379_v62 = vshrl.u32 %v1378_v23, 23 }
 0x1a5   : > { %v1302_v21 = vor.u32 %v1301_v54, %v1300_v0  ;;  %v1287_v47 = vshrl.u32 %v10824_v16, %v1286_v22  ;;  %v1308_v31 = vsel %vm1306_vm8, %v1296_v3, 2102212464  ;;  %v1311_v53 = vsel %vm1303_vm7, %v1290_v43, %v1293_v38 }
 0x1a6   : > { %v1233_v48 = vsub.s32 0, %v6924_v32  ;;  %v1140_v4 = vadd.s32 127, %v1139_v40  ;;  %vm1305_vm9 = vcmp.lt.s32.totalorder %v1284_v49, 3  ;;  %v1312_v17 = vsel %vm1306_vm8, %v1299_v33, 920167782 }
 0x1a7   : > { %v1315_v29 = vsel %vm1303_vm7, %v1293_v38, %v1296_v3  ;;  %vm890_vm10 = vcmp.lt.s32.totalorder %v6705_v45, 4  ;;  %vm1304_vm11 = vcmp.lt.s32.totalorder %v1284_v49, 2  ;;  %v1313_v54 = vsel %vm1305_vm9, %v1296_v3, %v1312_v17 }
 0x1a8   : > { %v5512_v44 = vmin.u32 %v1233_v48, %v6924_v32  ;;  %v1316_v0 = vsel %vm1306_vm8, %v1302_v21, 1326507024  ;;  %v1307_v15 = vsel %vm1303_vm7, %v1287_v47, %v1290_v43  ;;  %v1309_v18 = vsel %vm1305_vm9, %v1293_v38, %v1308_v31 }
 0x1a9   : > { %v1314_v56 = vsel %vm1304_vm11, %v1311_v53, %v1313_v54  ;;  %v1317_v22 = vsel %vm1305_vm9, %v1299_v33, %v1316_v0  ;;  %v1039_v42 = vand.u32 2147483647, %v1038_v30  ;;  %v5519_v36 = vadd.s32 4294967169, %v1379_v62 }
 0x1aa   : > { %v1235_v61 = vclz %v5512_v44  ;;  %v1318_v23 = vsel %vm1304_vm11, %v1315_v29, %v1317_v22  ;;  %v6933_v39 = vmul.u32.u64.low %v1319_v28, %v1314_v56  ;;  %v6934_v40 = vmul.u32.u64.high %v1319_v28, %v1314_v56, %v6933_v39 }
 0x1ab   : > { %v6937_v59 = vmul.u32.u64.low %v1319_v28, %v1318_v23  ;;  %v6938_v14 = vmul.u32.u64.high %v1319_v28, %v1318_v23, %v6937_v59  ;;  %v1135_v48 = vsub.s32 32, %v6907_v26  ;;  %v1141_v3 = vshll.u32 %v1140_v4, 23 }
 0x1ac   : > { %v1310_v21 = vsel %vm1304_vm11, %v1307_v15, %v1309_v18  ;;  %v10684_v49 = vand.u32 2147483647, %v6905_v35  ;;  %v10834_v43 = vand.u32 2147483647, %v6877_v50  ;;  %v10835_v38 = vcvt.s32.f32 %v6875_v41 }
 0x1ad   : > { %v10836_v47 = vshll.u32 %v6712_v6, %v6808_v24  ;;  %v1041_v31 = vcvt.s32.f32 %v1034_v58  ;;  %v1385_v59 = vadd.s32 1, %v5519_v36  ;;  %v831_v62 = vand.u32 2147483647, %v6899_v10 }
 0x1ae   : > { %v6946_v33 = vmul.f32 %v10835_v38, %v10834_v43  ;;  %v1119_v53 = vadd.s32 %v6799_v12, %v6805_v51  ;;  %v5513_v4 = vadd.s32 4294967294, %v1235_v61  ;;  %v1329_v17 = vadd.s32 1, %v6934_v40 }
 0x1af   : > { %v826_v30 = vor.u32 %v6897_v55, %v10836_v47  ;;  %v6956_v50 = vmul.f32 %v1041_v31, %v1039_v42  ;;  %v1326_v41 = vmul.u32 %v1319_v28, %v1310_v21  ;;  %vm1328_vm12 = vc.u32 %v6938_v14, %v6933_v39 }
 0x1b0   : > { %vm1386_vm13 = vcmp.gt.s32.totalorder %v1385_v59, 0  ;;  %v1137_v6 = vshrl.u32 %v1119_v53, %v1135_v48  ;;  %v6960_v24 = vor.u32 4788187, %v1141_v3  ;;  %v1330_v36 = vsel %vm1328_vm12, %v1329_v17, %v6934_v40 }
 0x1b1   : > { %v1382_v55 = vand.u32 8388607, %v10684_v49  ;;  %v833_v10 = vcvt.s32.f32 %v826_v30  ;;  %v6968_v12 = vsel %vm890_vm10, %v6819_v5, 920167782  ;;  %v1331_v42 = vadd.s32 %v1330_v36, %v1326_v41 }
 0x1b2   : > { %v1387_v51 = vsel %vm1386_vm13, %v1385_v59, 0  ;;  %v627_v58 = vxor.u32 2147483648, %v6946_v33  ;;  %v1136_v28 = vshll.u32 %v6856_v1, %v6907_v26  ;;  %vm5514_vm14 = vcmp.lt.s32.totalorder %v5513_v4, 0 }
 0x1b3   : > { %v1389_v29 = vand.u32 31, %v1387_v51  ;;  %v6973_v44 = vmul.f32 %v833_v10, %v831_v62  ;;  %v1043_v54 = vxor.u32 2147483648, %v6956_v50  ;;  %v6978_v0 = vadd.s32 %v6862_v13, %v6873_v20 }
 0x1b4   : > { %v1332_v15 = vadd.s32 536870912, %v1331_v42  ;;  %v6980_v18 = vor.u32 %v1137_v6, %v1136_v28  ;;  %v1143_v56 = vand.u32 2147483647, %v6960_v24  ;;  %v1383_v22 = vor.u32 8388608, %v1382_v55 }
 0x1b5   : > { %v1390_v61 = vsub.s32 32, %v1389_v29  ;;  %v6983_v23 = vsel %vm5514_vm14, 0, %v5513_v4  ;;  %v1388_v26 = vshrl.u32 %v1387_v51, 5  ;;  %v1392_v40 = vshll.u32 %v10824_v16, %v1389_v29 }
 0x1b6   : > { %v6985_v1 = vshrl.u32 %v1332_v15, 30  ;;  %v1395_v3 = vshll.u32 %v10828_v11, %v1389_v29  ;;  %v1398_v13 = vshll.u32 %v10829_v52, %v1389_v29  ;;  %v1401_v20 = vshll.u32 %v10830_v2, %v1389_v29 }
 0x1b7   : > { %v1393_v48 = vshrl.u32 %v10828_v11, %v1390_v61  ;;  %v1396_v43 = vshrl.u32 %v10829_v52, %v1390_v61  ;;  %v1399_v38 = vshrl.u32 %v10830_v2, %v1390_v61  ;;  %v1402_v47 = vshrl.u32 %v10821_v34, %v1390_v61 }
 0x1b8   : > { %v1334_v21 = vshll.u32 %v6985_v1, 30  ;;  %v1404_v31 = vshll.u32 %v10821_v34, %v1389_v29  ;;  %v1405_v59 = vshrl.u32 %v10822_v25, %v1390_v61  ;;  %v7000_v62 = vadd.f32 %v6591_v63, %v6892_v9 }
 0x1b9   : > { %v1394_v30 = vor.u32 %v1393_v48, %v1392_v40  ;;  %v1397_v4 = vor.u32 %v1396_v43, %v1395_v3  ;;  %v1400_v17 = vor.u32 %v1399_v38, %v1398_v13  ;;  %v1403_v41 = vor.u32 %v1402_v47, %v1401_v20 }
 0x1ba   : > { %v7002_v53 = vsub.s32 %v1331_v42, %v1334_v21  ;;  %v1239_v6 = vsub.s32 32, %v6983_v23  ;;  %v1243_v36 = vsub.s32 4294967266, %v6983_v23  ;;  %v1406_v55 = vor.u32 %v1405_v59, %v1404_v31  ;;  %v429_v31 = vpop.permute.xlu1 %428 }
 0x1bb   : > { %v1423_v10 = vshll.u32 %v1383_v22, 8  ;;  %vm545_vm0 = vcmp.lt.s32.totalorder %v6553_v19, 0  ;;  %v1391_v28 = vshrl.u32 %v10824_v16, %v1390_v61  ;;  %vm1407_vm1 = vcmp.lt.s32.totalorder %v1388_v26, 1 }
 0x1bc   : > { %v1337_v51 = vsub.s32 0, %v7002_v53  ;;  %vm1410_vm2 = vcmp.lt.s32.totalorder %v1388_v26, 4  ;;  %vm10702_vm3 = vcmp.lt.s32.totalorder %v6613_v46, 0  ;;  %vm1408_vm4 = vcmp.lt.s32.totalorder %v1388_v26, 2 }
 0x1bd   : > { %vm1409_vm5 = vcmp.lt.s32.totalorder %v1388_v26, 3  ;;  %v1415_v63 = vsel %vm1407_vm1, %v1394_v30, %v1397_v4  ;;  %v1416_v9 = vsel %vm1410_vm2, %v1403_v41, 920167782  ;;  %v1412_v29 = vsel %vm1410_vm2, %v1400_v17, 2102212464 }
 0x1be   : > { %v5516_v42 = vmin.u32 %v1337_v51, %v7002_v53  ;;  %v1417_v15 = vsel %vm1409_vm5, %v1400_v17, %v1416_v9  ;;  %v1419_v22 = vsel %vm1407_vm1, %v1397_v4, %v1400_v17  ;;  %vm10724_vm6 = vcmp.lt.s32.totalorder %v6559_v27, 0 }
 0x1bf   : > { %v1418_v61 = vsel %vm1408_vm4, %v1415_v63, %v1417_v15  ;;  %v1420_v40 = vsel %vm1410_vm2, %v1406_v55, 1326507024  ;;  %v10683_v48 = vand.u32 2147483647, %v7000_v62  ;;  %v1482_v3 = vand.u32 2139095040, %v7000_v62 }
 0x1c0   : > { %v10837_v13 = vand.u32 2147483647, %v6613_v46  ;;  %v10838_v20 = vmov 0  ;;  %v1244_v21 = vadd.s32 127, %v1243_v36  ;;  %v1339_v43 = vclz %v5516_v42 }
 0x1c1   : > { %v1411_v38 = vsel %vm1407_vm1, %v1391_v28, %v1394_v30  ;;  %v1421_v47 = vsel %vm1409_vm5, %v1403_v41, %v1420_v40  ;;  %v1413_v59 = vsel %vm1409_vm5, %v1397_v4, %v1412_v29  ;;  %v7036_v36 = vadd.f32 %v6607_v37, %v429_v31 }
 0x1c2   : > { %vm7020_vm7 = vcmp.le.f32.partialorder %v10837_v13, 0.7853982  ;;  %v1422_v17 = vsel %vm1408_vm4, %v1419_v22, %v1421_v47  ;;  %v7028_v55 = vmul.u32.u64.low %v1423_v10, %v1418_v61  ;;  %v7029_v51 = vmul.u32.u64.high %v1423_v10, %v1418_v61, %v7028_v55 }
 0x1c3   : > { %v10839_v20 = vsel %vm7020_vm7, 4294967295, %v10838_v20  ;;  %v5517_v63 = vadd.s32 4294967294, %v1339_v43  ;;  %v7032_v9 = vmul.u32.u64.low %v1423_v10, %v1422_v17  ;;  %v7033_v15 = vmul.u32.u64.high %v1423_v10, %v1422_v17, %v7032_v9 }
 0x1c4   : > { %10840 = vst [vmem:[#allocation30_spill] sm:$0xff] %v10839_v20  ;;  %v835_v30 = vxor.u32 2147483648, %v6973_v44  ;;  %v10841_v41 = vor.u32 %v6769_v57, %v6765_v8  ;;  %v1241_v28 = vshrl.u32 %v6978_v0, %v1239_v6  ;;  %v1483_v42 = vshrl.u32 %v1482_v3, 23 }
 0x1c5   : > { %v1145_v29 = vcvt.s32.f32 %v6980_v18  ;;  %v1245_v22 = vshll.u32 %v1244_v21, 23  ;;  %v1414_v61 = vsel %vm1408_vm4, %v1411_v38, %v1413_v59  ;;  %v1486_v37 = vand.u32 8388607, %v10683_v48 }
 0x1c6   : > { %v7044_v4 = vsel %vm890_vm10, %v10841_v41, 1326507024  ;;  %v7056_v8 = vsel %vm545_vm0, %v627_v58, %v6946_v33  ;;  %v1240_v57 = vshll.u32 %v6924_v32, %v6983_v23  ;;  %v1433_v0 = vadd.s32 1, %v7029_v51 }
 0x1c7   : > { %v5523_v6 = vadd.s32 4294967169, %v1483_v42  ;;  %v1044_v18 = vsel %vm10702_vm3, %v1043_v54, %v6956_v50  ;;  %v7068_v26 = vmul.f32 %v1145_v29, %v1143_v56  ;;  %vm5518_vm8 = vcmp.lt.s32.totalorder %v5517_v63, 0 }
 0x1c8   : > { %v1586_v33 = vand.u32 2139095040, %v7036_v36  ;;  %v7071_v58 = vor.u32 %v1241_v28, %v1240_v57  ;;  %v1430_v40 = vmul.u32 %v1423_v10, %v1414_v61  ;;  %vm1432_vm9 = vc.u32 %v7033_v15, %v7028_v55 }
 0x1c9   : > { %v1489_v32 = vadd.s32 1, %v5523_v6  ;;  %v7078_v23 = vsel %vm10724_vm6, %v835_v30, %v6973_v44  ;;  %v7080_v50 = vor.u32 4788187, %v1245_v22  ;;  %v1434_v24 = vsel %vm1432_vm9, %v1433_v0, %v7029_v51 }
 0x1ca   : > { %v1487_v54 = vor.u32 8388608, %v1486_v37  ;;  %v7086_v56 = vsel %vm7020_vm7, %v6613_v46, %v1044_v18  ;;  %v1342_v10 = vsel %vm5518_vm8, 0, %v5517_v63  ;;  %v1435_v3 = vadd.s32 %v1434_v24, %v1430_v40 }
 0x1cb   : > { %vm1490_vm11 = vcmp.gt.s32.totalorder %v1489_v32, 0  ;;  %v1147_v13 = vxor.u32 2147483648, %v7068_v26  ;;  %v1587_v43 = vshrl.u32 %v1586_v33, 23  ;;  %v7090_v44 = vadd.f32 %v6652_v60, %v429_v31 }
 0x1cc   : > { %v1491_v21 = vsel %vm1490_vm11, %v1489_v32, 0  ;;  %v1249_v38 = vcvt.s32.f32 %v7071_v58  ;;  %v1327_v47 = vadd.s32 %v6933_v39, %v6938_v14  ;;  %v1436_v59 = vadd.s32 536870912, %v1435_v3 }
 0x1cd   : > { %v1493_v17 = vand.u32 31, %v1491_v21  ;;  %v1247_v51 = vand.u32 2147483647, %v7080_v50  ;;  %v1343_v9 = vsub.s32 32, %v1342_v10  ;;  %v7096_v63 = vshll.u32 %v1487_v54, 8 }
 0x1ce   : > { %v10685_v30 = vand.u32 2147483647, %v7036_v36  ;;  %v1344_v41 = vshll.u32 %v7002_v53, %v1342_v10  ;;  %v1347_v28 = vsub.s32 4294967266, %v1342_v10  ;;  %v7100_v42 = vshrl.u32 %v1436_v59, 30 }
 0x1cf   : > { %v1494_v60 = vsub.s32 32, %v1493_v17  ;;  %v1492_v31 = vshrl.u32 %v1491_v21, 5  ;;  %v1496_v29 = vshll.u32 %v10824_v16, %v1493_v17  ;;  %v1499_v14 = vshll.u32 %v10828_v11, %v1493_v17 }
 0x1d0   : > { %10842 = vst [vmem:[#allocation31_spill] sm:$0xff] %v7100_v42  ;;  %v5527_v39 = vadd.s32 4294967169, %v1587_v43  ;;  %v1438_v22 = vshll.u32 %v7100_v42, 30  ;;  %v1502_v57 = vshll.u32 %v10829_v52, %v1493_v17  ;;  %v1505_v0 = vshll.u32 %v10830_v2, %v1493_v17 }
 0x1d1   : > { %v1497_v61 = vshrl.u32 %v10828_v11, %v1494_v60  ;;  %v1500_v37 = vshrl.u32 %v10829_v52, %v1494_v60  ;;  %v1503_v53 = vshrl.u32 %v10830_v2, %v1494_v60  ;;  %v1506_v6 = vshrl.u32 %v10821_v34, %v1494_v60 }
 0x1d2   : > { %v1509_v18 = vshrl.u32 %v10822_v25, %v1494_v60  ;;  %v7112_v33 = vsub.s32 %v1435_v3, %v1438_v22  ;;  %v1508_v24 = vshll.u32 %v10821_v34, %v1493_v17  ;;  %v1345_v54 = vshrl.u32 %v1327_v47, %v1343_v9 }
 0x1d3   : > { %v1498_v40 = vor.u32 %v1497_v61, %v1496_v29  ;;  %v1501_v32 = vor.u32 %v1500_v37, %v1499_v14  ;;  %v1348_v10 = vadd.s32 127, %v1347_v28  ;;  %v1504_v21 = vor.u32 %v1503_v53, %v1502_v57 }
 0x1d4   : > { %v1507_v43 = vor.u32 %v1506_v6, %v1505_v0  ;;  %vm10721_vm12 = vcmp.lt.s32.totalorder %v6666_v7, 0  ;;  %v1441_v59 = vsub.s32 0, %v7112_v33  ;;  %v1510_v48 = vor.u32 %v1509_v18, %v1508_v24 }
 0x1d5   : > { %vm1511_vm13 = vcmp.lt.s32.totalorder %v1492_v31, 1  ;;  %v1590_v49 = vand.u32 8388607, %v10685_v30  ;;  %v1495_v3 = vshrl.u32 %v10824_v16, %v1494_v60  ;;  %vm1514_vm14 = vcmp.lt.s32.totalorder %v1492_v31, 4 }
 0x1d6   : > { %v1519_v29 = vsel %vm1511_vm13, %v1498_v40, %v1501_v32  ;;  %v1593_v14 = vadd.s32 1, %v5527_v39  ;;  %v5520_v17 = vmin.u32 %v1441_v59, %v7112_v33  ;;  %vm1513_vm1 = vcmp.lt.s32.totalorder %v1492_v31, 3 }
 0x1d7   : > { %v1516_v47 = vsel %vm1514_vm14, %v1504_v21, 2102212464  ;;  %v1520_v9 = vsel %vm1514_vm14, %v1507_v43, 920167782  ;;  %v7121_v28 = vor.u32 %v1345_v54, %v1344_v41  ;;  %vm1512_vm2 = vcmp.lt.s32.totalorder %v1492_v31, 2 }
 0x1d8   : > { %v1521_v22 = vsel %vm1513_vm1, %v1504_v21, %v1520_v9  ;;  %v1523_v61 = vsel %vm1511_vm13, %v1501_v32, %v1504_v21  ;;  %v1443_v37 = vclz %v5520_v17  ;;  %v1515_v57 = vsel %vm1511_vm13, %v1495_v3, %v1498_v40 }
 0x1d9   : > { %v1522_v53 = vsel %vm1512_vm2, %v1519_v29, %v1521_v22  ;;  %v1524_v0 = vsel %vm1514_vm14, %v1510_v48, 1326507024  ;;  %v1517_v6 = vsel %vm1513_vm1, %v1501_v32, %v1516_v47  ;;  %v1349_v24 = vshll.u32 %v1348_v10, 23 }
 0x1da   : > { %v1525_v60 = vsel %vm1513_vm1, %v1507_v43, %v1524_v0  ;;  %v7125_v18 = vmul.u32.u64.low %v7096_v63, %v1522_v53  ;;  %v7126_v39 = vmul.u32.u64.high %v7096_v63, %v1522_v53, %v7125_v18  ;;  %v5521_v59 = vadd.s32 4294967294, %v1443_v37 }
 0x1db   : > { %v1526_v41 = vsel %vm1512_vm2, %v1523_v61, %v1525_v60  ;;  %vm1594_vm4 = vcmp.gt.s32.totalorder %v1593_v14, 0  ;;  %v1591_v40 = vor.u32 8388608, %v1590_v49  ;;  %v1518_v48 = vsel %vm1512_vm2, %v1515_v57, %v1517_v6 }
 0x1dc   : > { %v7131_v54 = vmul.u32.u64.low %v7096_v63, %v1526_v41  ;;  %v7132_v21 = vmul.u32.u64.high %v7096_v63, %v1526_v41, %v7131_v54  ;;  %v1595_v3 = vsel %vm1594_vm4, %v1593_v14, 0  ;;  %vm5522_vm5 = vcmp.lt.s32.totalorder %v5521_v59, 0 }
 0x1dd   : > { %v1597_v32 = vand.u32 31, %v1595_v3  ;;  %v1690_v43 = vand.u32 2139095040, %v7090_v44  ;;  %5979 = vcosq.f32 %v7086_v56  ;;  %v7142_v10 = vsel %vm10721_vm12, %v1147_v13, %v7068_v26 }
 0x1de   : > { %v7144_v29 = vsel %vm5522_vm5, 0, %v5521_v59  ;;  %v1537_v49 = vadd.s32 1, %v7126_v39  ;;  %v7151_v31 = vmul.f32 %v1249_v38, %v1247_v51  ;;  %v7155_v14 = vadd.s32 %v7028_v55, %v7033_v15 }
 0x1df   : > { %v1598_v17 = vsub.s32 32, %v1597_v32  ;;  %v1350_v9 = vor.u32 4788187, %v1349_v24  ;;  %v1353_v26 = vcvt.s32.f32 %v7121_v28  ;;  %v1534_v13 = vmul.u32 %v7096_v63, %v1518_v48 }
 0x1e0   : > { %vm1536_vm8 = vc.u32 %v7132_v21, %v7125_v18  ;;  %v1451_v50 = vsub.s32 4294967266, %v7144_v29  ;;  %v7164_v38 = vshll.u32 %v1591_v40, 8  ;;  %v1691_v51 = vshrl.u32 %v1690_v43, 23 }
 0x1e1   : > { %v1538_v58 = vsel %vm1536_vm8, %v1537_v49, %v7126_v39  ;;  %v1596_v15 = vshrl.u32 %v1595_v3, 5  ;;  %v1601_v22 = vshrl.u32 %v10828_v11, %v1598_v17  ;;  %v1604_v61 = vshrl.u32 %v10829_v52, %v1598_v17 }
 0x1e2   : > { %v1539_v55 = vadd.s32 %v1538_v58, %v1534_v13  ;;  %v1600_v28 = vshll.u32 %v10824_v16, %v1597_v32  ;;  %v1603_v63 = vshll.u32 %v10828_v11, %v1597_v32  ;;  %v1606_v37 = vshll.u32 %v10829_v52, %v1597_v32 }
 0x1e3   : > { %v1607_v57 = vshrl.u32 %v10830_v2, %v1598_v17  ;;  %v1351_v53 = vand.u32 2147483647, %v1350_v9  ;;  %v1609_v6 = vshll.u32 %v10830_v2, %v1597_v32  ;;  %v1610_v60 = vshrl.u32 %v10821_v34, %v1598_v17 }
 0x1e4   : > { %v1540_v0 = vadd.s32 536870912, %v1539_v55  ;;  %v1452_v39 = vadd.s32 127, %v1451_v50  ;;  %v1602_v24 = vor.u32 %v1601_v22, %v1600_v28  ;;  %v1605_v59 = vor.u32 %v1604_v61, %v1603_v63 }
 0x1e5   : > { %v1608_v41 = vor.u32 %v1607_v57, %v1606_v37  ;;  %v10843_v54 = vand.u32 2147483647, %v6666_v7  ;;  %v1611_v48 = vor.u32 %v1610_v60, %v1609_v6  ;;  %v1612_v43 = vshll.u32 %v10821_v34, %v1597_v32 }
 0x1e6   : > { %v7180_v3 = vshrl.u32 %v1540_v0, 30  ;;  %v1613_v49 = vshrl.u32 %v10822_v25, %v1598_v17  ;;  %v1447_v9 = vsub.s32 32, %v7144_v29  ;;  %v1599_v13 = vshrl.u32 %v10824_v16, %v1598_v17 }
 0x1e7   : > { %vm7176_vm9 = vcmp.le.f32.partialorder %v10843_v54, 0.7853982  ;;  %vm1618_vm11 = vcmp.lt.s32.totalorder %v1596_v15, 4  ;;  %v5531_v50 = vadd.s32 4294967169, %v1691_v51  ;;  %v7186_v58 = vpop.eup %5979  ;;  %vm1615_vm13 = vcmp.lt.s32.totalorder %v1596_v15, 1 }
 0x1e8   : > { %10846 = vst [vmem:[#allocation32_spill] sm:$0xff] %v7180_v3  ;;  %10847 = vst [vmem:[#allocation33_spill] sm:$0xff] %v7186_v58  ;;  %v1542_v22 = vshll.u32 %v7180_v3, 30  ;;  %v1614_v61 = vor.u32 %v1613_v49, %v1612_v43  ;;  %v1620_v28 = vsel %vm1618_vm11, %v1608_v41, 2102212464  ;;  %v1453_v63 = vshll.u32 %v1452_v39, 23 }
 0x1e9   : > { %vm1617_vm14 = vcmp.lt.s32.totalorder %v1596_v15, 3  ;;  %v1623_v37 = vsel %vm1615_vm13, %v1602_v24, %v1605_v59  ;;  %v1624_v32 = vsel %vm1618_vm11, %v1611_v48, 920167782  ;;  %vm1616_vm1 = vcmp.lt.s32.totalorder %v1596_v15, 2  ;;  %v10852_v58 = vld [vmem:[#allocation22_spill] sm:$0xff] }
 0x1ea   : > { %v7191_v57 = vsub.s32 %v1539_v55, %v1542_v22  ;;  %v1625_v0 = vsel %vm1617_vm14, %v1608_v41, %v1624_v32  ;;  %v1627_v17 = vsel %vm1615_vm13, %v1605_v59, %v1608_v41  ;;  %v1619_v6 = vsel %vm1615_vm13, %v1599_v13, %v1602_v24 }
 0x1eb   : > { %v1621_v51 = vsel %vm1617_vm14, %v1605_v59, %v1620_v28  ;;  %v1626_v60 = vsel %vm1616_vm1, %v1623_v37, %v1625_v0  ;;  %v1628_v54 = vsel %vm1618_vm11, %v1614_v61, 1326507024  ;;  %v7201_v47 = vmul.f32 %v1353_v26, %v1351_v53 }
 0x1ec   : > { %v1545_v43 = vsub.s32 0, %v7191_v57  ;;  %v1629_v49 = vsel %vm1617_vm14, %v1611_v48, %v1628_v54  ;;  %v7197_v39 = vmul.u32.u64.low %v7164_v38, %v1626_v60  ;;  %v7198_v30 = vmul.u32.u64.high %v7164_v38, %v1626_v60, %v7197_v39  ;;  %v7225_v54 = vpop.permute.xlu0 %433 }
 0x1ed   : > { %v1630_v55 = vsel %vm1616_vm1, %v1627_v17, %v1629_v49  ;;  %v10848_v41 = vand.u32 2147483647, %v7090_v44  ;;  %v1697_v59 = vadd.s32 1, %v5531_v50  ;;  %5981 = vsinq.f32 %v7086_v56 }
 0x1ee   : > { %v5524_v13 = vmin.u32 %v1545_v43, %v7191_v57  ;;  %v7209_v22 = vmul.u32.u64.low %v7164_v38, %v1630_v55  ;;  %v7210_v48 = vmul.u32.u64.high %v7164_v38, %v1630_v55, %v7209_v22  ;;  %v7216_v26 = vsel %vm7176_vm9, %v6666_v7, %v7142_v10 }
 0x1ef   : > { %v1694_v24 = vand.u32 8388607, %v10848_v41  ;;  %v1449_v53 = vshrl.u32 %v7155_v14, %v1447_v9  ;;  %v1622_v61 = vsel %vm1616_vm1, %v1619_v6, %v1621_v51  ;;  %vm1698_vm2 = vcmp.gt.s32.totalorder %v1697_v59, 0  ;;  %v10849_v51 = vld [vmem:[#allocation23_spill] sm:$0xff] }
 0x1f0   : > { %v7220_v50 = vor.u32 4788187, %v1453_v63  ;;  %v1547_v56 = vclz %v5524_v13  ;;  %v1641_v28 = vadd.s32 1, %v7198_v30  ;;  %v1699_v37 = vsel %vm1698_vm2, %v1697_v59, 0 }
 0x1f1   : > { %v1695_v17 = vor.u32 8388608, %v1694_v24  ;;  %v1701_v60 = vand.u32 31, %v1699_v37  ;;  %v1448_v10 = vshll.u32 %v7112_v33, %v7144_v29  ;;  %v1638_v15 = vmul.u32 %v7164_v38, %v1622_v61 }
 0x1f2   : > { %v5525_v14 = vadd.s32 4294967294, %v1547_v56  ;;  %vm1640_vm4 = vc.u32 %v7210_v48, %v7197_v39  ;;  %v1535_v9 = vadd.s32 %v7125_v18, %v7132_v21  ;;  %v7237_v43 = vadd.f32 %v10849_v51, %v7225_v54 }
 0x1f3   : > { %v1642_v63 = vsel %vm1640_vm4, %v1641_v28, %v7198_v30  ;;  %v1702_v6 = vsub.s32 32, %v1701_v60  ;;  %v7239_v49 = vor.u32 %v1449_v53, %v1448_v10  ;;  %v1700_v55 = vshrl.u32 %v1699_v37, 5 }
 0x1f4   : > { %vm5526_vm5 = vcmp.lt.s32.totalorder %v5525_v14, 0  ;;  %v1643_v29 = vadd.s32 %v1642_v63, %v1638_v15  ;;  %v1704_v24 = vshll.u32 %v10824_v16, %v1701_v60  ;;  %v1707_v59 = vshll.u32 %v10828_v11, %v1701_v60 }
 0x1f5   : > { %v7242_v38 = vsel %vm5526_vm5, 0, %v5525_v14  ;;  %v1705_v41 = vshrl.u32 %v10828_v11, %v1702_v6  ;;  %v1708_v18 = vshrl.u32 %v10829_v52, %v1702_v6  ;;  %v1710_v13 = vshll.u32 %v10829_v52, %v1701_v60 }
 0x1f6   : > { %v1555_v30 = vsub.s32 4294967266, %v7242_v38  ;;  %v1644_v21 = vadd.s32 536870912, %v1643_v29  ;;  %v1711_v22 = vshrl.u32 %v10830_v2, %v1702_v6  ;;  %v1713_v53 = vshll.u32 %v10830_v2, %v1701_v60 }
 0x1f7   : > { %v1714_v61 = vshrl.u32 %v10821_v34, %v1702_v6  ;;  %v7253_v56 = vpop.eup %5981  ;;  %v1706_v10 = vor.u32 %v1705_v41, %v1704_v24  ;;  %v1709_v14 = vor.u32 %v1708_v18, %v1707_v59  ;;  %v1716_v51 = vshll.u32 %v10821_v34, %v1701_v60 }
 0x1f8   : > { %10850 = vst [vmem:[#allocation23_spill] sm:$0xff] %v7253_v56  ;;  %v1556_v28 = vadd.s32 127, %v1555_v30  ;;  %v7255_v37 = vshrl.u32 %v1644_v21, 30  ;;  %v1712_v15 = vor.u32 %v1711_v22, %v1710_v13  ;;  %v1717_v33 = vshrl.u32 %v10822_v25, %v1702_v6  ;;  %v10853_v21 = vld [vmem:[#allocation26_spill] sm:$0xff] }
 0x1f9   : > { %v1715_v63 = vor.u32 %v1714_v61, %v1713_v53  ;;  %v7260_v32 = vshll.u32 %v1695_v17, 8  ;;  %v1794_v3 = vand.u32 2139095040, %v7237_v43  ;;  %vm10701_vm8 = vcmp.lt.s32.totalorder %v10852_v58, 0 }
 0x1fa   : > { %10851 = vst [vmem:[#allocation34_spill] sm:$0xff] %v7255_v37  ;;  %v1646_v0 = vshll.u32 %v7255_v37, 30  ;;  %v1551_v30 = vsub.s32 32, %v7242_v38  ;;  %v1552_v41 = vshll.u32 %v7191_v57, %v7242_v38  ;;  %v1703_v18 = vshrl.u32 %v10824_v16, %v1702_v6 }
 0x1fb   : > { %v1718_v60 = vor.u32 %v1717_v33, %v1716_v51  ;;  %vm10703_vm11 = vcmp.lt.s32.totalorder %v10853_v21, 0  ;;  %v1557_v24 = vshll.u32 %v1556_v28, 23  ;;  %vm1719_vm13 = vcmp.lt.s32.totalorder %v1700_v55, 1 }
 0x1fc   : > { %v7270_v59 = vsub.s32 %v1643_v29, %v1646_v0  ;;  %vm1722_vm14 = vcmp.lt.s32.totalorder %v1700_v55, 4  ;;  %vm1721_vm1 = vcmp.lt.s32.totalorder %v1700_v55, 3  ;;  %v1727_v13 = vsel %vm1719_vm13, %v1706_v10, %v1709_v14 }
 0x1fd   : > { %v1724_v17 = vsel %vm1722_vm14, %v1712_v15, 2102212464  ;;  %v1728_v22 = vsel %vm1722_vm14, %v1715_v63, 920167782  ;;  %vm1720_vm2 = vcmp.lt.s32.totalorder %v1700_v55, 2  ;;  %v1731_v6 = vsel %vm1719_vm13, %v1709_v14, %v1712_v15 }
 0x1fe   : > { %v1649_v53 = vsub.s32 0, %v7270_v59  ;;  %v1729_v57 = vsel %vm1721_vm1, %v1712_v15, %v1728_v22  ;;  %v1553_v33 = vshrl.u32 %v1535_v9, %v1551_v30  ;;  %v1732_v61 = vsel %vm1722_vm14, %v1718_v60, 1326507024 }
 0x1ff   : > { %v1730_v38 = vsel %vm1720_vm2, %v1727_v13, %v1729_v57  ;;  %v1795_v0 = vshrl.u32 %v1794_v3, 23  ;;  %v10854_v29 = vand.u32 2147483647, %v10852_v58  ;;  %v10855_v28 = vmov 0 }
 0x200   : > { %v10858_v51 = vand.u32 2147483647, %v10853_v21  ;;  %v10859_v42 = vmov 0  ;;  %v5528_v22 = vmin.u32 %v1649_v53, %v7270_v59  ;;  %v1723_v9 = vsel %vm1719_vm13, %v1703_v18, %v1706_v10 }
 0x201   : > { %vm7279_vm4 = vcmp.le.f32.partialorder %v10854_v29, 0.7853982  ;;  %v1725_v15 = vsel %vm1721_vm1, %v1709_v14, %v1724_v17  ;;  %v1733_v3 = vsel %vm1721_vm1, %v1715_v63, %v1732_v61  ;;  %v5535_v57 = vadd.s32 4294967169, %v1795_v0 }
 0x202   : > { %v10856_v28 = vsel %vm7279_vm4, 4294967295, %v10855_v28  ;;  %vm7285_vm5 = vcmp.le.f32.partialorder %v10858_v51, 0.7853982  ;;  %v1734_v30 = vsel %vm1720_vm2, %v1731_v6, %v1733_v3  ;;  %v1558_v29 = vor.u32 4788187, %v1557_v24 }
 0x203   : > { %10857 = vst [vmem:[#allocation35_spill] sm:$0xff] %v10856_v28  ;;  %v10860_v42 = vsel %vm7285_vm5, 4294967295, %v10859_v42  ;;  %v7295_v60 = vmul.u32.u64.low %v7260_v32, %v1730_v38  ;;  %v7296_v13 = vmul.u32.u64.high %v7260_v32, %v1730_v38, %v7295_v60  ;;  %v1651_v51 = vclz %v5528_v22 }
 0x204   : > { %10861 = vst [vmem:[#allocation36_spill] sm:$0xff] %v10860_v42  ;;  %v7300_v37 = vmul.u32.u64.low %v7260_v32, %v1734_v30  ;;  %v7301_v56 = vmul.u32.u64.high %v7260_v32, %v1734_v30, %v7300_v37  ;;  %v1457_v10 = vcvt.s32.f32 %v7239_v49  ;;  %v1726_v14 = vsel %vm1720_vm2, %v1723_v9, %v1725_v15 }
 0x205   : > { %v10862_v63 = vand.u32 2147483647, %v7237_v43  ;;  %v1801_v17 = vadd.s32 1, %v5535_v57  ;;  %5983 = vcosq.f32 %v7216_v26  ;;  %v10863_v53 = vxor.u32 2147483648, %v7151_v31 }
 0x206   : > { %v1554_v6 = vor.u32 %v1553_v33, %v1552_v41  ;;  %v5529_v38 = vadd.s32 4294967294, %v1651_v51  ;;  %v10864_v37 = vxor.u32 2147483648, %v7201_v47  ;;  %v10865_v55 = vand.u32 2147483647, %v7220_v50 }
 0x207   : > { %v1798_v18 = vand.u32 8388607, %v10862_v63  ;;  %v1252_v24 = vsel %vm10701_vm8, %v10863_v53, %v7151_v31  ;;  %v1745_v0 = vadd.s32 1, %v7296_v13  ;;  %vm1802_vm13 = vcmp.gt.s32.totalorder %v1801_v17, 0 }
 0x208   : > { %v1356_v49 = vsel %vm10703_vm11, %v10864_v37, %v7201_v47  ;;  %v7320_v61 = vmul.f32 %v1457_v10, %v10865_v55  ;;  %v1559_v22 = vand.u32 2147483647, %v1558_v29  ;;  %vm5530_vm14 = vcmp.lt.s32.totalorder %v5529_v38, 0 }
 0x209   : > { %v1742_v9 = vmul.u32 %v7260_v32, %v1726_v14  ;;  %vm1744_vm1 = vc.u32 %v7301_v56, %v7295_v60  ;;  %v7326_v31 = vsel %vm5530_vm14, 0, %v5529_v38  ;;  %v1799_v33 = vor.u32 8388608, %v1798_v18 }
 0x20a   : > { %v1746_v41 = vsel %vm1744_vm1, %v1745_v0, %v7296_v13  ;;  %v1803_v47 = vsel %vm1802_vm13, %v1801_v17, 0  ;;  %5985 = vsinq.f32 %v7216_v26  ;;  %v1561_v50 = vcvt.s32.f32 %v1554_v6  ;;  %v10866_v17 = vld [vmem:[#allocation25_spill] sm:$0xff] }
 0x20b   : > { %v1659_v15 = vsub.s32 4294967266, %v7326_v31  ;;  %v1747_v3 = vadd.s32 %v1746_v41, %v1742_v9  ;;  %v7334_v30 = vsel %vm7279_vm4, %v10852_v58, %v1252_v24  ;;  %v7339_v32 = vsel %vm7285_vm5, %v10853_v21, %v1356_v49 }
 0x20c   : > { %v1805_v57 = vand.u32 31, %v1803_v47  ;;  %v7342_v29 = vmul.f32 %v1561_v50, %v1559_v22  ;;  %v1639_v26 = vadd.s32 %v7197_v39, %v7210_v48  ;;  %v1655_v14 = vsub.s32 32, %v7326_v31 }
 0x20d   : > { %v1660_v51 = vadd.s32 127, %v1659_v15  ;;  %v1748_v10 = vadd.s32 536870912, %v1747_v3  ;;  %v7347_v18 = vshll.u32 %v1799_v33, 8  ;;  %v7351_v53 = vadd.f32 %v10866_v17, %v7225_v54 }
 0x20e   : > { %v1806_v63 = vsub.s32 32, %v1805_v57  ;;  %v1808_v6 = vshll.u32 %v10824_v16, %v1805_v57  ;;  %v1811_v38 = vshll.u32 %v10828_v11, %v1805_v57  ;;  %v1814_v37 = vshll.u32 %v10829_v52, %v1805_v57 }
 0x20f   : > { %v7353_v24 = vshrl.u32 %v1748_v10, 30  ;;  %v1661_v39 = vshll.u32 %v1660_v51, 23  ;;  %v7361_v0 = vpop.eup %5983  ;;  %v1804_v22 = vshrl.u32 %v1803_v47, 5  ;;  %v1817_v9 = vshll.u32 %v10830_v2, %v1805_v57 }
 0x210   : > { %v1809_v48 = vshrl.u32 %v10828_v11, %v1806_v63  ;;  %v1812_v49 = vshrl.u32 %v10829_v52, %v1806_v63  ;;  %v1815_v55 = vshrl.u32 %v10830_v2, %v1806_v63  ;;  %10868 = vst [vmem:[#allocation37_spill] sm:$0xff] %v7361_v0  ;;  %v1818_v41 = vshrl.u32 %v10821_v34, %v1806_v63 }
 0x211   : > { %10867 = vst [vmem:[#allocation25_spill] sm:$0xff] %v7353_v24  ;;  %v1750_v54 = vshll.u32 %v7353_v24, 30  ;;  %v1656_v33 = vshll.u32 %v7270_v59, %v7326_v31  ;;  %vm10719_vm2 = vcmp.lt.s32.totalorder %v6905_v35, 0  ;;  %v1820_v13 = vshll.u32 %v10821_v34, %v1805_v57 }
 0x212   : > { %v1810_v50 = vor.u32 %v1809_v48, %v1808_v6  ;;  %v1813_v15 = vor.u32 %v1812_v49, %v1811_v38  ;;  %v1816_v51 = vor.u32 %v1815_v55, %v1814_v37  ;;  %v1819_v17 = vor.u32 %v1818_v41, %v1817_v9 }
 0x213   : > { %v7369_v10 = vsub.s32 %v1747_v3, %v1750_v54  ;;  %v1821_v24 = vshrl.u32 %v10822_v25, %v1806_v63  ;;  %v1657_v47 = vshrl.u32 %v1639_v26, %v1655_v14  ;;  %v1662_v28 = vor.u32 4788187, %v1661_v39 }
 0x214   : > { %v1807_v58 = vshrl.u32 %v10824_v16, %v1806_v63  ;;  %v1898_v20 = vand.u32 2139095040, %v7351_v53  ;;  %v7375_v46 = vpop.eup %5985  ;;  %vm1823_vm13 = vcmp.lt.s32.totalorder %v1804_v22, 1  ;;  %vm1826_vm14 = vcmp.lt.s32.totalorder %v1804_v22, 4 }
 0x215   : > { %10869 = vst [vmem:[#allocation38_spill] sm:$0xff] %v7375_v46  ;;  %v1753_v59 = vsub.s32 0, %v7369_v10  ;;  %v1822_v31 = vor.u32 %v1821_v24, %v1820_v13  ;;  %v10870_v3 = vand.u32 2147483647, %v6905_v35  ;;  %v10871_v6 = vmov 0 }
 0x216   : > { %vm1824_vm8 = vcmp.lt.s32.totalorder %v1804_v22, 2  ;;  %vm1825_vm3 = vcmp.lt.s32.totalorder %v1804_v22, 3  ;;  %v1831_v57 = vsel %vm1823_vm13, %v1810_v50, %v1813_v15  ;;  %v1832_v26 = vsel %vm1826_vm14, %v1819_v17, 920167782  ;;  %v10875_v22 = vld [vmem:[#allocation9_spill] sm:$0xff] }
 0x217   : > { %vm7380_vm1 = vcmp.le.f32.partialorder %v10870_v3, 0.7853982  ;;  %vm10720_vm11 = vcmp.lt.s32.totalorder %v7000_v62, 0  ;;  %v5532_v14 = vmin.u32 %v1753_v59, %v7369_v10  ;;  %v1828_v63 = vsel %vm1826_vm14, %v1816_v51, 2102212464 }
 0x218   : > { %v10872_v6 = vsel %vm7380_vm1, 4294967295, %v10871_v6  ;;  %v1833_v13 = vsel %vm1825_vm3, %v1816_v51, %v1832_v26  ;;  %v1835_v24 = vsel %vm1823_vm13, %v1813_v15, %v1816_v51  ;;  %v1836_v37 = vsel %vm1826_vm14, %v1822_v31, 1326507024 }
 0x219   : > { %10873 = vst [vmem:[#allocation39_spill] sm:$0xff] %v10872_v6  ;;  %v1834_v38 = vsel %vm1824_vm8, %v1831_v57, %v1833_v13  ;;  %v10704_v39 = vand.u32 2147483647, %v7351_v53  ;;  %v1899_v48 = vshrl.u32 %v1898_v20, 23  ;;  %v1658_v49 = vor.u32 %v1657_v47, %v1656_v33 }
 0x21a   : > { %v1755_v55 = vclz %v5532_v14  ;;  %v1827_v54 = vsel %vm1823_vm13, %v1807_v58, %v1810_v50  ;;  %v1837_v9 = vsel %vm1825_vm3, %v1819_v17, %v1836_v37  ;;  %v1829_v41 = vsel %vm1825_vm3, %v1813_v15, %v1828_v63 }
 0x21b   : > { %v1838_v59 = vsel %vm1824_vm8, %v1835_v24, %v1837_v9  ;;  %v7396_v3 = vmul.u32.u64.low %v7347_v18, %v1834_v38  ;;  %v7397_v26 = vmul.u32.u64.high %v7347_v18, %v1834_v38, %v7396_v3  ;;  %v1663_v51 = vand.u32 2147483647, %v1662_v28 }
 0x21c   : > { %v5533_v31 = vadd.s32 4294967294, %v1755_v55  ;;  %v7401_v57 = vmul.u32.u64.low %v7347_v18, %v1838_v59  ;;  %v7402_v20 = vmul.u32.u64.high %v7347_v18, %v1838_v59, %v7401_v57  ;;  %5987 = vcosq.f32 %v7334_v30 }
 0x21d   : > { %v10874_v58 = vxor.u32 2147483648, %v7320_v61  ;;  %v1563_v50 = vxor.u32 2147483648, %v7342_v29  ;;  %v5539_v15 = vadd.s32 4294967169, %v1899_v48  ;;  %5989 = vsinq.f32 %v7334_v30 }
 0x21e   : > { %v1665_v17 = vcvt.s32.f32 %v1658_v49  ;;  %v1830_v28 = vsel %vm1824_vm8, %v1827_v54, %v1829_v41  ;;  %v1902_v47 = vand.u32 8388607, %v10704_v39  ;;  %5991 = vcosq.f32 %v7339_v32 }
 0x21f   : > { %v1460_v33 = vsel %vm10719_vm2, %v10874_v58, %v7320_v61  ;;  %vm5534_vm3 = vcmp.lt.s32.totalorder %v5533_v31, 0  ;;  %v1849_v14 = vadd.s32 1, %v7397_v26  ;;  %v1905_v63 = vadd.s32 1, %v5539_v15 }
 0x220   : > { %5993 = vsinq.f32 %v7339_v32  ;;  %v7421_v61 = vsel %vm7380_vm1, %v6905_v35, %v1460_v33  ;;  %v7423_v30 = vmul.f32 %v1665_v17, %v1663_v51  ;;  %v10705_v13 = vand.u32 2147483647, %v10875_v22  ;;  %v10877_v51 = vld [vmem:[#allocation13_spill] sm:$0xff] }
 0x221   : > { %v7429_v24 = vsel %vm10720_vm11, %v1563_v50, %v7342_v29  ;;  %v1846_v38 = vmul.u32 %v7347_v18, %v1830_v28  ;;  %vm1848_vm8 = vc.u32 %v7402_v20, %v7396_v3  ;;  %vm1906_vm13 = vcmp.gt.s32.totalorder %v1905_v63, 0  ;;  %v10876_v29 = vld [vmem:[#allocation14_spill] sm:$0xff] }
 0x222   : > { %v7434_v32 = vsel %vm5534_vm3, 0, %v5533_v31  ;;  %v1850_v37 = vsel %vm1848_vm8, %v1849_v14, %v7397_v26  ;;  %v1903_v48 = vor.u32 8388608, %v1902_v47  ;;  %v1907_v49 = vsel %vm1906_vm13, %v1905_v63, 0 }
 0x223   : > { %v7439_v55 = vadd.s32 %v7295_v60, %v7301_v56  ;;  %v1851_v54 = vadd.s32 %v1850_v37, %v1846_v38  ;;  %v1909_v9 = vand.u32 31, %v1907_v49  ;;  %v7443_v41 = vshrl.u32 %v10824_v16, %v10876_v29 }
 0x224   : > { %v7448_v59 = vand.u32 8388607, %v10705_v13  ;;  %v664_v26 = vshll.u32 %v10824_v16, %v10877_v51  ;;  %v665_v31 = vshrl.u32 %v10828_v11, %v10876_v29  ;;  %v1763_v60 = vsub.s32 4294967266, %v7434_v32 }
 0x225   : > { %v1852_v57 = vadd.s32 536870912, %v1851_v54  ;;  %v1910_v58 = vsub.s32 32, %v1909_v9  ;;  %v1908_v33 = vshrl.u32 %v1907_v49, 5  ;;  %v1912_v50 = vshll.u32 %v10824_v16, %v1909_v9 }
 0x226   : > { %v1915_v15 = vshll.u32 %v10828_v11, %v1909_v9  ;;  %v7458_v17 = vshll.u32 %v1903_v48, 8  ;;  %v7460_v28 = vpop.eup %5987  ;;  %v1918_v38 = vshll.u32 %v10829_v52, %v1909_v9  ;;  %v1921_v39 = vshll.u32 %v10830_v2, %v1909_v9 }
 0x227   : > { %10878 = vst [vmem:[#allocation9_spill] sm:$0xff] %v7460_v28  ;;  %v7462_v47 = vshrl.u32 %v1852_v57, 30  ;;  %v1913_v14 = vshrl.u32 %v10828_v11, %v1910_v58  ;;  %v1916_v63 = vshrl.u32 %v10829_v52, %v1910_v58  ;;  %v7467_v37 = vpop.eup %5989  ;;  %v1919_v49 = vshrl.u32 %v10830_v2, %v1910_v58 }
 0x228   : > { %10880 = vst [vmem:[#allocation13_spill] sm:$0xff] %v7467_v37  ;;  %v1922_v13 = vshrl.u32 %v10821_v34, %v1910_v58  ;;  %v1924_v48 = vshll.u32 %v10821_v34, %v1909_v9  ;;  %v7473_v18 = vpop.eup %5991  ;;  %v1925_v35 = vshrl.u32 %v10822_v25, %v1910_v58  ;;  %v1764_v42 = vadd.s32 127, %v1763_v60 }
 0x229   : > { %10879 = vst [vmem:[#allocation14_spill] sm:$0xff] %v7462_v47  ;;  %v1854_v57 = vshll.u32 %v7462_v47, 30  ;;  %v1914_v56 = vor.u32 %v1913_v14, %v1912_v50  ;;  %v1917_v6 = vor.u32 %v1916_v63, %v1915_v15  ;;  %v1920_v37 = vor.u32 %v1919_v49, %v1918_v38 }
 0x22a   : > { %v7477_v28 = vpop.eup %5993  ;;  %v1923_v0 = vor.u32 %v1922_v13, %v1921_v39  ;;  %v668_v46 = vshrl.u32 %v10829_v52, %v10876_v29  ;;  %v1911_v9 = vshrl.u32 %v10824_v16, %v1910_v58  ;;  %v1926_v34 = vor.u32 %v1925_v35, %v1924_v48 }
 0x22b   : > { %v7481_v21 = vsub.s32 %v1851_v54, %v1854_v57  ;;  %vm1927_vm14 = vcmp.lt.s32.totalorder %v1908_v33, 1  ;;  %vm1928_vm3 = vcmp.lt.s32.totalorder %v1908_v33, 2  ;;  %vm1929_vm8 = vcmp.lt.s32.totalorder %v1908_v33, 3 }
 0x22c   : > { %vm1930_vm13 = vcmp.lt.s32.totalorder %v1908_v33, 4  ;;  %v1935_v50 = vsel %vm1927_vm14, %v1914_v56, %v1917_v6  ;;  %v1931_v14 = vsel %vm1927_vm14, %v1911_v9, %v1914_v56  ;;  %v1939_v13 = vsel %vm1927_vm14, %v1917_v6, %v1920_v37 }
 0x22d   : > { %v1857_v15 = vsub.s32 0, %v7481_v21  ;;  %v1932_v63 = vsel %vm1930_vm13, %v1920_v37, 2102212464  ;;  %v1936_v60 = vsel %vm1930_vm13, %v1923_v0, 920167782  ;;  %v1760_v54 = vshll.u32 %v7369_v10, %v7434_v32 }
 0x22e   : > { %v1933_v38 = vsel %vm1929_vm8, %v1917_v6, %v1932_v63  ;;  %v1937_v39 = vsel %vm1929_vm8, %v1920_v37, %v1936_v60  ;;  %v1940_v49 = vsel %vm1930_vm13, %v1926_v34, 1326507024  ;;  %v1765_v57 = vshll.u32 %v1764_v42, 23 }
 0x22f   : > { %v5536_v35 = vmin.u32 %v1857_v15, %v7481_v21  ;;  %v1938_v58 = vsel %vm1928_vm3, %v1935_v50, %v1937_v39  ;;  %v1941_v48 = vsel %vm1929_vm8, %v1923_v0, %v1940_v49  ;;  %v667_v56 = vshll.u32 %v10828_v11, %v10877_v51  ;;  %v10887_v49 = vld [vmem:[#allocation16_spill] sm:$0xff] }
 0x230   : > { %v7490_v25 = vmul.u32.u64.low %v7458_v17, %v1938_v58  ;;  %v7491_v47 = vmul.u32.u64.high %v7458_v17, %v1938_v58, %v7490_v25  ;;  %v1847_v34 = vadd.s32 %v7396_v3, %v7402_v20  ;;  %v1934_v10 = vsel %vm1928_vm3, %v1931_v14, %v1933_v38 }
 0x231   : > { %v1859_v6 = vclz %v5536_v35  ;;  %v1942_v42 = vsel %vm1928_vm3, %v1939_v13, %v1941_v48  ;;  %v666_v0 = vor.u32 %v665_v31, %v664_v26  ;;  %v669_v50 = vor.u32 %v668_v46, %v667_v56  ;;  %v10886_v13 = vld [vmem:[#allocation20_spill] sm:$0xff]  ;;  %v10888_v48 = vld [vmem:[#allocation19_spill] sm:$0xff] }
 0x232   : > { %v7501_v37 = vmul.u32.u64.low %v7458_v17, %v1942_v42  ;;  %v7502_v9 = vmul.u32.u64.high %v7458_v17, %v1942_v42, %v7501_v37  ;;  %v655_v63 = vor.u32 8388608, %v7448_v59  ;;  %v670_v60 = vshll.u32 %v10829_v52, %v10877_v51 }
 0x233   : > { %v5537_v15 = vadd.s32 4294967294, %v1859_v6  ;;  %v671_v3 = vshrl.u32 %v10830_v2, %v10876_v29  ;;  %v10881_v20 = vsub.s32 32, %v7434_v32  ;;  %v1766_v14 = vor.u32 4788187, %v1765_v57  ;;  %v10885_v29 = vld [vmem:[#allocation15_spill] sm:$0xff] }
 0x234   : > { %v1950_v38 = vmul.u32 %v7458_v17, %v1934_v10  ;;  %v1953_v39 = vadd.s32 1, %v7491_v47  ;;  %v10882_v46 = vand.u32 2147483647, %v7000_v62  ;;  %vm10722_vm3 = vcmp.lt.s32.totalorder %v7036_v36, 0 }
 0x235   : > { %v1761_v33 = vshrl.u32 %v7439_v55, %v10881_v20  ;;  %vm5538_vm8 = vcmp.lt.s32.totalorder %v5537_v15, 0  ;;  %v672_v59 = vor.u32 %v671_v3, %v670_v60  ;;  %vm679_vm13 = vcmp.lt.s32.totalorder %v10885_v29, 1 }
 0x236   : > { %vm7516_vm14 = vcmp.le.f32.partialorder %v10882_v46, 0.7853982  ;;  %vm680_vm2 = vcmp.lt.s32.totalorder %v10885_v29, 2  ;;  %v1862_v32 = vsel %vm5538_vm8, 0, %v5537_v15  ;;  %vm1952_vm11 = vc.u32 %v7502_v9, %v7490_v25 }
 0x237   : > { %vm681_vm12 = vcmp.lt.s32.totalorder %v10885_v29, 3  ;;  %v687_v55 = vsel %vm679_vm13, %v666_v0, %v669_v50  ;;  %v1863_v51 = vsub.s32 32, %v1862_v32  ;;  %v1867_v31 = vsub.s32 4294967266, %v1862_v32 }
 0x238   : > { %v1954_v17 = vsel %vm1952_vm11, %v1953_v39, %v7491_v47  ;;  %v693_v57 = vsel %vm681_vm12, %v10887_v49, %v10886_v13  ;;  %v684_v58 = vsel %vm682_vm15, %v672_v59, 2102212464  ;;  %v689_v56 = vsel %vm681_vm12, %v672_v59, %v10888_v48  ;;  %v10891_v49 = vld [vmem:[#allocation21_spill] sm:$0xff] }
 0x239   : > { %v1955_v35 = vadd.s32 %v1954_v17, %v1950_v38  ;;  %v691_v6 = vsel %vm679_vm13, %v669_v50, %v672_v59  ;;  %v1762_v10 = vor.u32 %v1761_v33, %v1760_v54  ;;  %v1868_v42 = vadd.s32 127, %v1867_v31 }
 0x23a   : > { %v690_v47 = vsel %vm680_vm2, %v687_v55, %v689_v56  ;;  %v695_v37 = vshll.u32 %v655_v63, 8  ;;  %v683_v60 = vsel %vm679_vm13, %v7443_v41, %v666_v0  ;;  %v685_v3 = vsel %vm681_vm12, %v669_v50, %v684_v58 }
 0x23b   : > { %v1956_v15 = vadd.s32 536870912, %v1955_v35  ;;  %v694_v20 = vsel %vm680_vm2, %v691_v6, %v693_v57  ;;  %v1767_v38 = vand.u32 2147483647, %v1766_v14  ;;  %v1865_v39 = vshrl.u32 %v1847_v34, %v1863_v51 }
 0x23c   : > { %v7549_v46 = vmul.u32.u64.low %v695_v37, %v694_v20  ;;  %v7550_v54 = vmul.u32.u64.high %v695_v37, %v694_v20, %v7549_v46  ;;  %5995 = vcosq.f32 %v7421_v61  ;;  %v1769_v41 = vcvt.s32.f32 %v1762_v10 }
 0x23d   : > { %v7553_v33 = vshrl.u32 %v1956_v15, 30  ;;  %v7555_v63 = vmul.u32.u64.low %v695_v37, %v690_v47  ;;  %v7556_v59 = vmul.u32.u64.high %v695_v37, %v690_v47, %v7555_v63  ;;  %v1864_v0 = vshll.u32 %v7481_v21, %v1862_v32 }
 0x23e   : > { %v1869_v50 = vshll.u32 %v1868_v42, 23  ;;  %v686_v55 = vsel %vm680_vm2, %v683_v60, %v685_v3  ;;  %5997 = vsinq.f32 %v7421_v61  ;;  %v1567_v34 = vsel %vm7516_vm14, %v7000_v62, %v7429_v24  ;;  %v10890_v61 = vld [vmem:[#allocation10_spill] sm:$0xff] }
 0x23f   : > { %v10889_v14 = vxor.u32 2147483648, %v7423_v30  ;;  %v1958_v31 = vshll.u32 %v7553_v33, 30  ;;  %v7573_v21 = vmul.f32 %v1769_v41, %v1767_v38  ;;  %v1866_v32 = vor.u32 %v1865_v39, %v1864_v0 }
 0x240   : > { %vm704_vm15 = vc.u32 %v7550_v54, %v7555_v63  ;;  %v855_v29 = vand.u32 2147483647, %v10890_v61  ;;  %v702_v13 = vmul.u32 %v695_v37, %v686_v55  ;;  %v705_v24 = vadd.s32 1, %v7556_v59 }
 0x241   : > { %v1668_v51 = vsel %vm10722_vm3, %v10889_v14, %v7423_v30  ;;  %v7578_v17 = vsub.s32 %v1955_v35, %v1958_v31  ;;  %v873_v57 = vshrl.u32 %v10828_v11, %v10891_v49  ;;  %v1870_v58 = vor.u32 4788187, %v1869_v50  ;;  %v10892_v30 = vld [vmem:[#allocation18_spill] sm:$0xff] }
 0x242   : > { %v872_v48 = vshll.u32 %v10824_v16, %v10892_v30  ;;  %v875_v56 = vshll.u32 %v10828_v11, %v10892_v30  ;;  %v876_v6 = vshrl.u32 %v10829_v52, %v10891_v49  ;;  %v706_v35 = vsel %vm704_vm15, %v705_v24, %v7556_v59 }
 0x243   : > { %v1961_v10 = vsub.s32 0, %v7578_v17  ;;  %v878_v42 = vshll.u32 %v10829_v52, %v10892_v30  ;;  %v879_v47 = vshrl.u32 %v10830_v2, %v10891_v49  ;;  %5999 = vcosq.f32 %v1567_v34 }
 0x244   : > { %v10893_v37 = vand.u32 2147483647, %v7036_v36  ;;  %v707_v60 = vadd.s32 %v706_v35, %v702_v13  ;;  %v862_v3 = vand.u32 8388607, %v855_v29  ;;  %v874_v38 = vor.u32 %v873_v57, %v872_v48 }
 0x245   : > { %v5540_v20 = vmin.u32 %v1961_v10, %v7578_v17  ;;  %v877_v39 = vor.u32 %v876_v6, %v875_v56  ;;  %v880_v46 = vor.u32 %v879_v47, %v878_v42  ;;  %6001 = vsinq.f32 %v1567_v34 }
 0x246   : > { %vm7597_vm12 = vcmp.le.f32.partialorder %v10893_v37, 0.7853982  ;;  %v1771_v41 = vxor.u32 2147483648, %v7573_v21  ;;  %v708_v0 = vadd.s32 536870912, %v707_v60  ;;  %v7608_v50 = vpop.eup %5995  ;;  %vm10723_vm11 = vcmp.lt.s32.totalorder %v7090_v44, 0 }
 0x247   : > { %v1671_v59 = vsel %vm7597_vm12, %v7036_v36, %v1668_v51  ;;  %v1871_v55 = vand.u32 2147483647, %v1870_v58  ;;  %v1873_v14 = vcvt.s32.f32 %v1866_v32  ;;  %v1963_v31 = vclz %v5540_v20 }
 0x248   : > { %vm889_vm2 = vcmp.lt.s32.totalorder %v6705_v45, 3  ;;  %v7612_v13 = vshrl.u32 %v708_v0, 30  ;;  %v863_v24 = vor.u32 8388608, %v862_v3  ;;  %vm887_vm8 = vcmp.lt.s32.totalorder %v6705_v45, 1  ;;  %v7619_v51 = vpop.eup %5997 }
 0x249   : > { %v901_v34 = vsel %vm889_vm2, %v6819_v5, %v7044_v4  ;;  %v5541_v57 = vadd.s32 4294967294, %v1963_v31  ;;  %v895_v58 = vsel %vm887_vm8, %v874_v38, %v877_v39  ;;  %v897_v32 = vsel %vm889_vm2, %v880_v46, %v6968_v12 }
 0x24a   : > { %v899_v30 = vsel %vm887_vm8, %v877_v39, %v880_v46  ;;  %v10896_v48 = vand.u32 2147483647, %v7090_v44  ;;  %v1951_v5 = vadd.s32 %v7490_v25, %v7502_v9  ;;  %v710_v4 = vshll.u32 %v7612_v13, 30 }
 0x24b   : > { %vm888_vm15 = vcmp.lt.s32.totalorder %v6705_v45, 2  ;;  %v892_v6 = vsel %vm890_vm10, %v880_v46, 2102212464  ;;  %v1874_v12 = vmul.f32 %v1873_v14, %v1871_v55  ;;  %vm5542_vm3 = vcmp.lt.s32.totalorder %v5541_v57, 0 }
 0x24c   : > { %vm7630_vm13 = vcmp.le.f32.partialorder %v10896_v48, 0.7853982  ;;  %v871_v10 = vshrl.u32 %v10824_v16, %v10891_v49  ;;  %v902_v35 = vsel %vm888_vm15, %v899_v30, %v901_v34  ;;  %v1966_v42 = vsel %vm5542_vm3, 0, %v5541_v57 }
 0x24d   : > { %v7644_v47 = vsub.s32 %v707_v60, %v710_v4  ;;  %v898_v25 = vsel %vm888_vm15, %v895_v58, %v897_v32  ;;  %v903_v9 = vshll.u32 %v863_v24, 8  ;;  %v1967_v37 = vsub.s32 32, %v1966_v42  ;;  %v7652_v0 = vpop.eup %5999 }
 0x24e   : > { %v1971_v3 = vsub.s32 4294967266, %v1966_v42  ;;  %v891_v20 = vsel %vm887_vm8, %v871_v10, %v874_v38  ;;  %v893_v46 = vsel %vm889_vm2, %v877_v39, %v892_v6  ;;  %v1968_v49 = vshll.u32 %v7578_v17, %v1966_v42 }
 0x24f   : > { %v713_v55 = vsub.s32 0, %v7644_v47  ;;  %v7656_v60 = vmul.u32.u64.low %v903_v9, %v902_v35  ;;  %v7657_v14 = vmul.u32.u64.high %v903_v9, %v902_v35, %v7656_v60  ;;  %vm10725_vm10 = vcmp.lt.s32.totalorder %v7237_v43, 0  ;;  %v7665_v39 = vpop.eup %6001  ;;  %v10908_v35 = vld [vmem:[#allocation12_spill] sm:$0xff] }
 0x250   : > { %v1969_v31 = vshrl.u32 %v1951_v5, %v1967_v37  ;;  %v1972_v24 = vadd.s32 127, %v1971_v3  ;;  %v7661_v34 = vmul.u32.u64.low %v903_v9, %v898_v25  ;;  %v7662_v38 = vmul.u32.u64.high %v903_v9, %v898_v25, %v7661_v34 }
 0x251   : > { %6003 = vcosq.f32 %v1671_v59  ;;  %v1772_v17 = vsel %vm10723_vm11, %v1771_v41, %v7573_v21  ;;  %v5492_v57 = vmin.u32 %v713_v55, %v7644_v47  ;;  %v10899_v58 = vand.u32 2147483647, %v6553_v19 }
 0x252   : > { %6005 = vsinq.f32 %v1671_v59  ;;  %v1970_v30 = vor.u32 %v1969_v31, %v1968_v49  ;;  %v1973_v48 = vshll.u32 %v1972_v24, 23  ;;  %v10902_v4 = vand.u32 2147483647, %v7237_v43  ;;  %v10909_v24 = vld [vmem:[#allocation17_spill] sm:$0xff] }
 0x253   : > { %vm7673_vm2 = vcmp.le.f32.partialorder %v10899_v58, 0.7853982  ;;  %v10905_v41 = vand.u32 2147483647, %v10875_v22  ;;  %v715_v59 = vclz %v5492_v57  ;;  %v894_v10 = vsel %vm888_vm15, %v891_v20, %v893_v46 }
 0x254   : > { %v631_v5 = vsel %vm7673_vm2, %v6553_v19, %v7056_v8  ;;  %vm7683_vm8 = vcmp.le.f32.partialorder %v10902_v4, 0.7853982  ;;  %v629_v42 = vsub.s32 4, %v10908_v35  ;;  %v1775_v8 = vsel %vm7630_vm13, %v7090_v44, %v1772_v17 }
 0x255   : > { %vm7689_vm11 = vcmp.le.f32.partialorder %v10905_v41, 0.7853982  ;;  %v1875_v25 = vxor.u32 2147483648, %v1874_v12  ;;  %v1974_v37 = vor.u32 4788187, %v1973_v48  ;;  %vm912_vm6 = vc.u32 %v7657_v14, %v7661_v34 }
 0x256   : > { %v5493_v3 = vadd.s32 4294967294, %v715_v59  ;;  %v733_v49 = vsub.s32 4, %v7612_v13  ;;  %v913_v55 = vadd.s32 1, %v7662_v38  ;;  %6007 = vcosq.f32 %v631_v5 }
 0x257   : > { %v1975_v45 = vand.u32 2147483647, %v1974_v37  ;;  %v1977_v20 = vcvt.s32.f32 %v1970_v30  ;;  %v910_v46 = vmul.u32 %v903_v9, %v894_v10  ;;  %6009 = vsinq.f32 %v631_v5 }
 0x258   : > { %vm5494_vm15 = vcmp.lt.s32.totalorder %v5493_v3, 0  ;;  %v914_v60 = vsel %vm912_vm6, %v913_v55, %v7662_v38  ;;  %v630_v31 = vsel %vm545_vm0, %v629_v42, %v10908_v35  ;;  %v837_v17 = vsub.s32 4, %v10909_v24 }
 0x259   : > { %v1978_v57 = vmul.f32 %v1977_v20, %v1975_v45  ;;  %v703_v58 = vadd.s32 %v7555_v63, %v7550_v54  ;;  %v718_v48 = vsel %vm5494_vm15, 0, %v5493_v3  ;;  %v915_v4 = vadd.s32 %v914_v60, %v910_v46 }
 0x25a   : > { %v1876_v30 = vsel %vm10725_vm10, %v1875_v25, %v1874_v12  ;;  %v10910_v9 = vand.u32 2147483647, %v7351_v53  ;;  %v719_v38 = vsub.s32 32, %v718_v48  ;;  %v723_v41 = vsub.s32 4294967266, %v718_v48 }
 0x25b   : > { %vm10913_vm0 = vcmp.lt.s32.totalorder %v10875_v22, 0  ;;  %6011 = vcosq.f32 %v1775_v8  ;;  %v720_v54 = vshll.u32 %v7644_v47, %v718_v48  ;;  %v916_v63 = vadd.s32 536870912, %v915_v4  ;;  %v7725_v12 = vpop.eup %6003 }
 0x25c   : > { %vm7715_vm3 = vcmp.le.f32.partialorder %v10910_v9, 0.7853982  ;;  %v734_v59 = vsel %vm10913_vm0, %v733_v49, %v7612_v13  ;;  %v632_v10 = vsel %vm7673_vm2, 0, %v630_v31  ;;  %v1979_v35 = vxor.u32 2147483648, %v1978_v57  ;;  %v7730_v3 = vpop.eup %6005  ;;  %v10919_v9 = vld [vmem:[#allocation27_spill] sm:$0xff] }
 0x25d   : > { %v721_v42 = vshrl.u32 %v703_v58, %v719_v38  ;;  %v724_v25 = vadd.s32 127, %v723_v41  ;;  %vm10914_vm6 = vcmp.lt.s32.totalorder %v6559_v27, 0  ;;  %v1879_v13 = vsel %vm7683_vm8, %v7237_v43, %v1876_v30 }
 0x25e   : > { %v838_v37 = vsel %vm10914_vm6, %v837_v17, %v10909_v24  ;;  %v736_v47 = vsel %vm7689_vm11, 0, %v734_v59  ;;  %v917_v32 = vshrl.u32 %v916_v63, 30  ;;  %v10915_v49 = vand.u32 2147483647, %v6559_v27 }
 0x25f   : > { %v722_v45 = vor.u32 %v721_v42, %v720_v54  ;;  %v725_v20 = vshll.u32 %v724_v25, 23  ;;  %v636_v46 = vadd.s32 3, %v632_v10  ;;  %6013 = vsinq.f32 %v1775_v8 }
 0x260   : > { %vm7739_vm2 = vcmp.le.f32.partialorder %v10915_v49, 0.7853982  ;;  %v918_v31 = vshll.u32 %v917_v32, 30  ;;  %v941_v24 = vsub.s32 4, %v917_v32  ;;  %v6008_v58 = vpop.eup %6007  ;;  %6015 = vcosq.f32 %v1879_v13 }
 0x261   : > { %v839_v60 = vsel %vm7739_vm2, %v6559_v27, %v7078_v23  ;;  %v840_v17 = vsel %vm7739_vm2, 0, %v838_v37  ;;  %vm10918_vm15 = vcmp.lt.s32.totalorder %v7351_v53, 0  ;;  %v726_v30 = vor.u32 4788187, %v725_v20  ;;  %v6010_v41 = vpop.eup %6009 }
 0x262   : > { %v1980_v48 = vsel %vm10918_vm15, %v1979_v35, %v1978_v57  ;;  %v1149_v38 = vsub.s32 4, %v10919_v9  ;;  %v740_v59 = vadd.s32 3, %v736_v47  ;;  %vm10726_vm0 = vcmp.lt.s32.totalorder %v10890_v61, 0 }
 0x263   : > { %v7753_v54 = vsub.s32 %v915_v4, %v918_v31  ;;  %6017 = vcosq.f32 %v839_v60  ;;  %v727_v23 = vand.u32 2147483647, %v726_v30  ;;  %v729_v8 = vcvt.s32.f32 %v722_v45 }
 0x264   : > { %v637_v63 = vand.u32 3, %v636_v46  ;;  %v844_v10 = vadd.s32 3, %v840_v17  ;;  %v1983_v42 = vsel %vm7715_vm3, %v7351_v53, %v1980_v48  ;;  %v942_v35 = vsel %vm10726_vm0, %v941_v24, %v917_v32 }
 0x265   : > { %v921_v57 = vsub.s32 0, %v7753_v54  ;;  %6019 = vsinq.f32 %v839_v60  ;;  %v730_v25 = vmul.f32 %v729_v8, %v727_v23  ;;  %v640_v37 = vxor.u32 2147483648, %v6010_v41  ;;  %v7764_v49 = vpop.eup %6011 }
 0x266   : > { %v643_v47 = vxor.u32 2147483648, %v6008_v58  ;;  %vm10920_vm6 = vcmp.lt.s32.totalorder %v6666_v7, 0  ;;  %6021 = vsinq.f32 %v1879_v13  ;;  %vm7768_vm2 = vcmp.le.f32.partialorder %v855_v29, 0.7853982 }
 0x267   : > { %v1150_v4 = vsel %vm10920_vm6, %v1149_v38, %v10919_v9  ;;  %v5500_v45 = vmin.u32 %v921_v57, %v7753_v54  ;;  %v731_v20 = vxor.u32 2147483648, %v730_v25  ;;  %v7775_v46 = vand.u32 3, %v740_v59  ;;  %v10924_v57 = vld [vmem:[#allocation26_spill] sm:$0xff] }
 0x268   : > { %v1152_v32 = vsel %vm7176_vm9, 0, %v1150_v4  ;;  %v944_v60 = vsel %vm7768_vm2, 0, %v942_v35  ;;  %vm639_vm15 = vcmp.eq.s32.totalorder %v637_v63, 0  ;;  %6023 = vcosq.f32 %v1983_v42  ;;  %v10927_v4 = vld [vmem:[#allocation37_spill] sm:$0xff] }
 0x269   : > { %v923_v13 = vclz %v5500_v45  ;;  %vm642_vm6 = vcmp.eq.s32.totalorder %v637_v63, 2  ;;  %v7779_v31 = vand.u32 3, %v844_v10  ;;  %vm10923_vm10 = vcmp.lt.s32.totalorder %v10875_v22, 0  ;;  %v7783_v40 = vpop.eup %6013 }
 0x26a   : > { %v732_v29 = vsel %vm10923_vm10, %v731_v20, %v730_v25  ;;  %v641_v24 = vsel %vm639_vm15, %v6008_v58, %v640_v37  ;;  %v644_v17 = vsel %vm642_vm6, %v643_v47, %v6010_v41  ;;  %v1156_v48 = vadd.s32 3, %v1152_v32  ;;  %v7789_v23 = vpop.eup %6015 }
 0x26b   : > { %v735_v30 = vsel %vm7689_vm11, %v10875_v22, %v732_v29  ;;  %v5501_v9 = vadd.s32 4294967294, %v923_v13  ;;  %v948_v38 = vadd.s32 3, %v944_v60  ;;  %v1357_v59 = vsub.s32 4, %v6985_v1 }
 0x26c   : > { %6025 = vsinq.f32 %v1983_v42  ;;  %v911_v8 = vadd.s32 %v7661_v34, %v7657_v14  ;;  %vm638_vm10 = vcmp.lt.s32.totalorder %v637_v63, 2  ;;  %v1157_v10 = vand.u32 3, %v1156_v48  ;;  %v10926_v63 = vld [vmem:[#allocation38_spill] sm:$0xff] }
 0x26d   : > { %v6018_v58 = vpop.eup %6017  ;;  %6027 = vcosq.f32 %v735_v30  ;;  %vm5502_vm15 = vcmp.lt.s32.totalorder %v5501_v9, 0  ;;  %v645_v41 = vsel %vm638_vm10, %v641_v24, %v644_v17  ;;  %vm10925_vm11 = vcmp.lt.s32.totalorder %v10924_v57, 0 }
 0x26e   : > { %6029 = vsinq.f32 %v735_v30  ;;  %v926_v6 = vsel %vm5502_vm15, 0, %v5501_v9  ;;  %v1358_v35 = vsel %vm10925_vm11, %v1357_v59, %v6985_v1  ;;  %v7798_v14 = vand.u32 3, %v948_v38  ;;  %v10930_v30 = vld [vmem:[#allocation24_spill] sm:$0xff] }
 0x26f   : > { %v6020_v42 = vpop.eup %6019  ;;  %v927_v25 = vsub.s32 32, %v926_v6  ;;  %v931_v37 = vsub.s32 4294967266, %v926_v6  ;;  %vm850_vm0 = vcmp.eq.s32.totalorder %v7779_v31, 2  ;;  %v851_v34 = vxor.u32 2147483648, %v6018_v58 }
 0x270   : > { %v1160_v47 = vxor.u32 2147483648, %v10926_v63  ;;  %v1163_v45 = vxor.u32 2147483648, %v10927_v4  ;;  %v1360_v20 = vsel %vm7285_vm5, 0, %v1358_v35  ;;  %v7806_v60 = vpop.eup %6021  ;;  %v928_v1 = vshll.u32 %v7753_v54, %v926_v6  ;;  %v10933_v35 = vld [vmem:[#allocation29_spill] sm:$0xff] }
 0x271   : > { %v929_v13 = vshrl.u32 %v911_v8, %v927_v25  ;;  %v932_v29 = vadd.s32 127, %v931_v37  ;;  %v1364_v24 = vadd.s32 3, %v1360_v20  ;;  %vm10929_vm10 = vweird.f32 %v6553_v19 }
 0x272   : > { %v7811_v17 = vsel %vm10929_vm10, nan, %v645_v41  ;;  %v848_v48 = vxor.u32 2147483648, %v6020_v42  ;;  %vm1159_vm15 = vcmp.eq.s32.totalorder %v1157_v10, 0  ;;  %v1045_v9 = vsub.s32 4, %v10930_v30  ;;  %v7814_v38 = vpop.eup %6023  ;;  %v10931_v41 = vld [vmem:[#allocation11_spill] sm:$0xff] }
 0x273   : > { %v930_v59 = vor.u32 %v929_v13, %v928_v1  ;;  %v933_v32 = vshll.u32 %v932_v29, 23  ;;  %vm843_vm5 = vweird.f32 %v6559_v27  ;;  %vm1162_vm9 = vcmp.eq.s32.totalorder %v1157_v10, 2 }
 0x274   : > { %v1365_v54 = vand.u32 3, %v1364_v24  ;;  %v1368_v8 = vxor.u32 2147483648, %v7477_v28  ;;  %v1371_v19 = vxor.u32 2147483648, %v7473_v18  ;;  %vm10932_vm10 = vcmp.lt.s32.totalorder %v10931_v41, 0 }
 0x275   : > { %v1046_v6 = vsel %vm10932_vm10, %v1045_v9, %v10930_v30  ;;  %v1253_v25 = vsub.s32 4, %v10933_v35  ;;  %v934_v37 = vor.u32 4788187, %v933_v32  ;;  %v852_v20 = vsel %vm850_vm0, %v851_v34, %v6020_v42  ;;  %v10936_v32 = vld [vmem:[#allocation22_spill] sm:$0xff] }
 0x276   : > { %v1161_v1 = vsel %vm1159_vm15, %v10927_v4, %v1160_v47  ;;  %v1164_v13 = vsel %vm1162_vm9, %v1163_v45, %v10926_v63  ;;  %v7830_v29 = vpop.eup %6025  ;;  %v937_v24 = vcvt.s32.f32 %v930_v59  ;;  %vm10934_vm10 = vcmp.eq.s32.totalorder %v7779_v31, 0 }
 0x277   : > { %v849_v30 = vsel %vm10934_vm10, %v6018_v58, %v848_v48  ;;  %v1048_v2 = vsel %vm7020_vm7, 0, %v1046_v6  ;;  %vm10937_vm6 = vcmp.lt.s32.totalorder %v10936_v32, 0  ;;  %v6028_v34 = vpop.eup %6027  ;;  %v935_v52 = vand.u32 2147483647, %v934_v37  ;;  %v10942_v37 = vld [vmem:[#allocation33_spill] sm:$0xff] }
 0x278   : > { %v1254_v42 = vsel %vm10937_vm6, %v1253_v25, %v10933_v35  ;;  %vm1367_vm0 = vcmp.eq.s32.totalorder %v1365_v54, 0  ;;  %vm1370_vm15 = vcmp.eq.s32.totalorder %v1365_v54, 2  ;;  %v1052_v63 = vadd.s32 3, %v1048_v2  ;;  %v6030_v47 = vpop.eup %6029 }
 0x279   : > { %vm1158_vm9 = vcmp.lt.s32.totalorder %v1157_v10, 2  ;;  %v1369_v4 = vsel %vm1367_vm0, %v7473_v18, %v1368_v8  ;;  %v1372_v45 = vsel %vm1370_vm15, %v1371_v19, %v7477_v28  ;;  %v1256_v58 = vsel %vm7279_vm4, 0, %v1254_v42  ;;  %v10940_v28 = vld [vmem:[#allocation23_spill] sm:$0xff] }
 0x27a   : > { %v938_v48 = vmul.f32 %v937_v24, %v935_v52  ;;  %vm10939_vm7 = vcmp.lt.s32.totalorder %v7779_v31, 2  ;;  %v1165_v9 = vsel %vm1158_vm9, %v1161_v1, %v1164_v13  ;;  %vm1363_vm6 = vweird.f32 %v10924_v57  ;;  %v10944_v13 = vld [vmem:[#allocation13_spill] sm:$0xff] }
 0x27b   : > { %v853_v6 = vsel %vm10939_vm7, %v849_v30, %v852_v20  ;;  %vm742_vm10 = vcmp.lt.s32.totalorder %v7775_v46, 2  ;;  %v747_v35 = vxor.u32 2147483648, %v6028_v34  ;;  %vm1366_vm11 = vcmp.lt.s32.totalorder %v1365_v54, 2  ;;  %v10945_v30 = vld [vmem:[#allocation9_spill] sm:$0xff] }
 0x27c   : > { %v1053_v2 = vand.u32 3, %v1052_v63  ;;  %v1260_v10 = vadd.s32 3, %v1256_v58  ;;  %v744_v25 = vxor.u32 2147483648, %v6030_v47  ;;  %v939_v18 = vxor.u32 2147483648, %v938_v48  ;;  %v10946_v63 = vld [vmem:[#allocation32_spill] sm:$0xff] }
 0x27d   : > { %v1373_v8 = vsel %vm1366_vm11, %v1369_v4, %v1372_v45  ;;  %v1056_v19 = vxor.u32 2147483648, %v10940_v28  ;;  %v7851_v52 = vsel %vm843_vm5, nan, %v853_v6  ;;  %vm10941_vm4 = vweird.f32 %v6666_v7 }
 0x27e   : > { %v7855_v31 = vsel %vm10941_vm4, nan, %v1165_v9  ;;  %v1059_v20 = vxor.u32 2147483648, %v10942_v37  ;;  %v1261_v1 = vand.u32 3, %v1260_v10  ;;  %vm739_vm0 = vweird.f32 %v10875_v22 }
 0x27f   : > { %vm10943_vm15 = vcmp.lt.s32.totalorder %v10890_v61, 0  ;;  %v1264_v24 = vxor.u32 2147483648, %v10944_v13  ;;  %v1267_v42 = vxor.u32 2147483648, %v10945_v30  ;;  %v1565_v27 = vsub.s32 4, %v10946_v63 }
 0x280   : > { %v940_v54 = vsel %vm10943_vm15, %v939_v18, %v938_v48  ;;  %vm10947_vm5 = vcmp.eq.s32.totalorder %v7775_v46, 2  ;;  %v7871_v45 = vsel %vm1363_vm6, nan, %v1373_v8  ;;  %vm1055_vm11 = vcmp.eq.s32.totalorder %v1053_v2, 0  ;;  %v10951_v18 = vld [vmem:[#allocation31_spill] sm:$0xff] }
 0x281   : > { %v748_v4 = vsel %vm10947_vm5, %v747_v35, %v6030_v47  ;;  %v943_v7 = vsel %vm7768_vm2, %v10890_v61, %v940_v54  ;;  %vm10948_vm9 = vcmp.eq.s32.totalorder %v7775_v46, 0  ;;  %vm1051_vm7 = vweird.f32 %v10931_v41  ;;  %v10950_v35 = vld [vmem:[#allocation25_spill] sm:$0xff]  ;;  %v10955_v54 = vld [vmem:[#allocation34_spill] sm:$0xff] }
 0x282   : > { %v745_v59 = vsel %vm10948_vm9, %v6028_v34, %v744_v25  ;;  %6031 = vcosq.f32 %v943_v7  ;;  %v1057_v58 = vsel %vm1055_vm11, %v10942_v37, %v1056_v19  ;;  %vm1058_vm4 = vcmp.eq.s32.totalorder %v1053_v2, 2 }
 0x283   : > { %6033 = vsinq.f32 %v943_v7  ;;  %vm1263_vm15 = vcmp.eq.s32.totalorder %v1261_v1, 0  ;;  %vm1266_vm5 = vcmp.eq.s32.totalorder %v1261_v1, 2  ;;  %vm10949_vm2 = vcmp.lt.s32.totalorder %v7000_v62, 0 }
 0x284   : > { %v1566_v55 = vsel %vm10949_vm2, %v1565_v27, %v10946_v63  ;;  %v1060_v57 = vsel %vm1058_vm4, %v1059_v20, %v10940_v28  ;;  %v1265_v47 = vsel %vm1263_vm15, %v10945_v30, %v1264_v24  ;;  %v1268_v48 = vsel %vm1266_vm5, %v1267_v42, %v10944_v13  ;;  %v10953_v20 = vld [vmem:[#allocation28_spill] sm:$0xff] }
 0x285   : > { %v1568_v34 = vsel %vm7516_vm14, 0, %v1566_v55  ;;  %v5717_v6 = vpack.c.bf16 %v7851_v52, %v7811_v17  ;;  %vm1259_vm6 = vweird.f32 %v10936_v32  ;;  %v1773_v10 = vsub.s32 4, %v10950_v35 }
 0x286   : > { %v1572_v9 = vadd.s32 3, %v1568_v34  ;;  %v749_v25 = vsel %vm742_vm10, %v745_v59, %v748_v4  ;;  %vm954_vm11 = vcmp.eq.s32.totalorder %v7798_v14, 2  ;;  %vm1054_vm9 = vcmp.lt.s32.totalorder %v1053_v2, 2 }
 0x287   : > { %vm1262_vm4 = vcmp.lt.s32.totalorder %v1261_v1, 2  ;;  %v1461_v8 = vsub.s32 4, %v10951_v18  ;;  %vm951_vm15 = vcmp.eq.s32.totalorder %v7798_v14, 0  ;;  %v5719_v26 = vpack.c.bf16 %v7871_v45, %v7855_v31 }
 0x288   : > { %v1061_v28 = vsel %vm1054_vm9, %v1057_v58, %v1060_v57  ;;  %v1269_v19 = vsel %vm1262_vm4, %v1265_v47, %v1268_v48  ;;  %vm10952_vm14 = vcmp.lt.s32.totalorder %v7090_v44, 0  ;;  %vm950_vm5 = vcmp.lt.s32.totalorder %v7798_v14, 2 }
 0x289   : > { %v1774_v37 = vsel %vm10952_vm14, %v1773_v10, %v10950_v35  ;;  %v1573_v46 = vand.u32 3, %v1572_v9  ;;  %vm10954_vm10 = vcmp.lt.s32.totalorder %v10953_v20, 0  ;;  %v1669_v13 = vsub.s32 4, %v10955_v54 }
 0x28a   : > { %v1776_v2 = vsel %vm7630_vm13, 0, %v1774_v37  ;;  %v1462_v1 = vsel %vm10954_vm10, %v1461_v8, %v10951_v18  ;;  %v750_v24 = vsel %vm739_vm0, nan, %v749_v25  ;;  %vm947_vm2 = vweird.f32 %v10890_v61 }
 0x28b   : > { %v1576_v30 = vxor.u32 2147483648, %v7665_v39  ;;  %v1579_v42 = vxor.u32 2147483648, %v7652_v0  ;;  %v1780_v63 = vadd.s32 3, %v1776_v2  ;;  %v1784_v27 = vxor.u32 2147483648, %v7783_v40 }
 0x28c   : > { %v1787_v56 = vxor.u32 2147483648, %v7764_v49  ;;  %v1464_v7 = vsel %vm7380_vm1, 0, %v1462_v1  ;;  %vm10957_vm13 = vcmp.lt.s32.totalorder %v7036_v36, 0  ;;  %v7920_v22 = vsel %vm1051_vm7, nan, %v1061_v28  ;;  %v6032_v47 = vpop.eup %6031 }
 0x28d   : > { %v1670_v59 = vsel %vm10957_vm13, %v1669_v13, %v10955_v54  ;;  %v7924_v58 = vsel %vm1259_vm6, nan, %v1269_v19  ;;  %v1781_v55 = vand.u32 3, %v1780_v63  ;;  %vm1575_vm0 = vcmp.eq.s32.totalorder %v1573_v46, 0  ;;  %v6034_v9 = vpop.eup %6033 }
 0x28e   : > { %v1672_v57 = vsel %vm7597_vm12, 0, %v1670_v59  ;;  %vm1578_vm9 = vcmp.eq.s32.totalorder %v1573_v46, 2  ;;  %v1468_v48 = vadd.s32 3, %v1464_v7  ;;  %v955_v35 = vxor.u32 2147483648, %v6032_v47 }
 0x28f   : > { %v1676_v34 = vadd.s32 3, %v1672_v57  ;;  %v1577_v10 = vsel %vm1575_vm0, %v7652_v0, %v1576_v30  ;;  %vm1783_vm1 = vcmp.eq.s32.totalorder %v1781_v55, 0  ;;  %vm1786_vm7 = vcmp.eq.s32.totalorder %v1781_v55, 2 }
 0x290   : > { %v952_v41 = vxor.u32 2147483648, %v6034_v9  ;;  %v1580_v32 = vsel %vm1578_vm9, %v1579_v42, %v7665_v39  ;;  %v1785_v25 = vsel %vm1783_vm1, %v7764_v49, %v1784_v27  ;;  %v1788_v18 = vsel %vm1786_vm7, %v1787_v56, %v7783_v40 }
 0x291   : > { %v956_v15 = vsel %vm954_vm11, %v955_v35, %v6034_v9  ;;  %vm1782_vm12 = vcmp.lt.s32.totalorder %v1781_v55, 2  ;;  %v1677_v8 = vand.u32 3, %v1676_v34  ;;  %v1680_v28 = vxor.u32 2147483648, %v7730_v3  ;;  %v2003_v34 = vld [vmem:[%s10627_s3 + $0x20] sm:$0xff]  ;;  %v2004_v9 = vld [vmem:[%s10627_s3 + $0x28] sm:$0xff] }
 0x292   : > { %v953_v19 = vsel %vm951_vm15, %v6032_v47, %v952_v41  ;;  %v1789_v0 = vsel %vm1782_vm12, %v1785_v25, %v1788_v18  ;;  %v1469_v37 = vand.u32 3, %v1468_v48  ;;  %v1683_v2 = vxor.u32 2147483648, %v7725_v12  ;;  %v2005_v35 = vld [vmem:[%s10627_s3 + $0x30] sm:$0x3] }
 0x293   : > { %v957_v39 = vsel %vm950_vm5, %v953_v19, %v956_v15  ;;  %vm1574_vm6 = vcmp.lt.s32.totalorder %v1573_v46, 2  ;;  %v1472_v49 = vxor.u32 2147483648, %v7619_v51  ;;  %v1475_v40 = vxor.u32 2147483648, %v7608_v50 }
 0x294   : > { %v958_v1 = vsel %vm947_vm2, nan, %v957_v39  ;;  %v1581_v54 = vsel %vm1574_vm6, %v1577_v10, %v1580_v32  ;;  %vm1779_vm11 = vweird.f32 %v7090_v44  ;;  %vm1679_vm4 = vcmp.eq.s32.totalorder %v1677_v8, 0  ;;  %v2016_v10 = vpop.permute.xlu1 %2015 }
 0x295   : > { %v5715_v13 = vpack.c.bf16 %v958_v1, %v750_v24  ;;  %v1790_v30 = vsel %vm1779_vm11, nan, %v1789_v0  ;;  %v1681_v42 = vsel %vm1679_vm4, %v7725_v12, %v1680_v28  ;;  %vm1682_vm15 = vcmp.eq.s32.totalorder %v1677_v8, 2  ;;  %v10959_v24 = vld [vmem:[#allocation14_spill] sm:$0xff]  ;;  %v2021_v28 = vpop.permute.xlu0 %2020 }
 0x296   : > { %vm1471_vm14 = vcmp.eq.s32.totalorder %v1469_v37, 0  ;;  %vm1474_vm10 = vcmp.eq.s32.totalorder %v1469_v37, 2  ;;  %v1684_v14 = vsel %vm1682_vm15, %v1683_v2, %v7730_v3  ;;  %v1981_v46 = vsub.s32 4, %v7553_v33 }
 0x297   : > { %5716 = vmatprep.subr.bf16.mxu1 %v5715_v13  ;;  %vm1571_vm5 = vweird.f32 %v7000_v62  ;;  %v1473_v61 = vsel %vm1471_vm14, %v7608_v50, %v1472_v49  ;;  %v1476_v63 = vsel %vm1474_vm10, %v1475_v40, %v7619_v51  ;;  %vm1678_vm2 = vcmp.lt.s32.totalorder %v1677_v8, 2 }
 0x298   : > { %5718 = vmatpush1.bf16.msra.mxu1 %v5717_v6  ;;  %v1582_v44 = vsel %vm1571_vm5, nan, %v1581_v54  ;;  %v1685_v12 = vsel %vm1678_vm2, %v1681_v42, %v1684_v14  ;;  %vm10958_vm13 = vcmp.lt.s32.totalorder %v7351_v53, 0  ;;  %v1877_v27 = vsub.s32 4, %v10959_v24 }
 0x299   : > { %v1982_v3 = vsel %vm10958_vm13, %v1981_v46, %v7553_v33  ;;  %5720 = vmatprep.subr.bf16.mxu1 %v5719_v26  ;;  %v5721_v62 = vpack.c.bf16 %v7924_v58, %v7920_v22  ;;  %v5723_v50 = vpack.c.bf16 %v1790_v30, %v1582_v44  ;;  %vm1470_vm0 = vcmp.lt.s32.totalorder %v1469_v37, 2 }
 0x29a   : > { %v1984_v51 = vsel %vm7715_vm3, 0, %v1982_v3  ;;  %v1477_v17 = vsel %vm1470_vm0, %v1473_v61, %v1476_v63  ;;  %vm1675_vm9 = vweird.f32 %v7036_v36  ;;  %vm10960_vm1 = vcmp.lt.s32.totalorder %v7237_v43, 0 }
 0x29b   : > { %v1988_v52 = vadd.s32 3, %v1984_v51  ;;  %v1878_v33 = vsel %vm10960_vm1, %v1877_v27, %v10959_v24  ;;  %v1686_v6 = vsel %vm1675_vm9, nan, %v1685_v12  ;;  %v1992_v31 = vxor.u32 2147483648, %v7830_v29 }
 0x29c   : > { %v1995_v45 = vxor.u32 2147483648, %v7814_v38  ;;  %v1880_v26 = vsel %vm7683_vm8, 0, %v1878_v33  ;;  %5722 = vmatpush1.bf16.msra.mxu1 %v5721_v62  ;;  %vm1467_vm7 = vweird.f32 %v10953_v20  ;;  %v1888_v4 = vxor.u32 2147483648, %v7806_v60 }
 0x29d   : > { %v1989_v5 = vand.u32 3, %v1988_v52  ;;  %v1884_v56 = vadd.s32 3, %v1880_v26  ;;  %5724 = vmatprep.subr.bf16.mxu1 %v5723_v50  ;;  %v1478_v36 = vsel %vm1467_vm7, nan, %v1477_v17  ;;  %v1891_v7 = vxor.u32 2147483648, %v7789_v23 }
 0x29e   : > { %v5725_v59 = vpack.c.bf16 %v1686_v6, %v1478_v36  ;;  %vm10762_vm8 = vcmask 1041408   ;;  %vm1987_vm11 = vweird.f32 %v7351_v53  ;;  %vm1883_vm10 = vweird.f32 %v7237_v43  ;;  %v2001_v43 = vld [vmem:[%s10627_s3 + $0x10] sm:$0xff] }
 0x29f   : > { %vm1991_vm3 = vcmp.eq.s32.totalorder %v1989_v5, 0  ;;  %vm1994_vm12 = vcmp.eq.s32.totalorder %v1989_v5, 2  ;;  %v1885_v22 = vand.u32 3, %v1884_v56  ;;  %vm1990_vm6 = vcmp.lt.s32.totalorder %v1989_v5, 2 }
 0x2a0   : > { %v1993_v58 = vsel %vm1991_vm3, %v7814_v38, %v1992_v31  ;;  %v1996_v21 = vsel %vm1994_vm12, %v1995_v45, %v7830_v29  ;;  %5726 = vmatpush1.bf16.msra.mxu1 %v5725_v59  ;;  %v1999_v29 = vld [vmem:[%s10627_s3] sm:$0xff]  ;;  %vm10754_vm5 = vcmask 408576   ;;  %v10961_v48 = vmov 0.0  }
 0x2a1   : > { %v1997_v20 = vsel %vm1990_vm6, %v1993_v58, %v1996_v21  ;;  %vm1887_vm4 = vcmp.eq.s32.totalorder %v1885_v22, 0  ;;  %vm1890_vm15 = vcmp.eq.s32.totalorder %v1885_v22, 2  ;;  %vm1886_vm14 = vcmp.lt.s32.totalorder %v1885_v22, 2 }
 0x2a2   : > { %v1998_v55 = vsel %vm1987_vm11, nan, %v1997_v20  ;;  %v1889_v57 = vsel %vm1887_vm4, %v7789_v23, %v1888_v4  ;;  %v1892_v47 = vsel %vm1890_vm15, %v1891_v7, %v7806_v60  ;;  %v2000_v23 = vld [vmem:[%s10627_s3 + $0x8] sm:$0xff]  ;;  %v2002_v60 = vld [vmem:[%s10627_s3 + $0x18] sm:$0xff]  ;;  %v10964_v22 = vmov 2131351028  }
 0x2a3   : > { %5543 = vmatprep.subr.msk.mxu1 %vm10762_vm8, %v1998_v55  ;;  %v1893_v38 = vsel %vm1886_vm14, %v1889_v57, %v1892_v47  ;;  %v10965_v21 = vmov 2102212464   ;;  %v10966_v55 = vmov 920167782  }
 0x2a4   : > { %v1894_v53 = vsel %vm1883_vm10, nan, %v1893_v38 }
 0x2a5   : > { %5544 = vmatpush1.msk.msra.mxu1 %vm10762_vm8, %v1894_v53 }
 0x2a6   : > { %5545 = vmatmul.mubr.msk.f32.vlgmr.msra.gmra.mrb[0].mxu1 %vm10754_vm5, %v1999_v29 }
 0x2a7   : > { %2147 = vmatprep.mubr.f32.mxu1 %v10961_v48 }
 0x2aa   : > { %5546 = vmatmul.mubr.msk.f32.gmra.mrb[2].mxu1 %vm10754_vm5, %v2000_v23 }
 0x2ab   : > { %2153 = vmatprep.mubr.f32.mxu1 %v10961_v48 }
 0x2ae   : > { %5547 = vmatmul.mubr.msk.f32.gmra.mrb[4].mxu1 %vm10754_vm5, %v2001_v43  ;;  %v10967_v43 = vmov 1326507024  }
 0x2af   : > { %2159 = vmatprep.mubr.f32.mxu1 %v10961_v48 }
 0x2b2   : > { %5548 = vmatmul.mubr.msk.f32.gmra.mrb[6].mxu1 %vm10754_vm5, %v2002_v60 }
 0x2b3   : > { %2165 = vmatprep.mubr.f32.mxu1 %v10961_v48 }
 0x2b6   : > { %5549 = vmatmul.mubr.msk.f32.gmra.mrb[8].mxu1 %vm10754_vm5, %v2003_v34 }
 0x2b7   : > { %2171 = vmatprep.mubr.f32.mxu1 %v10961_v48 }
 0x2ba   : > { %5550 = vmatmul.mubr.msk.f32.gmra.mrb[10].mxu1 %vm10754_vm5, %v2004_v9 }
 0x2bb   : > { %2177 = vmatprep.mubr.f32.mxu1 %v10961_v48 }
 0x2be   : > { %5551 = vmatmul.mubr.msk.f32.gmra.mrb[12].mxu1 %vm10754_vm5, %v2005_v35 }
 0x2bf   : > { %3780 = vmatprep.mubr.f32.mxu1 %v10961_v48 }
 0x379   : > { %v2143_v41 = vpop.f32.mrb[0].mxu1 }
 0x37a   : > { %v8019_v32 = vadd.f32 %v2143_v41, %v2016_v10  ;;  %v2145_v25 = vpop.f32.mrb[1].mxu1 }
 0x37b   : > { %v8021_v18 = vadd.f32 %v2145_v25, %v2016_v10 }
 0x37c   : > { %10962 = vst [vmem:[#allocation15_spill] sm:$0xff] %v8019_v32  ;;  %v2184_v15 = vand.u32 2147483647, %v8019_v32  ;;  %v2187_v8 = vand.u32 2139095040, %v8019_v32 }
 0x37d   : > { %v2288_v19 = vand.u32 2147483647, %v8021_v18  ;;  %v2291_v0 = vand.u32 2139095040, %v8021_v18  ;;  %v2149_v37 = vpop.f32.mrb[2].mxu1 }
 0x37e   : > { %v2188_v2 = vshrl.u32 %v2187_v8, 23  ;;  %v2191_v39 = vand.u32 8388607, %v2184_v15  ;;  %v8029_v49 = vadd.f32 %v2149_v37, %v2021_v28  ;;  %v2151_v40 = vpop.f32.mrb[3].mxu1 }
 0x37f   : > { %v2292_v1 = vshrl.u32 %v2291_v0, 23  ;;  %v2295_v54 = vand.u32 8388607, %v2288_v19  ;;  %v8041_v33 = vadd.f32 %v2151_v40, %v2021_v28 }
 0x380   : > { %10963 = vst [vmem:[#allocation20_spill] sm:$0xff] %v8029_v49  ;;  %v5552_v13 = vadd.s32 4294967169, %v2188_v2  ;;  %v2395_v42 = vand.u32 2139095040, %v8029_v49  ;;  %v2192_v46 = vor.u32 8388608, %v2191_v39  ;;  %v2392_v12 = vand.u32 2147483647, %v8029_v49 }
 0x381   : > { %v5556_v30 = vadd.s32 4294967169, %v2292_v1  ;;  %v8034_v14 = vpop.f32.mrb[4].mxu1  ;;  %v2296_v63 = vor.u32 8388608, %v2295_v54 }
 0x382   : > { %v2194_v61 = vadd.s32 1, %v5552_v13  ;;  %v2396_v3 = vshrl.u32 %v2395_v42, 23  ;;  %v8037_v24 = vpop.f32.mrb[5].mxu1  ;;  %v8045_v31 = vshll.u32 %v2192_v46, 8  ;;  %v8053_v5 = vand.u32 8388607, %v2392_v12 }
 0x383   : > { %v2298_v44 = vadd.s32 1, %v5556_v30  ;;  %v8049_v26 = vshll.u32 %v2296_v63, 8 }
 0x384   : > { %vm2195_vm2 = vcmp.gt.s32.totalorder %v2194_v61, 0  ;;  %v5560_v62 = vadd.s32 4294967169, %v2396_v3 }
 0x385   : > { %v2196_v27 = vsel %vm2195_vm2, %v2194_v61, 0  ;;  %vm2299_vm13 = vcmp.gt.s32.totalorder %v2298_v44, 0  ;;  %v8039_v50 = vpop.f32.mrb[6].mxu1 }
 0x386   : > { %v2197_v51 = vshrl.u32 %v2196_v27, 5  ;;  %v2198_v17 = vand.u32 31, %v2196_v27  ;;  %v2300_v52 = vsel %vm2299_vm13, %v2298_v44, 0  ;;  %v8043_v6 = vpop.f32.mrb[7].mxu1  ;;  %v8056_v7 = vadd.s32 1, %v5560_v62 }
 0x387   : > { %v8047_v45 = vshrl.u32 %v2300_v52, 5  ;;  %v2302_v4 = vand.u32 31, %v2300_v52 }
 0x388   : > { %v2199_v56 = vsub.s32 32, %v2198_v17  ;;  %v2201_v36 = vshll.u32 %v10824_v16, %v2198_v17  ;;  %v2204_v59 = vshll.u32 %v10828_v11, %v2198_v17  ;;  %v2207_v58 = vshll.u32 %v10964_v22, %v2198_v17 }
 0x389   : > { %v2210_v20 = vshll.u32 %v10965_v21, %v2198_v17  ;;  %v2213_v57 = vshll.u32 %v10966_v55, %v2198_v17  ;;  %vm2216_vm0 = vcmp.lt.s32.totalorder %v2197_v51, 1  ;;  %vm2217_vm9 = vcmp.lt.s32.totalorder %v2197_v51, 2  ;;  %v8068_v41 = vpop.f32.mrb[8].mxu1 }
 0x38a   : > { %v2202_v47 = vshrl.u32 %v10828_v11, %v2199_v56  ;;  %v2205_v38 = vshrl.u32 %v10964_v22, %v2199_v56  ;;  %v2208_v29 = vshrl.u32 %v10965_v21, %v2199_v56  ;;  %v2200_v53 = vshrl.u32 %v10824_v16, %v2199_v56 }
 0x38b   : > { %v2211_v23 = vshrl.u32 %v10966_v55, %v2199_v56  ;;  %v2214_v60 = vshrl.u32 %v10967_v43, %v2199_v56  ;;  %v2303_v10 = vsub.s32 32, %v2302_v4  ;;  %vm2218_vm1 = vcmp.lt.s32.totalorder %v2197_v51, 3 }
 0x38c   : > { %v2203_v34 = vor.u32 %v2202_v47, %v2201_v36  ;;  %v2206_v9 = vor.u32 %v2205_v38, %v2204_v59  ;;  %v2209_v35 = vor.u32 %v2208_v29, %v2207_v58  ;;  %vm2219_vm7 = vcmp.lt.s32.totalorder %v2197_v51, 4 }
 0x38d   : > { %v2212_v25 = vor.u32 %v2211_v23, %v2210_v20  ;;  %v2215_v8 = vor.u32 %v2214_v60, %v2213_v57  ;;  %v2305_v54 = vshll.u32 %v10824_v16, %v2302_v4  ;;  %v2306_v42 = vshrl.u32 %v10828_v11, %v2303_v10 }
 0x38e   : > { %v2220_v28 = vsel %vm2216_vm0, %v2200_v53, %v2203_v34  ;;  %v2221_v0 = vsel %vm2219_vm7, %v2209_v35, 2102212464  ;;  %v2224_v37 = vsel %vm2216_vm0, %v2203_v34, %v2206_v9  ;;  %v2228_v2 = vsel %vm2216_vm0, %v2206_v9, %v2209_v35 }
 0x38f   : > { %v2222_v39 = vsel %vm2218_vm1, %v2206_v9, %v2221_v0  ;;  %v2225_v40 = vsel %vm2219_vm7, %v2212_v25, 920167782  ;;  %v2229_v1 = vsel %vm2219_vm7, %v2215_v8, 1326507024  ;;  %v2308_v46 = vshll.u32 %v10828_v11, %v2302_v4 }
 0x390   : > { %v2226_v13 = vsel %vm2218_vm1, %v2209_v35, %v2225_v40  ;;  %v2230_v30 = vsel %vm2218_vm1, %v2212_v25, %v2229_v1  ;;  %v2223_v61 = vsel %vm2217_vm9, %v2220_v28, %v2222_v39  ;;  %v2309_v3 = vshrl.u32 %v10964_v22, %v2303_v10 }
 0x391   : > { %v2227_v63 = vsel %vm2217_vm9, %v2224_v37, %v2226_v13  ;;  %v2231_v44 = vsel %vm2217_vm9, %v2228_v2, %v2230_v30  ;;  %v2307_v56 = vor.u32 %v2306_v42, %v2305_v54  ;;  %v2311_v59 = vshll.u32 %v10964_v22, %v2302_v4 }
 0x392   : > { %v8081_v27 = vmul.u32.u64.low %v8045_v31, %v2231_v44  ;;  %v8082_v62 = vmul.u32.u64.high %v8045_v31, %v2231_v44, %v8081_v27  ;;  %v8085_v17 = vmul.u32.u64.low %v8045_v31, %v2227_v63  ;;  %v8086_v52 = vmul.u32.u64.high %v8045_v31, %v2227_v63, %v8085_v17 }
 0x393   : > { %v2310_v36 = vor.u32 %v2309_v3, %v2308_v46  ;;  %v2312_v58 = vshrl.u32 %v10965_v21, %v2303_v10  ;;  %v2304_v51 = vshrl.u32 %v10824_v16, %v2303_v10  ;;  %v2314_v20 = vshll.u32 %v10965_v21, %v2302_v4 }
 0x394   : > { %v2315_v57 = vshrl.u32 %v10966_v55, %v2303_v10  ;;  %v2318_v47 = vshrl.u32 %v10967_v43, %v2303_v10  ;;  %v2239_v38 = vmul.u32 %v8045_v31, %v2223_v61  ;;  %v2317_v53 = vshll.u32 %v10966_v55, %v2302_v4 }
 0x395   : > { %v2313_v29 = vor.u32 %v2312_v58, %v2311_v59  ;;  %vm2320_vm3 = vcmp.lt.s32.totalorder %v8047_v45, 1  ;;  %vm2241_vm12 = vc.u32 %v8082_v62, %v8085_v17  ;;  %v2242_v23 = vadd.s32 1, %v8086_v52 }
 0x396   : > { %v2316_v60 = vor.u32 %v2315_v57, %v2314_v20  ;;  %vm2321_vm6 = vcmp.lt.s32.totalorder %v8047_v45, 2  ;;  %v2319_v34 = vor.u32 %v2318_v47, %v2317_v53  ;;  %vm2322_vm11 = vcmp.lt.s32.totalorder %v8047_v45, 3 }
 0x397   : > { %vm2323_vm4 = vcmp.lt.s32.totalorder %v8047_v45, 4  ;;  %v2328_v9 = vsel %vm2320_vm3, %v2307_v56, %v2310_v36  ;;  %v2243_v31 = vsel %vm2241_vm12, %v2242_v23, %v8086_v52  ;;  %v2332_v10 = vsel %vm2320_vm3, %v2310_v36, %v2313_v29  ;;  %v8126_v52 = vpop.f32.mrb[9].mxu1 }
 0x398   : > { %v2325_v35 = vsel %vm2323_vm4, %v2313_v29, 2102212464  ;;  %v2329_v4 = vsel %vm2323_vm4, %v2316_v60, 920167782  ;;  %v2244_v25 = vadd.s32 %v2243_v31, %v2239_v38  ;;  %v2324_v8 = vsel %vm2320_vm3, %v2304_v51, %v2307_v56 }
 0x399   : > { %v2330_v28 = vsel %vm2322_vm11, %v2313_v29, %v2329_v4  ;;  %v2333_v0 = vsel %vm2323_vm4, %v2319_v34, 1326507024  ;;  %v2326_v37 = vsel %vm2322_vm11, %v2310_v36, %v2325_v35  ;;  %vm2403_vm15 = vcmp.gt.s32.totalorder %v8056_v7, 0 }
 0x39a   : > { %v2331_v2 = vsel %vm2321_vm6, %v2328_v9, %v2330_v28  ;;  %v2334_v39 = vsel %vm2322_vm11, %v2316_v60, %v2333_v0  ;;  %v2245_v40 = vadd.s32 536870912, %v2244_v25  ;;  %v2404_v46 = vsel %vm2403_vm15, %v8056_v7, 0 }
 0x39b   : > { %v2335_v1 = vsel %vm2321_vm6, %v2332_v10, %v2334_v39  ;;  %v8111_v54 = vmul.u32.u64.low %v8049_v26, %v2331_v2  ;;  %v8112_v13 = vmul.u32.u64.high %v8049_v26, %v2331_v2, %v8111_v54  ;;  %v2499_v61 = vand.u32 2139095040, %v8041_v33 }
 0x39c   : > { %v8116_v30 = vmul.u32.u64.low %v8049_v26, %v2335_v1  ;;  %v8117_v42 = vmul.u32.u64.high %v8049_v26, %v2335_v1, %v8116_v30  ;;  %v8121_v63 = vshrl.u32 %v2245_v40, 30  ;;  %v2327_v44 = vsel %vm2321_vm6, %v2324_v8, %v2326_v37 }
 0x39d   : > { %v2400_v3 = vor.u32 8388608, %v8053_v5  ;;  %v2406_v27 = vand.u32 31, %v2404_v46  ;;  %v2346_v36 = vadd.s32 1, %v8112_v13  ;;  %v2343_v58 = vmul.u32 %v8049_v26, %v2327_v44 }
 0x39e   : > { %v2247_v56 = vshll.u32 %v8121_v63, 30  ;;  %vm2345_vm14 = vc.u32 %v8117_v42, %v8111_v54  ;;  %v2500_v7 = vshrl.u32 %v2499_v61, 23  ;;  %v10731_v5 = vand.u32 2147483647, %v8041_v33 }
 0x39f   : > { %v2407_v59 = vsub.s32 32, %v2406_v27  ;;  %v2347_v45 = vsel %vm2345_vm14, %v2346_v36, %v8112_v13  ;;  %v8136_v20 = vshll.u32 %v2400_v3, 8  ;;  %v2409_v47 = vshll.u32 %v10824_v16, %v2406_v27 }
 0x3a0   : > { %v8133_v51 = vsub.s32 %v2244_v25, %v2247_v56  ;;  %v2348_v57 = vadd.s32 %v2347_v45, %v2343_v58  ;;  %v2405_v53 = vshrl.u32 %v2404_v46, 5  ;;  %v2412_v23 = vshll.u32 %v10828_v11, %v2406_v27 }
 0x3a1   : > { %v2410_v38 = vshrl.u32 %v10828_v11, %v2407_v59  ;;  %v2413_v29 = vshrl.u32 %v10964_v22, %v2407_v59  ;;  %v2416_v60 = vshrl.u32 %v10965_v21, %v2407_v59  ;;  %v2415_v31 = vshll.u32 %v10964_v22, %v2406_v27 }
 0x3a2   : > { %v2250_v26 = vsub.s32 0, %v8133_v51  ;;  %v2349_v34 = vadd.s32 536870912, %v2348_v57  ;;  %v5564_v35 = vadd.s32 4294967169, %v2500_v7  ;;  %v2418_v25 = vshll.u32 %v10965_v21, %v2406_v27 }
 0x3a3   : > { %v2411_v9 = vor.u32 %v2410_v38, %v2409_v47  ;;  %v2414_v10 = vor.u32 %v2413_v29, %v2412_v23  ;;  %v2419_v8 = vshrl.u32 %v10966_v55, %v2407_v59  ;;  %v2417_v0 = vor.u32 %v2416_v60, %v2415_v31 }
 0x3a4   : > { %v5553_v4 = vmin.u32 %v2250_v26, %v8133_v51  ;;  %v8149_v28 = vshrl.u32 %v2349_v34, 30  ;;  %v2421_v37 = vshll.u32 %v10966_v55, %v2406_v27  ;;  %v2422_v2 = vshrl.u32 %v10967_v43, %v2407_v59 }
 0x3a5   : > { %v2408_v40 = vshrl.u32 %v10824_v16, %v2407_v59  ;;  %v2420_v1 = vor.u32 %v2419_v8, %v2418_v25  ;;  %vm2424_vm10 = vcmp.lt.s32.totalorder %v2405_v53, 1  ;;  %vm2425_vm2 = vcmp.lt.s32.totalorder %v2405_v53, 2 }
 0x3a6   : > { %v2252_v39 = vclz %v5553_v4  ;;  %v2351_v13 = vshll.u32 %v8149_v28, 30  ;;  %v2423_v30 = vor.u32 %v2422_v2, %v2421_v37  ;;  %vm2427_vm13 = vcmp.lt.s32.totalorder %v2405_v53, 4 }
 0x3a7   : > { %vm2426_vm0 = vcmp.lt.s32.totalorder %v2405_v53, 3  ;;  %v2432_v61 = vsel %vm2424_vm10, %v2411_v9, %v2414_v10  ;;  %v2433_v44 = vsel %vm2427_vm13, %v2420_v1, 920167782  ;;  %v2429_v56 = vsel %vm2427_vm13, %v2417_v0, 2102212464 }
 0x3a8   : > { %v5554_v46 = vadd.s32 4294967294, %v2252_v39  ;;  %v8155_v3 = vsub.s32 %v2348_v57, %v2351_v13  ;;  %v2434_v27 = vsel %vm2426_vm0, %v2417_v0, %v2433_v44  ;;  %v2436_v36 = vsel %vm2424_vm10, %v2414_v10, %v2417_v0 }
 0x3a9   : > { %v2428_v58 = vsel %vm2424_vm10, %v2408_v40, %v2411_v9  ;;  %v2435_v59 = vsel %vm2425_vm2, %v2432_v61, %v2434_v27  ;;  %v2437_v7 = vsel %vm2427_vm13, %v2423_v30, 1326507024  ;;  %v2506_v29 = vadd.s32 1, %v5564_v35  ;;  %v2026_v27 = vpop.permute.xlu1 %2025 }
 0x3aa   : > { %vm5555_vm9 = vcmp.lt.s32.totalorder %v5554_v46, 0  ;;  %v2354_v47 = vsub.s32 0, %v8155_v3  ;;  %v2438_v38 = vsel %vm2426_vm0, %v2420_v1, %v2437_v7  ;;  %v2430_v57 = vsel %vm2426_vm0, %v2414_v10, %v2429_v56 }
 0x3ab   : > { %v2255_v45 = vsel %vm5555_vm9, 0, %v5554_v46  ;;  %v2439_v60 = vsel %vm2425_vm2, %v2436_v36, %v2438_v38  ;;  %vm2507_vm1 = vcmp.gt.s32.totalorder %v2506_v29, 0  ;;  %v2240_v4 = vadd.s32 %v8085_v17, %v8082_v62 }
 0x3ac   : > { %v2256_v26 = vsub.s32 32, %v2255_v45  ;;  %v2260_v23 = vsub.s32 4294967266, %v2255_v45  ;;  %v5557_v34 = vmin.u32 %v2354_v47, %v8155_v3  ;;  %v2508_v10 = vsel %vm2507_vm1, %v2506_v29, 0 }
 0x3ad   : > { %v8165_v31 = vmul.u32.u64.low %v8136_v20, %v2439_v60  ;;  %v8166_v9 = vmul.u32.u64.high %v8136_v20, %v2439_v60, %v8165_v31  ;;  %v8171_v8 = vmul.u32.u64.low %v8136_v20, %v2435_v59  ;;  %v8172_v35 = vmul.u32.u64.high %v8136_v20, %v2435_v59, %v8171_v8  ;;  %v8184_v59 = vpop.f32.mrb[10].mxu1 }
 0x3ae   : > { %v2261_v25 = vadd.s32 127, %v2260_v23  ;;  %v2356_v0 = vclz %v5557_v34  ;;  %v2258_v37 = vshrl.u32 %v2240_v4, %v2256_v26  ;;  %v2431_v39 = vsel %vm2425_vm2, %v2428_v58, %v2430_v57 }
 0x3af   : > { %v2510_v40 = vand.u32 31, %v2508_v10  ;;  %vm2449_vm7 = vc.u32 %v8166_v9, %v8171_v8  ;;  %v2257_v13 = vshll.u32 %v8133_v51, %v2255_v45  ;;  %v2450_v62 = vadd.s32 1, %v8172_v35 }
 0x3b0   : > { %v2262_v2 = vshll.u32 %v2261_v25, 23  ;;  %v5558_v1 = vadd.s32 4294967294, %v2356_v0  ;;  %v2503_v17 = vand.u32 8388607, %v10731_v5  ;;  %v2447_v46 = vmul.u32 %v8136_v20, %v2431_v39 }
 0x3b1   : > { %v2259_v61 = vor.u32 %v2258_v37, %v2257_v13  ;;  %v2451_v53 = vsel %vm2449_vm7, %v2450_v62, %v8172_v35  ;;  %v2511_v56 = vsub.s32 32, %v2510_v40  ;;  %v8187_v7 = vadd.f32 %v8034_v14, %v2026_v27 }
 0x3b2   : > { %v2263_v30 = vor.u32 4788187, %v2262_v2  ;;  %vm5559_vm3 = vcmp.lt.s32.totalorder %v5558_v1, 0  ;;  %v2452_v58 = vadd.s32 %v2451_v53, %v2447_v46  ;;  %v2504_v51 = vor.u32 8388608, %v2503_v17 }
 0x3b3   : > { %v2359_v44 = vsel %vm5559_vm3, 0, %v5558_v1  ;;  %10968 = vst [vmem:[#allocation16_spill] sm:$0xff] %v8187_v7  ;;  %v8190_v45 = vadd.f32 %v8037_v24, %v2026_v27  ;;  %v2344_v20 = vadd.s32 %v8111_v54, %v8117_v42  ;;  %v2266_v26 = vcvt.s32.f32 %v2259_v61 }
 0x3b4   : > { %v2364_v36 = vsub.s32 4294967266, %v2359_v44  ;;  %v2264_v47 = vand.u32 2147483647, %v2263_v30  ;;  %v2453_v29 = vadd.s32 536870912, %v2452_v58  ;;  %v8194_v23 = vshrl.u32 %v2508_v10, 5 }
 0x3b5   : > { %v2514_v57 = vshrl.u32 %v10828_v11, %v2511_v56  ;;  %v2517_v60 = vshrl.u32 %v10964_v22, %v2511_v56  ;;  %v2513_v14 = vshll.u32 %v10824_v16, %v2510_v40  ;;  %v2520_v24 = vshrl.u32 %v10965_v21, %v2511_v56 }
 0x3b6   : > { %v2365_v38 = vadd.s32 127, %v2364_v36  ;;  %v8198_v34 = vshrl.u32 %v2453_v29, 30  ;;  %v2523_v31 = vshrl.u32 %v10966_v55, %v2511_v56  ;;  %v2360_v4 = vsub.s32 32, %v2359_v44 }
 0x3b7   : > { %v2516_v54 = vshll.u32 %v10828_v11, %v2510_v40  ;;  %v2522_v42 = vshll.u32 %v10965_v21, %v2510_v40  ;;  %v2526_v25 = vshrl.u32 %v10967_v43, %v2511_v56  ;;  %v2267_v35 = vmul.f32 %v2266_v26, %v2264_v47 }
 0x3b8   : > { %v2366_v0 = vshll.u32 %v2365_v38, 23  ;;  %v2455_v10 = vshll.u32 %v8198_v34, 30  ;;  %v2519_v37 = vshll.u32 %v10964_v22, %v2510_v40  ;;  %v2515_v2 = vor.u32 %v2514_v57, %v2513_v14 }
 0x3b9   : > { %v2518_v39 = vor.u32 %v2517_v60, %v2516_v54  ;;  %v2524_v1 = vor.u32 %v2523_v31, %v2522_v42  ;;  %v2525_v13 = vshll.u32 %v10966_v55, %v2510_v40  ;;  %vm2186_vm12 = vcmp.lt.s32.totalorder %v8019_v32, 0 }
 0x3ba   : > { %v2270_v62 = vsub.s32 4, %v8121_v63  ;;  %v8211_v17 = vsub.s32 %v2452_v58, %v2455_v10  ;;  %v2521_v30 = vor.u32 %v2520_v24, %v2519_v37  ;;  %v8213_v46 = vshll.u32 %v2504_v51, 8 }
 0x3bb   : > { %v2361_v61 = vshll.u32 %v8155_v3, %v2359_v44  ;;  %v2362_v53 = vshrl.u32 %v2344_v20, %v2360_v4  ;;  %v2512_v27 = vshrl.u32 %v10824_v16, %v2511_v56  ;;  %v2527_v36 = vor.u32 %v2526_v25, %v2525_v13 }
 0x3bc   : > { %v2367_v47 = vor.u32 4788187, %v2366_v0  ;;  %v2458_v38 = vsub.s32 0, %v8211_v17  ;;  %vm2528_vm6 = vcmp.lt.s32.totalorder %v8194_v23, 1  ;;  %vm2531_vm11 = vcmp.lt.s32.totalorder %v8194_v23, 4 }
 0x3bd   : > { %v2268_v40 = vxor.u32 2147483648, %v2267_v35  ;;  %vm2530_vm4 = vcmp.lt.s32.totalorder %v8194_v23, 3  ;;  %v2536_v58 = vsel %vm2528_vm6, %v2515_v2, %v2518_v39  ;;  %v2537_v51 = vsel %vm2531_vm11, %v2524_v1, 920167782 }
 0x3be   : > { %v5561_v3 = vmin.u32 %v2458_v38, %v8211_v17  ;;  %vm2529_vm15 = vcmp.lt.s32.totalorder %v8194_v23, 2  ;;  %v2533_v44 = vsel %vm2531_vm11, %v2521_v30, 2102212464  ;;  %v2538_v56 = vsel %vm2530_vm4, %v2521_v30, %v2537_v51  ;;  %v8269_v51 = vpop.permute.xlu0 %2030 }
 0x3bf   : > { %v2363_v20 = vor.u32 %v2362_v53, %v2361_v61  ;;  %v2539_v29 = vsel %vm2529_vm15, %v2536_v58, %v2538_v56  ;;  %v2540_v26 = vsel %vm2528_vm6, %v2518_v39, %v2521_v30  ;;  %v2541_v57 = vsel %vm2531_vm11, %v2527_v36, 1326507024  ;;  %v8252_v61 = vpop.f32.mrb[11].mxu1 }
 0x3c0   : > { %v2368_v60 = vand.u32 2147483647, %v2367_v47  ;;  %v2460_v14 = vclz %v5561_v3  ;;  %v2532_v24 = vsel %vm2528_vm6, %v2512_v27, %v2515_v2  ;;  %v2542_v31 = vsel %vm2530_vm4, %v2524_v1, %v2541_v57 }
 0x3c1   : > { %v2534_v4 = vsel %vm2530_vm4, %v2518_v39, %v2533_v44  ;;  %v2543_v54 = vsel %vm2529_vm15, %v2540_v26, %v2542_v31  ;;  %v8234_v42 = vmul.u32.u64.low %v8213_v46, %v2539_v29  ;;  %v8235_v25 = vmul.u32.u64.high %v8213_v46, %v2539_v29, %v8234_v42 }
 0x3c2   : > { %v5562_v0 = vadd.s32 4294967294, %v2460_v14  ;;  %v8239_v10 = vmul.u32.u64.low %v8213_v46, %v2543_v54  ;;  %v8240_v37 = vmul.u32.u64.high %v8213_v46, %v2543_v54, %v8239_v10  ;;  %v10730_v13 = vand.u32 2147483647, %v8187_v7 }
 0x3c3   : > { %vm8245_vm14 = vcmp.le.f32.partialorder %v2184_v15, 0.7853982  ;;  %v2269_v39 = vsel %vm2186_vm12, %v2268_v40, %v2267_v35  ;;  %v2370_v1 = vcvt.s32.f32 %v2363_v20  ;;  %v2603_v30 = vand.u32 2139095040, %v8187_v7 }
 0x3c4   : > { %vm2290_vm10 = vcmp.lt.s32.totalorder %v8021_v18, 0  ;;  %vm2394_vm2 = vcmp.lt.s32.totalorder %v8029_v49, 0  ;;  %vm5563_vm13 = vcmp.lt.s32.totalorder %v5562_v0, 0  ;;  %v2535_v53 = vsel %vm2529_vm15, %v2532_v24, %v2534_v4 }
 0x3c5   : > { %v2707_v15 = vand.u32 2139095040, %v8190_v45  ;;  %v2371_v27 = vmul.f32 %v2370_v1, %v2368_v60  ;;  %v2463_v36 = vsel %vm5563_vm13, 0, %v5562_v0  ;;  %v2554_v47 = vadd.s32 1, %v8235_v25 }
 0x3c6   : > { %v2604_v35 = vshrl.u32 %v2603_v30, 23  ;;  %v2271_v38 = vsel %vm2186_vm12, %v2270_v62, %v8121_v63  ;;  %v2272_v40 = vsel %vm8245_vm14, %v8019_v32, %v2269_v39  ;;  %v2478_v58 = vsub.s32 4, %v8198_v34 }
 0x3c7   : > { %v2607_v23 = vand.u32 8388607, %v10730_v13  ;;  %v2468_v3 = vsub.s32 4294967266, %v2463_v36  ;;  %v2551_v44 = vmul.u32 %v8213_v46, %v2535_v53  ;;  %vm2553_vm0 = vc.u32 %v8240_v37, %v8234_v42 }
 0x3c8   : > { %v5568_v56 = vadd.s32 4294967169, %v2604_v35  ;;  %vm8276_vm9 = vcmp.le.f32.partialorder %v2392_v12, 0.7853982  ;;  %v2555_v62 = vsel %vm2553_vm0, %v2554_v47, %v8235_v25  ;;  %v2708_v20 = vshrl.u32 %v2707_v15, 23 }
 0x3c9   : > { %v8283_v29 = vadd.f32 %v8039_v50, %v8269_v51  ;;  %v2273_v46 = vsel %vm8245_vm14, 0, %v2271_v38  ;;  %v2372_v26 = vxor.u32 2147483648, %v2371_v27  ;;  %v2556_v57 = vadd.s32 %v2555_v62, %v2551_v44 }
 0x3ca   : > { %v2610_v60 = vadd.s32 1, %v5568_v56  ;;  %6035 = vcosq.f32 %v2272_v40  ;;  %v2464_v14 = vsub.s32 32, %v2463_v36  ;;  %v8290_v12 = vsel %vm2394_vm2, %v2478_v58, %v8198_v34 }
 0x3cb   : > { %10973 = vst [vmem:[#allocation19_spill] sm:$0xff] %v8283_v29  ;;  %v2608_v24 = vor.u32 8388608, %v2607_v23  ;;  %v2469_v31 = vadd.s32 127, %v2468_v3  ;;  %v2557_v4 = vadd.s32 536870912, %v2556_v57  ;;  %v5572_v54 = vadd.s32 4294967169, %v2708_v20 }
 0x3cc   : > { %vm2611_vm1 = vcmp.gt.s32.totalorder %v2610_v60, 0  ;;  %6037 = vsinq.f32 %v2272_v40  ;;  %v8292_v50 = vadd.s32 3, %v2273_v46  ;;  %v2448_v25 = vadd.s32 %v8171_v8, %v8166_v9 }
 0x3cd   : > { %v2612_v0 = vsel %vm2611_vm1, %v2610_v60, 0  ;;  %v8298_v10 = vsel %vm2290_vm10, %v2372_v26, %v2371_v27  ;;  %v8303_v2 = vshrl.u32 %v2557_v4, 30  ;;  %v2465_v1 = vshll.u32 %v8211_v17, %v2463_v36 }
 0x3ce   : > { %v2614_v39 = vand.u32 31, %v2612_v0  ;;  %v2466_v30 = vshrl.u32 %v2448_v25, %v2464_v14  ;;  %v8306_v53 = vshll.u32 %v2608_v24, 8  ;;  %v10729_v15 = vand.u32 2147483647, %v8190_v45 }
 0x3cf   : > { %v2470_v9 = vshll.u32 %v2469_v31, 23  ;;  %v2559_v8 = vshll.u32 %v8303_v2, 30  ;;  %v2714_v27 = vadd.s32 1, %v5572_v54  ;;  %v2613_v35 = vshrl.u32 %v2612_v0, 5 }
 0x3d0   : > { %v2615_v47 = vsub.s32 32, %v2614_v39  ;;  %v2617_v38 = vshll.u32 %v10824_v16, %v2614_v39  ;;  %v2620_v40 = vshll.u32 %v10828_v11, %v2614_v39  ;;  %v2623_v58 = vshll.u32 %v10964_v22, %v2614_v39 }
 0x3d1   : > { %v8313_v23 = vsub.s32 %v2556_v57, %v2559_v8  ;;  %v2626_v3 = vshll.u32 %v10965_v21, %v2614_v39  ;;  %v2629_v62 = vshll.u32 %v10966_v55, %v2614_v39  ;;  %v8325_v57 = vand.u32 8388607, %v10729_v15 }
 0x3d2   : > { %v2618_v17 = vshrl.u32 %v10828_v11, %v2615_v47  ;;  %v2621_v36 = vshrl.u32 %v10964_v22, %v2615_v47  ;;  %v2624_v44 = vshrl.u32 %v10965_v21, %v2615_v47  ;;  %v2627_v56 = vshrl.u32 %v10966_v55, %v2615_v47 }
 0x3d3   : > { %v2630_v20 = vshrl.u32 %v10967_v43, %v2615_v47  ;;  %v2562_v46 = vsub.s32 0, %v8313_v23  ;;  %v2467_v24 = vor.u32 %v2466_v30, %v2465_v1  ;;  %v2471_v25 = vor.u32 4788187, %v2470_v9 }
 0x3d4   : > { %v2619_v26 = vor.u32 %v2618_v17, %v2617_v38  ;;  %v2622_v60 = vor.u32 %v2621_v36, %v2620_v40  ;;  %v8327_v14 = vpop.eup %6035  ;;  %v2625_v31 = vor.u32 %v2624_v44, %v2623_v58  ;;  %v2628_v4 = vor.u32 %v2627_v56, %v2626_v3 }
 0x3d5   : > { %10974 = vst [vmem:[#allocation10_spill] sm:$0xff] %v8327_v14  ;;  %v2631_v54 = vor.u32 %v2630_v20, %v2629_v62  ;;  %v5565_v0 = vmin.u32 %v2562_v46, %v8313_v23  ;;  %vm2632_vm7 = vcmp.lt.s32.totalorder %v2613_v35, 1  ;;  %vm2715_vm3 = vcmp.gt.s32.totalorder %v2714_v27, 0 }
 0x3d6   : > { %v8330_v39 = vpop.eup %6037  ;;  %v2616_v8 = vshrl.u32 %v10824_v16, %v2615_v47  ;;  %vm2633_vm12 = vcmp.lt.s32.totalorder %v2613_v35, 2  ;;  %vm2635_vm6 = vcmp.lt.s32.totalorder %v2613_v35, 4  ;;  %v2640_v38 = vsel %vm2632_vm7, %v2619_v26, %v2622_v60 }
 0x3d7   : > { %10975 = vst [vmem:[#allocation21_spill] sm:$0xff] %v8330_v39  ;;  %v2564_v40 = vclz %v5565_v0  ;;  %vm2634_vm11 = vcmp.lt.s32.totalorder %v2613_v35, 3  ;;  %v2637_v17 = vsel %vm2635_vm6, %v2625_v31, 2102212464  ;;  %v2641_v36 = vsel %vm2635_vm6, %v2628_v4, 920167782 }
 0x3d8   : > { %v2636_v1 = vsel %vm2632_vm7, %v2616_v8, %v2619_v26  ;;  %v2642_v30 = vsel %vm2634_vm11, %v2625_v31, %v2641_v36  ;;  %v2644_v58 = vsel %vm2632_vm7, %v2622_v60, %v2625_v31  ;;  %v2645_v3 = vsel %vm2635_vm6, %v2631_v54, 1326507024 }
 0x3d9   : > { %v5566_v9 = vadd.s32 4294967294, %v2564_v40  ;;  %v2638_v44 = vsel %vm2634_vm11, %v2622_v60, %v2637_v17  ;;  %v2643_v56 = vsel %vm2633_vm12, %v2640_v38, %v2642_v30  ;;  %v2646_v62 = vsel %vm2634_vm11, %v2628_v4, %v2645_v3 }
 0x3da   : > { %v2647_v20 = vsel %vm2633_vm12, %v2644_v58, %v2646_v62  ;;  %v8336_v47 = vmul.u32.u64.low %v8306_v53, %v2643_v56  ;;  %v8337_v46 = vmul.u32.u64.high %v8306_v53, %v2643_v56, %v8336_v47  ;;  %v2811_v0 = vand.u32 2139095040, %v8283_v29 }
 0x3db   : > { %vm5567_vm4 = vcmp.lt.s32.totalorder %v5566_v9, 0  ;;  %v8342_v26 = vmul.u32.u64.low %v8306_v53, %v2647_v20  ;;  %v8343_v8 = vmul.u32.u64.high %v8306_v53, %v2647_v20, %v8342_v26  ;;  %v2716_v31 = vsel %vm2715_vm3, %v2714_v27, 0 }
 0x3dc   : > { %v2472_v60 = vand.u32 2147483647, %v2471_v25  ;;  %v2567_v54 = vsel %vm5567_vm4, 0, %v5566_v9  ;;  %v2639_v4 = vsel %vm2633_vm12, %v2636_v1, %v2638_v44  ;;  %v2718_v38 = vand.u32 31, %v2716_v31  ;;  %v8355_v25 = vpop.f32.mrb[12].mxu1 }
 0x3dd   : > { %v2552_v40 = vadd.s32 %v8234_v42, %v8240_v37  ;;  %v2572_v17 = vsub.s32 4294967266, %v2567_v54  ;;  %v2712_v36 = vor.u32 8388608, %v8325_v57  ;;  %v10733_v30 = vand.u32 2147483647, %v8283_v29 }
 0x3de   : > { %v2474_v58 = vcvt.s32.f32 %v2467_v24  ;;  %v2568_v3 = vsub.s32 32, %v2567_v54  ;;  %v2658_v56 = vadd.s32 1, %v8337_v46  ;;  %v2719_v62 = vsub.s32 32, %v2718_v38 }
 0x3df   : > { %v2573_v20 = vadd.s32 127, %v2572_v17  ;;  %v2655_v27 = vmul.u32 %v8306_v53, %v2639_v4  ;;  %vm2657_vm15 = vc.u32 %v8343_v8, %v8336_v47  ;;  %v2812_v35 = vshrl.u32 %v2811_v0, 23 }
 0x3e0   : > { %v8357_v42 = vmul.f32 %v2474_v58, %v2472_v60  ;;  %v2659_v37 = vsel %vm2657_vm15, %v2658_v56, %v8337_v46  ;;  %v2722_v57 = vshrl.u32 %v10828_v11, %v2719_v62  ;;  %v2725_v24 = vshrl.u32 %v10964_v22, %v2719_v62 }
 0x3e1   : > { %v2569_v1 = vshll.u32 %v8313_v23, %v2567_v54  ;;  %v2574_v9 = vshll.u32 %v2573_v20, 23  ;;  %v2660_v44 = vadd.s32 %v2659_v37, %v2655_v27  ;;  %v2717_v26 = vshrl.u32 %v2716_v31, 5 }
 0x3e2   : > { %v2570_v53 = vshrl.u32 %v2552_v40, %v2568_v3  ;;  %v2721_v4 = vshll.u32 %v10824_v16, %v2718_v38  ;;  %v2724_v0 = vshll.u32 %v10828_v11, %v2718_v38  ;;  %v2728_v17 = vshrl.u32 %v10965_v21, %v2719_v62 }
 0x3e3   : > { %v2661_v60 = vadd.s32 536870912, %v2660_v44  ;;  %v2727_v58 = vshll.u32 %v10964_v22, %v2718_v38  ;;  %v2730_v46 = vshll.u32 %v10965_v21, %v2718_v38  ;;  %v2731_v56 = vshrl.u32 %v10966_v55, %v2719_v62 }
 0x3e4   : > { %vm8371_vm14 = vcmp.le.f32.partialorder %v2288_v19, 0.7853982  ;;  %v2723_v31 = vor.u32 %v2722_v57, %v2721_v4  ;;  %v2726_v54 = vor.u32 %v2725_v24, %v2724_v0  ;;  %v2733_v40 = vshll.u32 %v10966_v55, %v2718_v38 }
 0x3e5   : > { %v2734_v3 = vshrl.u32 %v10967_v43, %v2719_v62  ;;  %v2575_v20 = vor.u32 4788187, %v2574_v9  ;;  %v8377_v27 = vshrl.u32 %v2661_v60, 30  ;;  %v2729_v37 = vor.u32 %v2728_v17, %v2727_v58 }
 0x3e6   : > { %v2732_v15 = vor.u32 %v2731_v56, %v2730_v46  ;;  %v2476_v13 = vxor.u32 2147483648, %v8357_v42  ;;  %v2752_v34 = vshll.u32 %v2712_v36, 8  ;;  %v2815_v19 = vand.u32 8388607, %v10733_v30 }
 0x3e7   : > { %v2735_v5 = vor.u32 %v2734_v3, %v2733_v40  ;;  %v2571_v48 = vor.u32 %v2570_v53, %v2569_v1  ;;  %v2663_v57 = vshll.u32 %v8377_v27, 30  ;;  %vm2736_vm13 = vcmp.lt.s32.totalorder %v2717_v26, 1 }
 0x3e8   : > { %vm2739_vm0 = vcmp.lt.s32.totalorder %v2717_v26, 4  ;;  %v2720_v38 = vshrl.u32 %v10824_v16, %v2719_v62  ;;  %v2744_v24 = vsel %vm2736_vm13, %v2723_v31, %v2726_v54  ;;  %v5576_v4 = vadd.s32 4294967169, %v2812_v35 }
 0x3e9   : > { %v2745_v9 = vsel %vm2739_vm0, %v2732_v15, 920167782  ;;  %v2576_v0 = vand.u32 2147483647, %v2575_v20  ;;  %v8385_v17 = vsub.s32 %v2660_v44, %v2663_v57  ;;  %vm2738_vm1 = vcmp.lt.s32.totalorder %v2717_v26, 3 }
 0x3ea   : > { %v2741_v60 = vsel %vm2739_vm0, %v2729_v37, 2102212464  ;;  %vm2737_vm7 = vcmp.lt.s32.totalorder %v2717_v26, 2  ;;  %v2746_v36 = vsel %vm2738_vm1, %v2729_v37, %v2745_v9  ;;  %v2748_v58 = vsel %vm2736_vm13, %v2726_v54, %v2729_v37 }
 0x3eb   : > { %v2749_v1 = vsel %vm2739_vm0, %v2735_v5, 1326507024  ;;  %v2578_v53 = vcvt.s32.f32 %v2571_v48  ;;  %v2666_v46 = vsub.s32 0, %v8385_v17  ;;  %v2740_v56 = vsel %vm2736_vm13, %v2720_v38, %v2723_v31 }
 0x3ec   : > { %v2747_v62 = vsel %vm2737_vm7, %v2744_v24, %v2746_v36  ;;  %v2742_v40 = vsel %vm2738_vm1, %v2726_v54, %v2741_v60  ;;  %v2750_v3 = vsel %vm2738_vm1, %v2732_v15, %v2749_v1  ;;  %v8399_v44 = vsel %vm8371_vm14, %v8021_v18, %v8298_v10 }
 0x3ed   : > { %v8391_v35 = vmul.u32.u64.low %v2752_v34, %v2747_v62  ;;  %v8392_v20 = vmul.u32.u64.high %v2752_v34, %v2747_v62, %v8391_v35  ;;  %v5569_v48 = vmin.u32 %v2666_v46, %v8385_v17  ;;  %v2751_v5 = vsel %vm2737_vm7, %v2748_v58, %v2750_v3 }
 0x3ee   : > { %v2818_v37 = vadd.s32 1, %v5576_v4  ;;  %v8403_v31 = vmul.f32 %v2578_v53, %v2576_v0  ;;  %v8405_v57 = vmul.u32.u64.low %v2752_v34, %v2751_v5  ;;  %v8406_v54 = vmul.u32.u64.high %v2752_v34, %v2751_v5, %v8405_v57 }
 0x3ef   : > { %v2816_v15 = vor.u32 8388608, %v2815_v19  ;;  %v10978_v38 = vsel %vm8276_vm9, 0, %v8290_v12  ;;  %v2668_v9 = vclz %v5569_v48  ;;  %v2743_v10 = vsel %vm2737_vm7, %v2740_v56, %v2742_v40 }
 0x3f0   : > { %v8412_v24 = vadd.s32 3, %v10978_v38  ;;  %vm2819_vm3 = vcmp.gt.s32.totalorder %v2818_v37, 0  ;;  %6039 = vcosq.f32 %v8399_v44  ;;  %v8419_v4 = vsel %vm2394_vm2, %v2476_v13, %v8357_v42  ;;  %v8430_v13 = vpop.f32.mrb[13].mxu1 }
 0x3f1   : > { %v2762_v0 = vadd.s32 1, %v8392_v20  ;;  %v2820_v19 = vsel %vm2819_vm3, %v2818_v37, 0  ;;  %v2656_v60 = vadd.s32 %v8336_v47, %v8343_v8  ;;  %v5570_v12 = vadd.s32 4294967294, %v2668_v9 }
 0x3f2   : > { %10979 = vst [vmem:[#allocation18_spill] sm:$0xff] %v8412_v24  ;;  %v2822_v58 = vand.u32 31, %v2820_v19  ;;  %v2759_v1 = vmul.u32 %v2752_v34, %v2743_v10  ;;  %vm2761_vm12 = vc.u32 %v8406_v54, %v8391_v35  ;;  %v8428_v53 = vshll.u32 %v2816_v15, 8 }
 0x3f3   : > { %vm5571_vm2 = vcmp.lt.s32.totalorder %v5570_v12, 0  ;;  %v2763_v42 = vsel %vm2761_vm12, %v2762_v0, %v8392_v20  ;;  %v8435_v47 = vadd.f32 %v8043_v6, %v8269_v51  ;;  %v8437_v62 = vshrl.u32 %v2820_v19, 5 }
 0x3f4   : > { %v2823_v46 = vsub.s32 32, %v2822_v58  ;;  %v2671_v8 = vsel %vm5571_vm2, 0, %v5570_v12  ;;  %v2764_v56 = vadd.s32 %v2763_v42, %v2759_v1  ;;  %v2825_v34 = vshll.u32 %v10824_v16, %v2822_v58 }
 0x3f5   : > { %v2672_v40 = vsub.s32 32, %v2671_v8  ;;  %v2676_v3 = vsub.s32 4294967266, %v2671_v8  ;;  %v2828_v48 = vshll.u32 %v10828_v11, %v2822_v58  ;;  %v2831_v5 = vshll.u32 %v10964_v22, %v2822_v58 }
 0x3f6   : > { %v2765_v37 = vadd.s32 536870912, %v2764_v56  ;;  %v2826_v20 = vshrl.u32 %v10828_v11, %v2823_v46  ;;  %v2829_v57 = vshrl.u32 %v10964_v22, %v2823_v46  ;;  %v2832_v6 = vshrl.u32 %v10965_v21, %v2823_v46 }
 0x3f7   : > { %v2674_v51 = vshrl.u32 %v2656_v60, %v2672_v40  ;;  %v2677_v15 = vadd.s32 127, %v2676_v3  ;;  %v2834_v38 = vshll.u32 %v10965_v21, %v2822_v58  ;;  %v2835_v9 = vshrl.u32 %v10966_v55, %v2823_v46 }
 0x3f8   : > { %v2673_v10 = vshll.u32 %v8385_v17, %v2671_v8  ;;  %v8448_v0 = vshrl.u32 %v2765_v37, 30  ;;  %v2833_v19 = vor.u32 %v2832_v6, %v2831_v5  ;;  %v2915_v12 = vand.u32 2139095040, %v8435_v47 }
 0x3f9   : > { %vm2498_vm6 = vcmp.lt.s32.totalorder %v8041_v33, 0  ;;  %v2678_v1 = vshll.u32 %v2677_v15, 23  ;;  %v2827_v42 = vor.u32 %v2826_v20, %v2825_v34  ;;  %v2830_v30 = vor.u32 %v2829_v57, %v2828_v48 }
 0x3fa   : > { %10980 = vst [vmem:[#allocation12_spill] sm:$0xff] %v8448_v0  ;;  %v2836_v36 = vor.u32 %v2835_v9, %v2834_v38  ;;  %v8452_v26 = vpop.eup %6039  ;;  %v2675_v60 = vor.u32 %v2674_v51, %v2673_v10  ;;  %v2767_v40 = vshll.u32 %v8448_v0, 30  ;;  %v2837_v3 = vshll.u32 %v10966_v55, %v2822_v58 }
 0x3fb   : > { %v2838_v17 = vshrl.u32 %v10967_v43, %v2823_v46  ;;  %v2679_v8 = vor.u32 4788187, %v2678_v1  ;;  %v2824_v5 = vshrl.u32 %v10824_v16, %v2823_v46  ;;  %vm2840_vm11 = vcmp.lt.s32.totalorder %v8437_v62, 1 }
 0x3fc   : > { %vm2843_vm4 = vcmp.lt.s32.totalorder %v8437_v62, 4  ;;  %v10981_v34 = vand.u32 2147483647, %v8041_v33  ;;  %v8466_v37 = vsub.s32 %v2764_v56, %v2767_v40  ;;  %vm2841_vm13 = vcmp.lt.s32.totalorder %v8437_v62, 2 }
 0x3fd   : > { %v2839_v20 = vor.u32 %v2838_v17, %v2837_v3  ;;  %v2845_v58 = vsel %vm2843_vm4, %v2833_v19, 2102212464  ;;  %v2680_v57 = vand.u32 2147483647, %v2679_v8  ;;  %vm2842_vm0 = vcmp.lt.s32.totalorder %v8437_v62, 3 }
 0x3fe   : > { %vm8462_vm15 = vcmp.le.f32.partialorder %v10981_v34, 0.7853982  ;;  %v2848_v46 = vsel %vm2840_vm11, %v2827_v42, %v2830_v30  ;;  %v2849_v6 = vsel %vm2843_vm4, %v2836_v36, 920167782  ;;  %v2682_v51 = vcvt.s32.f32 %v2675_v60 }
 0x3ff   : > { %v2770_v15 = vsub.s32 0, %v8466_v37  ;;  %v2850_v56 = vsel %vm2842_vm0, %v2833_v19, %v2849_v6  ;;  %v2852_v38 = vsel %vm2840_vm11, %v2830_v30, %v2833_v19  ;;  %v10984_v9 = vand.u32 2147483647, %v8187_v7 }
 0x400   : > { %v2844_v1 = vsel %vm2840_vm11, %v2824_v5, %v2827_v42  ;;  %v2846_v40 = vsel %vm2842_vm0, %v2830_v30, %v2845_v58  ;;  %v2851_v3 = vsel %vm2841_vm13, %v2848_v46, %v2850_v56  ;;  %v2853_v60 = vsel %vm2843_vm4, %v2839_v20, 1326507024  ;;  %v2036_v56 = vpop.permute.xlu1 %2035 }
 0x401   : > { %vm8481_vm1 = vcmp.le.f32.partialorder %v10984_v9, 0.7853982  ;;  %v5573_v17 = vmin.u32 %v2770_v15, %v8466_v37  ;;  %v2854_v8 = vsel %vm2842_vm0, %v2836_v36, %v2853_v60  ;;  %v2480_v6 = vsel %vm8276_vm9, %v8029_v49, %v8419_v4 }
 0x402   : > { %v8493_v19 = vmul.u32.u64.low %v8428_v53, %v2851_v3  ;;  %v8494_v34 = vmul.u32.u64.high %v8428_v53, %v2851_v3, %v8493_v19  ;;  %v2683_v42 = vmul.f32 %v2682_v51, %v2680_v57  ;;  %v2855_v30 = vsel %vm2841_vm13, %v2852_v38, %v2854_v8 }
 0x403   : > { %v2916_v5 = vshrl.u32 %v2915_v12, 23  ;;  %v10987_v20 = vxor.u32 2147483648, %v8403_v31  ;;  %v2772_v58 = vclz %v5573_v17  ;;  %6041 = vsinq.f32 %v8399_v44 }
 0x404   : > { %v8508_v46 = vmul.u32.u64.low %v8428_v53, %v2855_v30  ;;  %v8509_v15 = vmul.u32.u64.high %v8428_v53, %v2855_v30, %v8508_v46  ;;  %vm2602_vm9 = vcmp.lt.s32.totalorder %v8187_v7, 0  ;;  %v2847_v63 = vsel %vm2841_vm13, %v2844_v1, %v2846_v40 }
 0x405   : > { %v2581_v36 = vsel %vm2498_vm6, %v10987_v20, %v8403_v31  ;;  %v5580_v4 = vadd.s32 4294967169, %v2916_v5  ;;  %6043 = vcosq.f32 %v2480_v6  ;;  %v10988_v12 = vsub.s32 4, %v8377_v27 }
 0x406   : > { %v5574_v57 = vadd.s32 4294967294, %v2772_v58  ;;  %v2866_v51 = vadd.s32 1, %v8494_v34  ;;  %v2584_v44 = vsel %vm8462_vm15, %v8041_v33, %v2581_v36  ;;  %v2684_v38 = vxor.u32 2147483648, %v2683_v42 }
 0x407   : > { %v8520_v31 = vsel %vm2602_vm9, %v10988_v12, %v8377_v27  ;;  %v10734_v62 = vand.u32 2147483647, %v8435_v47  ;;  %v2922_v9 = vadd.s32 1, %v5580_v4  ;;  %v2863_v1 = vmul.u32 %v8428_v53, %v2847_v63 }
 0x408   : > { %vm5575_vm7 = vcmp.lt.s32.totalorder %v5574_v57, 0  ;;  %vm2865_vm3 = vc.u32 %v8509_v15, %v8493_v19  ;;  %v8530_v27 = vadd.f32 %v8068_v41, %v2036_v56  ;;  %6045 = vsinq.f32 %v2480_v6  ;;  %v8540_v6 = vpop.permute.xlu0 %2040 }
 0x409   : > { %v2775_v40 = vsel %vm5575_vm7, 0, %v5574_v57  ;;  %v2867_v3 = vsel %vm2865_vm3, %v2866_v51, %v8494_v34  ;;  %vm2923_vm12 = vcmp.gt.s32.totalorder %v2922_v9, 0  ;;  %6047 = vcosq.f32 %v2584_v44 }
 0x40a   : > { %10989 = vst [vmem:[#allocation17_spill] sm:$0xff] %v8530_v27  ;;  %v2776_v17 = vsub.s32 32, %v2775_v40  ;;  %v2780_v8 = vsub.s32 4294967266, %v2775_v40  ;;  %v2868_v30 = vadd.s32 %v2867_v3, %v2863_v1  ;;  %v2685_v53 = vsel %vm2602_vm9, %v2684_v38, %v2683_v42 }
 0x40b   : > { %v2919_v41 = vand.u32 8388607, %v10734_v62  ;;  %v2924_v5 = vsel %vm2923_vm12, %v2922_v9, 0  ;;  %v2760_v34 = vadd.s32 %v8391_v35, %v8406_v54  ;;  %v3019_v58 = vand.u32 2139095040, %v8530_v27 }
 0x40c   : > { %v2781_v20 = vadd.s32 127, %v2780_v8  ;;  %v2869_v36 = vadd.s32 536870912, %v2868_v30  ;;  %6049 = vsinq.f32 %v2584_v44  ;;  %v2926_v46 = vand.u32 31, %v2924_v5 }
 0x40d   : > { %v8546_v63 = vadd.f32 %v8126_v52, %v2036_v56  ;;  %v8550_v42 = vadd.f32 %v8184_v59, %v8540_v6  ;;  %v8555_v4 = vsel %vm8481_vm1, %v8187_v7, %v2685_v53  ;;  %v2778_v12 = vshrl.u32 %v2760_v34, %v2776_v17  ;;  %v8560_v57 = vpop.eup %6041 }
 0x40e   : > { %v8557_v35 = vshrl.u32 %v2869_v36, 30  ;;  %v10736_v54 = vand.u32 2147483647, %v8530_v27  ;;  %v2777_v51 = vshll.u32 %v8466_v37, %v2775_v40  ;;  %v8564_v52 = vadd.s32 %v8493_v19, %v8509_v15 }
 0x40f   : > { %v2920_v56 = vor.u32 8388608, %v2919_v41  ;;  %v2927_v59 = vsub.s32 32, %v2926_v46  ;;  %v8566_v44 = vpop.eup %6043  ;;  %v2782_v38 = vshll.u32 %v2781_v20, 23  ;;  %v2929_v1 = vshll.u32 %v10824_v16, %v2926_v46 }
 0x410   : > { %10990 = vst [vmem:[#allocation27_spill] sm:$0xff] %v8566_v44  ;;  %v2871_v9 = vshll.u32 %v8557_v35, 30  ;;  %v3020_v3 = vshrl.u32 %v3019_v58, 23  ;;  %v2932_v8 = vshll.u32 %v10828_v11, %v2926_v46  ;;  %v2779_v19 = vor.u32 %v2778_v12, %v2777_v51 }
 0x411   : > { %v2930_v17 = vshrl.u32 %v10828_v11, %v2927_v59  ;;  %v2933_v53 = vshrl.u32 %v10964_v22, %v2927_v59  ;;  %v2936_v37 = vshrl.u32 %v10965_v21, %v2927_v59  ;;  %v2925_v40 = vshrl.u32 %v2924_v5, 5 }
 0x412   : > { %v8574_v15 = vsub.s32 %v2868_v30, %v2871_v9  ;;  %v2935_v41 = vshll.u32 %v10964_v22, %v2926_v46  ;;  %v8577_v34 = vpop.eup %6045  ;;  %v8579_v62 = vshll.u32 %v2920_v56, 8  ;;  %v8583_v58 = vand.u32 8388607, %v10736_v54 }
 0x413   : > { %10991 = vst [vmem:[#allocation26_spill] sm:$0xff] %v8577_v34  ;;  %v2931_v20 = vor.u32 %v2930_v17, %v2929_v1  ;;  %v2934_v36 = vor.u32 %v2933_v53, %v2932_v8  ;;  %v2938_v12 = vshll.u32 %v10965_v21, %v2926_v46  ;;  %v2939_v30 = vshrl.u32 %v10966_v55, %v2927_v59  ;;  %v8588_v5 = vpop.eup %6047 }
 0x414   : > { %v2874_v60 = vsub.s32 0, %v8574_v15  ;;  %v2937_v7 = vor.u32 %v2936_v37, %v2935_v41  ;;  %v2783_v51 = vor.u32 4788187, %v2782_v38  ;;  %v2941_v9 = vshll.u32 %v10966_v55, %v2926_v46 }
 0x415   : > { %v2942_v1 = vshrl.u32 %v10967_v43, %v2927_v59  ;;  %v5584_v56 = vadd.s32 4294967169, %v3020_v3  ;;  %v2786_v17 = vcvt.s32.f32 %v2779_v19  ;;  %v2940_v53 = vor.u32 %v2939_v30, %v2938_v12 }
 0x416   : > { %v5577_v8 = vmin.u32 %v2874_v60, %v8574_v15  ;;  %vm2944_vm2 = vcmp.lt.s32.totalorder %v2925_v40, 1  ;;  %v8593_v54 = vpop.eup %6049  ;;  %v2928_v37 = vshrl.u32 %v10824_v16, %v2927_v59  ;;  %vm2947_vm11 = vcmp.lt.s32.totalorder %v2925_v40, 4 }
 0x417   : > { %v2943_v41 = vor.u32 %v2942_v1, %v2941_v9  ;;  %v2952_v49 = vsel %vm2944_vm2, %v2931_v20, %v2934_v36  ;;  %vm2946_vm4 = vcmp.lt.s32.totalorder %v2925_v40, 3  ;;  %v2949_v38 = vsel %vm2947_vm11, %v2937_v7, 2102212464 }
 0x418   : > { %v2876_v0 = vclz %v5577_v8  ;;  %v2953_v44 = vsel %vm2947_vm11, %v2940_v53, 920167782  ;;  %v2784_v46 = vand.u32 2147483647, %v2783_v51  ;;  %vm2945_vm13 = vcmp.lt.s32.totalorder %v2925_v40, 2 }
 0x419   : > { %v2954_v34 = vsel %vm2946_vm4, %v2937_v7, %v2953_v44  ;;  %v2956_v3 = vsel %vm2944_vm2, %v2934_v36, %v2937_v7  ;;  %v2948_v24 = vsel %vm2944_vm2, %v2928_v37, %v2931_v20  ;;  %v2957_v12 = vsel %vm2947_vm11, %v2943_v41, 1326507024 }
 0x41a   : > { %v5578_v19 = vadd.s32 4294967294, %v2876_v0  ;;  %v2955_v60 = vsel %vm2945_vm13, %v2952_v49, %v2954_v34  ;;  %v2950_v30 = vsel %vm2946_vm4, %v2934_v36, %v2949_v38  ;;  %v2958_v14 = vsel %vm2946_vm4, %v2940_v53, %v2957_v12 }
 0x41b   : > { %v8598_v59 = vmul.u32.u64.low %v8579_v62, %v2955_v60  ;;  %v8599_v9 = vmul.u32.u64.high %v8579_v62, %v2955_v60, %v8598_v59  ;;  %v2959_v1 = vsel %vm2945_vm13, %v2956_v3, %v2958_v14  ;;  %v3026_v8 = vadd.s32 1, %v5584_v56 }
 0x41c   : > { %vm5579_vm0 = vcmp.lt.s32.totalorder %v5578_v19, 0  ;;  %v8604_v44 = vmul.f32 %v2786_v17, %v2784_v46  ;;  %v8607_v0 = vmul.u32.u64.low %v8579_v62, %v2959_v1  ;;  %v8608_v49 = vmul.u32.u64.high %v8579_v62, %v2959_v1, %v8607_v0 }
 0x41d   : > { %v2879_v7 = vsel %vm5579_vm0, 0, %v5578_v19  ;;  %v2951_v36 = vsel %vm2945_vm13, %v2948_v24, %v2950_v30  ;;  %vm3027_vm9 = vcmp.gt.s32.totalorder %v3026_v8, 0  ;;  %v2970_v37 = vadd.s32 1, %v8599_v9 }
 0x41e   : > { %v2880_v34 = vsub.s32 32, %v2879_v7  ;;  %v2884_v20 = vsub.s32 4294967266, %v2879_v7  ;;  %v3024_v14 = vor.u32 8388608, %v8583_v58  ;;  %v3028_v56 = vsel %vm3027_vm9, %v3026_v8, 0 }
 0x41f   : > { %v2881_v17 = vshll.u32 %v8574_v15, %v2879_v7  ;;  %v3030_v46 = vand.u32 31, %v3028_v56  ;;  %v2788_v3 = vxor.u32 2147483648, %v8604_v44  ;;  %v2967_v19 = vmul.u32 %v8579_v62, %v2951_v36 }
 0x420   : > { %v2882_v41 = vshrl.u32 %v8564_v52, %v2880_v34  ;;  %v2885_v38 = vadd.s32 127, %v2884_v20  ;;  %vm2969_vm7 = vc.u32 %v8608_v49, %v8598_v59  ;;  %v3123_v24 = vand.u32 2139095040, %v8546_v63 }
 0x421   : > { %v2971_v58 = vsel %vm2969_vm7, %v2970_v37, %v8599_v9  ;;  %v3031_v12 = vsub.s32 32, %v3030_v46  ;;  %v3029_v15 = vshrl.u32 %v3028_v56, 5  ;;  %v3033_v52 = vshll.u32 %v10824_v16, %v3030_v46 }
 0x422   : > { %v2883_v40 = vor.u32 %v2882_v41, %v2881_v17  ;;  %v2886_v60 = vshll.u32 %v2885_v38, 23  ;;  %v2972_v30 = vadd.s32 %v2971_v58, %v2967_v19  ;;  %v3036_v1 = vshll.u32 %v10828_v11, %v3030_v46 }
 0x423   : > { %v3034_v62 = vshrl.u32 %v10828_v11, %v3031_v12  ;;  %v3039_v0 = vshll.u32 %v10964_v22, %v3030_v46  ;;  %vm2706_vm3 = vcmp.lt.s32.totalorder %v8190_v45, 0  ;;  %v3037_v20 = vshrl.u32 %v10964_v22, %v3031_v12 }
 0x424   : > { %v2887_v8 = vor.u32 4788187, %v2886_v60  ;;  %v2890_v7 = vcvt.s32.f32 %v2883_v40  ;;  %v2973_v34 = vadd.s32 536870912, %v2972_v30  ;;  %v3040_v9 = vshrl.u32 %v10965_v21, %v3031_v12 }
 0x425   : > { %v3042_v36 = vshll.u32 %v10965_v21, %v3030_v46  ;;  %vm2810_vm12 = vcmp.lt.s32.totalorder %v8283_v29, 0  ;;  %v3035_v56 = vor.u32 %v3034_v62, %v3033_v52  ;;  %v3043_v17 = vshrl.u32 %v10966_v55, %v3031_v12 }
 0x426   : > { %v2888_v37 = vand.u32 2147483647, %v2887_v8  ;;  %v3045_v41 = vshll.u32 %v10966_v55, %v3030_v46  ;;  %v8633_v38 = vshrl.u32 %v2973_v34, 30  ;;  %v3038_v19 = vor.u32 %v3037_v20, %v3036_v1 }
 0x427   : > { %v3041_v40 = vor.u32 %v3040_v9, %v3039_v0  ;;  %v3046_v60 = vshrl.u32 %v10967_v43, %v3031_v12  ;;  %v10993_v58 = vand.u32 2147483647, %v8190_v45  ;;  %v3044_v39 = vor.u32 %v3043_v17, %v3042_v36 }
 0x428   : > { %10992 = vst [vmem:[#allocation38_spill] sm:$0xff] %v8633_v38  ;;  %v2891_v53 = vmul.f32 %v2890_v7, %v2888_v37  ;;  %v3064_v8 = vshll.u32 %v3024_v14, 8  ;;  %v3124_v52 = vshrl.u32 %v3123_v24, 23  ;;  %v10996_v62 = vand.u32 2147483647, %v8283_v29 }
 0x429   : > { %vm8638_vm2 = vcmp.le.f32.partialorder %v10993_v58, 0.7853982  ;;  %v2975_v1 = vshll.u32 %v8633_v38, 30  ;;  %v3047_v0 = vor.u32 %v3046_v60, %v3045_v41  ;;  %vm3048_vm4 = vcmp.lt.s32.totalorder %v3029_v15, 1 }
 0x42a   : > { %vm8644_vm11 = vcmp.le.f32.partialorder %v10996_v62, 0.7853982  ;;  %vm3051_vm13 = vcmp.lt.s32.totalorder %v3029_v15, 4  ;;  %v3032_v34 = vshrl.u32 %v10824_v16, %v3031_v12  ;;  %vm3049_vm0 = vcmp.lt.s32.totalorder %v3029_v15, 2 }
 0x42b   : > { %v3053_v20 = vsel %vm3051_vm13, %v3041_v40, 2102212464  ;;  %v3056_v9 = vsel %vm3048_vm4, %v3035_v56, %v3038_v19  ;;  %v8650_v7 = vsub.s32 %v2972_v30, %v2975_v1  ;;  %vm3050_vm9 = vcmp.lt.s32.totalorder %v3029_v15, 3 }
 0x42c   : > { %v3057_v14 = vsel %vm3051_vm13, %v3044_v39, 920167782  ;;  %v3060_v24 = vsel %vm3048_vm4, %v3038_v19, %v3041_v40  ;;  %v2892_v36 = vxor.u32 2147483648, %v2891_v53  ;;  %v3052_v37 = vsel %vm3048_vm4, %v3032_v34, %v3035_v56 }
 0x42d   : > { %v3058_v17 = vsel %vm3050_vm9, %v3041_v40, %v3057_v14  ;;  %v3061_v58 = vsel %vm3051_vm13, %v3047_v0, 1326507024  ;;  %v2978_v62 = vsub.s32 0, %v8650_v7  ;;  %v3054_v38 = vsel %vm3050_vm9, %v3038_v19, %v3053_v20 }
 0x42e   : > { %v3059_v41 = vsel %vm3049_vm0, %v3056_v9, %v3058_v17  ;;  %v3062_v60 = vsel %vm3050_vm9, %v3044_v39, %v3061_v58  ;;  %v2789_v12 = vsel %vm2706_vm3, %v2788_v3, %v8604_v44  ;;  %v10999_v56 = vsub.s32 4, %v8557_v35 }
 0x42f   : > { %v3063_v30 = vsel %vm3049_vm0, %v3060_v24, %v3062_v60  ;;  %v8658_v1 = vmul.u32.u64.low %v3064_v8, %v3059_v41  ;;  %v8659_v32 = vmul.u32.u64.high %v3064_v8, %v3059_v41, %v8658_v1  ;;  %v5581_v19 = vmin.u32 %v2978_v62, %v8650_v7 }
 0x430   : > { %v8667_v40 = vsel %vm2810_vm12, %v10999_v56, %v8557_v35  ;;  %v8670_v39 = vmul.u32.u64.low %v3064_v8, %v3063_v30  ;;  %v8671_v0 = vmul.u32.u64.high %v3064_v8, %v3063_v30, %v8670_v39  ;;  %6051 = vcosq.f32 %v8555_v4 }
 0x431   : > { %v2893_v44 = vsel %vm2810_vm12, %v2892_v36, %v2891_v53  ;;  %v3055_v3 = vsel %vm3049_vm0, %v3052_v37, %v3054_v38  ;;  %v5588_v34 = vadd.s32 4294967169, %v3124_v52  ;;  %6053 = vsinq.f32 %v8555_v4 }
 0x432   : > { %v11000_v35 = vsel %vm8481_vm1, 0, %v8520_v31  ;;  %v2792_v9 = vsel %vm8638_vm2, %v8190_v45, %v2789_v12  ;;  %v2980_v14 = vclz %v5581_v19  ;;  %v3074_v15 = vadd.s32 1, %v8659_v32 }
 0x433   : > { %v8682_v20 = vadd.s32 3, %v11000_v35  ;;  %v11002_v38 = vand.u32 2147483647, %v8546_v63  ;;  %v3130_v52 = vadd.s32 1, %v5588_v34  ;;  %v8696_v10 = vsel %vm8644_vm11, %v8283_v29, %v2893_v44 }
 0x434   : > { %v5582_v31 = vadd.s32 4294967294, %v2980_v14  ;;  %v3071_v24 = vmul.u32 %v3064_v8, %v3055_v3  ;;  %vm3073_vm1 = vc.u32 %v8671_v0, %v8658_v1  ;;  %6055 = vcosq.f32 %v2792_v9 }
 0x435   : > { %11001 = vst [vmem:[#allocation37_spill] sm:$0xff] %v8682_v20  ;;  %v3127_v4 = vand.u32 8388607, %v11002_v38  ;;  %v3075_v36 = vsel %vm3073_vm1, %v3074_v15, %v8659_v32  ;;  %vm3131_vm7 = vcmp.gt.s32.totalorder %v3130_v52, 0  ;;  %v3227_v37 = vand.u32 2139095040, %v8550_v42 }
 0x436   : > { %6057 = vsinq.f32 %v2792_v9  ;;  %vm5583_vm12 = vcmp.lt.s32.totalorder %v5582_v31, 0  ;;  %v3076_v17 = vadd.s32 %v3075_v36, %v3071_v24  ;;  %v3132_v58 = vsel %vm3131_vm7, %v3130_v52, 0 }
 0x437   : > { %6059 = vcosq.f32 %v8696_v10  ;;  %v2968_v62 = vadd.s32 %v8598_v59, %v8608_v49  ;;  %v2983_v41 = vsel %vm5583_vm12, 0, %v5582_v31  ;;  %v3134_v8 = vand.u32 31, %v3132_v58 }
 0x438   : > { %v2984_v60 = vsub.s32 32, %v2983_v41  ;;  %v2988_v12 = vsub.s32 4294967266, %v2983_v41  ;;  %v3077_v30 = vadd.s32 536870912, %v3076_v17  ;;  %v3128_v56 = vor.u32 8388608, %v3127_v4 }
 0x439   : > { %v3135_v19 = vsub.s32 32, %v3134_v8  ;;  %v3228_v39 = vshrl.u32 %v3227_v37, 23  ;;  %v8708_v44 = vadd.f32 %v8252_v61, %v8540_v6  ;;  %v3133_v9 = vshrl.u32 %v3132_v58, 5 }
 0x43a   : > { %v2986_v3 = vshrl.u32 %v2968_v62, %v2984_v60  ;;  %v2989_v34 = vadd.s32 127, %v2988_v12  ;;  %v8710_v35 = vshrl.u32 %v3077_v30, 30  ;;  %v8712_v59 = vpop.eup %6051  ;;  %v2985_v49 = vshll.u32 %v8650_v7, %v2983_v41 }
 0x43b   : > { %11003 = vst [vmem:[#allocation36_spill] sm:$0xff] %v8712_v59  ;;  %v3138_v14 = vshrl.u32 %v10828_v11, %v3135_v19  ;;  %v3141_v15 = vshrl.u32 %v10964_v22, %v3135_v19  ;;  %v3144_v38 = vshrl.u32 %v10965_v21, %v3135_v19  ;;  %v8718_v4 = vpop.eup %6053  ;;  %v3137_v6 = vshll.u32 %v10824_v16, %v3134_v8 }
 0x43c   : > { %11004 = vst [vmem:[#allocation24_spill] sm:$0xff] %v8718_v4  ;;  %v2990_v52 = vshll.u32 %v2989_v34, 23  ;;  %v3079_v61 = vshll.u32 %v8710_v35, 30  ;;  %v3143_v31 = vshll.u32 %v10964_v22, %v3134_v8  ;;  %v2987_v24 = vor.u32 %v2986_v3, %v2985_v49 }
 0x43d   : > { %v3140_v36 = vshll.u32 %v10828_v11, %v3134_v8  ;;  %v3146_v7 = vshll.u32 %v10965_v21, %v3134_v8  ;;  %v3147_v37 = vshrl.u32 %v10966_v55, %v3135_v19  ;;  %v3139_v41 = vor.u32 %v3138_v14, %v3137_v6 }
 0x43e   : > { %v2991_v58 = vor.u32 4788187, %v2990_v52  ;;  %v8726_v62 = vsub.s32 %v3076_v17, %v3079_v61  ;;  %v3145_v60 = vor.u32 %v3144_v38, %v3143_v31  ;;  %v8728_v12 = vpop.eup %6055  ;;  %v3149_v53 = vshll.u32 %v10966_v55, %v3134_v8 }
 0x43f   : > { %11005 = vst [vmem:[#allocation11_spill] sm:$0xff] %v8728_v12  ;;  %v3142_v30 = vor.u32 %v3141_v15, %v3140_v36  ;;  %v3148_v34 = vor.u32 %v3147_v37, %v3146_v7  ;;  %v3150_v32 = vshrl.u32 %v10967_v43, %v3135_v19  ;;  %v3168_v29 = vshll.u32 %v3128_v56, 8 }
 0x440   : > { %v8732_v3 = vpop.eup %6057  ;;  %v3082_v49 = vsub.s32 0, %v8726_v62  ;;  %v5592_v59 = vadd.s32 4294967169, %v3228_v39  ;;  %v11007_v52 = vand.u32 2147483647, %v8550_v42  ;;  %v2994_v38 = vcvt.s32.f32 %v2987_v24 }
 0x441   : > { %11006 = vst [vmem:[#allocation29_spill] sm:$0xff] %v8732_v3  ;;  %v8739_v14 = vpop.eup %6059  ;;  %vm3018_vm4 = vcmp.lt.s32.totalorder %v8530_v27, 0  ;;  %v3136_v15 = vshrl.u32 %v10824_v16, %v3135_v19  ;;  %v3151_v8 = vor.u32 %v3150_v32, %v3149_v53  ;;  %vm3155_vm13 = vcmp.lt.s32.totalorder %v3133_v9, 4 }
 0x442   : > { %v8737_v17 = vand.u32 8388607, %v11007_v52  ;;  %11008 = vst [vmem:[#allocation30_spill] sm:$0xff] %v8739_v14  ;;  %v2992_v61 = vand.u32 2147483647, %v2991_v58  ;;  %v5585_v6 = vmin.u32 %v3082_v49, %v8726_v62  ;;  %vm3152_vm0 = vcmp.lt.s32.totalorder %v3133_v9, 1 }
 0x443   : > { %v3157_v31 = vsel %vm3155_vm13, %v3145_v60, 2102212464  ;;  %vm3153_vm9 = vcmp.lt.s32.totalorder %v3133_v9, 2  ;;  %vm3154_vm1 = vcmp.lt.s32.totalorder %v3133_v9, 3  ;;  %v3160_v56 = vsel %vm3152_vm0, %v3139_v41, %v3142_v30 }
 0x444   : > { %v3161_v39 = vsel %vm3155_vm13, %v3148_v34, 920167782  ;;  %v3084_v36 = vclz %v5585_v6  ;;  %v3156_v7 = vsel %vm3152_vm0, %v3136_v15, %v3139_v41  ;;  %v3164_v52 = vsel %vm3152_vm0, %v3142_v30, %v3145_v60 }
 0x445   : > { %v3162_v37 = vsel %vm3154_vm1, %v3145_v60, %v3161_v39  ;;  %v3158_v24 = vsel %vm3154_vm1, %v3142_v30, %v3157_v31  ;;  %v3165_v4 = vsel %vm3155_vm13, %v3151_v8, 1326507024  ;;  %v3234_v19 = vadd.s32 1, %v5592_v59 }
 0x446   : > { %v3163_v14 = vsel %vm3153_vm9, %v3160_v56, %v3162_v37  ;;  %v3072_v53 = vadd.s32 %v8658_v1, %v8671_v0  ;;  %v5586_v32 = vadd.s32 4294967294, %v3084_v36  ;;  %v3102_v58 = vsub.s32 4, %v8710_v35 }
 0x447   : > { %v3166_v49 = vsel %vm3154_vm1, %v3148_v34, %v3165_v4  ;;  %v2995_v20 = vmul.f32 %v2994_v38, %v2992_v61  ;;  %v8749_v3 = vmul.u32.u64.low %v3168_v29, %v3163_v14  ;;  %v8750_v6 = vmul.u32.u64.high %v3168_v29, %v3163_v14, %v8749_v3 }
 0x448   : > { %v3167_v12 = vsel %vm3153_vm9, %v3164_v52, %v3166_v49  ;;  %vm5587_vm7 = vcmp.lt.s32.totalorder %v5586_v32, 0  ;;  %v3159_v41 = vsel %vm3153_vm9, %v3156_v7, %v3158_v24  ;;  %v3232_v1 = vor.u32 8388608, %v8737_v17 }
 0x449   : > { %v8754_v60 = vmul.u32.u64.low %v3168_v29, %v3167_v12  ;;  %v8755_v30 = vmul.u32.u64.high %v3168_v29, %v3167_v12, %v8754_v60  ;;  %v3087_v59 = vsel %vm5587_vm7, 0, %v5586_v32  ;;  %vm3235_vm12 = vcmp.gt.s32.totalorder %v3234_v19, 0 }
 0x44a   : > { %v10756_v0 = vand.u32 2147483647, %v8708_v44  ;;  %vm10763_vm13 = vcmp.lt.s32.totalorder %v8435_v47, 0  ;;  %v3088_v4 = vsub.s32 32, %v3087_v59  ;;  %v3092_v34 = vsub.s32 4294967266, %v3087_v59 }
 0x44b   : > { %v8763_v14 = vsel %vm3018_vm4, %v3102_v58, %v8710_v35  ;;  %v3236_v9 = vsel %vm3235_vm12, %v3234_v19, 0  ;;  %v2996_v38 = vxor.u32 2147483648, %v2995_v20  ;;  %v3175_v15 = vmul.u32 %v3168_v29, %v3159_v41 }
 0x44c   : > { %v3178_v12 = vadd.s32 1, %v8750_v6  ;;  %v3238_v8 = vand.u32 31, %v3236_v9  ;;  %v3089_v17 = vshll.u32 %v8726_v62, %v3087_v59  ;;  %v3090_v61 = vshrl.u32 %v3072_v53, %v3088_v4 }
 0x44d   : > { %v3093_v31 = vadd.s32 127, %v3092_v34  ;;  %vm3177_vm0 = vc.u32 %v8755_v30, %v8749_v3  ;;  %v3237_v39 = vshrl.u32 %v3236_v9, 5  ;;  %v11009_v32 = vand.u32 2147483647, %v8530_v27 }
 0x44e   : > { %v3179_v56 = vsel %vm3177_vm0, %v3178_v12, %v8750_v6  ;;  %v3239_v36 = vsub.s32 32, %v3238_v8  ;;  %v3241_v35 = vshll.u32 %v10824_v16, %v3238_v8  ;;  %v3091_v7 = vor.u32 %v3090_v61, %v3089_v17 }
 0x44f   : > { %v3094_v37 = vshll.u32 %v3093_v31, 23  ;;  %v3180_v52 = vadd.s32 %v3179_v56, %v3175_v15  ;;  %v3244_v29 = vshll.u32 %v10828_v11, %v3238_v8  ;;  %v3247_v19 = vshll.u32 %v10964_v22, %v3238_v8 }
 0x450   : > { %v3242_v24 = vshrl.u32 %v10828_v11, %v3239_v36  ;;  %v3245_v62 = vshrl.u32 %v10964_v22, %v3239_v36  ;;  %v3248_v53 = vshrl.u32 %v10965_v21, %v3239_v36  ;;  %vm8778_vm9 = vcmp.le.f32.partialorder %v11009_v32, 0.7853982 }
 0x451   : > { %v3095_v49 = vor.u32 4788187, %v3094_v37  ;;  %v3098_v6 = vcvt.s32.f32 %v3091_v7  ;;  %v3181_v41 = vadd.s32 536870912, %v3180_v52  ;;  %v3250_v60 = vshll.u32 %v10965_v21, %v3238_v8 }
 0x452   : > { %v3243_v59 = vor.u32 %v3242_v24, %v3241_v35  ;;  %v3246_v4 = vor.u32 %v3245_v62, %v3244_v29  ;;  %v3249_v34 = vor.u32 %v3248_v53, %v3247_v19  ;;  %v3251_v9 = vshrl.u32 %v10966_v55, %v3239_v36 }
 0x453   : > { %v11012_v15 = vand.u32 2147483647, %v8435_v47  ;;  %v3096_v17 = vand.u32 2147483647, %v3095_v49  ;;  %v8790_v61 = vshrl.u32 %v3181_v41, 30  ;;  %v3253_v31 = vshll.u32 %v10966_v55, %v3238_v8 }
 0x454   : > { %v3254_v56 = vshrl.u32 %v10967_v43, %v3239_v36  ;;  %v2997_v35 = vsel %vm10763_vm13, %v2996_v38, %v2995_v20  ;;  %v3240_v7 = vshrl.u32 %v10824_v16, %v3239_v36  ;;  %v3252_v37 = vor.u32 %v3251_v9, %v3250_v60 }
 0x455   : > { %vm8786_vm1 = vcmp.le.f32.partialorder %v11012_v15, 0.7853982  ;;  %11015 = vst [vmem:[#allocation22_spill] sm:$0xff] %v8790_v61  ;;  %vm3256_vm7 = vcmp.lt.s32.totalorder %v3237_v39, 1  ;;  %v3099_v29 = vmul.f32 %v3098_v6, %v3096_v17  ;;  %v3183_v24 = vshll.u32 %v8790_v61, 30 }
 0x456   : > { %v3255_v62 = vor.u32 %v3254_v56, %v3253_v31  ;;  %vm3259_vm12 = vcmp.lt.s32.totalorder %v3237_v39, 4  ;;  %vm3258_vm0 = vcmp.lt.s32.totalorder %v3237_v39, 3  ;;  %v3264_v53 = vsel %vm3256_vm7, %v3243_v59, %v3246_v4 }
 0x457   : > { %v3261_v19 = vsel %vm3259_vm12, %v3249_v34, 2102212464  ;;  %v3265_v32 = vsel %vm3259_vm12, %v3252_v37, 920167782  ;;  %v3100_v8 = vxor.u32 2147483648, %v3099_v29  ;;  %v8799_v49 = vsub.s32 %v3180_v52, %v3183_v24 }
 0x458   : > { %vm3257_vm5 = vcmp.lt.s32.totalorder %v3237_v39, 2  ;;  %v3266_v41 = vsel %vm3258_vm0, %v3249_v34, %v3265_v32  ;;  %v3268_v38 = vsel %vm3256_vm7, %v3246_v4, %v3249_v34  ;;  %v3269_v36 = vsel %vm3259_vm12, %v3255_v62, 1326507024 }
 0x459   : > { %v3267_v20 = vsel %vm3257_vm5, %v3264_v53, %v3266_v41  ;;  %v3272_v6 = vshll.u32 %v3232_v1, 8  ;;  %v3186_v60 = vsub.s32 0, %v8799_v49  ;;  %v3260_v9 = vsel %vm3256_vm7, %v3240_v7, %v3243_v59  ;;  %v2046_v53 = vpop.permute.xlu1 %2045 }
 0x45a   : > { %v3262_v15 = vsel %vm3258_vm0, %v3246_v4, %v3261_v19  ;;  %v3270_v17 = vsel %vm3258_vm0, %v3252_v37, %v3269_v36  ;;  %v3105_v31 = vsel %vm8778_vm9, 0, %v8763_v14  ;;  %v3101_v34 = vsel %vm3018_vm4, %v3100_v8, %v3099_v29 }
 0x45b   : > { %v3271_v52 = vsel %vm3257_vm5, %v3268_v38, %v3270_v17  ;;  %v8809_v56 = vmul.u32.u64.low %v3272_v6, %v3267_v20  ;;  %v8810_v24 = vmul.u32.u64.high %v3272_v6, %v3267_v20, %v8809_v56  ;;  %v5589_v1 = vmin.u32 %v3186_v60, %v8799_v49 }
 0x45c   : > { %v8815_v62 = vmul.u32.u64.low %v3272_v6, %v3271_v52  ;;  %v8816_v32 = vmul.u32.u64.high %v3272_v6, %v3271_v52, %v8815_v62  ;;  %v3000_v59 = vsel %vm8786_vm1, %v8435_v47, %v2997_v35  ;;  %v3263_v14 = vsel %vm3257_vm5, %v3260_v9, %v3262_v15 }
 0x45d   : > { %v3331_v4 = vand.u32 2139095040, %v8708_v44  ;;  %v8824_v7 = vadd.f32 %v8355_v25, %v2046_v53  ;;  %6061 = vsinq.f32 %v8696_v10  ;;  %v11016_v37 = vsel %vm8644_vm11, 0, %v8667_v40 }
 0x45e   : > { %v8831_v29 = vadd.s32 3, %v11016_v37  ;;  %v8833_v19 = vadd.s32 3, %v3105_v31  ;;  %v3188_v8 = vclz %v5589_v1  ;;  %v3104_v39 = vsel %vm8778_vm9, %v8530_v27, %v3101_v34 }
 0x45f   : > { %v3282_v35 = vadd.s32 1, %v8810_v24  ;;  %v3332_v41 = vshrl.u32 %v3331_v4, 23  ;;  %v3335_v25 = vand.u32 8388607, %v10756_v0  ;;  %6063 = vcosq.f32 %v3000_v59 }
 0x460   : > { %11017 = vst [vmem:[#allocation35_spill] sm:$0xff] %v8833_v19  ;;  %v5590_v10 = vadd.s32 4294967294, %v3188_v8  ;;  %v3279_v46 = vmul.u32 %v3272_v6, %v3263_v14  ;;  %vm3281_vm5 = vc.u32 %v8816_v32, %v8809_v56  ;;  %6065 = vsinq.f32 %v3000_v59 }
 0x461   : > { %v3283_v40 = vsel %vm3281_vm5, %v3282_v35, %v8810_v24  ;;  %v5596_v20 = vadd.s32 4294967169, %v3332_v41  ;;  %v10755_v38 = vand.u32 2147483647, %v8824_v7  ;;  %6067 = vcosq.f32 %v3104_v39 }
 0x462   : > { %v3176_v58 = vadd.s32 %v8749_v3, %v8755_v30  ;;  %vm5591_vm11 = vcmp.lt.s32.totalorder %v5590_v10, 0  ;;  %v3284_v36 = vadd.s32 %v3283_v40, %v3279_v46  ;;  %6069 = vsinq.f32 %v3104_v39 }
 0x463   : > { %v3191_v60 = vsel %vm5591_vm11, 0, %v5590_v10  ;;  %v3336_v9 = vor.u32 8388608, %v3335_v25  ;;  %v3338_v15 = vadd.s32 1, %v5596_v20  ;;  %v8847_v52 = vadd.f32 %v8430_v13, %v2046_v53 }
 0x464   : > { %v3192_v17 = vsub.s32 32, %v3191_v60  ;;  %v3196_v6 = vsub.s32 4294967266, %v3191_v60  ;;  %v3285_v31 = vadd.s32 536870912, %v3284_v36  ;;  %v3193_v24 = vshll.u32 %v8799_v49, %v3191_v60 }
 0x465   : > { %vm3339_vm4 = vcmp.gt.s32.totalorder %v3338_v15, 0  ;;  %v3435_v34 = vand.u32 2139095040, %v8824_v7  ;;  %v8853_v3 = vand.u32 8388607, %v10755_v38  ;;  %vm3226_vm9 = vcmp.lt.s32.totalorder %v8550_v42, 0 }
 0x466   : > { %v3194_v30 = vshrl.u32 %v3176_v58, %v3192_v17  ;;  %v3197_v1 = vadd.s32 127, %v3196_v6  ;;  %v3286_v62 = vshrl.u32 %v3285_v31, 30  ;;  %v3340_v59 = vsel %vm3339_vm4, %v3338_v15, 0 }
 0x467   : > { %v8857_v14 = vadd.s32 %v8809_v56, %v8816_v32  ;;  %v3342_v13 = vand.u32 31, %v3340_v59  ;;  %v8859_v53 = vshll.u32 %v3336_v9, 8  ;;  %v8862_v4 = vpop.eup %6061  ;;  %vm3122_vm7 = vcmp.lt.s32.totalorder %v8546_v63, 0 }
 0x468   : > { %v3195_v37 = vor.u32 %v3194_v30, %v3193_v24  ;;  %v3198_v8 = vshll.u32 %v3197_v1, 23  ;;  %v3287_v39 = vshll.u32 %v3286_v62, 30  ;;  %v8866_v41 = vshrl.u32 %v3340_v59, 5 }
 0x469   : > { %v3343_v25 = vsub.s32 32, %v3342_v13  ;;  %v3436_v10 = vshrl.u32 %v3435_v34, 23  ;;  %v8869_v32 = vpop.eup %6063  ;;  %v11018_v40 = vand.u32 2147483647, %v8550_v42  ;;  %v3310_v60 = vsub.s32 4, %v3286_v62 }
 0x46a   : > { %v3199_v46 = vor.u32 4788187, %v3198_v8  ;;  %v8877_v58 = vsub.s32 %v3284_v36, %v3287_v39  ;;  %v3345_v9 = vshll.u32 %v10824_v16, %v3342_v13  ;;  %v8880_v15 = vpop.eup %6065  ;;  %v3348_v6 = vshll.u32 %v10828_v11, %v3342_v13 }
 0x46b   : > { %vm8873_vm12 = vcmp.le.f32.partialorder %v11018_v40, 0.7853982  ;;  %v3346_v17 = vshrl.u32 %v10828_v11, %v3343_v25  ;;  %v3349_v31 = vshrl.u32 %v10964_v22, %v3343_v25  ;;  %v3351_v24 = vshll.u32 %v10964_v22, %v3342_v13  ;;  %v8886_v34 = vpop.eup %6067 }
 0x46c   : > { %11021 = vst [vmem:[#allocation23_spill] sm:$0xff] %v8886_v34  ;;  %v11022_v30 = vand.u32 2147483647, %v8546_v63  ;;  %v11023_v36 = vmov 0  ;;  %v3200_v1 = vand.u32 2147483647, %v3199_v46  ;;  %v3202_v59 = vcvt.s32.f32 %v3195_v37  ;;  %v8896_v40 = vpop.eup %6069 }
 0x46d   : > { %v3290_v8 = vsub.s32 0, %v8877_v58  ;;  %v3352_v39 = vshrl.u32 %v10965_v21, %v3343_v25  ;;  %11026 = vst [vmem:[#allocation13_spill] sm:$0xff] %v8896_v40  ;;  %v3347_v38 = vor.u32 %v3346_v17, %v3345_v9  ;;  %v3350_v0 = vor.u32 %v3349_v31, %v3348_v6 }
 0x46e   : > { %vm8890_vm0 = vcmp.le.f32.partialorder %v11022_v30, 0.7853982  ;;  %v3354_v49 = vshll.u32 %v10965_v21, %v3342_v13  ;;  %v3355_v35 = vshrl.u32 %v10966_v55, %v3343_v25  ;;  %v3203_v56 = vmul.f32 %v3202_v59, %v3200_v1 }
 0x46f   : > { %v11024_v36 = vsel %vm8890_vm0, 4294967295, %v11023_v36  ;;  %v5593_v30 = vmin.u32 %v3290_v8, %v8877_v58  ;;  %v3353_v27 = vor.u32 %v3352_v39, %v3351_v24  ;;  %v5600_v34 = vadd.s32 4294967169, %v3436_v10 }
 0x470   : > { %11025 = vst [vmem:[#allocation33_spill] sm:$0xff] %v11024_v36  ;;  %v3311_v37 = vsel %vm3226_vm9, %v3310_v60, %v3286_v62  ;;  %v3356_v46 = vor.u32 %v3355_v35, %v3354_v49  ;;  %v3357_v19 = vshll.u32 %v10966_v55, %v3342_v13  ;;  %v3358_v61 = vshrl.u32 %v10967_v43, %v3343_v25 }
 0x471   : > { %v3204_v40 = vxor.u32 2147483648, %v3203_v56  ;;  %v3292_v9 = vclz %v5593_v30  ;;  %v3344_v17 = vshrl.u32 %v10824_v16, %v3343_v25  ;;  %vm3360_vm5 = vcmp.lt.s32.totalorder %v8866_v41, 1 }
 0x472   : > { %v3359_v6 = vor.u32 %v3358_v61, %v3357_v19  ;;  %vm3362_vm11 = vcmp.lt.s32.totalorder %v8866_v41, 3  ;;  %vm3363_vm4 = vcmp.lt.s32.totalorder %v8866_v41, 4  ;;  %v3368_v10 = vsel %vm3360_vm5, %v3347_v38, %v3350_v0 }
 0x473   : > { %v3205_v62 = vsel %vm3122_vm7, %v3204_v40, %v3203_v56  ;;  %v5594_v49 = vadd.s32 4294967294, %v3292_v9  ;;  %v3365_v35 = vsel %vm3363_vm4, %v3353_v27, 2102212464  ;;  %v3369_v13 = vsel %vm3363_vm4, %v3356_v46, 920167782 }
 0x474   : > { %v3313_v60 = vsel %vm8873_vm12, 0, %v3311_v37  ;;  %vm3361_vm8 = vcmp.lt.s32.totalorder %v8866_v41, 2  ;;  %v3370_v25 = vsel %vm3362_vm11, %v3353_v27, %v3369_v13  ;;  %v3372_v61 = vsel %vm3360_vm5, %v3350_v0, %v3353_v27 }
 0x475   : > { %vm5595_vm13 = vcmp.lt.s32.totalorder %v5594_v49, 0  ;;  %v3364_v19 = vsel %vm3360_vm5, %v3344_v17, %v3347_v38  ;;  %v3371_v31 = vsel %vm3361_vm8, %v3368_v10, %v3370_v25  ;;  %v3373_v24 = vsel %vm3363_vm4, %v3359_v6, 1326507024 }
 0x476   : > { %v3208_v56 = vsel %vm8890_vm0, %v8546_v63, %v3205_v62  ;;  %v3295_v1 = vsel %vm5595_vm13, 0, %v5594_v49  ;;  %v3366_v59 = vsel %vm3362_vm11, %v3350_v0, %v3365_v35  ;;  %v3374_v8 = vsel %vm3362_vm11, %v3356_v46, %v3373_v24 }
 0x477   : > { %v3296_v39 = vsub.s32 32, %v3295_v1  ;;  %v3297_v27 = vshll.u32 %v8877_v58, %v3295_v1  ;;  %v3300_v40 = vsub.s32 4294967266, %v3295_v1  ;;  %v3375_v38 = vsel %vm3361_vm8, %v3372_v61, %v3374_v8 }
 0x478   : > { %v8929_v30 = vmul.u32.u64.low %v8859_v53, %v3375_v38  ;;  %v8930_v37 = vmul.u32.u64.high %v8859_v53, %v3375_v38, %v8929_v30  ;;  %v8933_v9 = vmul.u32.u64.low %v8859_v53, %v3371_v31  ;;  %v8934_v17 = vmul.u32.u64.high %v8859_v53, %v3371_v31, %v8933_v9 }
 0x479   : > { %v3298_v0 = vshrl.u32 %v8857_v14, %v3296_v39  ;;  %v3301_v6 = vadd.s32 127, %v3300_v40  ;;  %v3442_v46 = vadd.s32 1, %v5600_v34  ;;  %v3539_v10 = vand.u32 2139095040, %v8847_v52 }
 0x47a   : > { %6071 = vcosq.f32 %v3208_v56  ;;  %v8939_v58 = vadd.s32 3, %v3313_v60  ;;  %v3367_v62 = vsel %vm3361_vm8, %v3364_v19, %v3366_v59  ;;  %v11028_v49 = vor.u32 8388608, %v8853_v3 }
 0x47b   : > { %6073 = vsinq.f32 %v3208_v56  ;;  %v3299_v13 = vor.u32 %v3298_v0, %v3297_v27  ;;  %v3302_v25 = vshll.u32 %v3301_v6, 23  ;;  %vm3443_vm13 = vcmp.gt.s32.totalorder %v3442_v46, 0 }
 0x47c   : > { %11027 = vst [vmem:[#allocation9_spill] sm:$0xff] %v8939_v58  ;;  %v8945_v35 = vshll.u32 %v11028_v49, 8  ;;  %vm3385_vm5 = vc.u32 %v8930_v37, %v8933_v9  ;;  %v3386_v14 = vadd.s32 1, %v8934_v17  ;;  %v3444_v34 = vsel %vm3443_vm13, %v3442_v46, 0 }
 0x47d   : > { %v3540_v61 = vshrl.u32 %v3539_v10, 23  ;;  %v3303_v60 = vor.u32 4788187, %v3302_v25  ;;  %v3383_v31 = vmul.u32 %v8859_v53, %v3367_v62  ;;  %v3446_v41 = vand.u32 31, %v3444_v34 }
 0x47e   : > { %v11029_v19 = vand.u32 2147483647, %v8847_v52  ;;  %v3306_v24 = vcvt.s32.f32 %v3299_v13  ;;  %v3387_v56 = vsel %vm3385_vm5, %v3386_v14, %v8934_v17  ;;  %v11030_v1 = vsub.s32 4, %v8149_v28 }
 0x47f   : > { %v3304_v39 = vand.u32 2147483647, %v3303_v60  ;;  %v3388_v27 = vadd.s32 %v3387_v56, %v3383_v31  ;;  %v3445_v40 = vshrl.u32 %v3444_v34, 5  ;;  %v3447_v53 = vsub.s32 32, %v3446_v41 }
 0x480   : > { %v8953_v3 = vand.u32 8388607, %v11029_v19  ;;  %v2375_v59 = vsel %vm2290_vm10, %v11030_v1, %v8149_v28  ;;  %v3449_v38 = vshll.u32 %v10824_v16, %v3446_v41  ;;  %v3452_v30 = vshll.u32 %v10828_v11, %v3446_v41 }
 0x481   : > { %v3455_v0 = vshll.u32 %v10964_v22, %v3446_v41  ;;  %v5604_v6 = vadd.s32 4294967169, %v3540_v61  ;;  %v3307_v17 = vmul.f32 %v3306_v24, %v3304_v39  ;;  %v3389_v46 = vadd.s32 536870912, %v3388_v27 }
 0x482   : > { %v3450_v10 = vshrl.u32 %v10828_v11, %v3447_v53  ;;  %v3458_v62 = vshll.u32 %v10965_v21, %v3446_v41  ;;  %v3453_v28 = vshrl.u32 %v10964_v22, %v3447_v53  ;;  %v3456_v49 = vshrl.u32 %v10965_v21, %v3447_v53 }
 0x483   : > { %v3459_v13 = vshrl.u32 %v10966_v55, %v3447_v53  ;;  %v3462_v25 = vshrl.u32 %v10967_v43, %v3447_v53  ;;  %v3308_v14 = vxor.u32 2147483648, %v3307_v17  ;;  %v8971_v34 = vshrl.u32 %v3389_v46, 30 }
 0x484   : > { %v3451_v60 = vor.u32 %v3450_v10, %v3449_v38  ;;  %v3461_v61 = vshll.u32 %v10966_v55, %v3446_v41  ;;  %v8974_v31 = vpop.eup %6071  ;;  %v3454_v19 = vor.u32 %v3453_v28, %v3452_v30  ;;  %v3457_v24 = vor.u32 %v3456_v49, %v3455_v0 }
 0x485   : > { %v3460_v56 = vor.u32 %v3459_v13, %v3458_v62  ;;  %v3544_v1 = vor.u32 8388608, %v8953_v3  ;;  %v8977_v39 = vpop.eup %6073  ;;  %v3391_v8 = vshll.u32 %v8971_v34, 30  ;;  %v3448_v58 = vshrl.u32 %v10824_v16, %v3447_v53 }
 0x486   : > { %v3463_v36 = vor.u32 %v3462_v25, %v3461_v61  ;;  %vm3464_vm8 = vcmp.lt.s32.totalorder %v3445_v40, 1  ;;  %v3309_v38 = vsel %vm3226_vm9, %v3308_v14, %v3307_v17  ;;  %vm3465_vm10 = vcmp.lt.s32.totalorder %v3445_v40, 2 }
 0x487   : > { %vm3467_vm11 = vcmp.lt.s32.totalorder %v3445_v40, 4  ;;  %v3472_v41 = vsel %vm3464_vm8, %v3451_v60, %v3454_v19  ;;  %v8983_v46 = vsub.s32 %v3388_v27, %v3391_v8  ;;  %vm3466_vm4 = vcmp.lt.s32.totalorder %v3445_v40, 3 }
 0x488   : > { %v3469_v30 = vsel %vm3467_vm11, %v3457_v24, 2102212464  ;;  %v3473_v0 = vsel %vm3467_vm11, %v3460_v56, 920167782  ;;  %v3468_v3 = vsel %vm3464_vm8, %v3448_v58, %v3451_v60  ;;  %v3476_v28 = vsel %vm3464_vm8, %v3454_v19, %v3457_v24 }
 0x489   : > { %v3470_v10 = vsel %vm3466_vm4, %v3454_v19, %v3469_v30  ;;  %v3474_v62 = vsel %vm3466_vm4, %v3457_v24, %v3473_v0  ;;  %v3394_v49 = vsub.s32 0, %v8983_v46  ;;  %v3477_v13 = vsel %vm3467_vm11, %v3463_v36, 1326507024 }
 0x48a   : > { %v3475_v53 = vsel %vm3465_vm10, %v3472_v41, %v3474_v62  ;;  %v2377_v17 = vsel %vm8371_vm14, 0, %v2375_v59  ;;  %v3312_v8 = vsel %vm8873_vm12, %v8550_v42, %v3309_v38  ;;  %v3478_v27 = vsel %vm3466_vm4, %v3460_v56, %v3477_v13 }
 0x48b   : > { %v8993_v25 = vmul.u32.u64.low %v8945_v35, %v3475_v53  ;;  %v8994_v14 = vmul.u32.u64.high %v8945_v35, %v3475_v53, %v8993_v25  ;;  %v5597_v58 = vmin.u32 %v3394_v49, %v8983_v46  ;;  %v3471_v60 = vsel %vm3465_vm10, %v3468_v3, %v3470_v10 }
 0x48c   : > { %v3479_v61 = vsel %vm3465_vm10, %v3476_v28, %v3478_v27  ;;  %v3546_v36 = vadd.s32 1, %v5604_v6  ;;  %v2381_v19 = vadd.s32 3, %v2377_v17  ;;  %v2582_v20 = vsub.s32 4, %v8303_v2 }
 0x48d   : > { %v9001_v23 = vmul.u32.u64.low %v8945_v35, %v3479_v61  ;;  %v9002_v59 = vmul.u32.u64.high %v8945_v35, %v3479_v61, %v9001_v23  ;;  %v3384_v24 = vadd.s32 %v8933_v9, %v8930_v37  ;;  %v3396_v56 = vclz %v5597_v58 }
 0x48e   : > { %vm3547_vm14 = vcmp.gt.s32.totalorder %v3546_v36, 0  ;;  %6075 = vcosq.f32 %v3312_v8  ;;  %v3490_v41 = vadd.s32 1, %v8994_v14  ;;  %v9012_v6 = vsel %vm2498_vm6, %v2582_v20, %v8303_v2 }
 0x48f   : > { %v3548_v40 = vsel %vm3547_vm14, %v3546_v36, 0  ;;  %6077 = vsinq.f32 %v3312_v8  ;;  %v5598_v30 = vadd.s32 4294967294, %v3396_v56  ;;  %v3487_v0 = vmul.u32 %v8945_v35, %v3471_v60 }
 0x490   : > { %v3550_v3 = vand.u32 31, %v3548_v40  ;;  %vm3489_vm9 = vc.u32 %v9002_v59, %v8993_v25  ;;  %v9017_v37 = vshrl.u32 %v3548_v40, 5  ;;  %v9019_v9 = vshll.u32 %v3544_v1, 8 }
 0x491   : > { %v9021_v10 = vand.u32 3, %v2381_v19  ;;  %vm5599_vm12 = vcmp.lt.s32.totalorder %v5598_v30, 0  ;;  %v3491_v62 = vsel %vm3489_vm9, %v3490_v41, %v8994_v14  ;;  %vm3330_vm13 = vcmp.lt.s32.totalorder %v8708_v44, 0 }
 0x492   : > { %v3551_v28 = vsub.s32 32, %v3550_v3  ;;  %v3399_v49 = vsel %vm5599_vm12, 0, %v5598_v30  ;;  %v3492_v35 = vadd.s32 %v3491_v62, %v3487_v0  ;;  %v3553_v53 = vshll.u32 %v10824_v16, %v3550_v3 }
 0x493   : > { %v3556_v13 = vshll.u32 %v10828_v11, %v3550_v3  ;;  %v3400_v17 = vsub.s32 32, %v3399_v49  ;;  %v3401_v1 = vshll.u32 %v8983_v46, %v3399_v49  ;;  %v3404_v8 = vsub.s32 4294967266, %v3399_v49 }
 0x494   : > { %v3559_v27 = vshll.u32 %v10964_v22, %v3550_v3  ;;  %v3493_v58 = vadd.s32 536870912, %v3492_v35  ;;  %v3554_v14 = vshrl.u32 %v10828_v11, %v3551_v28  ;;  %v3557_v60 = vshrl.u32 %v10964_v22, %v3551_v28 }
 0x495   : > { %v3560_v61 = vshrl.u32 %v10965_v21, %v3551_v28  ;;  %v3402_v36 = vshrl.u32 %v3384_v24, %v3400_v17  ;;  %v3405_v23 = vadd.s32 127, %v3404_v8  ;;  %v3562_v19 = vshll.u32 %v10965_v21, %v3550_v3 }
 0x496   : > { %v3563_v20 = vshrl.u32 %v10966_v55, %v3551_v28  ;;  %v9036_v56 = vshrl.u32 %v3493_v58, 30  ;;  %v3552_v46 = vshrl.u32 %v10824_v16, %v3551_v28  ;;  %v3555_v41 = vor.u32 %v3554_v14, %v3553_v53 }
 0x497   : > { %v3561_v40 = vor.u32 %v3560_v61, %v3559_v27  ;;  %vm2384_vm6 = vcmp.eq.s32.totalorder %v9021_v10, 0  ;;  %v3403_v30 = vor.u32 %v3402_v36, %v3401_v1  ;;  %v3406_v0 = vshll.u32 %v3405_v23, 23 }
 0x498   : > { %v3558_v62 = vor.u32 %v3557_v60, %v3556_v13  ;;  %v3564_v49 = vor.u32 %v3563_v20, %v3562_v19  ;;  %v9040_v2 = vpop.eup %6075  ;;  %v3495_v24 = vshll.u32 %v9036_v56, 30  ;;  %v3565_v17 = vshll.u32 %v10966_v55, %v3550_v3 }
 0x499   : > { %v3566_v8 = vshrl.u32 %v10967_v43, %v3551_v28  ;;  %vm3568_vm5 = vcmp.lt.s32.totalorder %v9017_v37, 1  ;;  %vm2383_vm8 = vcmp.lt.s32.totalorder %v9021_v10, 2  ;;  %v9048_v53 = vpop.eup %6077  ;;  %v11031_v1 = vand.u32 2147483647, %v8708_v44 }
 0x49a   : > { %v3407_v27 = vor.u32 4788187, %v3406_v0  ;;  %v3410_v58 = vcvt.s32.f32 %v3403_v30  ;;  %vm3570_vm11 = vcmp.lt.s32.totalorder %v9017_v37, 3  ;;  %vm3571_vm4 = vcmp.lt.s32.totalorder %v9017_v37, 4 }
 0x49b   : > { %vm9052_vm10 = vcmp.le.f32.partialorder %v11031_v1, 0.7853982  ;;  %v9058_v3 = vsub.s32 %v3492_v35, %v3495_v24  ;;  %v3567_v28 = vor.u32 %v3566_v8, %v3565_v17  ;;  %v3572_v14 = vsel %vm3568_vm5, %v3552_v46, %v3555_v41 }
 0x49c   : > { %v3573_v60 = vsel %vm3571_vm4, %v3561_v40, 2102212464  ;;  %v3408_v61 = vand.u32 2147483647, %v3407_v27  ;;  %v3576_v23 = vsel %vm3568_vm5, %v3555_v41, %v3558_v62  ;;  %v3577_v19 = vsel %vm3571_vm4, %v3564_v49, 920167782 }
 0x49d   : > { %v3574_v36 = vsel %vm3570_vm11, %v3558_v62, %v3573_v60  ;;  %vm2380_vm14 = vweird.f32 %v8021_v18  ;;  %v3498_v35 = vsub.s32 0, %v9058_v3  ;;  %vm3569_vm9 = vcmp.lt.s32.totalorder %v9017_v37, 2 }
 0x49e   : > { %v3578_v20 = vsel %vm3570_vm11, %v3561_v40, %v3577_v19  ;;  %v3580_v46 = vsel %vm3568_vm5, %v3558_v62, %v3561_v40  ;;  %v3411_v30 = vmul.f32 %v3410_v58, %v3408_v61  ;;  %v3575_v0 = vsel %vm3569_vm9, %v3572_v14, %v3574_v36 }
 0x49f   : > { %v3579_v24 = vsel %vm3569_vm9, %v3576_v23, %v3578_v20  ;;  %v3581_v41 = vsel %vm3571_vm4, %v3567_v28, 1326507024  ;;  %v5601_v17 = vmin.u32 %v3498_v35, %v9058_v3  ;;  %v11034_v38 = vxor.u32 2147483648, %v8560_v57 }
 0x4a0   : > { %v3582_v8 = vsel %vm3570_vm11, %v3564_v49, %v3581_v41  ;;  %v9083_v1 = vmul.u32.u64.low %v9019_v9, %v3579_v24  ;;  %v9084_v27 = vmul.u32.u64.high %v9019_v9, %v3579_v24, %v9083_v1  ;;  %v3412_v60 = vxor.u32 2147483648, %v3411_v30 }
 0x4a1   : > { %v3583_v19 = vsel %vm3569_vm9, %v3580_v46, %v3582_v8  ;;  %v2386_v40 = vsel %vm2384_vm6, %v8452_v26, %v11034_v38  ;;  %vm2387_vm12 = vcmp.eq.s32.totalorder %v9021_v10, 2  ;;  %v3500_v62 = vclz %v5601_v17 }
 0x4a2   : > { %v9093_v58 = vmul.u32.u64.low %v9019_v9, %v3583_v19  ;;  %v9094_v28 = vmul.u32.u64.high %v9019_v9, %v3583_v19, %v9093_v58  ;;  %v11035_v37 = vxor.u32 2147483648, %v8452_v26  ;;  %v3413_v14 = vsel %vm3330_vm13, %v3412_v60, %v3411_v30  ;;  %v11037_v19 = vld [vmem:[#allocation15_spill] sm:$0xff] }
 0x4a3   : > { %vm2588_vm5 = vweird.f32 %v8041_v33  ;;  %v11036_v38 = vsel %vm8462_vm15, 0, %v9012_v6  ;;  %v3416_v23 = vsel %vm9052_vm10, %v8708_v44, %v3413_v14  ;;  %v5602_v35 = vadd.s32 4294967294, %v3500_v62  ;;  %v11039_v58 = vld [vmem:[#allocation10_spill] sm:$0xff] }
 0x4a4   : > { %v2389_v49 = vsel %vm2387_vm12, %v11035_v37, %v8560_v57  ;;  %v2589_v36 = vadd.s32 3, %v11036_v38  ;;  %v3594_v26 = vadd.s32 1, %v9084_v27  ;;  %v2593_v57 = vxor.u32 2147483648, %v8593_v54 }
 0x4a5   : > { %v2390_v61 = vsel %vm2383_vm8, %v2386_v40, %v2389_v49  ;;  %v3488_v10 = vadd.s32 %v8993_v25, %v9002_v59  ;;  %v3591_v20 = vmul.u32 %v9019_v9, %v3575_v0  ;;  %v2278_v48 = vand.u32 3, %v8292_v50 }
 0x4a6   : > { %v2590_v46 = vand.u32 3, %v2589_v36  ;;  %vm5603_vm6 = vcmp.lt.s32.totalorder %v5602_v35, 0  ;;  %vm3593_vm15 = vc.u32 %v9094_v28, %v9083_v1  ;;  %v2391_v6 = vsel %vm2380_vm14, nan, %v2390_v61 }
 0x4a7   : > { %v2596_v30 = vxor.u32 2147483648, %v8588_v5  ;;  %6079 = vcosq.f32 %v3416_v23  ;;  %v3503_v24 = vsel %vm5603_vm6, 0, %v5602_v35  ;;  %v3595_v41 = vsel %vm3593_vm15, %v3594_v26, %v9084_v27  ;;  %v11038_v27 = vld [vmem:[#allocation21_spill] sm:$0xff] }
 0x4a8   : > { %vm2591_vm8 = vcmp.lt.s32.totalorder %v2590_v46, 2  ;;  %v3504_v17 = vsub.s32 32, %v3503_v24  ;;  %v3508_v25 = vsub.s32 4294967266, %v3503_v24  ;;  %v3596_v59 = vadd.s32 %v3595_v41, %v3591_v20 }
 0x4a9   : > { %vm2592_vm11 = vcmp.eq.s32.totalorder %v2590_v46, 0  ;;  %v3505_v9 = vshll.u32 %v9058_v3, %v3503_v24  ;;  %vm2595_vm4 = vcmp.eq.s32.totalorder %v2590_v46, 2  ;;  %vm2280_vm9 = vcmp.eq.s32.totalorder %v2278_v48, 0  ;;  %v11044_v46 = vld [vmem:[#allocation26_spill] sm:$0xff] }
 0x4aa   : > { %v2594_v50 = vsel %vm2592_vm11, %v8588_v5, %v2593_v57  ;;  %v3506_v0 = vshrl.u32 %v3488_v10, %v3504_v17  ;;  %v3509_v18 = vadd.s32 127, %v3508_v25  ;;  %v3597_v8 = vadd.s32 536870912, %v3596_v59  ;;  %v11043_v10 = vld [vmem:[#allocation18_spill] sm:$0xff]  ;;  %v11046_v17 = vld [vmem:[#allocation12_spill] sm:$0xff] }
 0x4ab   : > { %v2597_v60 = vsel %vm2595_vm4, %v2596_v30, %v8593_v54  ;;  %vm2276_vm14 = vweird.f32 %v11037_v19  ;;  %v2281_v62 = vxor.u32 2147483648, %v11038_v27  ;;  %vm2283_vm12 = vcmp.eq.s32.totalorder %v2278_v48, 2  ;;  %v11045_v30 = vld [vmem:[#allocation27_spill] sm:$0xff] }
 0x4ac   : > { %v2598_v40 = vsel %vm2591_vm8, %v2594_v50, %v2597_v60  ;;  %v2284_v37 = vxor.u32 2147483648, %v11039_v58  ;;  %v3507_v49 = vor.u32 %v3506_v0, %v3505_v9  ;;  %v3510_v14 = vshll.u32 %v3509_v18, 23  ;;  %v11047_v9 = vld [vmem:[#allocation20_spill] sm:$0xff] }
 0x4ad   : > { %v9128_v3 = vshrl.u32 %v3597_v8, 30  ;;  %v2599_v5 = vsel %vm2588_vm5, nan, %v2598_v40  ;;  %6081 = vsinq.f32 %v3416_v23  ;;  %vm10765_vm6 = vcmp.lt.s32.totalorder %v8824_v7, 0 }
 0x4ae   : > { %v5727_v61 = vpack.c.bf16 %v2599_v5, %v2391_v6  ;;  %v2282_v54 = vsel %vm2280_vm9, %v11039_v58, %v2281_v62  ;;  %v2285_v38 = vsel %vm2283_vm12, %v2284_v37, %v11038_v27  ;;  %v3511_v36 = vor.u32 4788187, %v3510_v14  ;;  %v11048_v27 = vld [vmem:[#allocation38_spill] sm:$0xff] }
 0x4af   : > { %v9137_v35 = vadd.s32 %v9083_v1, %v9094_v28  ;;  %v3599_v26 = vshll.u32 %v9128_v3, 30  ;;  %vm2279_vm15 = vcmp.lt.s32.totalorder %v2278_v48, 2  ;;  %v11040_v57 = vand.u32 2147483647, %v8824_v7 }
 0x4b0   : > { %v3514_v23 = vcvt.s32.f32 %v3507_v49  ;;  %5728 = vmatprep.subr.bf16.mxu1 %v5727_v61  ;;  %v2486_v20 = vand.u32 3, %v11043_v10  ;;  %v2489_v6 = vxor.u32 2147483648, %v11044_v46  ;;  %v2492_v24 = vxor.u32 2147483648, %v11045_v30 }
 0x4b1   : > { %vm9142_vm8 = vcmp.le.f32.partialorder %v11040_v57, 0.7853982  ;;  %v3512_v41 = vand.u32 2147483647, %v3511_v36  ;;  %v9149_v1 = vsub.s32 %v3596_v59, %v3599_v26  ;;  %v2286_v28 = vsel %vm2279_vm15, %v2282_v54, %v2285_v38  ;;  %v9152_v25 = vpop.eup %6079  ;;  %v11049_v54 = vld [vmem:[#allocation29_spill] sm:$0xff]  ;;  %v11051_v57 = vld [vmem:[#allocation11_spill] sm:$0xff] }
 0x4b2   : > { %v2790_v48 = vsub.s32 4, %v11046_v17  ;;  %vm2484_vm5 = vweird.f32 %v11047_v9  ;;  %vm2487_vm11 = vcmp.lt.s32.totalorder %v2486_v20, 2  ;;  %vm2488_vm4 = vcmp.eq.s32.totalorder %v2486_v20, 0 }
 0x4b3   : > { %vm2491_vm9 = vcmp.eq.s32.totalorder %v2486_v20, 2  ;;  %v3515_v50 = vmul.f32 %v3514_v23, %v3512_v41  ;;  %v3602_v0 = vsub.s32 0, %v9149_v1  ;;  %v2490_v18 = vsel %vm2488_vm4, %v11045_v30, %v2489_v6  ;;  %v11052_v41 = vld [vmem:[#allocation37_spill] sm:$0xff] }
 0x4b4   : > { %v2493_v8 = vsel %vm2491_vm9, %v2492_v24, %v11044_v46  ;;  %v2287_v59 = vsel %vm2276_vm14, nan, %v2286_v28  ;;  %v2791_v40 = vsel %vm2706_vm3, %v2790_v48, %v11046_v17  ;;  %v2998_v62 = vsub.s32 4, %v11048_v27 }
 0x4b5   : > { %v2494_v60 = vsel %vm2487_vm11, %v2490_v18, %v2493_v8  ;;  %v3516_v58 = vxor.u32 2147483648, %v3515_v50  ;;  %v5605_v37 = vmin.u32 %v3602_v0, %v9149_v1  ;;  %v2793_v14 = vsel %vm8638_vm2, 0, %v2791_v40 }
 0x4b6   : > { %v2495_v49 = vsel %vm2484_vm5, nan, %v2494_v60  ;;  %v2797_v61 = vadd.s32 3, %v2793_v14  ;;  %v2801_v38 = vxor.u32 2147483648, %v11049_v54  ;;  %vm11050_vm14 = vcmp.lt.s32.totalorder %v8435_v47, 0  ;;  %v11053_v60 = vld [vmem:[#allocation24_spill] sm:$0xff] }
 0x4b7   : > { %v5729_v5 = vpack.c.bf16 %v2495_v49, %v2287_v59  ;;  %v2999_v19 = vsel %vm11050_vm14, %v2998_v62, %v11048_v27  ;;  %v3517_v36 = vsel %vm10765_vm6, %v3516_v58, %v3515_v50  ;;  %v3604_v26 = vclz %v5605_v37  ;;  %v9176_v20 = vpop.eup %6081 }
 0x4b8   : > { %v2804_v23 = vxor.u32 2147483648, %v11051_v57  ;;  %v3001_v10 = vsel %vm8786_vm1, 0, %v2999_v19  ;;  %vm2796_vm3 = vweird.f32 %v8190_v45  ;;  %v2798_v51 = vand.u32 3, %v2797_v61 }
 0x4b9   : > { %5730 = vmatpush1.bf16.msra.mxu1 %v5729_v5  ;;  %vm3004_vm2 = vweird.f32 %v8435_v47  ;;  %v3005_v46 = vadd.s32 3, %v3001_v10  ;;  %v3520_v6 = vsel %vm9142_vm8, %v8824_v7, %v3517_v36  ;;  %v5606_v30 = vadd.s32 4294967294, %v3604_v26  ;;  %v11054_v5 = vld [vmem:[#allocation36_spill] sm:$0xff]  ;;  %v11059_v10 = vld [vmem:[#allocation30_spill] sm:$0xff] }
 0x4ba   : > { %v3009_v24 = vxor.u32 2147483648, %v8880_v15  ;;  %v2694_v28 = vand.u32 3, %v11052_v41  ;;  %vm2799_vm12 = vcmp.lt.s32.totalorder %v2798_v51, 2  ;;  %vm2800_vm1 = vcmp.eq.s32.totalorder %v2798_v51, 0  ;;  %v11060_v41 = vld [vmem:[#allocation22_spill] sm:$0xff] }
 0x4bb   : > { %vm2803_vm15 = vcmp.eq.s32.totalorder %v2798_v51, 2  ;;  %v3012_v12 = vxor.u32 2147483648, %v8869_v32  ;;  %vm5607_vm5 = vcmp.lt.s32.totalorder %v5606_v30, 0  ;;  %v2802_v17 = vsel %vm2800_vm1, %v11051_v57, %v2801_v38 }
 0x4bc   : > { %v2805_v48 = vsel %vm2803_vm15, %v2804_v23, %v11049_v54  ;;  %v3006_v9 = vand.u32 3, %v3005_v46  ;;  %6083 = vcosq.f32 %v3520_v6  ;;  %v3607_v50 = vsel %vm5607_vm5, 0, %v5606_v30  ;;  %v11058_v23 = vld [vmem:[#allocation16_spill] sm:$0xff] }
 0x4bd   : > { %v2806_v0 = vsel %vm2799_vm12, %v2802_v17, %v2805_v48  ;;  %vm2695_vm11 = vcmp.lt.s32.totalorder %v2694_v28, 2  ;;  %v3608_v18 = vsub.s32 32, %v3607_v50  ;;  %v3609_v8 = vshll.u32 %v9149_v1, %v3607_v50 }
 0x4be   : > { %v3612_v59 = vsub.s32 4294967266, %v3607_v50  ;;  %vm2696_vm4 = vcmp.eq.s32.totalorder %v2694_v28, 0  ;;  %vm3007_vm9 = vcmp.lt.s32.totalorder %v3006_v9, 2  ;;  %vm3008_vm14 = vcmp.eq.s32.totalorder %v3006_v9, 0 }
 0x4bf   : > { %vm3011_vm6 = vcmp.eq.s32.totalorder %v3006_v9, 2  ;;  %v2697_v40 = vxor.u32 2147483648, %v11053_v60  ;;  %v3610_v27 = vshrl.u32 %v9137_v35, %v3608_v18  ;;  %v3010_v58 = vsel %vm3008_vm14, %v8869_v32, %v3009_v24 }
 0x4c0   : > { %v3613_v62 = vadd.s32 127, %v3612_v59  ;;  %v3013_v37 = vsel %vm3011_vm6, %v3012_v12, %v8880_v15  ;;  %v2807_v49 = vsel %vm2796_vm3, nan, %v2806_v0  ;;  %v2700_v61 = vxor.u32 2147483648, %v11054_v5 }
 0x4c1   : > { %v3014_v14 = vsel %vm3007_vm9, %v3010_v58, %v3013_v37  ;;  %v2698_v1 = vsel %vm2696_vm4, %v11054_v5, %v2697_v40  ;;  %v3611_v54 = vor.u32 %v3610_v27, %v3609_v8  ;;  %vm2699_vm12 = vcmp.eq.s32.totalorder %v2694_v28, 2  ;;  %v11061_v28 = vld [vmem:[#allocation19_spill] sm:$0xff] }
 0x4c2   : > { %v3614_v38 = vshll.u32 %v3613_v62, 23  ;;  %v3015_v19 = vsel %vm3004_vm2, nan, %v3014_v14  ;;  %vm3538_vm1 = vcmp.lt.s32.totalorder %v8847_v52, 0  ;;  %v2701_v32 = vsel %vm2699_vm12, %v2700_v61, %v11053_v60  ;;  %v11063_v14 = vld [vmem:[#allocation35_spill] sm:$0xff] }
 0x4c3   : > { %v5731_v35 = vpack.c.bf16 %v3015_v19, %v2807_v49  ;;  %v2902_v15 = vand.u32 3, %v8831_v29  ;;  %v2905_v45 = vxor.u32 2147483648, %v8862_v4  ;;  %v11055_v36 = vand.u32 2147483647, %v8847_v52 }
 0x4c4   : > { %v3615_v57 = vor.u32 4788187, %v3614_v38  ;;  %vm2692_vm3 = vweird.f32 %v11058_v23  ;;  %v2702_v47 = vsel %vm2695_vm11, %v2698_v1, %v2701_v32  ;;  %v2908_v51 = vxor.u32 2147483648, %v11059_v10  ;;  %v11064_v1 = vld [vmem:[#allocation13_spill] sm:$0xff] }
 0x4c5   : > { %vm9205_vm6 = vcmp.le.f32.partialorder %v11055_v36, 0.7853982  ;;  %v3618_v46 = vcvt.s32.f32 %v3611_v54  ;;  %5732 = vmatprep.subr.bf16.mxu1 %v5731_v35  ;;  %vm2903_vm2 = vcmp.lt.s32.totalorder %v2902_v15, 2  ;;  %vm2904_vm15 = vcmp.eq.s32.totalorder %v2902_v15, 0  ;;  %v11065_v35 = vld [vmem:[#allocation23_spill] sm:$0xff] }
 0x4c6   : > { %vm2907_vm5 = vcmp.eq.s32.totalorder %v2902_v15, 2  ;;  %v3616_v29 = vand.u32 2147483647, %v3615_v57  ;;  %v2906_v30 = vsel %vm2904_vm15, %v11059_v10, %v2905_v45  ;;  %v3206_v12 = vsub.s32 4, %v11060_v41  ;;  %v9215_v17 = vpop.eup %6083 }
 0x4c7   : > { %v2909_v24 = vsel %vm2907_vm5, %v2908_v51, %v8862_v4  ;;  %6085 = vsinq.f32 %v3520_v6  ;;  %v2703_v48 = vsel %vm2692_vm3, nan, %v2702_v47  ;;  %vm2900_vm11 = vweird.f32 %v11061_v28 }
 0x4c8   : > { %v2910_v9 = vsel %vm2903_vm2, %v2906_v30, %v2909_v24  ;;  %v3619_v50 = vmul.f32 %v3618_v46, %v3616_v29  ;;  %v3207_v18 = vsel %vm3122_vm7, %v3206_v12, %v11060_v41  ;;  %v3414_v8 = vsub.s32 4, %v8971_v34  ;;  %v11066_v46 = vld [vmem:[#allocation9_spill] sm:$0xff] }
 0x4c9   : > { %v2911_v0 = vsel %vm2900_vm11, nan, %v2910_v9  ;;  %v3209_v4 = vsel %vm8890_vm0, 0, %v3207_v18  ;;  %vm3212_vm4 = vweird.f32 %v8546_v63  ;;  %v3217_v6 = vxor.u32 2147483648, %v8977_v39  ;;  %v11067_v9 = vld [vmem:[#allocation17_spill] sm:$0xff] }
 0x4ca   : > { %v5733_v59 = vpack.c.bf16 %v2911_v0, %v2703_v48  ;;  %v3620_v40 = vxor.u32 2147483648, %v3619_v50  ;;  %v3213_v27 = vadd.s32 3, %v3209_v4  ;;  %v3220_v62 = vxor.u32 2147483648, %v8974_v31 }
 0x4cb   : > { %v3415_v58 = vsel %vm3330_vm13, %v3414_v8, %v8971_v34  ;;  %v3425_v49 = vxor.u32 2147483648, %v9176_v20  ;;  %v3110_v5 = vand.u32 3, %v11063_v14  ;;  %v3113_v61 = vxor.u32 2147483648, %v11064_v1 }
 0x4cc   : > { %5734 = vmatpush1.bf16.msra.mxu1 %v5733_v59  ;;  %v3417_v37 = vsel %vm9052_vm10, 0, %v3415_v58  ;;  %v3621_v54 = vsel %vm3538_vm1, %v3620_v40, %v3619_v50  ;;  %v3214_v38 = vand.u32 3, %v3213_v27  ;;  %v3116_v32 = vxor.u32 2147483648, %v11065_v35 }
 0x4cd   : > { %v3421_v19 = vadd.s32 3, %v3417_v37  ;;  %v3624_v34 = vsel %vm9205_vm6, %v8847_v52, %v3621_v54  ;;  %v3428_v13 = vxor.u32 2147483648, %v9152_v25  ;;  %vm3112_vm7 = vcmp.eq.s32.totalorder %v3110_v5, 0  ;;  %v3640_v54 = vld [vmem:[%s10629_s5] sm:$0xff] }
 0x4ce   : > { %vm3115_vm0 = vcmp.eq.s32.totalorder %v3110_v5, 2  ;;  %6087 = vcosq.f32 %v3624_v34  ;;  %vm3215_vm13 = vcmp.lt.s32.totalorder %v3214_v38, 2  ;;  %vm3216_vm10 = vcmp.eq.s32.totalorder %v3214_v38, 0 }
 0x4cf   : > { %vm3219_vm9 = vcmp.eq.s32.totalorder %v3214_v38, 2  ;;  %6089 = vsinq.f32 %v3624_v34  ;;  %v3218_v15 = vsel %vm3216_vm10, %v8974_v31, %v3217_v6  ;;  %v3422_v36 = vand.u32 3, %v3421_v19  ;;  %v3643_v19 = vld [vmem:[%s10629_s5 + $0x18] sm:$0xff]  ;;  %v3646_v34 = vld [vmem:[%s10629_s5 + $0x30] sm:$0x3] }
 0x4d0   : > { %v3221_v45 = vsel %vm3219_vm9, %v3220_v62, %v8977_v39  ;;  %vm3420_vm14 = vweird.f32 %v8708_v44  ;;  %v3114_v23 = vsel %vm3112_vm7, %v11065_v35, %v3113_v61  ;;  %v3117_v47 = vsel %vm3115_vm0, %v3116_v32, %v11064_v1  ;;  %v3644_v35 = vld [vmem:[%s10629_s5 + $0x20] sm:$0xff]  ;;  %v3645_v32 = vld [vmem:[%s10629_s5 + $0x28] sm:$0xff] }
 0x4d1   : > { %v3222_v57 = vsel %vm3215_vm13, %v3218_v15, %v3221_v45  ;;  %v6086_v10 = vpop.eup %6085  ;;  %vm3424_vm12 = vcmp.eq.s32.totalorder %v3422_v36, 0  ;;  %vm3427_vm3 = vcmp.eq.s32.totalorder %v3422_v36, 2  ;;  %vm3111_vm2 = vcmp.lt.s32.totalorder %v3110_v5, 2 }
 0x4d2   : > { %v3223_v51 = vsel %vm3212_vm4, nan, %v3222_v57  ;;  %vm3423_vm15 = vcmp.lt.s32.totalorder %v3422_v36, 2  ;;  %v3426_v31 = vsel %vm3424_vm12, %v9152_v25, %v3425_v49  ;;  %v3429_v39 = vsel %vm3427_vm3, %v3428_v13, %v9176_v20  ;;  %v3657_v13 = vpop.permute.xlu0 %3656 }
 0x4d3   : > { %v3318_v29 = vand.u32 3, %v11066_v46  ;;  %v3430_v30 = vsel %vm3423_vm15, %v3426_v31, %v3429_v39  ;;  %v3118_v24 = vsel %vm3111_vm2, %v3114_v23, %v3117_v47  ;;  %v3321_v41 = vxor.u32 2147483648, %v9048_v53 }
 0x4d4   : > { %v3324_v12 = vxor.u32 2147483648, %v9040_v2  ;;  %v3431_v63 = vsel %vm3420_vm14, nan, %v3430_v30  ;;  %v3622_v20 = vsub.s32 4, %v9128_v3  ;;  %vm3108_vm7 = vweird.f32 %v11067_v9 }
 0x4d5   : > { %vm3319_vm5 = vcmp.lt.s32.totalorder %v3318_v29, 2  ;;  %vm3320_vm11 = vcmp.eq.s32.totalorder %v3318_v29, 0  ;;  %vm3323_vm4 = vcmp.eq.s32.totalorder %v3318_v29, 2  ;;  %v5735_v48 = vpack.c.bf16 %v3431_v63, %v3223_v51 }
 0x4d6   : > { %v3322_v28 = vsel %vm3320_vm11, %v9040_v2, %v3321_v41  ;;  %v3325_v25 = vsel %vm3323_vm4, %v3324_v12, %v9048_v53  ;;  %vm3316_vm0 = vweird.f32 %v8550_v42  ;;  %v3518_v0 = vsub.s32 4, %v9036_v56 }
 0x4d7   : > { %v3326_v50 = vsel %vm3319_vm5, %v3322_v28, %v3325_v25  ;;  %5736 = vmatprep.subr.bf16.mxu1 %v5735_v48  ;;  %v3119_v44 = vsel %vm3108_vm7, nan, %v3118_v24  ;;  %v3623_v8 = vsel %vm3538_vm1, %v3622_v20, %v9128_v3  ;;  %vm11068_vm13 = vcmp.lt.s32.totalorder %v8824_v7, 0 }
 0x4d8   : > { %v3327_v18 = vsel %vm3316_vm0, nan, %v3326_v50  ;;  %v6088_v59 = vpop.eup %6087  ;;  %v3625_v53 = vsel %vm9205_vm6, 0, %v3623_v8  ;;  %v3519_v60 = vsel %vm11068_vm13, %v3518_v0, %v9036_v56  ;;  %v3529_v3 = vxor.u32 2147483648, %v6086_v10 }
 0x4d9   : > { %v5737_v2 = vpack.c.bf16 %v3327_v18, %v3119_v44  ;;  %v6090_v42 = vpop.eup %6089  ;;  %v3629_v4 = vadd.s32 3, %v3625_v53  ;;  %v3521_v6 = vsel %vm9142_vm8, 0, %v3519_v60  ;;  %v3636_v27 = vxor.u32 2147483648, %v6088_v59 }
 0x4da   : > { %v3633_v40 = vxor.u32 2147483648, %v6090_v42  ;;  %v3525_v62 = vadd.s32 3, %v3521_v6  ;;  %v3532_v49 = vxor.u32 2147483648, %v9215_v17  ;;  %vm3628_vm14 = vweird.f32 %v8847_v52 }
 0x4db   : > { %5738 = vmatpush1.bf16.msra.mxu1 %v5737_v2  ;;  %v3630_v58 = vand.u32 3, %v3629_v4  ;;  %vm11069_vm3 = vcmask 1041408   ;;  %vm3524_vm2 = vweird.f32 %v8824_v7  ;;  %vm11071_vm5 = vcmask 408576   ;;  %v3642_v7 = vld [vmem:[%s10629_s5 + $0x10] sm:$0xff] }
 0x4dc   : > { %v3526_v37 = vand.u32 3, %v3525_v62  ;;  %vm11070_vm15 = vmmov %vm11069_vm3  ;;  %v11072_v52 = vmov 0.0  }
 0x4dd   : > { %vm3632_vm1 = vcmp.eq.s32.totalorder %v3630_v58, 0  ;;  %vm3635_vm6 = vcmp.eq.s32.totalorder %v3630_v58, 2  ;;  %vm3631_vm10 = vcmp.lt.s32.totalorder %v3630_v58, 2  ;;  %vm11073_vm11 = vmmov %vm11071_vm5 }
 0x4de   : > { %v3634_v26 = vsel %vm3632_vm1, %v6088_v59, %v3633_v40  ;;  %v3637_v14 = vsel %vm3635_vm6, %v3636_v27, %v6090_v42  ;;  %vm3528_vm9 = vcmp.eq.s32.totalorder %v3526_v37, 0  ;;  %vm3531_vm8 = vcmp.eq.s32.totalorder %v3526_v37, 2  ;;  %vm11074_vm4 = vmmov %vm11071_vm5 }
 0x4df   : > { %v3638_v56 = vsel %vm3631_vm10, %v3634_v26, %v3637_v14  ;;  %v3530_v33 = vsel %vm3528_vm9, %v9215_v17, %v3529_v3  ;;  %vm3527_vm12 = vcmp.lt.s32.totalorder %v3526_v37, 2  ;;  %v3533_v1 = vsel %vm3531_vm8, %v3532_v49, %v6086_v10  ;;  %v3641_v17 = vld [vmem:[%s10629_s5 + $0x8] sm:$0xff]  ;;  %vm11075_vm7 = vmmov %vm11074_vm4  ;;  %v3662_v10 = vpop.permute.xlu1 %3661 }
 0x4e0   : > { %v3639_v5 = vsel %vm3628_vm14, nan, %v3638_v56  ;;  %v3534_v61 = vsel %vm3527_vm12, %v3530_v33, %v3533_v1  ;;  %vm11076_vm0 = vmmov %vm11074_vm4 }
 0x4e1   : > { %5608 = vmatprep.subr.msk.mxu1 %vm11069_vm3, %v3639_v5  ;;  %v3535_v38 = vsel %vm3524_vm2, nan, %v3534_v61  ;;  %vm11077_vm13 = vmmov %vm11076_vm0 }
 0x4e2   : > { %5609 = vmatpush1.msk.msra.mxu1 %vm11070_vm15, %v3535_v38  ;;  %vm11078_vm1 = vmmov %vm11076_vm0 }
 0x4e3   : > { %5610 = vmatmul.mubr.msk.f32.vlgmr.msra.gmra.mrb[14].mxu1 %vm11071_vm5, %v3640_v54 }
 0x4e4   : > { %3786 = vmatprep.mubr.f32.mxu1 %v11072_v52 }
 0x4e7   : > { %5611 = vmatmul.mubr.msk.f32.gmra.mrb[16].mxu1 %vm11073_vm11, %v3641_v17 }
 0x4e8   : > { %3792 = vmatprep.mubr.f32.mxu1 %v11072_v52 }
 0x4eb   : > { %5612 = vmatmul.mubr.msk.f32.gmra.mrb[18].mxu1 %vm11074_vm4, %v3642_v7 }
 0x4ec   : > { %3798 = vmatprep.mubr.f32.mxu1 %v11072_v52 }
 0x4ef   : > { %5613 = vmatmul.mubr.msk.f32.gmra.mrb[20].mxu1 %vm11075_vm7, %v3643_v19 }
 0x4f0   : > { %3804 = vmatprep.mubr.f32.mxu1 %v11072_v52 }
 0x4f3   : > { %5614 = vmatmul.mubr.msk.f32.gmra.mrb[22].mxu1 %vm11076_vm0, %v3644_v35 }
 0x4f4   : > { %3810 = vmatprep.mubr.f32.mxu1 %v11072_v52 }
 0x4f7   : > { %5615 = vmatmul.mubr.msk.f32.gmra.mrb[24].mxu1 %vm11077_vm13, %v3645_v32 }
 0x4f8   : > { %3816 = vmatprep.mubr.f32.mxu1 %v11072_v52 }
 0x4fb   : > { %5616 = vmatmul.mubr.msk.f32.gmra.mrb[26].mxu1 %vm11078_vm1, %v3646_v34 }
 0x5b6   : > { %v3782_v15 = vpop.f32.mrb[14].mxu1 }
 0x5b7   : > { %v9312_v45 = vadd.f32 %v3782_v15, %v3657_v13  ;;  %v3784_v36 = vpop.f32.mrb[15].mxu1 }
 0x5b8   : > { %v9314_v57 = vadd.f32 %v3784_v36, %v3657_v13 }
 0x5b9   : > { %11079 = vst [vmem:[#allocation32_spill] sm:$0xff] %v9312_v45  ;;  %v3823_v23 = vand.u32 2147483647, %v9312_v45  ;;  %v3826_v47 = vand.u32 2139095040, %v9312_v45 }
 0x5ba   : > { %v3927_v51 = vand.u32 2147483647, %v9314_v57  ;;  %v3930_v31 = vand.u32 2139095040, %v9314_v57  ;;  %v3788_v39 = vpop.f32.mrb[16].mxu1 }
 0x5bb   : > { %v3827_v46 = vshrl.u32 %v3826_v47, 23  ;;  %v3830_v29 = vand.u32 8388607, %v3823_v23  ;;  %v9322_v30 = vadd.f32 %v3788_v39, %v3662_v10  ;;  %v3790_v24 = vpop.f32.mrb[17].mxu1 }
 0x5bc   : > { %v3931_v41 = vshrl.u32 %v3930_v31, 23  ;;  %v3934_v12 = vand.u32 8388607, %v3927_v51  ;;  %v9334_v6 = vadd.f32 %v3790_v24, %v3662_v10 }
 0x5bd   : > { %11080 = vst [vmem:[#allocation25_spill] sm:$0xff] %v9322_v30  ;;  %v5617_v63 = vadd.s32 4294967169, %v3827_v46  ;;  %v4034_v28 = vand.u32 2139095040, %v9322_v30  ;;  %v3831_v20 = vor.u32 8388608, %v3830_v29  ;;  %v4031_v44 = vand.u32 2147483647, %v9322_v30 }
 0x5be   : > { %v5621_v48 = vadd.s32 4294967169, %v3931_v41  ;;  %v9327_v25 = vpop.f32.mrb[18].mxu1  ;;  %v3935_v50 = vor.u32 8388608, %v3934_v12 }
 0x5bf   : > { %v3833_v9 = vadd.s32 1, %v5617_v63  ;;  %v4035_v18 = vshrl.u32 %v4034_v28, 23  ;;  %v9330_v8 = vpop.f32.mrb[19].mxu1  ;;  %v9338_v27 = vshll.u32 %v3831_v20, 8  ;;  %v9346_v3 = vand.u32 8388607, %v4031_v44 }
 0x5c0   : > { %v3937_v0 = vadd.s32 1, %v5621_v48  ;;  %v9342_v58 = vshll.u32 %v3935_v50, 8 }
 0x5c1   : > { %vm3834_vm6 = vcmp.gt.s32.totalorder %v3833_v9, 0  ;;  %v5625_v2 = vadd.s32 4294967169, %v4035_v18 }
 0x5c2   : > { %v3835_v59 = vsel %vm3834_vm6, %v3833_v9, 0  ;;  %vm3938_vm10 = vcmp.gt.s32.totalorder %v3937_v0, 0  ;;  %v9332_v53 = vpop.f32.mrb[20].mxu1 }
 0x5c3   : > { %v3836_v60 = vshrl.u32 %v3835_v59, 5  ;;  %v3837_v42 = vand.u32 31, %v3835_v59  ;;  %v3939_v4 = vsel %vm3938_vm10, %v3937_v0, 0  ;;  %v9336_v40 = vpop.f32.mrb[21].mxu1  ;;  %v9349_v14 = vadd.s32 1, %v5625_v2 }
 0x5c4   : > { %v9340_v62 = vshrl.u32 %v3939_v4, 5  ;;  %v3941_v26 = vand.u32 31, %v3939_v4 }
 0x5c5   : > { %v3838_v37 = vsub.s32 32, %v3837_v42  ;;  %v3840_v49 = vshll.u32 %v10824_v16, %v3837_v42  ;;  %v3843_v56 = vshll.u32 %v10828_v11, %v3837_v42  ;;  %v3846_v33 = vshll.u32 %v10964_v22, %v3837_v42 }
 0x5c6   : > { %v3849_v5 = vshll.u32 %v10965_v21, %v3837_v42  ;;  %v3852_v1 = vshll.u32 %v10966_v55, %v3837_v42  ;;  %vm3855_vm9 = vcmp.lt.s32.totalorder %v3836_v60, 1  ;;  %vm3856_vm14 = vcmp.lt.s32.totalorder %v3836_v60, 2  ;;  %v9361_v13 = vpop.f32.mrb[22].mxu1 }
 0x5c7   : > { %v3841_v61 = vshrl.u32 %v10828_v11, %v3838_v37  ;;  %v3844_v54 = vshrl.u32 %v10964_v22, %v3838_v37  ;;  %v3847_v38 = vshrl.u32 %v10965_v21, %v3838_v37  ;;  %v3839_v52 = vshrl.u32 %v10824_v16, %v3838_v37 }
 0x5c8   : > { %v3850_v17 = vshrl.u32 %v10966_v55, %v3838_v37  ;;  %v3853_v7 = vshrl.u32 %v10967_v43, %v3838_v37  ;;  %v3942_v34 = vsub.s32 32, %v3941_v26  ;;  %vm3857_vm8 = vcmp.lt.s32.totalorder %v3836_v60, 3 }
 0x5c9   : > { %v3842_v19 = vor.u32 %v3841_v61, %v3840_v49  ;;  %v3845_v35 = vor.u32 %v3844_v54, %v3843_v56  ;;  %v3848_v32 = vor.u32 %v3847_v38, %v3846_v33  ;;  %vm3858_vm12 = vcmp.lt.s32.totalorder %v3836_v60, 4 }
 0x5ca   : > { %v3851_v15 = vor.u32 %v3850_v17, %v3849_v5  ;;  %v3854_v36 = vor.u32 %v3853_v7, %v3852_v1  ;;  %v3944_v41 = vshll.u32 %v10824_v16, %v3941_v26  ;;  %v3945_v48 = vshrl.u32 %v10828_v11, %v3942_v34 }
 0x5cb   : > { %v3859_v47 = vsel %vm3855_vm9, %v3839_v52, %v3842_v19  ;;  %v3860_v10 = vsel %vm3858_vm12, %v3848_v32, 2102212464  ;;  %v3863_v31 = vsel %vm3855_vm9, %v3842_v19, %v3845_v35  ;;  %v3867_v39 = vsel %vm3855_vm9, %v3845_v35, %v3848_v32 }
 0x5cc   : > { %v3861_v46 = vsel %vm3857_vm8, %v3845_v35, %v3860_v10  ;;  %v3864_v29 = vsel %vm3858_vm12, %v3851_v15, 920167782  ;;  %v3868_v24 = vsel %vm3858_vm12, %v3854_v36, 1326507024  ;;  %v3947_v28 = vshll.u32 %v10828_v11, %v3941_v26 }
 0x5cd   : > { %v3865_v12 = vsel %vm3857_vm8, %v3848_v32, %v3864_v29  ;;  %v3869_v63 = vsel %vm3857_vm8, %v3851_v15, %v3868_v24  ;;  %v3862_v20 = vsel %vm3856_vm14, %v3859_v47, %v3861_v46  ;;  %v3948_v0 = vshrl.u32 %v10964_v22, %v3942_v34 }
 0x5ce   : > { %v3866_v9 = vsel %vm3856_vm14, %v3863_v31, %v3865_v12  ;;  %v3870_v50 = vsel %vm3856_vm14, %v3867_v39, %v3869_v63  ;;  %v3946_v4 = vor.u32 %v3945_v48, %v3944_v41  ;;  %v3950_v49 = vshll.u32 %v10964_v22, %v3941_v26 }
 0x5cf   : > { %v9374_v18 = vmul.u32.u64.low %v9338_v27, %v3870_v50  ;;  %v9375_v59 = vmul.u32.u64.high %v9338_v27, %v3870_v50, %v9374_v18  ;;  %v9378_v2 = vmul.u32.u64.low %v9338_v27, %v3866_v9  ;;  %v9379_v42 = vmul.u32.u64.high %v9338_v27, %v3866_v9, %v9378_v2 }
 0x5d0   : > { %v3949_v37 = vor.u32 %v3948_v0, %v3947_v28  ;;  %v3951_v56 = vshrl.u32 %v10965_v21, %v3942_v34  ;;  %v3943_v60 = vshrl.u32 %v10824_v16, %v3942_v34  ;;  %v3953_v33 = vshll.u32 %v10965_v21, %v3941_v26  ;;  %v9419_v18 = vpop.f32.mrb[23].mxu1 }
 0x5d1   : > { %v3954_v5 = vshrl.u32 %v10966_v55, %v3942_v34  ;;  %v3957_v1 = vshrl.u32 %v10967_v43, %v3942_v34  ;;  %v3878_v61 = vmul.u32 %v9338_v27, %v3862_v20  ;;  %v3956_v38 = vshll.u32 %v10966_v55, %v3941_v26 }
 0x5d2   : > { %v3952_v54 = vor.u32 %v3951_v56, %v3950_v49  ;;  %vm3959_vm3 = vcmp.lt.s32.totalorder %v9340_v62, 1  ;;  %vm3880_vm2 = vc.u32 %v9375_v59, %v9378_v2  ;;  %v3881_v52 = vadd.s32 1, %v9379_v42 }
 0x5d3   : > { %v3955_v17 = vor.u32 %v3954_v5, %v3953_v33  ;;  %vm3960_vm15 = vcmp.lt.s32.totalorder %v9340_v62, 2  ;;  %v3958_v7 = vor.u32 %v3957_v1, %v3956_v38  ;;  %vm3961_vm5 = vcmp.lt.s32.totalorder %v9340_v62, 3 }
 0x5d4   : > { %vm3962_vm11 = vcmp.lt.s32.totalorder %v9340_v62, 4  ;;  %v3967_v19 = vsel %vm3959_vm3, %v3946_v4, %v3949_v37  ;;  %v3882_v27 = vsel %vm3880_vm2, %v3881_v52, %v9379_v42  ;;  %v3971_v32 = vsel %vm3959_vm3, %v3949_v37, %v3952_v54 }
 0x5d5   : > { %v3964_v35 = vsel %vm3962_vm11, %v3952_v54, 2102212464  ;;  %v3968_v26 = vsel %vm3962_vm11, %v3955_v17, 920167782  ;;  %v3883_v34 = vadd.s32 %v3882_v27, %v3878_v61  ;;  %v3963_v15 = vsel %vm3959_vm3, %v3943_v60, %v3946_v4 }
 0x5d6   : > { %v3969_v36 = vsel %vm3961_vm5, %v3952_v54, %v3968_v26  ;;  %v3972_v47 = vsel %vm3962_vm11, %v3958_v7, 1326507024  ;;  %v3965_v10 = vsel %vm3961_vm5, %v3949_v37, %v3964_v35  ;;  %vm4042_vm4 = vcmp.gt.s32.totalorder %v9349_v14, 0 }
 0x5d7   : > { %v3970_v31 = vsel %vm3960_vm15, %v3967_v19, %v3969_v36  ;;  %v3973_v39 = vsel %vm3961_vm5, %v3955_v17, %v3972_v47  ;;  %v3884_v46 = vadd.s32 536870912, %v3883_v34  ;;  %v4043_v48 = vsel %vm4042_vm4, %v9349_v14, 0 }
 0x5d8   : > { %v3974_v29 = vsel %vm3960_vm15, %v3971_v32, %v3973_v39  ;;  %v9404_v24 = vmul.u32.u64.low %v9342_v58, %v3970_v31  ;;  %v9405_v41 = vmul.u32.u64.high %v9342_v58, %v3970_v31, %v9404_v24  ;;  %v4138_v28 = vand.u32 2139095040, %v9334_v6 }
 0x5d9   : > { %v9409_v12 = vmul.u32.u64.low %v9342_v58, %v3974_v29  ;;  %v9410_v63 = vmul.u32.u64.high %v9342_v58, %v3974_v29, %v9409_v12  ;;  %v9414_v20 = vshrl.u32 %v3884_v46, 30  ;;  %v3966_v9 = vsel %vm3960_vm15, %v3963_v15, %v3965_v10 }
 0x5da   : > { %v4039_v50 = vor.u32 8388608, %v9346_v3  ;;  %v4045_v0 = vand.u32 31, %v4043_v48  ;;  %v3985_v4 = vadd.s32 1, %v9405_v41  ;;  %v3982_v49 = vmul.u32 %v9342_v58, %v3966_v9 }
 0x5db   : > { %v3886_v42 = vshll.u32 %v9414_v20, 30  ;;  %vm3984_vm7 = vc.u32 %v9410_v63, %v9404_v24  ;;  %v4139_v14 = vshrl.u32 %v4138_v28, 23  ;;  %v10768_v3 = vand.u32 2147483647, %v9334_v6 }
 0x5dc   : > { %v4046_v37 = vsub.s32 32, %v4045_v0  ;;  %v3986_v62 = vsel %vm3984_vm7, %v3985_v4, %v9405_v41  ;;  %v9429_v60 = vshll.u32 %v4039_v50, 8  ;;  %v4048_v5 = vshll.u32 %v10824_v16, %v4045_v0 }
 0x5dd   : > { %v9426_v56 = vsub.s32 %v3883_v34, %v3886_v42  ;;  %v3987_v33 = vadd.s32 %v3986_v62, %v3982_v49  ;;  %v4044_v54 = vshrl.u32 %v4043_v48, 5  ;;  %v4051_v38 = vshll.u32 %v10828_v11, %v4045_v0 }
 0x5de   : > { %v4049_v1 = vshrl.u32 %v10828_v11, %v4046_v37  ;;  %v4052_v61 = vshrl.u32 %v10964_v22, %v4046_v37  ;;  %v4055_v52 = vshrl.u32 %v10965_v21, %v4046_v37  ;;  %v4054_v19 = vshll.u32 %v10964_v22, %v4045_v0 }
 0x5df   : > { %v3889_v58 = vsub.s32 0, %v9426_v56  ;;  %v3988_v17 = vadd.s32 536870912, %v3987_v33  ;;  %v5629_v27 = vadd.s32 4294967169, %v4139_v14  ;;  %v4057_v32 = vshll.u32 %v10965_v21, %v4045_v0 }
 0x5e0   : > { %v4050_v7 = vor.u32 %v4049_v1, %v4048_v5  ;;  %v4053_v26 = vor.u32 %v4052_v61, %v4051_v38  ;;  %v4058_v34 = vshrl.u32 %v10966_v55, %v4046_v37  ;;  %v4056_v36 = vor.u32 %v4055_v52, %v4054_v19 }
 0x5e1   : > { %v5618_v35 = vmin.u32 %v3889_v58, %v9426_v56  ;;  %v9442_v15 = vshrl.u32 %v3988_v17, 30  ;;  %v4060_v47 = vshll.u32 %v10966_v55, %v4045_v0  ;;  %v4061_v10 = vshrl.u32 %v10967_v43, %v4046_v37 }
 0x5e2   : > { %v4047_v39 = vshrl.u32 %v10824_v16, %v4046_v37  ;;  %v4059_v46 = vor.u32 %v4058_v34, %v4057_v32  ;;  %vm4063_vm0 = vcmp.lt.s32.totalorder %v4044_v54, 1  ;;  %vm4064_vm13 = vcmp.lt.s32.totalorder %v4044_v54, 2 }
 0x5e3   : > { %v3891_v31 = vclz %v5618_v35  ;;  %v3990_v29 = vshll.u32 %v9442_v15, 30  ;;  %v4062_v41 = vor.u32 %v4061_v10, %v4060_v47  ;;  %vm4066_vm1 = vcmp.lt.s32.totalorder %v4044_v54, 4 }
 0x5e4   : > { %vm4065_vm6 = vcmp.lt.s32.totalorder %v4044_v54, 3  ;;  %v4071_v48 = vsel %vm4063_vm0, %v4050_v7, %v4053_v26  ;;  %v4072_v28 = vsel %vm4066_vm1, %v4059_v46, 920167782  ;;  %v4068_v50 = vsel %vm4066_vm1, %v4056_v36, 2102212464 }
 0x5e5   : > { %v5619_v12 = vadd.s32 4294967294, %v3891_v31  ;;  %v9448_v9 = vsub.s32 %v3987_v33, %v3990_v29  ;;  %v4073_v0 = vsel %vm4065_vm6, %v4056_v36, %v4072_v28  ;;  %v4075_v42 = vsel %vm4063_vm0, %v4053_v26, %v4056_v36 }
 0x5e6   : > { %v4067_v4 = vsel %vm4063_vm0, %v4047_v39, %v4050_v7  ;;  %v4074_v37 = vsel %vm4064_vm13, %v4071_v48, %v4073_v0  ;;  %v4076_v49 = vsel %vm4066_vm1, %v4062_v41, 1326507024  ;;  %v4145_v1 = vadd.s32 1, %v5629_v27 }
 0x5e7   : > { %vm5620_vm10 = vcmp.lt.s32.totalorder %v5619_v12, 0  ;;  %v3993_v62 = vsub.s32 0, %v9448_v9  ;;  %v4077_v5 = vsel %vm4065_vm6, %v4059_v46, %v4076_v49  ;;  %v4069_v33 = vsel %vm4065_vm6, %v4053_v26, %v4068_v50  ;;  %v3667_v50 = vpop.permute.xlu0 %3666 }
 0x5e8   : > { %v3894_v14 = vsel %vm5620_vm10, 0, %v5619_v12  ;;  %v4078_v38 = vsel %vm4064_vm13, %v4075_v42, %v4077_v5  ;;  %vm4146_vm9 = vcmp.gt.s32.totalorder %v4145_v1, 0  ;;  %v3879_v19 = vadd.s32 %v9378_v2, %v9375_v59 }
 0x5e9   : > { %v3895_v61 = vsub.s32 32, %v3894_v14  ;;  %v3899_v58 = vsub.s32 4294967266, %v3894_v14  ;;  %v5622_v52 = vmin.u32 %v3993_v62, %v9448_v9  ;;  %v4147_v26 = vsel %vm4146_vm9, %v4145_v1, 0 }
 0x5ea   : > { %v9458_v17 = vmul.u32.u64.low %v9429_v60, %v4078_v38  ;;  %v9459_v7 = vmul.u32.u64.high %v9429_v60, %v4078_v38, %v9458_v17  ;;  %v9464_v32 = vmul.u32.u64.low %v9429_v60, %v4074_v37  ;;  %v9465_v27 = vmul.u32.u64.high %v9429_v60, %v4074_v37, %v9464_v32 }
 0x5eb   : > { %v3900_v35 = vadd.s32 127, %v3899_v58  ;;  %v3995_v34 = vclz %v5622_v52  ;;  %v3897_v36 = vshrl.u32 %v3879_v19, %v3895_v61  ;;  %v4070_v10 = vsel %vm4064_vm13, %v4067_v4, %v4069_v33  ;;  %v9477_v4 = vpop.f32.mrb[24].mxu1 }
 0x5ec   : > { %v4149_v31 = vand.u32 31, %v4147_v26  ;;  %vm4088_vm14 = vc.u32 %v9459_v7, %v9464_v32  ;;  %v3896_v46 = vshll.u32 %v9426_v56, %v3894_v14  ;;  %v4089_v59 = vadd.s32 1, %v9465_v27 }
 0x5ed   : > { %v3901_v47 = vshll.u32 %v3900_v35, 23  ;;  %v5623_v39 = vadd.s32 4294967294, %v3995_v34  ;;  %v4142_v2 = vand.u32 8388607, %v10768_v3  ;;  %v4086_v41 = vmul.u32 %v9429_v60, %v4070_v10 }
 0x5ee   : > { %v3898_v12 = vor.u32 %v3897_v36, %v3896_v46  ;;  %v4090_v54 = vsel %vm4088_vm14, %v4089_v59, %v9465_v27  ;;  %v4150_v28 = vsub.s32 32, %v4149_v31  ;;  %v9480_v37 = vadd.f32 %v9327_v25, %v3667_v50 }
 0x5ef   : > { %v3902_v29 = vor.u32 4788187, %v3901_v47  ;;  %vm5624_vm8 = vcmp.lt.s32.totalorder %v5623_v39, 0  ;;  %v4091_v42 = vadd.s32 %v4090_v54, %v4086_v41  ;;  %v4143_v56 = vor.u32 8388608, %v4142_v2 }
 0x5f0   : > { %v3998_v48 = vsel %vm5624_vm8, 0, %v5623_v39  ;;  %11081 = vst [vmem:[#allocation31_spill] sm:$0xff] %v9480_v37  ;;  %v9483_v49 = vadd.f32 %v9330_v8, %v3667_v50  ;;  %v3983_v60 = vadd.s32 %v9404_v24, %v9410_v63  ;;  %v3905_v1 = vcvt.s32.f32 %v3898_v12 }
 0x5f1   : > { %v4003_v0 = vsub.s32 4294967266, %v3998_v48  ;;  %v3903_v14 = vand.u32 2147483647, %v3902_v29  ;;  %v4092_v5 = vadd.s32 536870912, %v4091_v42  ;;  %v9487_v61 = vshrl.u32 %v4147_v26, 5 }
 0x5f2   : > { %v4153_v58 = vshrl.u32 %v10828_v11, %v4150_v28  ;;  %v4156_v33 = vshrl.u32 %v10964_v22, %v4150_v28  ;;  %v4152_v25 = vshll.u32 %v10824_v16, %v4149_v31  ;;  %v4159_v8 = vshrl.u32 %v10965_v21, %v4150_v28 }
 0x5f3   : > { %v4004_v62 = vadd.s32 127, %v4003_v0  ;;  %v9491_v38 = vshrl.u32 %v4092_v5, 30  ;;  %v4162_v52 = vshrl.u32 %v10966_v55, %v4150_v28  ;;  %v3999_v17 = vsub.s32 32, %v3998_v48 }
 0x5f4   : > { %v4155_v24 = vshll.u32 %v10828_v11, %v4149_v31  ;;  %v4161_v63 = vshll.u32 %v10965_v21, %v4149_v31  ;;  %v4165_v19 = vshrl.u32 %v10967_v43, %v4150_v28  ;;  %v3906_v35 = vmul.f32 %v3905_v1, %v3903_v14 }
 0x5f5   : > { %v4005_v27 = vshll.u32 %v4004_v62, 23  ;;  %v4094_v34 = vshll.u32 %v9491_v38, 30  ;;  %v4158_v26 = vshll.u32 %v10964_v22, %v4149_v31  ;;  %v4154_v36 = vor.u32 %v4153_v58, %v4152_v25 }
 0x5f6   : > { %v4157_v47 = vor.u32 %v4156_v33, %v4155_v24  ;;  %v4163_v10 = vor.u32 %v4162_v52, %v4161_v63  ;;  %v4164_v39 = vshll.u32 %v10966_v55, %v4149_v31  ;;  %vm3825_vm12 = vcmp.lt.s32.totalorder %v9312_v45, 0 }
 0x5f7   : > { %v3909_v46 = vsub.s32 4, %v9414_v20  ;;  %v9504_v59 = vsub.s32 %v4091_v42, %v4094_v34  ;;  %v4160_v2 = vor.u32 %v4159_v8, %v4158_v26  ;;  %v9506_v29 = vshll.u32 %v4143_v56, 8 }
 0x5f8   : > { %v4000_v41 = vshll.u32 %v9448_v9, %v3998_v48  ;;  %v4001_v12 = vshrl.u32 %v3983_v60, %v3999_v17  ;;  %v4151_v54 = vshrl.u32 %v10824_v16, %v4150_v28  ;;  %v4166_v50 = vor.u32 %v4165_v19, %v4164_v39 }
 0x5f9   : > { %v4006_v0 = vor.u32 4788187, %v4005_v27  ;;  %v4097_v14 = vsub.s32 0, %v9504_v59  ;;  %vm4167_vm3 = vcmp.lt.s32.totalorder %v9487_v61, 1  ;;  %vm4170_vm2 = vcmp.lt.s32.totalorder %v9487_v61, 4 }
 0x5fa   : > { %v3907_v31 = vxor.u32 2147483648, %v3906_v35  ;;  %vm4169_vm15 = vcmp.lt.s32.totalorder %v9487_v61, 3  ;;  %v4175_v42 = vsel %vm4167_vm3, %v4154_v36, %v4157_v47  ;;  %v4176_v56 = vsel %vm4170_vm2, %v4163_v10, 920167782 }
 0x5fb   : > { %v5626_v9 = vmin.u32 %v4097_v14, %v9504_v59  ;;  %vm4168_vm5 = vcmp.lt.s32.totalorder %v9487_v61, 2  ;;  %v4172_v48 = vsel %vm4170_vm2, %v4160_v2, 2102212464  ;;  %v4177_v28 = vsel %vm4169_vm15, %v4160_v2, %v4176_v56 }
 0x5fc   : > { %v4002_v60 = vor.u32 %v4001_v12, %v4000_v41  ;;  %v4178_v62 = vsel %vm4168_vm5, %v4175_v42, %v4177_v28  ;;  %v4179_v5 = vsel %vm4167_vm3, %v4157_v47, %v4160_v2  ;;  %v4180_v1 = vsel %vm4170_vm2, %v4166_v50, 1326507024  ;;  %v9545_v2 = vpop.f32.mrb[25].mxu1  ;;  %v9562_v42 = vpop.permute.xlu1 %3671 }
 0x5fd   : > { %v4007_v58 = vand.u32 2147483647, %v4006_v0  ;;  %v4099_v33 = vclz %v5626_v9  ;;  %v4171_v25 = vsel %vm4167_vm3, %v4151_v54, %v4154_v36  ;;  %v4181_v8 = vsel %vm4169_vm15, %v4163_v10, %v4180_v1 }
 0x5fe   : > { %v4173_v52 = vsel %vm4169_vm15, %v4157_v47, %v4172_v48  ;;  %v4182_v17 = vsel %vm4168_vm5, %v4179_v5, %v4181_v8  ;;  %v9527_v24 = vmul.u32.u64.low %v9506_v29, %v4178_v62  ;;  %v9528_v63 = vmul.u32.u64.high %v9506_v29, %v4178_v62, %v9527_v24 }
 0x5ff   : > { %v5627_v19 = vadd.s32 4294967294, %v4099_v33  ;;  %v9532_v27 = vmul.u32.u64.low %v9506_v29, %v4182_v17  ;;  %v9533_v34 = vmul.u32.u64.high %v9506_v29, %v4182_v17, %v9532_v27  ;;  %v10767_v26 = vand.u32 2147483647, %v9480_v37 }
 0x600   : > { %vm9538_vm11 = vcmp.le.f32.partialorder %v3823_v23, 0.7853982  ;;  %v3908_v47 = vsel %vm3825_vm12, %v3907_v31, %v3906_v35  ;;  %v4009_v10 = vcvt.s32.f32 %v4002_v60  ;;  %v4242_v39 = vand.u32 2139095040, %v9480_v37 }
 0x601   : > { %vm3929_vm4 = vcmp.lt.s32.totalorder %v9314_v57, 0  ;;  %vm4033_vm7 = vcmp.lt.s32.totalorder %v9322_v30, 0  ;;  %vm5628_vm0 = vcmp.lt.s32.totalorder %v5627_v19, 0  ;;  %v4174_v41 = vsel %vm4168_vm5, %v4171_v25, %v4173_v52 }
 0x602   : > { %v4346_v23 = vand.u32 2139095040, %v9483_v49  ;;  %v4010_v12 = vmul.f32 %v4009_v10, %v4007_v58  ;;  %v4102_v54 = vsel %vm5628_vm0, 0, %v5627_v19  ;;  %v4193_v50 = vadd.s32 1, %v9528_v63 }
 0x603   : > { %v4243_v35 = vshrl.u32 %v4242_v39, 23  ;;  %v3910_v0 = vsel %vm3825_vm12, %v3909_v46, %v9414_v20  ;;  %v3911_v14 = vsel %vm9538_vm11, %v9312_v45, %v3908_v47  ;;  %v4117_v31 = vsub.s32 4, %v9491_v38 }
 0x604   : > { %v4246_v61 = vand.u32 8388607, %v10767_v26  ;;  %v4107_v56 = vsub.s32 4294967266, %v4102_v54  ;;  %v4190_v9 = vmul.u32 %v9506_v29, %v4174_v41  ;;  %vm4192_vm13 = vc.u32 %v9533_v34, %v9527_v24 }
 0x605   : > { %v5633_v48 = vadd.s32 4294967169, %v4243_v35  ;;  %vm9569_vm1 = vcmp.le.f32.partialorder %v4031_v44, 0.7853982  ;;  %v4194_v46 = vsel %vm4192_vm13, %v4193_v50, %v9528_v63  ;;  %v4347_v28 = vshrl.u32 %v4346_v23, 23 }
 0x606   : > { %v9576_v60 = vadd.f32 %v9332_v53, %v9562_v42  ;;  %v3912_v29 = vsel %vm9538_vm11, 0, %v3910_v0  ;;  %v4011_v62 = vxor.u32 2147483648, %v4010_v12  ;;  %v4195_v5 = vadd.s32 %v4194_v46, %v4190_v9 }
 0x607   : > { %v4249_v1 = vadd.s32 1, %v5633_v48  ;;  %6091 = vcosq.f32 %v3911_v14  ;;  %v4103_v58 = vsub.s32 32, %v4102_v54  ;;  %v9583_v44 = vsel %vm4033_vm7, %v4117_v31, %v9491_v38 }
 0x608   : > { %11086 = vst [vmem:[#allocation28_spill] sm:$0xff] %v9576_v60  ;;  %v4247_v33 = vor.u32 8388608, %v4246_v61  ;;  %v4108_v25 = vadd.s32 127, %v4107_v56  ;;  %v4196_v8 = vadd.s32 536870912, %v4195_v5  ;;  %v5637_v52 = vadd.s32 4294967169, %v4347_v28 }
 0x609   : > { %vm4250_vm6 = vcmp.gt.s32.totalorder %v4249_v1, 0  ;;  %6093 = vsinq.f32 %v3911_v14  ;;  %v9585_v53 = vadd.s32 3, %v3912_v29  ;;  %v4087_v17 = vadd.s32 %v9464_v32, %v9459_v7 }
 0x60a   : > { %v4251_v63 = vsel %vm4250_vm6, %v4249_v1, 0  ;;  %v9591_v19 = vsel %vm3929_vm4, %v4011_v62, %v4010_v12  ;;  %v9596_v27 = vshrl.u32 %v4196_v8, 30  ;;  %v4104_v47 = vshll.u32 %v9504_v59, %v4102_v54 }
 0x60b   : > { %v4253_v36 = vand.u32 31, %v4251_v63  ;;  %v4105_v10 = vshrl.u32 %v4087_v17, %v4103_v58  ;;  %v9599_v39 = vshll.u32 %v4247_v33, 8  ;;  %v10766_v41 = vand.u32 2147483647, %v9483_v49 }
 0x60c   : > { %v4109_v7 = vshll.u32 %v4108_v25, 23  ;;  %v4198_v32 = vshll.u32 %v9596_v27, 30  ;;  %v4353_v12 = vadd.s32 1, %v5637_v52  ;;  %v4252_v50 = vshrl.u32 %v4251_v63, 5 }
 0x60d   : > { %v4254_v23 = vsub.s32 32, %v4253_v36  ;;  %v4256_v35 = vshll.u32 %v10824_v16, %v4253_v36  ;;  %v4259_v0 = vshll.u32 %v10828_v11, %v4253_v36  ;;  %v4262_v14 = vshll.u32 %v10964_v22, %v4253_v36 }
 0x60e   : > { %v9606_v31 = vsub.s32 %v4195_v5, %v4198_v32  ;;  %v4265_v61 = vshll.u32 %v10965_v21, %v4253_v36  ;;  %v4268_v48 = vshll.u32 %v10966_v55, %v4253_v36  ;;  %v9618_v5 = vand.u32 8388607, %v10766_v41 }
 0x60f   : > { %v4257_v59 = vshrl.u32 %v10828_v11, %v4254_v23  ;;  %v4260_v54 = vshrl.u32 %v10964_v22, %v4254_v23  ;;  %v4263_v56 = vshrl.u32 %v10965_v21, %v4254_v23  ;;  %v4266_v9 = vshrl.u32 %v10966_v55, %v4254_v23 }
 0x610   : > { %v4269_v46 = vshrl.u32 %v10967_v43, %v4254_v23  ;;  %v4201_v28 = vsub.s32 0, %v9606_v31  ;;  %v4106_v58 = vor.u32 %v4105_v10, %v4104_v47  ;;  %v4110_v52 = vor.u32 4788187, %v4109_v7 }
 0x611   : > { %v4258_v29 = vor.u32 %v4257_v59, %v4256_v35  ;;  %v4261_v62 = vor.u32 %v4260_v54, %v4259_v0  ;;  %v9620_v1 = vpop.eup %6091  ;;  %v4264_v33 = vor.u32 %v4263_v56, %v4262_v14  ;;  %v4267_v25 = vor.u32 %v4266_v9, %v4265_v61 }
 0x612   : > { %11087 = vst [vmem:[#allocation34_spill] sm:$0xff] %v9620_v1  ;;  %v4270_v8 = vor.u32 %v4269_v46, %v4268_v48  ;;  %v5630_v17 = vmin.u32 %v4201_v28, %v9606_v31  ;;  %vm4271_vm10 = vcmp.lt.s32.totalorder %v4252_v50, 1  ;;  %vm4354_vm9 = vcmp.gt.s32.totalorder %v4353_v12, 0 }
 0x613   : > { %v9623_v63 = vpop.eup %6093  ;;  %v4255_v36 = vshrl.u32 %v10824_v16, %v4254_v23  ;;  %vm4272_vm14 = vcmp.lt.s32.totalorder %v4252_v50, 2  ;;  %vm4274_vm8 = vcmp.lt.s32.totalorder %v4252_v50, 4  ;;  %v4279_v32 = vsel %vm4271_vm10, %v4258_v29, %v4261_v62 }
 0x614   : > { %11088 = vst [vmem:[#allocation39_spill] sm:$0xff] %v9623_v63  ;;  %v4203_v35 = vclz %v5630_v17  ;;  %vm4273_vm12 = vcmp.lt.s32.totalorder %v4252_v50, 3  ;;  %v4276_v0 = vsel %vm4274_vm8, %v4264_v33, 2102212464  ;;  %v4280_v59 = vsel %vm4274_vm8, %v4267_v25, 920167782 }
 0x615   : > { %v4275_v47 = vsel %vm4271_vm10, %v4255_v36, %v4258_v29  ;;  %v4281_v10 = vsel %vm4273_vm12, %v4264_v33, %v4280_v59  ;;  %v4283_v14 = vsel %vm4271_vm10, %v4261_v62, %v4264_v33  ;;  %v4284_v54 = vsel %vm4274_vm8, %v4270_v8, 1326507024 }
 0x616   : > { %v5631_v7 = vadd.s32 4294967294, %v4203_v35  ;;  %v4277_v61 = vsel %vm4273_vm12, %v4261_v62, %v4276_v0  ;;  %v4282_v56 = vsel %vm4272_vm14, %v4279_v32, %v4281_v10  ;;  %v4285_v9 = vsel %vm4273_vm12, %v4267_v25, %v4284_v54 }
 0x617   : > { %v4286_v48 = vsel %vm4272_vm14, %v4283_v14, %v4285_v9  ;;  %v9629_v23 = vmul.u32.u64.low %v9599_v39, %v4282_v56  ;;  %v9630_v46 = vmul.u32.u64.high %v9599_v39, %v4282_v56, %v9629_v23  ;;  %v4450_v28 = vand.u32 2139095040, %v9576_v60 }
 0x618   : > { %vm5632_vm3 = vcmp.lt.s32.totalorder %v5631_v7, 0  ;;  %v9635_v29 = vmul.u32.u64.low %v9599_v39, %v4286_v48  ;;  %v9636_v17 = vmul.u32.u64.high %v9599_v39, %v4286_v48, %v9635_v29  ;;  %v4355_v33 = vsel %vm4354_vm9, %v4353_v12, 0 }
 0x619   : > { %v4111_v62 = vand.u32 2147483647, %v4110_v52  ;;  %v4206_v8 = vsel %vm5632_vm3, 0, %v5631_v7  ;;  %v4278_v25 = vsel %vm4272_vm14, %v4275_v47, %v4277_v61  ;;  %v4357_v36 = vand.u32 31, %v4355_v33  ;;  %v9648_v52 = vpop.f32.mrb[26].mxu1 }
 0x61a   : > { %v4191_v32 = vadd.s32 %v9527_v24, %v9533_v34  ;;  %v4211_v35 = vsub.s32 4294967266, %v4206_v8  ;;  %v4351_v0 = vor.u32 8388608, %v9618_v5  ;;  %v10769_v59 = vand.u32 2147483647, %v9576_v60 }
 0x61b   : > { %v4113_v10 = vcvt.s32.f32 %v4106_v58  ;;  %v4207_v14 = vsub.s32 32, %v4206_v8  ;;  %v4297_v54 = vadd.s32 1, %v9630_v46  ;;  %v4358_v56 = vsub.s32 32, %v4357_v36 }
 0x61c   : > { %v4212_v9 = vadd.s32 127, %v4211_v35  ;;  %v4294_v12 = vmul.u32 %v9599_v39, %v4278_v25  ;;  %vm4296_vm2 = vc.u32 %v9636_v17, %v9629_v23  ;;  %v4451_v50 = vshrl.u32 %v4450_v28, 23 }
 0x61d   : > { %v9650_v24 = vmul.f32 %v4113_v10, %v4111_v62  ;;  %v4298_v34 = vsel %vm4296_vm2, %v4297_v54, %v9630_v46  ;;  %v4361_v5 = vshrl.u32 %v10828_v11, %v4358_v56  ;;  %v4364_v58 = vshrl.u32 %v10964_v22, %v4358_v56 }
 0x61e   : > { %v4208_v47 = vshll.u32 %v9606_v31, %v4206_v8  ;;  %v4213_v7 = vshll.u32 %v4212_v9, 23  ;;  %v4299_v61 = vadd.s32 %v4298_v34, %v4294_v12  ;;  %v4356_v48 = vshrl.u32 %v4355_v33, 5 }
 0x61f   : > { %v4209_v39 = vshrl.u32 %v4191_v32, %v4207_v14  ;;  %v4360_v29 = vshll.u32 %v10824_v16, %v4357_v36  ;;  %v4363_v28 = vshll.u32 %v10828_v11, %v4357_v36  ;;  %v4367_v25 = vshrl.u32 %v10965_v21, %v4358_v56 }
 0x620   : > { %v4300_v62 = vadd.s32 536870912, %v4299_v61  ;;  %v4366_v35 = vshll.u32 %v10964_v22, %v4357_v36  ;;  %v4369_v46 = vshll.u32 %v10965_v21, %v4357_v36  ;;  %v4370_v10 = vshrl.u32 %v10966_v55, %v4358_v56 }
 0x621   : > { %vm9664_vm15 = vcmp.le.f32.partialorder %v3927_v51, 0.7853982  ;;  %v4362_v33 = vor.u32 %v4361_v5, %v4360_v29  ;;  %v4365_v8 = vor.u32 %v4364_v58, %v4363_v28  ;;  %v4372_v32 = vshll.u32 %v10966_v55, %v4357_v36 }
 0x622   : > { %v4373_v14 = vshrl.u32 %v10967_v43, %v4358_v56  ;;  %v4214_v54 = vor.u32 4788187, %v4213_v7  ;;  %v9670_v9 = vshrl.u32 %v4300_v62, 30  ;;  %v4368_v12 = vor.u32 %v4367_v25, %v4366_v35 }
 0x623   : > { %v4371_v34 = vor.u32 %v4370_v10, %v4369_v46  ;;  %v4115_v41 = vxor.u32 2147483648, %v9650_v24  ;;  %v4391_v3 = vshll.u32 %v4351_v0, 8  ;;  %v4454_v51 = vand.u32 8388607, %v10769_v59 }
 0x624   : > { %v4374_v26 = vor.u32 %v4373_v14, %v4372_v32  ;;  %v4210_v38 = vor.u32 %v4209_v39, %v4208_v47  ;;  %v4302_v5 = vshll.u32 %v9670_v9, 30  ;;  %vm4375_vm5 = vcmp.lt.s32.totalorder %v4356_v48, 1 }
 0x625   : > { %vm4378_vm11 = vcmp.lt.s32.totalorder %v4356_v48, 4  ;;  %v4359_v36 = vshrl.u32 %v10824_v16, %v4358_v56  ;;  %v4383_v58 = vsel %vm4375_vm5, %v4362_v33, %v4365_v8  ;;  %v5641_v29 = vadd.s32 4294967169, %v4451_v50 }
 0x626   : > { %v4384_v7 = vsel %vm4378_vm11, %v4371_v34, 920167782  ;;  %v4215_v28 = vand.u32 2147483647, %v4214_v54  ;;  %v9678_v25 = vsub.s32 %v4299_v61, %v4302_v5  ;;  %vm4377_vm0 = vcmp.lt.s32.totalorder %v4356_v48, 3 }
 0x627   : > { %v4380_v62 = vsel %vm4378_vm11, %v4368_v12, 2102212464  ;;  %vm4376_vm13 = vcmp.lt.s32.totalorder %v4356_v48, 2  ;;  %v4385_v0 = vsel %vm4377_vm0, %v4368_v12, %v4384_v7  ;;  %v4387_v35 = vsel %vm4375_vm5, %v4365_v8, %v4368_v12 }
 0x628   : > { %v4388_v47 = vsel %vm4378_vm11, %v4374_v26, 1326507024  ;;  %v4217_v39 = vcvt.s32.f32 %v4210_v38  ;;  %v4305_v46 = vsub.s32 0, %v9678_v25  ;;  %v4379_v10 = vsel %vm4375_vm5, %v4359_v36, %v4362_v33 }
 0x629   : > { %v4386_v56 = vsel %vm4376_vm13, %v4383_v58, %v4385_v0  ;;  %v4381_v32 = vsel %vm4377_vm0, %v4365_v8, %v4380_v62  ;;  %v4389_v14 = vsel %vm4377_vm0, %v4371_v34, %v4388_v47  ;;  %v9692_v61 = vsel %vm9664_vm15, %v9314_v57, %v9591_v19 }
 0x62a   : > { %v9684_v50 = vmul.u32.u64.low %v4391_v3, %v4386_v56  ;;  %v9685_v54 = vmul.u32.u64.high %v4391_v3, %v4386_v56, %v9684_v50  ;;  %v5634_v26 = vmin.u32 %v4305_v46, %v9678_v25  ;;  %v4390_v38 = vsel %vm4376_vm13, %v4387_v35, %v4389_v14 }
 0x62b   : > { %v4457_v12 = vadd.s32 1, %v5641_v29  ;;  %v9696_v33 = vmul.f32 %v4217_v39, %v4215_v28  ;;  %v9698_v5 = vmul.u32.u64.low %v4391_v3, %v4390_v38  ;;  %v9699_v8 = vmul.u32.u64.high %v4391_v3, %v4390_v38, %v9698_v5 }
 0x62c   : > { %v4455_v34 = vor.u32 8388608, %v4454_v51  ;;  %v11091_v36 = vsel %vm9569_vm1, 0, %v9583_v44  ;;  %v4307_v7 = vclz %v5634_v26  ;;  %v4382_v19 = vsel %vm4376_vm13, %v4379_v10, %v4381_v32 }
 0x62d   : > { %v9705_v58 = vadd.s32 3, %v11091_v36  ;;  %vm4458_vm6 = vcmp.gt.s32.totalorder %v4457_v12, 0  ;;  %6095 = vcosq.f32 %v9692_v61  ;;  %v9712_v29 = vsel %vm4033_vm7, %v4115_v41, %v9650_v24  ;;  %v9723_v41 = vpop.f32.mrb[27].mxu1 }
 0x62e   : > { %v4401_v28 = vadd.s32 1, %v9685_v54  ;;  %v4459_v51 = vsel %vm4458_vm6, %v4457_v12, 0  ;;  %v4295_v62 = vadd.s32 %v9629_v23, %v9636_v17  ;;  %v5635_v44 = vadd.s32 4294967294, %v4307_v7 }
 0x62f   : > { %11092 = vst [vmem:[#allocation14_spill] sm:$0xff] %v9705_v58  ;;  %v4461_v35 = vand.u32 31, %v4459_v51  ;;  %v4398_v47 = vmul.u32 %v4391_v3, %v4382_v19  ;;  %vm4400_vm10 = vc.u32 %v9699_v8, %v9684_v50  ;;  %v9721_v39 = vshll.u32 %v4455_v34, 8 }
 0x630   : > { %vm5636_vm7 = vcmp.lt.s32.totalorder %v5635_v44, 0  ;;  %v4402_v24 = vsel %vm4400_vm10, %v4401_v28, %v9685_v54  ;;  %v9728_v23 = vadd.f32 %v9336_v40, %v9562_v42  ;;  %v9730_v56 = vshrl.u32 %v4459_v51, 5 }
 0x631   : > { %v4462_v46 = vsub.s32 32, %v4461_v35  ;;  %v4310_v17 = vsel %vm5636_vm7, 0, %v5635_v44  ;;  %v4403_v10 = vadd.s32 %v4402_v24, %v4398_v47  ;;  %v4464_v3 = vshll.u32 %v10824_v16, %v4461_v35 }
 0x632   : > { %v4311_v32 = vsub.s32 32, %v4310_v17  ;;  %v4315_v14 = vsub.s32 4294967266, %v4310_v17  ;;  %v4467_v26 = vshll.u32 %v10828_v11, %v4461_v35  ;;  %v4470_v38 = vshll.u32 %v10964_v22, %v4461_v35 }
 0x633   : > { %v4404_v12 = vadd.s32 536870912, %v4403_v10  ;;  %v4465_v54 = vshrl.u32 %v10828_v11, %v4462_v46  ;;  %v4468_v5 = vshrl.u32 %v10964_v22, %v4462_v46  ;;  %v4471_v40 = vshrl.u32 %v10965_v21, %v4462_v46 }
 0x634   : > { %v4313_v42 = vshrl.u32 %v4295_v62, %v4311_v32  ;;  %v4316_v34 = vadd.s32 127, %v4315_v14  ;;  %v4473_v36 = vshll.u32 %v10965_v21, %v4461_v35  ;;  %v4474_v7 = vshrl.u32 %v10966_v55, %v4462_v46 }
 0x635   : > { %v4312_v19 = vshll.u32 %v9678_v25, %v4310_v17  ;;  %v9741_v28 = vshrl.u32 %v4404_v12, 30  ;;  %v4472_v51 = vor.u32 %v4471_v40, %v4470_v38  ;;  %v4554_v44 = vand.u32 2139095040, %v9728_v23 }
 0x636   : > { %vm4137_vm9 = vcmp.lt.s32.totalorder %v9334_v6, 0  ;;  %v4317_v47 = vshll.u32 %v4316_v34, 23  ;;  %v4466_v24 = vor.u32 %v4465_v54, %v4464_v3  ;;  %v4469_v59 = vor.u32 %v4468_v5, %v4467_v26 }
 0x637   : > { %11093 = vst [vmem:[#allocation15_spill] sm:$0xff] %v9741_v28  ;;  %v4475_v0 = vor.u32 %v4474_v7, %v4473_v36  ;;  %v9745_v48 = vpop.eup %6095  ;;  %v4314_v62 = vor.u32 %v4313_v42, %v4312_v19  ;;  %v4406_v32 = vshll.u32 %v9741_v28, 30  ;;  %v4476_v14 = vshll.u32 %v10966_v55, %v4461_v35 }
 0x638   : > { %v4477_v25 = vshrl.u32 %v10967_v43, %v4462_v46  ;;  %v4318_v17 = vor.u32 4788187, %v4317_v47  ;;  %v4463_v38 = vshrl.u32 %v10824_v16, %v4462_v46  ;;  %vm4479_vm14 = vcmp.lt.s32.totalorder %v9730_v56, 1 }
 0x639   : > { %vm4482_vm8 = vcmp.lt.s32.totalorder %v9730_v56, 4  ;;  %v11094_v3 = vand.u32 2147483647, %v9334_v6  ;;  %v9759_v12 = vsub.s32 %v4403_v10, %v4406_v32  ;;  %vm4480_vm3 = vcmp.lt.s32.totalorder %v9730_v56, 2 }
 0x63a   : > { %v4478_v54 = vor.u32 %v4477_v25, %v4476_v14  ;;  %v4484_v35 = vsel %vm4482_vm8, %v4472_v51, 2102212464  ;;  %v4319_v5 = vand.u32 2147483647, %v4318_v17  ;;  %vm4481_vm2 = vcmp.lt.s32.totalorder %v9730_v56, 3 }
 0x63b   : > { %vm9755_vm12 = vcmp.le.f32.partialorder %v11094_v3, 0.7853982  ;;  %v4487_v46 = vsel %vm4479_vm14, %v4466_v24, %v4469_v59  ;;  %v4488_v40 = vsel %vm4482_vm8, %v4475_v0, 920167782  ;;  %v4321_v42 = vcvt.s32.f32 %v4314_v62 }
 0x63c   : > { %v4409_v34 = vsub.s32 0, %v9759_v12  ;;  %v4489_v10 = vsel %vm4481_vm2, %v4472_v51, %v4488_v40  ;;  %v4491_v36 = vsel %vm4479_vm14, %v4469_v59, %v4472_v51  ;;  %v11097_v7 = vand.u32 2147483647, %v9480_v37 }
 0x63d   : > { %v4483_v47 = vsel %vm4479_vm14, %v4463_v38, %v4466_v24  ;;  %v4485_v32 = vsel %vm4481_vm2, %v4469_v59, %v4484_v35  ;;  %v4490_v14 = vsel %vm4480_vm3, %v4487_v46, %v4489_v10  ;;  %v4492_v62 = vsel %vm4482_vm8, %v4478_v54, 1326507024  ;;  %v3677_v10 = vpop.permute.xlu0 %3676 }
 0x63e   : > { %vm9774_vm5 = vcmp.le.f32.partialorder %v11097_v7, 0.7853982  ;;  %v5638_v25 = vmin.u32 %v4409_v34, %v9759_v12  ;;  %v4493_v17 = vsel %vm4481_vm2, %v4475_v0, %v4492_v62  ;;  %v4119_v40 = vsel %vm9569_vm1, %v9322_v30, %v9712_v29 }
 0x63f   : > { %v9786_v51 = vmul.u32.u64.low %v9721_v39, %v4490_v14  ;;  %v9787_v3 = vmul.u32.u64.high %v9721_v39, %v4490_v14, %v9786_v51  ;;  %v4322_v24 = vmul.f32 %v4321_v42, %v4319_v5  ;;  %v4494_v59 = vsel %vm4480_vm3, %v4491_v36, %v4493_v17 }
 0x640   : > { %v4555_v38 = vshrl.u32 %v4554_v44, 23  ;;  %v11100_v54 = vxor.u32 2147483648, %v9696_v33  ;;  %v4411_v35 = vclz %v5638_v25  ;;  %6097 = vsinq.f32 %v9692_v61 }
 0x641   : > { %v9801_v46 = vmul.u32.u64.low %v9721_v39, %v4494_v59  ;;  %v9802_v34 = vmul.u32.u64.high %v9721_v39, %v4494_v59, %v9801_v46  ;;  %vm4241_vm1 = vcmp.lt.s32.totalorder %v9480_v37, 0  ;;  %v4486_v20 = vsel %vm4480_vm3, %v4483_v47, %v4485_v32 }
 0x642   : > { %v4220_v0 = vsel %vm4137_vm9, %v11100_v54, %v9696_v33  ;;  %v5645_v29 = vadd.s32 4294967169, %v4555_v38  ;;  %6099 = vcosq.f32 %v4119_v40  ;;  %v11101_v44 = vsub.s32 4, %v9670_v9 }
 0x643   : > { %v5639_v5 = vadd.s32 4294967294, %v4411_v35  ;;  %v4505_v42 = vadd.s32 1, %v9787_v3  ;;  %v4223_v61 = vsel %vm9755_vm12, %v9334_v6, %v4220_v0  ;;  %v4323_v36 = vxor.u32 2147483648, %v4322_v24 }
 0x644   : > { %v9813_v33 = vsel %vm4241_vm1, %v11101_v44, %v9670_v9  ;;  %v10770_v56 = vand.u32 2147483647, %v9728_v23  ;;  %v4561_v7 = vadd.s32 1, %v5645_v29  ;;  %v4502_v47 = vmul.u32 %v9721_v39, %v4486_v20 }
 0x645   : > { %vm5640_vm11 = vcmp.lt.s32.totalorder %v5639_v5, 0  ;;  %vm4504_vm0 = vc.u32 %v9802_v34, %v9786_v51  ;;  %v9823_v9 = vadd.f32 %v9361_v13, %v3677_v10  ;;  %6101 = vsinq.f32 %v4119_v40  ;;  %v9833_v40 = vpop.permute.xlu1 %3681 }
 0x646   : > { %v4414_v32 = vsel %vm5640_vm11, 0, %v5639_v5  ;;  %v4506_v14 = vsel %vm4504_vm0, %v4505_v42, %v9787_v3  ;;  %vm4562_vm13 = vcmp.gt.s32.totalorder %v4561_v7, 0  ;;  %6103 = vcosq.f32 %v4223_v61 }
 0x647   : > { %11102 = vst [vmem:[#allocation21_spill] sm:$0xff] %v9823_v9  ;;  %v4415_v25 = vsub.s32 32, %v4414_v32  ;;  %v4419_v17 = vsub.s32 4294967266, %v4414_v32  ;;  %v4507_v59 = vadd.s32 %v4506_v14, %v4502_v47  ;;  %v4324_v39 = vsel %vm4241_vm1, %v4323_v36, %v4322_v24 }
 0x648   : > { %v4558_v13 = vand.u32 8388607, %v10770_v56  ;;  %v4563_v38 = vsel %vm4562_vm13, %v4561_v7, 0  ;;  %v4399_v3 = vadd.s32 %v9684_v50, %v9699_v8  ;;  %v4658_v35 = vand.u32 2139095040, %v9823_v9 }
 0x649   : > { %v4420_v54 = vadd.s32 127, %v4419_v17  ;;  %v4508_v0 = vadd.s32 536870912, %v4507_v59  ;;  %6105 = vsinq.f32 %v4223_v61  ;;  %v4565_v46 = vand.u32 31, %v4563_v38 }
 0x64a   : > { %v9839_v20 = vadd.f32 %v9419_v18, %v3677_v10  ;;  %v9843_v24 = vadd.f32 %v9477_v4, %v9833_v40  ;;  %v9848_v29 = vsel %vm9774_vm5, %v9480_v37, %v4324_v39  ;;  %v4417_v44 = vshrl.u32 %v4399_v3, %v4415_v25  ;;  %v9853_v5 = vpop.eup %6097 }
 0x64b   : > { %v9850_v50 = vshrl.u32 %v4508_v0, 30  ;;  %v10772_v8 = vand.u32 2147483647, %v9823_v9  ;;  %v4416_v42 = vshll.u32 %v9759_v12, %v4414_v32  ;;  %v9857_v18 = vadd.s32 %v9786_v51, %v9802_v34 }
 0x64c   : > { %v4559_v10 = vor.u32 8388608, %v4558_v13  ;;  %v4566_v4 = vsub.s32 32, %v4565_v46  ;;  %v9859_v61 = vpop.eup %6099  ;;  %v4421_v36 = vshll.u32 %v4420_v54, 23  ;;  %v4568_v47 = vshll.u32 %v10824_v16, %v4565_v46 }
 0x64d   : > { %11103 = vst [vmem:[#allocation10_spill] sm:$0xff] %v9859_v61  ;;  %v4510_v7 = vshll.u32 %v9850_v50, 30  ;;  %v4659_v14 = vshrl.u32 %v4658_v35, 23  ;;  %v4571_v17 = vshll.u32 %v10828_v11, %v4565_v46  ;;  %v4418_v51 = vor.u32 %v4417_v44, %v4416_v42 }
 0x64e   : > { %v4569_v25 = vshrl.u32 %v10828_v11, %v4566_v4  ;;  %v4572_v39 = vshrl.u32 %v10964_v22, %v4566_v4  ;;  %v4575_v12 = vshrl.u32 %v10965_v21, %v4566_v4  ;;  %v4564_v32 = vshrl.u32 %v4563_v38, 5 }
 0x64f   : > { %v9867_v34 = vsub.s32 %v4507_v59, %v4510_v7  ;;  %v4574_v13 = vshll.u32 %v10964_v22, %v4565_v46  ;;  %v9870_v3 = vpop.eup %6101  ;;  %v9872_v56 = vshll.u32 %v4559_v10, 8  ;;  %v9876_v35 = vand.u32 8388607, %v10772_v8 }
 0x650   : > { %11104 = vst [vmem:[#allocation18_spill] sm:$0xff] %v9870_v3  ;;  %v4570_v54 = vor.u32 %v4569_v25, %v4568_v47  ;;  %v4573_v0 = vor.u32 %v4572_v39, %v4571_v17  ;;  %v4577_v44 = vshll.u32 %v10965_v21, %v4565_v46  ;;  %v4578_v59 = vshrl.u32 %v10966_v55, %v4566_v4  ;;  %v9881_v38 = vpop.eup %6103 }
 0x651   : > { %v4513_v62 = vsub.s32 0, %v9867_v34  ;;  %v4576_v37 = vor.u32 %v4575_v12, %v4574_v13  ;;  %v4422_v42 = vor.u32 4788187, %v4421_v36  ;;  %v4580_v7 = vshll.u32 %v10966_v55, %v4565_v46 }
 0x652   : > { %v4581_v47 = vshrl.u32 %v10967_v43, %v4566_v4  ;;  %v5649_v10 = vadd.s32 4294967169, %v4659_v14  ;;  %v4425_v25 = vcvt.s32.f32 %v4418_v51  ;;  %v4579_v39 = vor.u32 %v4578_v59, %v4577_v44 }
 0x653   : > { %v5642_v17 = vmin.u32 %v4513_v62, %v9867_v34  ;;  %vm4583_vm6 = vcmp.lt.s32.totalorder %v4564_v32, 1  ;;  %v9886_v8 = vpop.eup %6105  ;;  %v4567_v12 = vshrl.u32 %v10824_v16, %v4566_v4  ;;  %vm4586_vm10 = vcmp.lt.s32.totalorder %v4564_v32, 4 }
 0x654   : > { %v4582_v13 = vor.u32 %v4581_v47, %v4580_v7  ;;  %v4591_v30 = vsel %vm4583_vm6, %v4570_v54, %v4573_v0  ;;  %vm4585_vm7 = vcmp.lt.s32.totalorder %v4564_v32, 3  ;;  %v4588_v36 = vsel %vm4586_vm10, %v4576_v37, 2102212464 }
 0x655   : > { %v4515_v28 = vclz %v5642_v17  ;;  %v4592_v61 = vsel %vm4586_vm10, %v4579_v39, 920167782  ;;  %v4423_v46 = vand.u32 2147483647, %v4422_v42  ;;  %vm4584_vm14 = vcmp.lt.s32.totalorder %v4564_v32, 2 }
 0x656   : > { %v4593_v3 = vsel %vm4585_vm7, %v4576_v37, %v4592_v61  ;;  %v4595_v14 = vsel %vm4583_vm6, %v4573_v0, %v4576_v37  ;;  %v4587_v58 = vsel %vm4583_vm6, %v4567_v12, %v4570_v54  ;;  %v4596_v44 = vsel %vm4586_vm10, %v4582_v13, 1326507024 }
 0x657   : > { %v5643_v51 = vadd.s32 4294967294, %v4515_v28  ;;  %v4594_v62 = vsel %vm4584_vm14, %v4591_v30, %v4593_v3  ;;  %v4589_v59 = vsel %vm4585_vm7, %v4573_v0, %v4588_v36  ;;  %v4597_v1 = vsel %vm4585_vm7, %v4579_v39, %v4596_v44 }
 0x658   : > { %v9891_v4 = vmul.u32.u64.low %v9872_v56, %v4594_v62  ;;  %v9892_v7 = vmul.u32.u64.high %v9872_v56, %v4594_v62, %v9891_v4  ;;  %v4598_v47 = vsel %vm4584_vm14, %v4595_v14, %v4597_v1  ;;  %v4665_v17 = vadd.s32 1, %v5649_v10 }
 0x659   : > { %vm5644_vm8 = vcmp.lt.s32.totalorder %v5643_v51, 0  ;;  %v9897_v61 = vmul.f32 %v4425_v25, %v4423_v46  ;;  %v9900_v28 = vmul.u32.u64.low %v9872_v56, %v4598_v47  ;;  %v9901_v30 = vmul.u32.u64.high %v9872_v56, %v4598_v47, %v9900_v28 }
 0x65a   : > { %v4518_v37 = vsel %vm5644_vm8, 0, %v5643_v51  ;;  %v4590_v0 = vsel %vm4584_vm14, %v4587_v58, %v4589_v59  ;;  %vm4666_vm3 = vcmp.gt.s32.totalorder %v4665_v17, 0  ;;  %v4609_v12 = vadd.s32 1, %v9892_v7 }
 0x65b   : > { %v4519_v3 = vsub.s32 32, %v4518_v37  ;;  %v4523_v54 = vsub.s32 4294967266, %v4518_v37  ;;  %v4663_v1 = vor.u32 8388608, %v9876_v35  ;;  %v4667_v10 = vsel %vm4666_vm3, %v4665_v17, 0 }
 0x65c   : > { %v4520_v25 = vshll.u32 %v9867_v34, %v4518_v37  ;;  %v4669_v46 = vand.u32 31, %v4667_v10  ;;  %v4427_v14 = vxor.u32 2147483648, %v9897_v61  ;;  %v4606_v51 = vmul.u32 %v9872_v56, %v4590_v0 }
 0x65d   : > { %v4521_v13 = vshrl.u32 %v9857_v18, %v4519_v3  ;;  %v4524_v36 = vadd.s32 127, %v4523_v54  ;;  %vm4608_vm2 = vc.u32 %v9901_v30, %v9891_v4  ;;  %v4762_v58 = vand.u32 2139095040, %v9839_v20 }
 0x65e   : > { %v4610_v35 = vsel %vm4608_vm2, %v4609_v12, %v9892_v7  ;;  %v4670_v44 = vsub.s32 32, %v4669_v46  ;;  %v4668_v34 = vshrl.u32 %v4667_v10, 5  ;;  %v4672_v18 = vshll.u32 %v10824_v16, %v4669_v46 }
 0x65f   : > { %v4522_v32 = vor.u32 %v4521_v13, %v4520_v25  ;;  %v4525_v62 = vshll.u32 %v4524_v36, 23  ;;  %v4611_v59 = vadd.s32 %v4610_v35, %v4606_v51  ;;  %v4675_v47 = vshll.u32 %v10828_v11, %v4669_v46 }
 0x660   : > { %v4673_v56 = vshrl.u32 %v10828_v11, %v4670_v44  ;;  %v4678_v28 = vshll.u32 %v10964_v22, %v4669_v46  ;;  %vm4345_vm1 = vcmp.lt.s32.totalorder %v9483_v49, 0  ;;  %v4676_v54 = vshrl.u32 %v10964_v22, %v4670_v44 }
 0x661   : > { %v4526_v17 = vor.u32 4788187, %v4525_v62  ;;  %v4529_v37 = vcvt.s32.f32 %v4522_v32  ;;  %v4612_v3 = vadd.s32 536870912, %v4611_v59  ;;  %v4679_v7 = vshrl.u32 %v10965_v21, %v4670_v44 }
 0x662   : > { %v4681_v0 = vshll.u32 %v10965_v21, %v4669_v46  ;;  %vm4449_vm11 = vcmp.lt.s32.totalorder %v9576_v60, 0  ;;  %v4674_v10 = vor.u32 %v4673_v56, %v4672_v18  ;;  %v4682_v25 = vshrl.u32 %v10966_v55, %v4670_v44 }
 0x663   : > { %v4527_v12 = vand.u32 2147483647, %v4526_v17  ;;  %v4684_v13 = vshll.u32 %v10966_v55, %v4669_v46  ;;  %v9926_v36 = vshrl.u32 %v4612_v3, 30  ;;  %v4677_v51 = vor.u32 %v4676_v54, %v4675_v47 }
 0x664   : > { %v4680_v32 = vor.u32 %v4679_v7, %v4678_v28  ;;  %v4685_v62 = vshrl.u32 %v10967_v43, %v4670_v44  ;;  %v11106_v35 = vand.u32 2147483647, %v9483_v49  ;;  %v4683_v63 = vor.u32 %v4682_v25, %v4681_v0 }
 0x665   : > { %11105 = vst [vmem:[#allocation26_spill] sm:$0xff] %v9926_v36  ;;  %v4530_v39 = vmul.f32 %v4529_v37, %v4527_v12  ;;  %v4703_v17 = vshll.u32 %v4663_v1, 8  ;;  %v4763_v18 = vshrl.u32 %v4762_v58, 23  ;;  %v11109_v56 = vand.u32 2147483647, %v9576_v60 }
 0x666   : > { %vm9931_vm0 = vcmp.le.f32.partialorder %v11106_v35, 0.7853982  ;;  %v4614_v47 = vshll.u32 %v9926_v36, 30  ;;  %v4686_v28 = vor.u32 %v4685_v62, %v4684_v13  ;;  %vm4687_vm6 = vcmp.lt.s32.totalorder %v4668_v34, 1 }
 0x667   : > { %vm9937_vm13 = vcmp.le.f32.partialorder %v11109_v56, 0.7853982  ;;  %vm4690_vm10 = vcmp.lt.s32.totalorder %v4668_v34, 4  ;;  %v4671_v3 = vshrl.u32 %v10824_v16, %v4670_v44  ;;  %vm4688_vm7 = vcmp.lt.s32.totalorder %v4668_v34, 2 }
 0x668   : > { %v4692_v54 = vsel %vm4690_vm10, %v4680_v32, 2102212464  ;;  %v4695_v7 = vsel %vm4687_vm6, %v4674_v10, %v4677_v51  ;;  %v9943_v37 = vsub.s32 %v4611_v59, %v4614_v47  ;;  %vm4689_vm14 = vcmp.lt.s32.totalorder %v4668_v34, 3 }
 0x669   : > { %v4696_v1 = vsel %vm4690_vm10, %v4683_v63, 920167782  ;;  %v4699_v58 = vsel %vm4687_vm6, %v4677_v51, %v4680_v32  ;;  %v4531_v0 = vxor.u32 2147483648, %v4530_v39  ;;  %v4691_v12 = vsel %vm4687_vm6, %v4671_v3, %v4674_v10 }
 0x66a   : > { %v4697_v25 = vsel %vm4689_vm14, %v4680_v32, %v4696_v1  ;;  %v4700_v35 = vsel %vm4690_vm10, %v4686_v28, 1326507024  ;;  %v4617_v56 = vsub.s32 0, %v9943_v37  ;;  %v4693_v36 = vsel %vm4689_vm14, %v4677_v51, %v4692_v54 }
 0x66b   : > { %v4698_v13 = vsel %vm4688_vm7, %v4695_v7, %v4697_v25  ;;  %v4701_v62 = vsel %vm4689_vm14, %v4683_v63, %v4700_v35  ;;  %v4428_v44 = vsel %vm4345_vm1, %v4427_v14, %v9897_v61  ;;  %v11112_v10 = vsub.s32 4, %v9850_v50 }
 0x66c   : > { %v4702_v59 = vsel %vm4688_vm7, %v4699_v58, %v4701_v62  ;;  %v9951_v47 = vmul.u32.u64.low %v4703_v17, %v4698_v13  ;;  %v9952_v45 = vmul.u32.u64.high %v4703_v17, %v4698_v13, %v9951_v47  ;;  %v5646_v51 = vmin.u32 %v4617_v56, %v9943_v37 }
 0x66d   : > { %v9960_v32 = vsel %vm4449_vm11, %v11112_v10, %v9850_v50  ;;  %v9963_v63 = vmul.u32.u64.low %v4703_v17, %v4702_v59  ;;  %v9964_v28 = vmul.u32.u64.high %v4703_v17, %v4702_v59, %v9963_v63  ;;  %6107 = vcosq.f32 %v9848_v29 }
 0x66e   : > { %v4532_v61 = vsel %vm4449_vm11, %v4531_v0, %v4530_v39  ;;  %v4694_v14 = vsel %vm4688_vm7, %v4691_v12, %v4693_v36  ;;  %v5653_v3 = vadd.s32 4294967169, %v4763_v18  ;;  %6109 = vsinq.f32 %v9848_v29 }
 0x66f   : > { %v11113_v50 = vsel %vm9774_vm5, 0, %v9813_v33  ;;  %v4431_v7 = vsel %vm9931_vm0, %v9483_v49, %v4428_v44  ;;  %v4619_v1 = vclz %v5646_v51  ;;  %v4713_v34 = vadd.s32 1, %v9952_v45 }
 0x670   : > { %v9975_v54 = vadd.s32 3, %v11113_v50  ;;  %v11115_v36 = vand.u32 2147483647, %v9839_v20  ;;  %v4769_v18 = vadd.s32 1, %v5653_v3  ;;  %v9989_v19 = vsel %vm9937_vm13, %v9576_v60, %v4532_v61 }
 0x671   : > { %v5647_v33 = vadd.s32 4294967294, %v4619_v1  ;;  %v4710_v58 = vmul.u32 %v4703_v17, %v4694_v14  ;;  %vm4712_vm5 = vc.u32 %v9964_v28, %v9951_v47  ;;  %6111 = vcosq.f32 %v4431_v7 }
 0x672   : > { %11114 = vst [vmem:[#allocation27_spill] sm:$0xff] %v9975_v54  ;;  %v4766_v29 = vand.u32 8388607, %v11115_v36  ;;  %v4714_v0 = vsel %vm4712_vm5, %v4713_v34, %v9952_v45  ;;  %vm4770_vm8 = vcmp.gt.s32.totalorder %v4769_v18, 0  ;;  %v4866_v12 = vand.u32 2139095040, %v9843_v24 }
 0x673   : > { %6113 = vsinq.f32 %v4431_v7  ;;  %vm5648_vm3 = vcmp.lt.s32.totalorder %v5647_v33, 0  ;;  %v4715_v25 = vadd.s32 %v4714_v0, %v4710_v58  ;;  %v4771_v35 = vsel %vm4770_vm8, %v4769_v18, 0 }
 0x674   : > { %6115 = vcosq.f32 %v9989_v19  ;;  %v4607_v56 = vadd.s32 %v9891_v4, %v9901_v30  ;;  %v4622_v13 = vsel %vm5648_vm3, 0, %v5647_v33  ;;  %v4773_v17 = vand.u32 31, %v4771_v35 }
 0x675   : > { %v4623_v62 = vsub.s32 32, %v4622_v13  ;;  %v4627_v44 = vsub.s32 4294967266, %v4622_v13  ;;  %v4716_v59 = vadd.s32 536870912, %v4715_v25  ;;  %v4767_v10 = vor.u32 8388608, %v4766_v29 }
 0x676   : > { %v4774_v51 = vsub.s32 32, %v4773_v17  ;;  %v4867_v63 = vshrl.u32 %v4866_v12, 23  ;;  %v10001_v61 = vadd.f32 %v9545_v2, %v9833_v40  ;;  %v4772_v7 = vshrl.u32 %v4771_v35, 5 }
 0x677   : > { %v4625_v14 = vshrl.u32 %v4607_v56, %v4623_v62  ;;  %v4628_v3 = vadd.s32 127, %v4627_v44  ;;  %v10003_v50 = vshrl.u32 %v4716_v59, 30  ;;  %v10005_v4 = vpop.eup %6107  ;;  %v4624_v30 = vshll.u32 %v9943_v37, %v4622_v13 }
 0x678   : > { %11116 = vst [vmem:[#allocation12_spill] sm:$0xff] %v10005_v4  ;;  %v4777_v1 = vshrl.u32 %v10828_v11, %v4774_v51  ;;  %v4780_v34 = vshrl.u32 %v10964_v22, %v4774_v51  ;;  %v4783_v36 = vshrl.u32 %v10965_v21, %v4774_v51  ;;  %v10011_v29 = vpop.eup %6109  ;;  %v4776_v40 = vshll.u32 %v10824_v16, %v4773_v17 }
 0x679   : > { %11117 = vst [vmem:[#allocation20_spill] sm:$0xff] %v10011_v29  ;;  %v4629_v18 = vshll.u32 %v4628_v3, 23  ;;  %v4718_v2 = vshll.u32 %v10003_v50, 30  ;;  %v4782_v33 = vshll.u32 %v10964_v22, %v4773_v17  ;;  %v4626_v58 = vor.u32 %v4625_v14, %v4624_v30 }
 0x67a   : > { %v4779_v0 = vshll.u32 %v10828_v11, %v4773_v17  ;;  %v4785_v37 = vshll.u32 %v10965_v21, %v4773_v17  ;;  %v4786_v12 = vshrl.u32 %v10966_v55, %v4774_v51  ;;  %v4778_v13 = vor.u32 %v4777_v1, %v4776_v40 }
 0x67b   : > { %v4630_v35 = vor.u32 4788187, %v4629_v18  ;;  %v10019_v56 = vsub.s32 %v4715_v25, %v4718_v2  ;;  %v4784_v62 = vor.u32 %v4783_v36, %v4782_v33  ;;  %v10021_v44 = vpop.eup %6111  ;;  %v4788_v39 = vshll.u32 %v10966_v55, %v4773_v17 }
 0x67c   : > { %11118 = vst [vmem:[#allocation38_spill] sm:$0xff] %v10021_v44  ;;  %v4781_v59 = vor.u32 %v4780_v34, %v4779_v0  ;;  %v4787_v3 = vor.u32 %v4786_v12, %v4785_v37  ;;  %v4789_v45 = vshrl.u32 %v10967_v43, %v4774_v51  ;;  %v4807_v60 = vshll.u32 %v4767_v10, 8 }
 0x67d   : > { %v10025_v14 = vpop.eup %6113  ;;  %v4721_v30 = vsub.s32 0, %v10019_v56  ;;  %v5657_v4 = vadd.s32 4294967169, %v4867_v63  ;;  %v11120_v18 = vand.u32 2147483647, %v9843_v24  ;;  %v4633_v36 = vcvt.s32.f32 %v4626_v58 }
 0x67e   : > { %11119 = vst [vmem:[#allocation29_spill] sm:$0xff] %v10025_v14  ;;  %v10032_v1 = vpop.eup %6115  ;;  %vm4657_vm2 = vcmp.lt.s32.totalorder %v9823_v9, 0  ;;  %v4775_v34 = vshrl.u32 %v10824_v16, %v4774_v51  ;;  %v4790_v17 = vor.u32 %v4789_v45, %v4788_v39  ;;  %vm4794_vm11 = vcmp.lt.s32.totalorder %v4772_v7, 4 }
 0x67f   : > { %v10030_v25 = vand.u32 8388607, %v11120_v18  ;;  %11121 = vst [vmem:[#allocation11_spill] sm:$0xff] %v10032_v1  ;;  %v4631_v2 = vand.u32 2147483647, %v4630_v35  ;;  %v5650_v40 = vmin.u32 %v4721_v30, %v10019_v56  ;;  %vm4791_vm6 = vcmp.lt.s32.totalorder %v4772_v7, 1 }
 0x680   : > { %v4796_v33 = vsel %vm4794_vm11, %v4784_v62, 2102212464  ;;  %vm4792_vm10 = vcmp.lt.s32.totalorder %v4772_v7, 2  ;;  %vm4793_vm7 = vcmp.lt.s32.totalorder %v4772_v7, 3  ;;  %v4799_v10 = vsel %vm4791_vm6, %v4778_v13, %v4781_v59 }
 0x681   : > { %v4800_v63 = vsel %vm4794_vm11, %v4787_v3, 920167782  ;;  %v4723_v0 = vclz %v5650_v40  ;;  %v4795_v37 = vsel %vm4791_vm6, %v4775_v34, %v4778_v13  ;;  %v4803_v18 = vsel %vm4791_vm6, %v4781_v59, %v4784_v62 }
 0x682   : > { %v4801_v12 = vsel %vm4793_vm7, %v4784_v62, %v4800_v63  ;;  %v4797_v58 = vsel %vm4793_vm7, %v4781_v59, %v4796_v33  ;;  %v4804_v29 = vsel %vm4794_vm11, %v4790_v17, 1326507024  ;;  %v4873_v51 = vadd.s32 1, %v5657_v4 }
 0x683   : > { %v4802_v1 = vsel %vm4792_vm10, %v4799_v10, %v4801_v12  ;;  %v4711_v39 = vadd.s32 %v9951_v47, %v9964_v28  ;;  %v5651_v45 = vadd.s32 4294967294, %v4723_v0  ;;  %v4741_v35 = vsub.s32 4, %v10003_v50 }
 0x684   : > { %v4805_v30 = vsel %vm4793_vm7, %v4787_v3, %v4804_v29  ;;  %v4634_v54 = vmul.f32 %v4633_v36, %v4631_v2  ;;  %v10042_v14 = vmul.u32.u64.low %v4807_v60, %v4802_v1  ;;  %v10043_v40 = vmul.u32.u64.high %v4807_v60, %v4802_v1, %v10042_v14 }
 0x685   : > { %v4806_v44 = vsel %vm4792_vm10, %v4803_v18, %v4805_v30  ;;  %vm5652_vm14 = vcmp.lt.s32.totalorder %v5651_v45, 0  ;;  %v4798_v13 = vsel %vm4792_vm10, %v4795_v37, %v4797_v58  ;;  %v4871_v47 = vor.u32 8388608, %v10030_v25 }
 0x686   : > { %v10047_v62 = vmul.u32.u64.low %v4807_v60, %v4806_v44  ;;  %v10048_v59 = vmul.u32.u64.high %v4807_v60, %v4806_v44, %v10047_v62  ;;  %v4726_v4 = vsel %vm5652_vm14, 0, %v5651_v45  ;;  %vm4874_vm5 = vcmp.gt.s32.totalorder %v4873_v51, 0 }
 0x687   : > { %v10791_v28 = vand.u32 2147483647, %v10001_v61  ;;  %vm10797_vm8 = vcmp.lt.s32.totalorder %v9728_v23, 0  ;;  %v4727_v29 = vsub.s32 32, %v4726_v4  ;;  %v4731_v3 = vsub.s32 4294967266, %v4726_v4 }
 0x688   : > { %v10056_v1 = vsel %vm4657_vm2, %v4741_v35, %v10003_v50  ;;  %v4875_v7 = vsel %vm4874_vm5, %v4873_v51, 0  ;;  %v4635_v36 = vxor.u32 2147483648, %v4634_v54  ;;  %v4814_v34 = vmul.u32 %v4807_v60, %v4798_v13 }
 0x689   : > { %v4817_v44 = vadd.s32 1, %v10043_v40  ;;  %v4877_v17 = vand.u32 31, %v4875_v7  ;;  %v4728_v25 = vshll.u32 %v10019_v56, %v4726_v4  ;;  %v4729_v2 = vshrl.u32 %v4711_v39, %v4727_v29 }
 0x68a   : > { %v4732_v33 = vadd.s32 127, %v4731_v3  ;;  %vm4816_vm3 = vc.u32 %v10048_v59, %v10042_v14  ;;  %v4876_v63 = vshrl.u32 %v4875_v7, 5  ;;  %v11122_v45 = vand.u32 2147483647, %v9823_v9 }
 0x68b   : > { %v4818_v10 = vsel %vm4816_vm3, %v4817_v44, %v10043_v40  ;;  %v4878_v0 = vsub.s32 32, %v4877_v17  ;;  %v4880_v50 = vshll.u32 %v10824_v16, %v4877_v17  ;;  %v4730_v37 = vor.u32 %v4729_v2, %v4728_v25 }
 0x68c   : > { %v4733_v12 = vshll.u32 %v4732_v33, 23  ;;  %v4819_v18 = vadd.s32 %v4818_v10, %v4814_v34  ;;  %v4883_v60 = vshll.u32 %v10828_v11, %v4877_v17  ;;  %v4886_v51 = vshll.u32 %v10964_v22, %v4877_v17 }
 0x68d   : > { %v4881_v58 = vshrl.u32 %v10828_v11, %v4878_v0  ;;  %v4884_v56 = vshrl.u32 %v10964_v22, %v4878_v0  ;;  %v4887_v39 = vshrl.u32 %v10965_v21, %v4878_v0  ;;  %vm10071_vm11 = vcmp.le.f32.partialorder %v11122_v45, 0.7853982 }
 0x68e   : > { %v4734_v30 = vor.u32 4788187, %v4733_v12  ;;  %v4737_v40 = vcvt.s32.f32 %v4730_v37  ;;  %v4820_v13 = vadd.s32 536870912, %v4819_v18  ;;  %v4889_v62 = vshll.u32 %v10965_v21, %v4877_v17 }
 0x68f   : > { %v4882_v4 = vor.u32 %v4881_v58, %v4880_v50  ;;  %v4885_v29 = vor.u32 %v4884_v56, %v4883_v60  ;;  %v4888_v3 = vor.u32 %v4887_v39, %v4886_v51  ;;  %v4890_v7 = vshrl.u32 %v10966_v55, %v4878_v0 }
 0x690   : > { %v11125_v34 = vand.u32 2147483647, %v9728_v23  ;;  %v4735_v25 = vand.u32 2147483647, %v4734_v30  ;;  %v10083_v2 = vshrl.u32 %v4820_v13, 30  ;;  %v4892_v33 = vshll.u32 %v10966_v55, %v4877_v17 }
 0x691   : > { %v4893_v10 = vshrl.u32 %v10967_v43, %v4878_v0  ;;  %v4636_v50 = vsel %vm10797_vm8, %v4635_v36, %v4634_v54  ;;  %v4879_v37 = vshrl.u32 %v10824_v16, %v4878_v0  ;;  %v4891_v12 = vor.u32 %v4890_v7, %v4889_v62 }
 0x692   : > { %vm10079_vm6 = vcmp.le.f32.partialorder %v11125_v34, 0.7853982  ;;  %11128 = vst [vmem:[#allocation37_spill] sm:$0xff] %v10083_v2  ;;  %vm4895_vm10 = vcmp.lt.s32.totalorder %v4876_v63, 1  ;;  %v4738_v60 = vmul.f32 %v4737_v40, %v4735_v25  ;;  %v4822_v58 = vshll.u32 %v10083_v2, 30 }
 0x693   : > { %v4894_v56 = vor.u32 %v4893_v10, %v4892_v33  ;;  %vm4898_vm7 = vcmp.lt.s32.totalorder %v4876_v63, 4  ;;  %vm4897_vm14 = vcmp.lt.s32.totalorder %v4876_v63, 3  ;;  %v4903_v39 = vsel %vm4895_vm10, %v4882_v4, %v4885_v29 }
 0x694   : > { %v4900_v51 = vsel %vm4898_vm7, %v4888_v3, 2102212464  ;;  %v4904_v45 = vsel %vm4898_vm7, %v4891_v12, 920167782  ;;  %v4739_v17 = vxor.u32 2147483648, %v4738_v60  ;;  %v10092_v30 = vsub.s32 %v4819_v18, %v4822_v58 }
 0x695   : > { %vm4896_vm5 = vcmp.lt.s32.totalorder %v4876_v63, 2  ;;  %v4905_v13 = vsel %vm4897_vm14, %v4888_v3, %v4904_v45  ;;  %v4907_v36 = vsel %vm4895_vm10, %v4885_v29, %v4888_v3  ;;  %v4908_v0 = vsel %vm4898_vm7, %v4894_v56, 1326507024 }
 0x696   : > { %v4906_v54 = vsel %vm4896_vm5, %v4903_v39, %v4905_v13  ;;  %v4911_v40 = vshll.u32 %v4871_v47, 8  ;;  %v4825_v62 = vsub.s32 0, %v10092_v30  ;;  %v4899_v7 = vsel %vm4895_vm10, %v4879_v37, %v4882_v4  ;;  %v3687_v39 = vpop.permute.xlu0 %3686 }
 0x697   : > { %v4901_v34 = vsel %vm4897_vm14, %v4885_v29, %v4900_v51  ;;  %v4909_v25 = vsel %vm4897_vm14, %v4891_v12, %v4908_v0  ;;  %v4744_v33 = vsel %vm10071_vm11, 0, %v10056_v1  ;;  %v4740_v3 = vsel %vm4657_vm2, %v4739_v17, %v4738_v60 }
 0x698   : > { %v4910_v18 = vsel %vm4896_vm5, %v4907_v36, %v4909_v25  ;;  %v10102_v10 = vmul.u32.u64.low %v4911_v40, %v4906_v54  ;;  %v10103_v58 = vmul.u32.u64.high %v4911_v40, %v4906_v54, %v10102_v10  ;;  %v5654_v47 = vmin.u32 %v4825_v62, %v10092_v30 }
 0x699   : > { %v10108_v56 = vmul.u32.u64.low %v4911_v40, %v4910_v18  ;;  %v10109_v45 = vmul.u32.u64.high %v4911_v40, %v4910_v18, %v10108_v56  ;;  %v4639_v4 = vsel %vm10079_vm6, %v9728_v23, %v4636_v50  ;;  %v4902_v1 = vsel %vm4896_vm5, %v4899_v7, %v4901_v34 }
 0x69a   : > { %v4970_v29 = vand.u32 2139095040, %v10001_v61  ;;  %v10117_v37 = vadd.f32 %v9648_v52, %v3687_v39  ;;  %6117 = vsinq.f32 %v9989_v19  ;;  %v11129_v12 = vsel %vm9937_vm13, 0, %v9960_v32 }
 0x69b   : > { %v10124_v60 = vadd.s32 3, %v11129_v12  ;;  %v10126_v51 = vadd.s32 3, %v4744_v33  ;;  %v4827_v17 = vclz %v5654_v47  ;;  %v4743_v63 = vsel %vm10071_vm11, %v9823_v9, %v4740_v3 }
 0x69c   : > { %v4921_v50 = vadd.s32 1, %v10103_v58  ;;  %v4971_v13 = vshrl.u32 %v4970_v29, 23  ;;  %v4974_v52 = vand.u32 8388607, %v10791_v28  ;;  %6119 = vcosq.f32 %v4639_v4 }
 0x69d   : > { %11130 = vst [vmem:[#allocation24_spill] sm:$0xff] %v10126_v51  ;;  %v5655_v19 = vadd.s32 4294967294, %v4827_v17  ;;  %v4918_v46 = vmul.u32 %v4911_v40, %v4902_v1  ;;  %vm4920_vm13 = vc.u32 %v10109_v45, %v10102_v10  ;;  %6121 = vsinq.f32 %v4639_v4 }
 0x69e   : > { %v4922_v32 = vsel %vm4920_vm13, %v4921_v50, %v10103_v58  ;;  %v5661_v54 = vadd.s32 4294967169, %v4971_v13  ;;  %v10790_v36 = vand.u32 2147483647, %v10117_v37  ;;  %6123 = vcosq.f32 %v4743_v63 }
 0x69f   : > { %v4815_v35 = vadd.s32 %v10042_v14, %v10048_v59  ;;  %vm5656_vm2 = vcmp.lt.s32.totalorder %v5655_v19, 0  ;;  %v4923_v0 = vadd.s32 %v4922_v32, %v4918_v46  ;;  %6125 = vsinq.f32 %v4743_v63 }
 0x6a0   : > { %v4830_v62 = vsel %vm5656_vm2, 0, %v5655_v19  ;;  %v4975_v7 = vor.u32 8388608, %v4974_v52  ;;  %v4977_v34 = vadd.s32 1, %v5661_v54  ;;  %v10140_v18 = vadd.f32 %v9723_v41, %v3687_v39 }
 0x6a1   : > { %v4831_v25 = vsub.s32 32, %v4830_v62  ;;  %v4835_v40 = vsub.s32 4294967266, %v4830_v62  ;;  %v4924_v33 = vadd.s32 536870912, %v4923_v0  ;;  %v4832_v58 = vshll.u32 %v10092_v30, %v4830_v62 }
 0x6a2   : > { %vm4978_vm3 = vcmp.gt.s32.totalorder %v4977_v34, 0  ;;  %v5074_v3 = vand.u32 2139095040, %v10117_v37  ;;  %v10146_v14 = vand.u32 8388607, %v10790_v36  ;;  %vm4865_vm11 = vcmp.lt.s32.totalorder %v9843_v24, 0 }
 0x6a3   : > { %v4833_v59 = vshrl.u32 %v4815_v35, %v4831_v25  ;;  %v4836_v47 = vadd.s32 127, %v4835_v40  ;;  %v4925_v56 = vshrl.u32 %v4924_v33, 30  ;;  %v4979_v4 = vsel %vm4978_vm3, %v4977_v34, 0 }
 0x6a4   : > { %v10150_v1 = vadd.s32 %v10102_v10, %v10109_v45  ;;  %v4981_v41 = vand.u32 31, %v4979_v4  ;;  %v10152_v39 = vshll.u32 %v4975_v7, 8  ;;  %v10155_v29 = vpop.eup %6117  ;;  %vm4761_vm10 = vcmp.lt.s32.totalorder %v9839_v20, 0 }
 0x6a5   : > { %v4834_v12 = vor.u32 %v4833_v59, %v4832_v58  ;;  %v4837_v17 = vshll.u32 %v4836_v47, 23  ;;  %v4926_v63 = vshll.u32 %v4925_v56, 30  ;;  %v10159_v13 = vshrl.u32 %v4979_v4, 5 }
 0x6a6   : > { %v4982_v52 = vsub.s32 32, %v4981_v41  ;;  %v5075_v19 = vshrl.u32 %v5074_v3, 23  ;;  %v10162_v45 = vpop.eup %6119  ;;  %v11131_v32 = vand.u32 2147483647, %v9843_v24  ;;  %v4949_v62 = vsub.s32 4, %v4925_v56 }
 0x6a7   : > { %v4838_v46 = vor.u32 4788187, %v4837_v17  ;;  %v10170_v35 = vsub.s32 %v4923_v0, %v4926_v63  ;;  %v4984_v7 = vshll.u32 %v10824_v16, %v4981_v41  ;;  %v10173_v34 = vpop.eup %6121  ;;  %v4987_v40 = vshll.u32 %v10828_v11, %v4981_v41 }
 0x6a8   : > { %vm10166_vm7 = vcmp.le.f32.partialorder %v11131_v32, 0.7853982  ;;  %v4985_v25 = vshrl.u32 %v10828_v11, %v4982_v52  ;;  %v4988_v33 = vshrl.u32 %v10964_v22, %v4982_v52  ;;  %v4990_v58 = vshll.u32 %v10964_v22, %v4981_v41  ;;  %v10179_v3 = vpop.eup %6123 }
 0x6a9   : > { %11134 = vst [vmem:[#allocation36_spill] sm:$0xff] %v10179_v3  ;;  %v11135_v59 = vand.u32 2147483647, %v9839_v20  ;;  %v11136_v0 = vmov 0  ;;  %v4839_v47 = vand.u32 2147483647, %v4838_v46  ;;  %v4841_v4 = vcvt.s32.f32 %v4834_v12  ;;  %v10189_v32 = vpop.eup %6125 }
 0x6aa   : > { %v4929_v17 = vsub.s32 0, %v10170_v35  ;;  %v4991_v63 = vshrl.u32 %v10965_v21, %v4982_v52  ;;  %11139 = vst [vmem:[#allocation30_spill] sm:$0xff] %v10189_v32  ;;  %v4986_v36 = vor.u32 %v4985_v25, %v4984_v7  ;;  %v4989_v28 = vor.u32 %v4988_v33, %v4987_v40 }
 0x6ab   : > { %vm10183_vm14 = vcmp.le.f32.partialorder %v11135_v59, 0.7853982  ;;  %v4993_v30 = vshll.u32 %v10965_v21, %v4981_v41  ;;  %v4994_v50 = vshrl.u32 %v10966_v55, %v4982_v52  ;;  %v4842_v10 = vmul.f32 %v4841_v4, %v4839_v47 }
 0x6ac   : > { %v11137_v0 = vsel %vm10183_vm14, 4294967295, %v11136_v0  ;;  %v5658_v59 = vmin.u32 %v4929_v17, %v10170_v35  ;;  %v4992_v9 = vor.u32 %v4991_v63, %v4990_v58  ;;  %v5665_v3 = vadd.s32 4294967169, %v5075_v19 }
 0x6ad   : > { %11138 = vst [vmem:[#allocation16_spill] sm:$0xff] %v11137_v0  ;;  %v4950_v12 = vsel %vm4865_vm11, %v4949_v62, %v4925_v56  ;;  %v4995_v46 = vor.u32 %v4994_v50, %v4993_v30  ;;  %v4996_v51 = vshll.u32 %v10966_v55, %v4981_v41  ;;  %v4997_v2 = vshrl.u32 %v10967_v43, %v4982_v52 }
 0x6ae   : > { %v4843_v32 = vxor.u32 2147483648, %v4842_v10  ;;  %v4931_v7 = vclz %v5658_v59  ;;  %v4983_v25 = vshrl.u32 %v10824_v16, %v4982_v52  ;;  %vm4999_vm5 = vcmp.lt.s32.totalorder %v10159_v13, 1 }
 0x6af   : > { %v4998_v40 = vor.u32 %v4997_v2, %v4996_v51  ;;  %vm5001_vm13 = vcmp.lt.s32.totalorder %v10159_v13, 3  ;;  %vm5002_vm2 = vcmp.lt.s32.totalorder %v10159_v13, 4  ;;  %v5007_v19 = vsel %vm4999_vm5, %v4986_v36, %v4989_v28 }
 0x6b0   : > { %v4844_v56 = vsel %vm4761_vm10, %v4843_v32, %v4842_v10  ;;  %v5659_v30 = vadd.s32 4294967294, %v4931_v7  ;;  %v5004_v50 = vsel %vm5002_vm2, %v4992_v9, 2102212464  ;;  %v5008_v41 = vsel %vm5002_vm2, %v4995_v46, 920167782 }
 0x6b1   : > { %v4952_v62 = vsel %vm10166_vm7, 0, %v4950_v12  ;;  %vm5000_vm3 = vcmp.lt.s32.totalorder %v10159_v13, 2  ;;  %v5009_v52 = vsel %vm5001_vm13, %v4992_v9, %v5008_v41  ;;  %v5011_v2 = vsel %vm4999_vm5, %v4989_v28, %v4992_v9 }
 0x6b2   : > { %vm5660_vm8 = vcmp.lt.s32.totalorder %v5659_v30, 0  ;;  %v5003_v51 = vsel %vm4999_vm5, %v4983_v25, %v4986_v36  ;;  %v5010_v33 = vsel %vm5000_vm3, %v5007_v19, %v5009_v52  ;;  %v5012_v58 = vsel %vm5002_vm2, %v4998_v40, 1326507024 }
 0x6b3   : > { %v4847_v10 = vsel %vm10183_vm14, %v9839_v20, %v4844_v56  ;;  %v4934_v47 = vsel %vm5660_vm8, 0, %v5659_v30  ;;  %v5005_v4 = vsel %vm5001_vm13, %v4989_v28, %v5004_v50  ;;  %v5013_v17 = vsel %vm5001_vm13, %v4995_v46, %v5012_v58 }
 0x6b4   : > { %v4935_v63 = vsub.s32 32, %v4934_v47  ;;  %v4936_v9 = vshll.u32 %v10170_v35, %v4934_v47  ;;  %v4939_v32 = vsub.s32 4294967266, %v4934_v47  ;;  %v5014_v36 = vsel %vm5000_vm3, %v5011_v2, %v5013_v17 }
 0x6b5   : > { %v10222_v59 = vmul.u32.u64.low %v10152_v39, %v5014_v36  ;;  %v10223_v12 = vmul.u32.u64.high %v10152_v39, %v5014_v36, %v10222_v59  ;;  %v10226_v7 = vmul.u32.u64.low %v10152_v39, %v5010_v33  ;;  %v10227_v25 = vmul.u32.u64.high %v10152_v39, %v5010_v33, %v10226_v7 }
 0x6b6   : > { %v4937_v28 = vshrl.u32 %v10150_v1, %v4935_v63  ;;  %v4940_v40 = vadd.s32 127, %v4939_v32  ;;  %v5081_v46 = vadd.s32 1, %v5665_v3  ;;  %v5178_v19 = vand.u32 2139095040, %v10140_v18 }
 0x6b7   : > { %6127 = vcosq.f32 %v4847_v10  ;;  %v10232_v35 = vadd.s32 3, %v4952_v62  ;;  %v5006_v56 = vsel %vm5000_vm3, %v5003_v51, %v5005_v4  ;;  %v11141_v30 = vor.u32 8388608, %v10146_v14 }
 0x6b8   : > { %6129 = vsinq.f32 %v4847_v10  ;;  %v4938_v41 = vor.u32 %v4937_v28, %v4936_v9  ;;  %v4941_v52 = vshll.u32 %v4940_v40, 23  ;;  %vm5082_vm8 = vcmp.gt.s32.totalorder %v5081_v46, 0 }
 0x6b9   : > { %11140 = vst [vmem:[#allocation22_spill] sm:$0xff] %v10232_v35  ;;  %v10238_v50 = vshll.u32 %v11141_v30, 8  ;;  %vm5024_vm5 = vc.u32 %v10223_v12, %v10226_v7  ;;  %v5025_v1 = vadd.s32 1, %v10227_v25  ;;  %v5083_v3 = vsel %vm5082_vm8, %v5081_v46, 0 }
 0x6ba   : > { %v5179_v2 = vshrl.u32 %v5178_v19, 23  ;;  %v4942_v62 = vor.u32 4788187, %v4941_v52  ;;  %v5022_v33 = vmul.u32 %v10152_v39, %v5006_v56  ;;  %v5085_v13 = vand.u32 31, %v5083_v3 }
 0x6bb   : > { %v11142_v51 = vand.u32 2147483647, %v10140_v18  ;;  %v4945_v58 = vcvt.s32.f32 %v4938_v41  ;;  %v5026_v10 = vsel %vm5024_vm5, %v5025_v1, %v10227_v25  ;;  %v11143_v47 = vsub.s32 4, %v9442_v15 }
 0x6bc   : > { %v4943_v63 = vand.u32 2147483647, %v4942_v62  ;;  %v5027_v9 = vadd.s32 %v5026_v10, %v5022_v33  ;;  %v5084_v32 = vshrl.u32 %v5083_v3, 5  ;;  %v5086_v39 = vsub.s32 32, %v5085_v13 }
 0x6bd   : > { %v10246_v14 = vand.u32 8388607, %v11142_v51  ;;  %v4014_v4 = vsel %vm3929_vm4, %v11143_v47, %v9442_v15  ;;  %v5088_v36 = vshll.u32 %v10824_v16, %v5085_v13  ;;  %v5091_v59 = vshll.u32 %v10828_v11, %v5085_v13 }
 0x6be   : > { %v5094_v28 = vshll.u32 %v10964_v22, %v5085_v13  ;;  %v5669_v40 = vadd.s32 4294967169, %v5179_v2  ;;  %v4946_v25 = vmul.f32 %v4945_v58, %v4943_v63  ;;  %v5028_v46 = vadd.s32 536870912, %v5027_v9 }
 0x6bf   : > { %v5089_v19 = vshrl.u32 %v10828_v11, %v5086_v39  ;;  %v5097_v56 = vshll.u32 %v10965_v21, %v5085_v13  ;;  %v5092_v15 = vshrl.u32 %v10964_v22, %v5086_v39  ;;  %v5095_v30 = vshrl.u32 %v10965_v21, %v5086_v39 }
 0x6c0   : > { %v5098_v41 = vshrl.u32 %v10966_v55, %v5086_v39  ;;  %v5101_v52 = vshrl.u32 %v10967_v43, %v5086_v39  ;;  %v4947_v1 = vxor.u32 2147483648, %v4946_v25  ;;  %v10264_v3 = vshrl.u32 %v5028_v46, 30 }
 0x6c1   : > { %v5090_v62 = vor.u32 %v5089_v19, %v5088_v36  ;;  %v5100_v2 = vshll.u32 %v10966_v55, %v5085_v13  ;;  %v10267_v33 = vpop.eup %6127  ;;  %v5093_v51 = vor.u32 %v5092_v15, %v5091_v59  ;;  %v5096_v58 = vor.u32 %v5095_v30, %v5094_v28 }
 0x6c2   : > { %v5099_v10 = vor.u32 %v5098_v41, %v5097_v56  ;;  %v5183_v47 = vor.u32 8388608, %v10246_v14  ;;  %v10270_v63 = vpop.eup %6129  ;;  %v5030_v17 = vshll.u32 %v10264_v3, 30  ;;  %v5087_v35 = vshrl.u32 %v10824_v16, %v5086_v39 }
 0x6c3   : > { %v5102_v0 = vor.u32 %v5101_v52, %v5100_v2  ;;  %vm5103_vm4 = vcmp.lt.s32.totalorder %v5084_v32, 1  ;;  %v4948_v36 = vsel %vm4865_vm11, %v4947_v1, %v4946_v25  ;;  %vm5104_vm13 = vcmp.lt.s32.totalorder %v5084_v32, 2 }
 0x6c4   : > { %vm5106_vm2 = vcmp.lt.s32.totalorder %v5084_v32, 4  ;;  %v5111_v13 = vsel %vm5103_vm4, %v5090_v62, %v5093_v51  ;;  %v10276_v46 = vsub.s32 %v5027_v9, %v5030_v17  ;;  %vm5105_vm3 = vcmp.lt.s32.totalorder %v5084_v32, 3 }
 0x6c5   : > { %v5108_v59 = vsel %vm5106_vm2, %v5096_v58, 2102212464  ;;  %v5112_v28 = vsel %vm5106_vm2, %v5099_v10, 920167782  ;;  %v5107_v14 = vsel %vm5103_vm4, %v5087_v35, %v5090_v62  ;;  %v5115_v15 = vsel %vm5103_vm4, %v5093_v51, %v5096_v58 }
 0x6c6   : > { %v5109_v19 = vsel %vm5105_vm3, %v5093_v51, %v5108_v59  ;;  %v5113_v56 = vsel %vm5105_vm3, %v5096_v58, %v5112_v28  ;;  %v5033_v30 = vsub.s32 0, %v10276_v46  ;;  %v5116_v41 = vsel %vm5106_vm2, %v5102_v0, 1326507024 }
 0x6c7   : > { %v5114_v39 = vsel %vm5104_vm13, %v5111_v13, %v5113_v56  ;;  %v4016_v25 = vsel %vm9664_vm15, 0, %v4014_v4  ;;  %v4951_v17 = vsel %vm10166_vm7, %v9843_v24, %v4948_v36  ;;  %v5117_v9 = vsel %vm5105_vm3, %v5099_v10, %v5116_v41 }
 0x6c8   : > { %v10286_v52 = vmul.u32.u64.low %v10238_v50, %v5114_v39  ;;  %v10287_v1 = vmul.u32.u64.high %v10238_v50, %v5114_v39, %v10286_v52  ;;  %v5662_v35 = vmin.u32 %v5033_v30, %v10276_v46  ;;  %v5110_v62 = vsel %vm5104_vm13, %v5107_v14, %v5109_v19 }
 0x6c9   : > { %v5118_v2 = vsel %vm5104_vm13, %v5115_v15, %v5117_v9  ;;  %v5185_v0 = vadd.s32 1, %v5669_v40  ;;  %v4020_v51 = vadd.s32 3, %v4016_v25  ;;  %v4221_v54 = vsub.s32 4, %v9596_v27 }
 0x6ca   : > { %v10294_v31 = vmul.u32.u64.low %v10238_v50, %v5118_v2  ;;  %v10295_v4 = vmul.u32.u64.high %v10238_v50, %v5118_v2, %v10294_v31  ;;  %v5023_v58 = vadd.s32 %v10226_v7, %v10223_v12  ;;  %v5035_v10 = vclz %v5662_v35 }
 0x6cb   : > { %vm5186_vm15 = vcmp.gt.s32.totalorder %v5185_v0, 0  ;;  %v4027_v36 = vxor.u32 2147483648, %v9745_v48  ;;  %6131 = vcosq.f32 %v4951_v17  ;;  %v5129_v13 = vadd.s32 1, %v10287_v1 }
 0x6cc   : > { %v5187_v32 = vsel %vm5186_vm15, %v5185_v0, 0  ;;  %v10305_v40 = vsel %vm4137_vm9, %v4221_v54, %v9596_v27  ;;  %6133 = vsinq.f32 %v4951_v17  ;;  %v5663_v59 = vadd.s32 4294967294, %v5035_v10 }
 0x6cd   : > { %v5126_v28 = vmul.u32 %v10238_v50, %v5110_v62  ;;  %v5189_v14 = vand.u32 31, %v5187_v32  ;;  %vm5128_vm11 = vc.u32 %v10295_v4, %v10286_v52  ;;  %v10310_v12 = vshrl.u32 %v5187_v32, 5 }
 0x6ce   : > { %v10312_v7 = vshll.u32 %v5183_v47, 8  ;;  %v10314_v19 = vand.u32 3, %v4020_v51  ;;  %vm5664_vm7 = vcmp.lt.s32.totalorder %v5663_v59, 0  ;;  %v5130_v56 = vsel %vm5128_vm11, %v5129_v13, %v10287_v1 }
 0x6cf   : > { %v5190_v15 = vsub.s32 32, %v5189_v14  ;;  %v4224_v27 = vsel %vm9755_vm12, 0, %v10305_v40  ;;  %v5038_v30 = vsel %vm5664_vm7, 0, %v5663_v59  ;;  %v5131_v50 = vadd.s32 %v5130_v56, %v5126_v28 }
 0x6d0   : > { %v5192_v39 = vshll.u32 %v10824_v16, %v5189_v14  ;;  %v5195_v41 = vshll.u32 %v10828_v11, %v5189_v14  ;;  %v5039_v25 = vsub.s32 32, %v5038_v30  ;;  %v5040_v47 = vshll.u32 %v10276_v46, %v5038_v30 }
 0x6d1   : > { %v5043_v17 = vsub.s32 4294967266, %v5038_v30  ;;  %v5198_v9 = vshll.u32 %v10964_v22, %v5189_v14  ;;  %v5132_v35 = vadd.s32 536870912, %v5131_v50  ;;  %v5193_v1 = vshrl.u32 %v10828_v11, %v5190_v15 }
 0x6d2   : > { %v5196_v62 = vshrl.u32 %v10964_v22, %v5190_v15  ;;  %v5199_v2 = vshrl.u32 %v10965_v21, %v5190_v15  ;;  %v5041_v0 = vshrl.u32 %v5023_v58, %v5039_v25  ;;  %v5201_v51 = vshll.u32 %v10965_v21, %v5189_v14 }
 0x6d3   : > { %v5044_v31 = vadd.s32 127, %v5043_v17  ;;  %v5202_v54 = vshrl.u32 %v10966_v55, %v5190_v15  ;;  %v10329_v10 = vshrl.u32 %v5132_v35, 30  ;;  %v5191_v46 = vshrl.u32 %v10824_v16, %v5190_v15 }
 0x6d4   : > { %v5194_v13 = vor.u32 %v5193_v1, %v5192_v39  ;;  %v5200_v32 = vor.u32 %v5199_v2, %v5198_v9  ;;  %vm4023_vm9 = vcmp.eq.s32.totalorder %v10314_v19, 0  ;;  %v5042_v59 = vor.u32 %v5041_v0, %v5040_v47 }
 0x6d5   : > { %v5045_v11 = vshll.u32 %v5044_v31, 23  ;;  %v5197_v28 = vor.u32 %v5196_v62, %v5195_v41  ;;  %v5203_v22 = vor.u32 %v5202_v54, %v5201_v51  ;;  %v10333_v56 = vpop.eup %6131  ;;  %vm4969_vm8 = vcmp.lt.s32.totalorder %v10001_v61, 0 }
 0x6d6   : > { %v5134_v21 = vshll.u32 %v10329_v10, 30  ;;  %v5204_v58 = vshll.u32 %v10966_v55, %v5189_v14  ;;  %v5205_v30 = vshrl.u32 %v10967_v43, %v5190_v15  ;;  %vm5207_vm5 = vcmp.lt.s32.totalorder %v10310_v12, 1  ;;  %v10341_v16 = vpop.eup %6133 }
 0x6d7   : > { %vm4022_vm4 = vcmp.lt.s32.totalorder %v10314_v19, 2  ;;  %v11144_v39 = vand.u32 2147483647, %v10001_v61  ;;  %v5046_v25 = vor.u32 4788187, %v5045_v11  ;;  %v5049_v47 = vcvt.s32.f32 %v5042_v59 }
 0x6d8   : > { %vm5209_vm2 = vcmp.lt.s32.totalorder %v10310_v12, 3  ;;  %vm5210_vm3 = vcmp.lt.s32.totalorder %v10310_v12, 4  ;;  %v10351_v55 = vsub.s32 %v5131_v50, %v5134_v21  ;;  %v5206_v43 = vor.u32 %v5205_v30, %v5204_v58 }
 0x6d9   : > { %vm10345_vm13 = vcmp.le.f32.partialorder %v11144_v39, 0.7853982  ;;  %v5211_v14 = vsel %vm5207_vm5, %v5191_v46, %v5194_v13  ;;  %v5212_v15 = vsel %vm5210_vm3, %v5200_v32, 2102212464  ;;  %v5047_v17 = vand.u32 2147483647, %v5046_v25 }
 0x6da   : > { %v5213_v9 = vsel %vm5209_vm2, %v5197_v28, %v5212_v15  ;;  %v5215_v35 = vsel %vm5207_vm5, %v5194_v13, %v5197_v28  ;;  %v5216_v1 = vsel %vm5210_vm3, %v5203_v22, 920167782  ;;  %vm4019_vm15 = vweird.f32 %v9314_v57 }
 0x6db   : > { %v5137_v50 = vsub.s32 0, %v10351_v55  ;;  %vm5208_vm11 = vcmp.lt.s32.totalorder %v10310_v12, 2  ;;  %v5217_v62 = vsel %vm5209_vm2, %v5200_v32, %v5216_v1  ;;  %v5219_v2 = vsel %vm5207_vm5, %v5197_v28, %v5200_v32 }
 0x6dc   : > { %v5050_v0 = vmul.f32 %v5049_v47, %v5047_v17  ;;  %v5214_v31 = vsel %vm5208_vm11, %v5211_v14, %v5213_v9  ;;  %v5218_v51 = vsel %vm5208_vm11, %v5215_v35, %v5217_v62  ;;  %v5220_v54 = vsel %vm5210_vm3, %v5206_v43, 1326507024 }
 0x6dd   : > { %v5666_v46 = vmin.u32 %v5137_v50, %v10351_v55  ;;  %v5221_v13 = vsel %vm5209_vm2, %v5203_v22, %v5220_v54  ;;  %v10376_v59 = vmul.u32.u64.low %v10312_v7, %v5218_v51  ;;  %v10377_v11 = vmul.u32.u64.high %v10312_v7, %v5218_v51, %v10376_v59  ;;  %v11149_v51 = vld [vmem:[#allocation39_spill] sm:$0xff] }
 0x6de   : > { %v5051_v21 = vxor.u32 2147483648, %v5050_v0  ;;  %v5222_v58 = vsel %vm5208_vm11, %v5219_v2, %v5221_v13  ;;  %v11147_v30 = vxor.u32 2147483648, %v9853_v5  ;;  %vm4026_vm7 = vcmp.eq.s32.totalorder %v10314_v19, 2 }
 0x6df   : > { %v5139_v28 = vclz %v5666_v46  ;;  %v10386_v39 = vmul.u32.u64.low %v10312_v7, %v5222_v58  ;;  %v10387_v25 = vmul.u32.u64.high %v10312_v7, %v5222_v58, %v10386_v39  ;;  %v4028_v12 = vsel %vm4026_vm7, %v4027_v36, %v9853_v5  ;;  %v11150_v46 = vld [vmem:[#allocation34_spill] sm:$0xff] }
 0x6e0   : > { %v4025_v32 = vsel %vm4023_vm9, %v9745_v48, %v11147_v30  ;;  %v5052_v22 = vsel %vm4969_vm8, %v5051_v21, %v5050_v0  ;;  %vm4227_vm5 = vweird.f32 %v9334_v6  ;;  %v4228_v43 = vadd.s32 3, %v4224_v27  ;;  %v11148_v0 = vld [vmem:[#allocation32_spill] sm:$0xff] }
 0x6e1   : > { %v4029_v47 = vsel %vm4022_vm4, %v4025_v32, %v4028_v12  ;;  %v5055_v14 = vsel %vm10345_vm13, %v10001_v61, %v5052_v22  ;;  %v5667_v15 = vadd.s32 4294967294, %v5139_v28  ;;  %v5233_v48 = vadd.s32 1, %v10377_v11 }
 0x6e2   : > { %v4232_v5 = vxor.u32 2147483648, %v9886_v8  ;;  %v5127_v36 = vadd.s32 %v10286_v52, %v10295_v4  ;;  %v5230_v19 = vmul.u32 %v10312_v7, %v5214_v31  ;;  %v4229_v17 = vand.u32 3, %v4228_v43 }
 0x6e3   : > { %v3917_v26 = vand.u32 3, %v9585_v53  ;;  %vm5668_vm9 = vcmp.lt.s32.totalorder %v5667_v15, 0  ;;  %vm5232_vm12 = vc.u32 %v10387_v25, %v10376_v59  ;;  %v4030_v40 = vsel %vm4019_vm15, nan, %v4029_v47  ;;  %v11154_v47 = vld [vmem:[#allocation14_spill] sm:$0xff] }
 0x6e4   : > { %v4235_v27 = vxor.u32 2147483648, %v9881_v38  ;;  %6135 = vcosq.f32 %v5055_v14  ;;  %v5142_v9 = vsel %vm5668_vm9, 0, %v5667_v15  ;;  %v5234_v35 = vsel %vm5232_vm12, %v5233_v48, %v10377_v11  ;;  %v11156_v48 = vld [vmem:[#allocation10_spill] sm:$0xff] }
 0x6e5   : > { %vm4230_vm4 = vcmp.lt.s32.totalorder %v4229_v17, 2  ;;  %v5143_v1 = vsub.s32 32, %v5142_v9  ;;  %v5147_v52 = vsub.s32 4294967266, %v5142_v9  ;;  %v5235_v4 = vadd.s32 %v5234_v35, %v5230_v19  ;;  %v11157_v19 = vld [vmem:[#allocation15_spill] sm:$0xff] }
 0x6e6   : > { %vm4231_vm2 = vcmp.eq.s32.totalorder %v4229_v17, 0  ;;  %v5144_v7 = vshll.u32 %v10351_v55, %v5142_v9  ;;  %vm4234_vm3 = vcmp.eq.s32.totalorder %v4229_v17, 2  ;;  %vm3919_vm11 = vcmp.eq.s32.totalorder %v3917_v26, 0 }
 0x6e7   : > { %v4233_v53 = vsel %vm4231_vm2, %v9881_v38, %v4232_v5  ;;  %v5145_v50 = vshrl.u32 %v5127_v36, %v5143_v1  ;;  %v5148_v57 = vadd.s32 127, %v5147_v52  ;;  %v5236_v62 = vadd.s32 536870912, %v5235_v4 }
 0x6e8   : > { %v4236_v2 = vsel %vm4234_vm3, %v4235_v27, %v9886_v8  ;;  %vm3915_vm15 = vweird.f32 %v11148_v0  ;;  %v3920_v54 = vxor.u32 2147483648, %v11149_v51  ;;  %vm3922_vm7 = vcmp.eq.s32.totalorder %v3917_v26, 2 }
 0x6e9   : > { %v4237_v31 = vsel %vm4230_vm4, %v4233_v53, %v4236_v2  ;;  %v3923_v13 = vxor.u32 2147483648, %v11150_v46  ;;  %v5146_v11 = vor.u32 %v5145_v50, %v5144_v7  ;;  %v5149_v21 = vshll.u32 %v5148_v57, 23  ;;  %v11159_v53 = vld [vmem:[#allocation26_spill] sm:$0xff] }
 0x6ea   : > { %v10421_v55 = vshrl.u32 %v5236_v62, 30  ;;  %v4238_v38 = vsel %vm4227_vm5, nan, %v4237_v31  ;;  %6137 = vsinq.f32 %v5055_v14  ;;  %vm10799_vm9 = vcmp.lt.s32.totalorder %v10117_v37, 0  ;;  %v11155_v14 = vld [vmem:[#allocation18_spill] sm:$0xff] }
 0x6eb   : > { %v5739_v58 = vpack.c.bf16 %v4238_v38, %v4030_v40  ;;  %v3921_v8 = vsel %vm3919_vm11, %v11150_v46, %v3920_v54  ;;  %v3924_v30 = vsel %vm3922_vm7, %v3923_v13, %v11149_v51  ;;  %v5150_v32 = vor.u32 4788187, %v5149_v21  ;;  %v11158_v40 = vld [vmem:[#allocation25_spill] sm:$0xff]  ;;  %v11162_v38 = vld [vmem:[#allocation38_spill] sm:$0xff] }
 0x6ec   : > { %v10430_v28 = vadd.s32 %v10376_v59, %v10387_v25  ;;  %v5238_v39 = vshll.u32 %v10421_v55, 30  ;;  %vm3918_vm12 = vcmp.lt.s32.totalorder %v3917_v26, 2  ;;  %v11151_v12 = vand.u32 2147483647, %v10117_v37  ;;  %v11160_v46 = vld [vmem:[#allocation29_spill] sm:$0xff] }
 0x6ed   : > { %v5153_v22 = vcvt.s32.f32 %v5146_v11  ;;  %5740 = vmatprep.subr.bf16.mxu0 %v5739_v58  ;;  %v4125_v43 = vand.u32 3, %v11154_v47  ;;  %v4128_v15 = vxor.u32 2147483648, %v11155_v14  ;;  %v4131_v5 = vxor.u32 2147483648, %v11156_v48  ;;  %v11163_v47 = vld [vmem:[#allocation27_spill] sm:$0xff] }
 0x6ee   : > { %vm10435_vm4 = vcmp.le.f32.partialorder %v11151_v12, 0.7853982  ;;  %v5151_v36 = vand.u32 2147483647, %v5150_v32  ;;  %v10442_v59 = vsub.s32 %v5235_v4, %v5238_v39  ;;  %v3925_v25 = vsel %vm3918_vm12, %v3921_v8, %v3924_v30  ;;  %v10445_v26 = vpop.eup %6135 }
 0x6ef   : > { %v4429_v17 = vsub.s32 4, %v11157_v19  ;;  %vm4123_vm5 = vweird.f32 %v11158_v40  ;;  %vm4126_vm2 = vcmp.lt.s32.totalorder %v4125_v43, 2  ;;  %vm4127_vm3 = vcmp.eq.s32.totalorder %v4125_v43, 0  ;;  %v11164_v40 = vld [vmem:[#allocation20_spill] sm:$0xff] }
 0x6f0   : > { %vm4130_vm11 = vcmp.eq.s32.totalorder %v4125_v43, 2  ;;  %v5154_v27 = vmul.f32 %v5153_v22, %v5151_v36  ;;  %v5241_v9 = vsub.s32 0, %v10442_v59  ;;  %v4129_v35 = vsel %vm4127_vm3, %v11156_v48, %v4128_v15 }
 0x6f1   : > { %v4132_v1 = vsel %vm4130_vm11, %v4131_v5, %v11155_v14  ;;  %v3926_v52 = vsel %vm3915_vm15, nan, %v3925_v25  ;;  %v4430_v7 = vsel %vm4345_vm1, %v4429_v17, %v11157_v19  ;;  %v4637_v50 = vsub.s32 4, %v11159_v53 }
 0x6f2   : > { %v4133_v4 = vsel %vm4126_vm2, %v4129_v35, %v4132_v1  ;;  %v5155_v57 = vxor.u32 2147483648, %v5154_v27  ;;  %v5670_v62 = vmin.u32 %v5241_v9, %v10442_v59  ;;  %v4432_v31 = vsel %vm9931_vm0, 0, %v4430_v7 }
 0x6f3   : > { %v4134_v2 = vsel %vm4123_vm5, nan, %v4133_v4  ;;  %v4436_v54 = vadd.s32 3, %v4432_v31  ;;  %v4440_v13 = vxor.u32 2147483648, %v11160_v46  ;;  %vm11161_vm15 = vcmp.lt.s32.totalorder %v9728_v23, 0 }
 0x6f4   : > { %v5741_v51 = vpack.c.bf16 %v4134_v2, %v3926_v52  ;;  %v4638_v0 = vsel %vm11161_vm15, %v4637_v50, %v11159_v53  ;;  %v5156_v11 = vsel %vm10799_vm9, %v5155_v57, %v5154_v27  ;;  %v5243_v21 = vclz %v5670_v62  ;;  %v10469_v30 = vpop.eup %6137  ;;  %v11165_v53 = vld [vmem:[#allocation12_spill] sm:$0xff] }
 0x6f5   : > { %v4443_v58 = vxor.u32 2147483648, %v11162_v38  ;;  %v4640_v8 = vsel %vm10079_vm6, 0, %v4638_v0  ;;  %vm4435_vm1 = vweird.f32 %v9483_v49  ;;  %v4437_v42 = vand.u32 3, %v4436_v54 }
 0x6f6   : > { %5742 = vmatpush1.bf16.msra.mxu0 %v5741_v51  ;;  %vm4643_vm0 = vweird.f32 %v9728_v23  ;;  %v4644_v32 = vadd.s32 3, %v4640_v8  ;;  %v5159_v39 = vsel %vm10435_vm4, %v10117_v37, %v5156_v11  ;;  %v5671_v12 = vadd.s32 4294967294, %v5243_v21 }
 0x6f7   : > { %v4648_v22 = vxor.u32 2147483648, %v10173_v34  ;;  %v4333_v43 = vand.u32 3, %v11163_v47  ;;  %vm4438_vm7 = vcmp.lt.s32.totalorder %v4437_v42, 2  ;;  %vm4439_vm6 = vcmp.eq.s32.totalorder %v4437_v42, 0 }
 0x6f8   : > { %vm4442_vm12 = vcmp.eq.s32.totalorder %v4437_v42, 2  ;;  %v4651_v44 = vxor.u32 2147483648, %v10162_v45  ;;  %vm5672_vm5 = vcmp.lt.s32.totalorder %v5671_v12, 0  ;;  %v4441_v14 = vsel %vm4439_vm6, %v11162_v38, %v4440_v13  ;;  %v11170_v13 = vld [vmem:[#allocation11_spill] sm:$0xff] }
 0x6f9   : > { %v4444_v15 = vsel %vm4442_vm12, %v4443_v58, %v11160_v46  ;;  %v4645_v48 = vand.u32 3, %v4644_v32  ;;  %6139 = vcosq.f32 %v5159_v39  ;;  %v5246_v5 = vsel %vm5672_vm5, 0, %v5671_v12  ;;  %v11169_v46 = vld [vmem:[#allocation31_spill] sm:$0xff]  ;;  %v11171_v58 = vld [vmem:[#allocation37_spill] sm:$0xff]  ;;  %v11172_v12 = vld [vmem:[#allocation28_spill] sm:$0xff] }
 0x6fa   : > { %v4445_v36 = vsel %vm4438_vm7, %v4441_v14, %v4444_v15  ;;  %vm4334_vm2 = vcmp.lt.s32.totalorder %v4333_v43, 2  ;;  %v5247_v25 = vsub.s32 32, %v5246_v5  ;;  %v5248_v19 = vshll.u32 %v10442_v59, %v5246_v5 }
 0x6fb   : > { %v5251_v17 = vsub.s32 4294967266, %v5246_v5  ;;  %vm4335_vm3 = vcmp.eq.s32.totalorder %v4333_v43, 0  ;;  %vm4646_vm11 = vcmp.lt.s32.totalorder %v4645_v48, 2  ;;  %vm4647_vm15 = vcmp.eq.s32.totalorder %v4645_v48, 0 }
 0x6fc   : > { %vm4650_vm9 = vcmp.eq.s32.totalorder %v4645_v48, 2  ;;  %v4336_v27 = vxor.u32 2147483648, %v11164_v40  ;;  %v5249_v9 = vshrl.u32 %v10430_v28, %v5247_v25  ;;  %v4649_v1 = vsel %vm4647_vm15, %v10162_v45, %v4648_v22 }
 0x6fd   : > { %v5252_v35 = vadd.s32 127, %v5251_v17  ;;  %v4652_v52 = vsel %vm4650_vm9, %v4651_v44, %v10173_v34  ;;  %v4446_v4 = vsel %vm4435_vm1, nan, %v4445_v36  ;;  %v4339_v50 = vxor.u32 2147483648, %v11165_v53 }
 0x6fe   : > { %v4653_v7 = vsel %vm4646_vm11, %v4649_v1, %v4652_v52  ;;  %v4337_v59 = vsel %vm4335_vm3, %v11165_v53, %v4336_v27  ;;  %v5250_v57 = vor.u32 %v5249_v9, %v5248_v19  ;;  %vm4338_vm7 = vcmp.eq.s32.totalorder %v4333_v43, 2  ;;  %v11174_v27 = vld [vmem:[#allocation24_spill] sm:$0xff] }
 0x6ff   : > { %v5253_v62 = vshll.u32 %v5252_v35, 23  ;;  %v4654_v2 = vsel %vm4643_vm0, nan, %v4653_v7  ;;  %vm5177_vm6 = vcmp.lt.s32.totalorder %v10140_v18, 0  ;;  %v4340_v45 = vsel %vm4338_vm7, %v4339_v50, %v11164_v40  ;;  %v11175_v35 = vld [vmem:[#allocation30_spill] sm:$0xff]  ;;  %v11176_v53 = vld [vmem:[#allocation36_spill] sm:$0xff] }
 0x700   : > { %v5743_v28 = vpack.c.bf16 %v4654_v2, %v4446_v4  ;;  %v4541_v34 = vand.u32 3, %v10124_v60  ;;  %v4544_v49 = vxor.u32 2147483648, %v10155_v29  ;;  %v11166_v31 = vand.u32 2147483647, %v10140_v18 }
 0x701   : > { %v5254_v54 = vor.u32 4788187, %v5253_v62  ;;  %vm4331_vm1 = vweird.f32 %v11169_v46  ;;  %v4341_v23 = vsel %vm4334_vm2, %v4337_v59, %v4340_v45  ;;  %v4547_v0 = vxor.u32 2147483648, %v11170_v13 }
 0x702   : > { %vm10498_vm9 = vcmp.le.f32.partialorder %v11166_v31, 0.7853982  ;;  %v5257_v11 = vcvt.s32.f32 %v5250_v57  ;;  %5744 = vmatprep.subr.bf16.mxu0 %v5743_v28  ;;  %vm4542_vm0 = vcmp.lt.s32.totalorder %v4541_v34, 2  ;;  %vm4543_vm12 = vcmp.eq.s32.totalorder %v4541_v34, 0  ;;  %v11177_v31 = vld [vmem:[#allocation22_spill] sm:$0xff] }
 0x703   : > { %vm4546_vm5 = vcmp.eq.s32.totalorder %v4541_v34, 2  ;;  %v5255_v60 = vand.u32 2147483647, %v5254_v54  ;;  %v4545_v21 = vsel %vm4543_vm12, %v11170_v13, %v4544_v49  ;;  %v4845_v8 = vsub.s32 4, %v11171_v58  ;;  %v10508_v42 = vpop.eup %6139 }
 0x704   : > { %v4548_v38 = vsel %vm4546_vm5, %v4547_v0, %v10155_v29  ;;  %6141 = vsinq.f32 %v5159_v39  ;;  %v4342_v32 = vsel %vm4331_vm1, nan, %v4341_v23  ;;  %vm4539_vm2 = vweird.f32 %v11172_v12 }
 0x705   : > { %v4549_v22 = vsel %vm4542_vm0, %v4545_v21, %v4548_v38  ;;  %v5258_v47 = vmul.f32 %v5257_v11, %v5255_v60  ;;  %v4846_v44 = vsel %vm4761_vm10, %v4845_v8, %v11171_v58  ;;  %v5053_v14 = vsub.s32 4, %v10264_v3  ;;  %v11178_v21 = vld [vmem:[#allocation21_spill] sm:$0xff] }
 0x706   : > { %v4550_v43 = vsel %vm4539_vm2, nan, %v4549_v22  ;;  %v4848_v29 = vsel %vm10183_vm14, 0, %v4846_v44  ;;  %vm4851_vm3 = vweird.f32 %v9839_v20  ;;  %v4856_v39 = vxor.u32 2147483648, %v10270_v63 }
 0x707   : > { %v5745_v15 = vpack.c.bf16 %v4550_v43, %v4342_v32  ;;  %v5259_v5 = vxor.u32 2147483648, %v5258_v47  ;;  %v4852_v36 = vadd.s32 3, %v4848_v29  ;;  %v4859_v25 = vxor.u32 2147483648, %v10267_v33 }
 0x708   : > { %v5054_v19 = vsel %vm4969_vm8, %v5053_v14, %v10264_v3  ;;  %v5064_v40 = vxor.u32 2147483648, %v10469_v30  ;;  %v4749_v9 = vand.u32 3, %v11174_v27  ;;  %v4752_v1 = vxor.u32 2147483648, %v11175_v35 }
 0x709   : > { %5746 = vmatpush1.bf16.msra.mxu0 %v5745_v15  ;;  %v5056_v17 = vsel %vm10345_vm13, 0, %v5054_v19  ;;  %v5260_v52 = vsel %vm5177_vm6, %v5259_v5, %v5258_v47  ;;  %v4853_v4 = vand.u32 3, %v4852_v36  ;;  %v4755_v59 = vxor.u32 2147483648, %v11176_v53 }
 0x70a   : > { %v5060_v7 = vadd.s32 3, %v5056_v17  ;;  %v5263_v3 = vsel %vm10498_vm9, %v10140_v18, %v5260_v52  ;;  %v5067_v41 = vxor.u32 2147483648, %v10445_v26  ;;  %vm4751_vm10 = vcmp.eq.s32.totalorder %v4749_v9, 0  ;;  %v5279_v17 = vld [vmem:[%s10631_s7] sm:$0x1] }
 0x70b   : > { %vm4754_vm14 = vcmp.eq.s32.totalorder %v4749_v9, 2  ;;  %6143 = vcosq.f32 %v5263_v3  ;;  %vm4854_vm8 = vcmp.lt.s32.totalorder %v4853_v4, 2  ;;  %vm4855_vm13 = vcmp.eq.s32.totalorder %v4853_v4, 0 }
 0x70c   : > { %vm4858_vm11 = vcmp.eq.s32.totalorder %v4853_v4, 2  ;;  %6145 = vsinq.f32 %v5263_v3  ;;  %v4857_v50 = vsel %vm4855_vm13, %v10267_v33, %v4856_v39  ;;  %v5061_v62 = vand.u32 3, %v5060_v7 }
 0x70d   : > { %v4860_v57 = vsel %vm4858_vm11, %v4859_v25, %v10270_v63  ;;  %vm5059_vm15 = vweird.f32 %v10001_v61  ;;  %v4753_v28 = vsel %vm4751_vm10, %v11176_v53, %v4752_v1  ;;  %v4756_v45 = vsel %vm4754_vm14, %v4755_v59, %v11175_v35  ;;  %v5284_v1 = vpop.permute.xlu1 %5283 }
 0x70e   : > { %v4861_v2 = vsel %vm4854_vm8, %v4857_v50, %v4860_v57  ;;  %v6142_v34 = vpop.eup %6141  ;;  %vm5063_vm7 = vcmp.eq.s32.totalorder %v5061_v62, 0  ;;  %vm5066_vm1 = vcmp.eq.s32.totalorder %v5061_v62, 2  ;;  %vm4750_vm0 = vcmp.lt.s32.totalorder %v4749_v9, 2 }
 0x70f   : > { %v4862_v49 = vsel %vm4851_vm3, nan, %v4861_v2  ;;  %vm5062_vm12 = vcmp.lt.s32.totalorder %v5061_v62, 2  ;;  %v5065_v33 = vsel %vm5063_vm7, %v10445_v26, %v5064_v40  ;;  %v5068_v63 = vsel %vm5066_vm1, %v5067_v41, %v10469_v30 }
 0x710   : > { %v4957_v54 = vand.u32 3, %v11177_v31  ;;  %v5069_v46 = vsel %vm5062_vm12, %v5065_v33, %v5068_v63  ;;  %v4757_v23 = vsel %vm4750_vm0, %v4753_v28, %v4756_v45  ;;  %v4960_v13 = vxor.u32 2147483648, %v10341_v16 }
 0x711   : > { %v4963_v0 = vxor.u32 2147483648, %v10333_v56  ;;  %v5070_v20 = vsel %vm5059_vm15, nan, %v5069_v46  ;;  %v5261_v30 = vsub.s32 4, %v10421_v55  ;;  %vm4747_vm10 = vweird.f32 %v11178_v21 }
 0x712   : > { %vm4958_vm5 = vcmp.lt.s32.totalorder %v4957_v54, 2  ;;  %vm4959_vm2 = vcmp.eq.s32.totalorder %v4957_v54, 0  ;;  %vm4962_vm3 = vcmp.eq.s32.totalorder %v4957_v54, 2  ;;  %v5747_v11 = vpack.c.bf16 %v5070_v20, %v4862_v49 }
 0x713   : > { %v4961_v60 = vsel %vm4959_vm2, %v10333_v56, %v4960_v13  ;;  %v4964_v26 = vsel %vm4962_vm3, %v4963_v0, %v10341_v16  ;;  %vm4955_vm14 = vweird.f32 %v9843_v24  ;;  %v5157_v58 = vsub.s32 4, %v10329_v10 }
 0x714   : > { %v4965_v38 = vsel %vm4958_vm5, %v4961_v60, %v4964_v26  ;;  %5748 = vmatprep.subr.bf16.mxu0 %v5747_v11  ;;  %v4758_v61 = vsel %vm4747_vm10, nan, %v4757_v23  ;;  %v5262_v32 = vsel %vm5177_vm6, %v5261_v30, %v10421_v55  ;;  %vm11179_vm8 = vcmp.lt.s32.totalorder %v10117_v37, 0 }
 0x715   : > { %v4966_v8 = vsel %vm4955_vm14, nan, %v4965_v38  ;;  %v6144_v12 = vpop.eup %6143  ;;  %v5264_v16 = vsel %vm10498_vm9, 0, %v5262_v32  ;;  %v5158_v22 = vsel %vm11179_vm8, %v5157_v58, %v10329_v10  ;;  %v5168_v55 = vxor.u32 2147483648, %v6142_v34 }
 0x716   : > { %v5749_v56 = vpack.c.bf16 %v4966_v8, %v4758_v61  ;;  %v6146_v24 = vpop.eup %6145  ;;  %v5268_v47 = vadd.s32 3, %v5264_v16  ;;  %v5160_v43 = vsel %vm10435_vm4, 0, %v5158_v22  ;;  %v5275_v14 = vxor.u32 2147483648, %v6144_v12 }
 0x717   : > { %v5272_v44 = vxor.u32 2147483648, %v6146_v24  ;;  %v5164_v15 = vadd.s32 3, %v5160_v43  ;;  %v5171_v39 = vxor.u32 2147483648, %v10508_v42  ;;  %vm5267_vm15 = vweird.f32 %v10140_v18 }
 0x718   : > { %5750 = vmatpush1.bf16.msra.mxu0 %v5749_v56  ;;  %v5269_v48 = vand.u32 3, %v5268_v47  ;;  %vm11180_vm1 = vcmask 1041408   ;;  %vm5163_vm0 = vweird.f32 %v10117_v37  ;;  %vm11182_vm5 = vcmask 408576  }
 0x719   : > { %v5165_v29 = vand.u32 3, %v5164_v15  ;;  %vm11181_vm12 = vmmov %vm11180_vm1  ;;  %v5286_v18 = vlaneseq  ;;  %v6257_v27 = vmov 1966171168  }
 0x71a   : > { %vm5271_vm6 = vcmp.eq.s32.totalorder %v5269_v48, 0  ;;  %vm5274_vm9 = vcmp.eq.s32.totalorder %v5269_v48, 2  ;;  %vm5270_vm13 = vcmp.lt.s32.totalorder %v5269_v48, 2  ;;  %v5374_v9 = vunpack.c.l.s4 %v6257_v27 }
 0x71b   : > { %v5273_v51 = vsel %vm5271_vm6, %v6144_v12, %v5272_v44  ;;  %v5276_v5 = vsel %vm5274_vm9, %v5275_v14, %v6146_v24  ;;  %vm5167_vm11 = vcmp.eq.s32.totalorder %v5165_v29, 0  ;;  %vm5170_vm4 = vcmp.eq.s32.totalorder %v5165_v29, 2 }
 0x71c   : > { %v5277_v10 = vsel %vm5270_vm13, %v5273_v51, %v5276_v5  ;;  %v5169_v6 = vsel %vm5167_vm11, %v10508_v42, %v5168_v55  ;;  %vm5166_vm7 = vcmp.lt.s32.totalorder %v5165_v29, 2  ;;  %v5172_v25 = vsel %vm5170_vm4, %v5171_v39, %v6142_v34 }
 0x71d   : > { %v5278_v36 = vsel %vm5267_vm15, nan, %v5277_v10  ;;  %v5173_v19 = vsel %vm5166_vm7, %v5169_v6, %v5172_v25  ;;  %v5287_v42 = vshrl.u32 %v5286_v18, 7  ;;  %v5375_v52 = vunpack.c.0.s8 %v5374_v9 }
 0x71e   : > { %5673 = vmatprep.subr.msk.mxu0 %vm11180_vm1, %v5278_v36  ;;  %v5174_v40 = vsel %vm5163_vm0, nan, %v5173_v19  ;;  %vm5390_vm2 = vcmp.lt.s32.totalorder %v5286_v18, 256 }
 0x71f   : > { %5674 = vmatpush1.msk.msra.mxu0 %vm11181_vm12, %v5174_v40  ;;  %v5288_v35 = vsub.s32 0, %v5287_v42  ;;  %v5378_v3 = vsub.s32 %v5375_v52, %v5287_v42 }
 0x720   : > { %5675 = vmatmul.mubr.msk.f32.vlgmr.msra.gmra.mrb[14].mxu0 %vm11182_vm5, %v5279_v17 }
 0x721   : > { %v5289_v4 = vrot.slane %v5284_v1, %v5288_v35 }
 0x7f3   : > { %v5365_v37 = vpop.f32.mrb[14].mxu0 }
 0x7f4   : > { %v5366_v7 = vadd.f32 %v5365_v37, %v5289_v4  ;;  %v5367_v53 = vpop.f32.mrb[15].mxu0 }
 0x7f5   : > { %v5368_v59 = vadd.f32 %v5367_v53, %v5289_v4 }
 0x7f7   : > { %v5372_v41 = vcombine.low %v5366_v7, %v5368_v59 }
 0x7f9   : > { %v5379_v50 = vrot.slane %v5372_v41, %v5378_v3 }
 0x7fb   : > { %v5386_v57 = vrot.slane %v5379_v50, %v5378_v3 }
 0x7fd   : > { %5392 = vst.msk [vmem:[%s352_s25] sm:$0x3] %vm5390_vm2, %v5386_v57 }
 0x7fe   : > { %6190 = shalt.err (!%p6187_p3)
}
 0x7ff   : > { %s6191_s28 = scalar_lea.hbm %s10580_s24, 32  ;;  %s6195_s17 = scalar_lea.hbm %s10633_s9, 64 }
 0x800   : > { %p6192_p5 = scmp.ne.s32.totalorder %s10580_s24, %s6191_s28  ;;  %p6196_p9 = scmp.lt.u32.totalorder %s10580_s24, %s10633_s9 }
 0x801   : > { %p6197_p0 = scmp.lt.u32.totalorder %s6195_s17, %s6191_s28  ;;  %p6199_p6 = scmp.lt.u32.totalorder %s6191_s28, %s10580_s24 }
 0x802   : > { %p6193_p7 = pnand %p6192_p5, %p11183_p11 }
 0x803   : > { %p6198_p2 = por %p6197_p0, %p6196_p9 }
 0x804   : > { %p6194_p8 = pneg %p6193_p7 }
 0x805   : > { %p6200_p12 = por %p6199_p6, %p6198_p2 }
 0x807   : > { %p6201_p13 = pnand %p6200_p12, %p6194_p8 }
 0x809   : > { %6204 = shalt.err (!%p6201_p13)
}
 0x80a   : > { %5921 = dma.vmem_to_hbm [thread:$0]  (%p11183_p11), %s10582_s18, 32, %s10580_s24, %s5394_s30  }
 0x80b PF: > { %s5420_s27 = sand.u32 1, %s6231_s11   ;;  %p11184_p4 = scmp.ne.s32.totalorder %s10803_s23, 0 }
 0x80c   : > { %p11185_p10 = scmp.ge.s32.totalorder %s6243_s14, 2  ;;  %s5421_s20 = scalar_lea.sflag [#allocation5], %s5420_s27 }
 0x80e   : > { %p5928_p1 = pnand %p11185_p10, %p11184_p4 }
 0x810   : > { %6226 = dma.done.wait (!%p5928_p1), %s5421_s20, 32  }
 0x811   : > { %6228 = vsyncadd (!%p5928_p1), %s5421_s20, 4294967264  ;;  %p24_p3 = scmp.ge.s32.totalorder %s6337_s16, 4   ;;  %s11186_s11 = smov %s6235_s12 }
 0x812   : > { %s11187_s12 = smov %s6239_s13  ;;  %s11188_s13 = smov %s6349_s19 }
 0x813   : > { %s11189_s14 = smov %s6337_s16  ;;  %26 = sbr.rel (!%p24_p3) target bundleno = 8 (0x8), region = 101 }
 0x81a   :  { %5426 = vsyncpa [#allocation4], 1 }
 0x81b   :  { %5428 = vsyncpa [#allocation4 + $0x1], 1 }
 0x81c   :  { %5429 = vsyncpa [#allocation5], 1 }
 0x81d   :  { %5431 = vsyncpa [#allocation5 + $0x1], 1 }

</bundles_post_ra>
